<compile_context>
chip_gen: v6e
topology: v6e:2x2x1
jax: 0.10.0
libtpu: 0.0.40
codegen_flags: <defaults>
</compile_context>

<pallas_src>
import jax
import jax.numpy as jnp
from jax.experimental import pallas as pl
from jax.experimental.pallas import tpu as pltpu


LANES = 128          # padded channel width for every stage (lane-dense)
NUM_CLASSES = 10


# ---------------------------------------------------------------------------
# Fused whole-network kernel (one batch tile per grid step, all in VMEM)
# ---------------------------------------------------------------------------

def _cnn_fused_kernel(x1_ref, w1_ref, b1_ref, w2_ref, b2_ref, w3_ref, b3_ref,
                      w4_ref, b4_ref, out_ref, s2, s_fc):
    """Full CNN forward for one batch tile.

    x1_ref : (256, TB, 9*Cin)  conv1 im2col operand, rows = (hpar,wpar,hp,wp,b)
    w1_ref : (9*Cin, 128)      conv1 weight, K = (tap, cin), Cout padded (bf16)
    w2_ref : (9, 128, 128)     conv2 per-tap (Cin_pad, Cout_pad) blocks (bf16)
    w3_ref : (2048, 128)       fc1, rows = (h*4+w)*128 + c_pad (bf16)
    w4_ref : (128, 128)        fc2 (bf16)
    b*_ref : (1, 128)          biases, zero-padded (f32)
    out_ref: (TB, 128)         logits, first NUM_CLASSES lanes valid (f32)
    s2     : (10, 10, TB, 128) zero-haloed conv2 input (bf16 scratch)
    s_fc   : (TB, 2048)        flattened fc1 input (f32 scratch)
    """
    TB = x1_ref.shape[1]
    K1 = x1_ref.shape[2]
    f32, bf16 = jnp.float32, jnp.bfloat16

    # ---------------- conv1: taps folded into K, single MXU GEMM ------------
    x1 = x1_ref[...].reshape(256 * TB, K1)                         # bf16
    acc1 = jnp.dot(x1, w1_ref[...], preferred_element_type=f32)    # (256*TB,128)

    # 2x2 max-pool: parity blocks are big aligned row slices -> pure VPU maxes.
    # Bias + ReLU applied after the pool (monotone, so it commutes).
    y = acc1.reshape(2, 2, 64 * TB, LANES)
    m = jnp.maximum(jnp.maximum(y[0, 0], y[0, 1]),
                    jnp.maximum(y[1, 0], y[1, 1]))                 # (64*TB,128)
    p1 = jnp.maximum(m + b1_ref[...], 0.0)                         # f32

    # ---------------- build zero-haloed conv2 input (bf16, aligned stores) --
    zrow = jnp.zeros((1, 10, TB, LANES), bf16)
    zcol = jnp.zeros((8, 1, TB, LANES), bf16)
    s2[0:1, :, :, :] = zrow
    s2[9:10, :, :, :] = zrow
    s2[1:9, 0:1, :, :] = zcol
    s2[1:9, 9:10, :, :] = zcol
    s2[1:9, 1:9, :, :] = p1.reshape(8, 8, TB, LANES).astype(bf16)

    # ---------------- conv2: 9 accumulating GEMMs ----------------------------
    acc2 = None
    for k in range(9):
        di, dj = divmod(k, 3)
        xs = s2[di:di + 8, dj:dj + 8, :, :].reshape(64 * TB, LANES)  # bf16
        t = jnp.dot(xs, w2_ref[k], preferred_element_type=f32)
        acc2 = t if acc2 is None else acc2 + t                     # (64*TB,128)

    # 2x2 max-pool (aligned row-block maxes), then bias + ReLU
    y = acc2.reshape(4, 2, 8 * TB, LANES)
    yh = jnp.maximum(y[:, 0], y[:, 1])                             # (4, 8*TB,128)
    z = yh.reshape(4, 4, 2, TB, LANES)
    m2 = jnp.maximum(z[:, :, 0], z[:, :, 1])                       # (4,4,TB,128)
    p2 = jnp.maximum(m2 + b2_ref[...], 0.0)

    # ---------------- fc1 as ONE GEMM with K = 16*128, then fc2 -------------
    for s in range(16):
        h, w = divmod(s, 4)
        s_fc[:, s * LANES:(s + 1) * LANES] = p2[h, w]              # aligned slab

    a1 = jnp.dot(s_fc[...].astype(bf16), w3_ref[...],
                 preferred_element_type=f32)                       # (TB,128)
    a1 = jnp.maximum(a1 + b3_ref[...], 0.0)

    logits = jnp.dot(a1.astype(bf16), w4_ref[...],
                     preferred_element_type=f32) + b4_ref[...]
    out_ref[...] = logits.astype(out_ref.dtype)


# ---------------------------------------------------------------------------
# Parameter preparation (done once; no per-call transposes / padding)
# ---------------------------------------------------------------------------

def init_params(key, in_ch=4, num_classes=NUM_CLASSES):
    ks = jax.random.split(key, 8)

    def norm(k, shape, scale):
        return jax.random.normal(k, shape, jnp.float32) * scale

    return {
        "conv1_w": norm(ks[0], (8, in_ch, 3, 3), 0.1),
        "conv1_b": norm(ks[1], (8,), 0.01),
        "conv2_w": norm(ks[2], (16, 8, 3, 3), 0.1),
        "conv2_b": norm(ks[3], (16,), 0.01),
        "fc1_w":   norm(ks[4], (32, 16 * 4 * 4), 0.1),
        "fc1_b":   norm(ks[5], (32,), 0.01),
        "fc2_w":   norm(ks[6], (num_classes, 32), 0.1),
        "fc2_b":   norm(ks[7], (num_classes,), 0.01),
    }


def prepare_params(params):
    """Repack PyTorch-layout weights into the kernel's lane-dense layout."""
    f32, bf16 = jnp.float32, jnp.bfloat16
    cin = params["conv1_w"].shape[1]     # 4
    c1 = params["conv1_w"].shape[0]      # 8
    c2 = params["conv2_w"].shape[0]      # 16
    nh = params["fc1_w"].shape[0]        # 32
    ncls = params["fc2_w"].shape[0]      # 10

    def bias(b):
        return jnp.pad(b, (0, LANES - b.shape[0])).reshape(1, LANES).astype(f32)

    # conv1: (Cout,Cin,3,3) -> (9*Cin, 128); K row = (di*3+dj)*Cin + c
    w1 = jnp.transpose(params["conv1_w"], (2, 3, 1, 0)).reshape(9 * cin, c1)
    w1 = jnp.pad(w1, ((0, 0), (0, LANES - c1))).astype(bf16)

    # conv2: (Cout,Cin,3,3) -> (9, 128, 128)
    w2 = jnp.transpose(params["conv2_w"], (2, 3, 1, 0)).reshape(9, c1, c2)
    w2 = jnp.pad(w2, ((0, 0), (0, LANES - c1), (0, LANES - c2))).astype(bf16)

    # fc1: (nh, c2*4*4) -> (16*128, 128); row = (h*4+w)*128 + c_pad
    w3 = params["fc1_w"].reshape(nh, c2, 4, 4)
    w3 = jnp.transpose(w3, (2, 3, 1, 0))                           # (h,w,c,o)
    w3 = jnp.pad(w3, ((0, 0), (0, 0), (0, LANES - c2), (0, LANES - nh)))
    w3 = w3.reshape(16 * LANES, LANES).astype(bf16)

    # fc2: (ncls, nh) -> (128, 128)
    w4 = jnp.pad(params["fc2_w"].T,
                 ((0, LANES - nh), (0, LANES - ncls))).astype(bf16)

    return (w1, bias(params["conv1_b"]), w2, bias(params["conv2_b"]),
            w3, bias(params["fc1_b"]), w4, bias(params["fc2_b"]))


# ---------------------------------------------------------------------------
# Forward pass
# ---------------------------------------------------------------------------

def _batch_tile(B):
    """Adaptive batch tile: multiple of 8, <=32, >=2 grid steps when B allows."""
    if B <= 8:
        return 8
    half = -(-B // 2)
    tb = -(-half // 8) * 8
    return max(8, min(32, tb))


@jax.jit
def cnn_forward(prepared, x):
    """x: (B, 4, 16, 16) NCHW float32 -> logits (B, NUM_CLASSES) float32."""
    w1, b1, w2, b2, w3, b3, w4, b4 = prepared
    B, cin = x.shape[0], x.shape[1]
    TB = _batch_tile(B)
    Bp = -(-B // TB) * TB
    K1 = 9 * cin

    # Wrapper-side glue: NCHW->NHWC, halo pad, conv1 im2col with rows ordered
    # (h_parity, w_parity, h_pool, w_pool, batch) so in-kernel pooling is
    # pure vreg maxes and the conv2-input store is fully aligned.
    xn = jnp.transpose(x.astype(jnp.float32), (0, 2, 3, 1))        # (B,16,16,C)
    xp = jnp.pad(xn, ((0, Bp - B), (1, 1), (1, 1), (0, 0)))        # (Bp,18,18,C)
    wins = [xp[:, di:di + 16, dj:dj + 16, :]
            for di in range(3) for dj in range(3)]
    patches = jnp.concatenate(wins, axis=-1)                       # (Bp,16,16,9C)
    p = patches.reshape(Bp, 8, 2, 8, 2, K1)                        # (b,hp,hq,wp,wq,K)
    p = jnp.transpose(p, (2, 4, 1, 3, 0, 5))                       # (hq,wq,hp,wp,b,K)
    x1 = p.reshape(256, Bp, K1).astype(jnp.bfloat16)

    out = pl.pallas_call(
        _cnn_fused_kernel,
        out_shape=jax.ShapeDtypeStruct((Bp, LANES), jnp.float32),
        grid=(Bp // TB,),
        in_specs=[
            pl.BlockSpec((256, TB, K1),       lambda i: (0, i, 0)),   # im2col x
            pl.BlockSpec((K1, LANES),         lambda i: (0, 0)),      # conv1 w
            pl.BlockSpec((1, LANES),          lambda i: (0, 0)),      # conv1 b
            pl.BlockSpec((9, LANES, LANES),   lambda i: (0, 0, 0)),   # conv2 w
            pl.BlockSpec((1, LANES),          lambda i: (0, 0)),      # conv2 b
            pl.BlockSpec((16 * LANES, LANES), lambda i: (0, 0)),      # fc1 w
            pl.BlockSpec((1, LANES),          lambda i: (0, 0)),      # fc1 b
            pl.BlockSpec((LANES, LANES),      lambda i: (0, 0)),      # fc2 w
            pl.BlockSpec((1, LANES),          lambda i: (0, 0)),      # fc2 b
        ],
        out_specs=pl.BlockSpec((TB, LANES), lambda i: (i, 0)),
        scratch_shapes=[
            pltpu.VMEM((10, 10, TB, LANES), jnp.bfloat16),  # conv2 input (halo)
            pltpu.VMEM((TB, 16 * LANES), jnp.float32),      # flattened fc1 input
        ],
        compiler_params=pltpu.CompilerParams(
            dimension_semantics=("parallel",),
            vmem_limit_bytes=40 * 1024 * 1024),
    )(x1, w1, b1, w2, b2, w3, b3, w4, b4)
    return out[:B, :NUM_CLASSES]


# ---------------------------------------------------------------------------
# Pure-XLA reference (PyTorch semantics) for a correctness check
# ---------------------------------------------------------------------------

def cnn_reference(params, x):
    def conv_relu(x, w, b):
        y = jax.lax.conv_general_dilated(
            x, w, window_strides=(1, 1), padding=((1, 1), (1, 1)),
            dimension_numbers=("NCHW", "OIHW", "NCHW"))
        return jax.nn.relu(y + b[None, :, None, None])

    def pool(x):
        return jax.lax.reduce_window(x, -jnp.inf, jax.lax.max,
                                     (1, 1, 2, 2), (1, 1, 2, 2), "VALID")

    x = pool(conv_relu(x, params["conv1_w"], params["conv1_b"]))
    x = pool(conv_relu(x, params["conv2_w"], params["conv2_b"]))
    x = x.reshape(x.shape[0], -1)
    x = jax.nn.relu(x @ params["fc1_w"].T + params["fc1_b"])
    return x @ params["fc2_w"].T + params["fc2_b"]


if __name__ == "__main__":
    key = jax.random.PRNGKey(0)
    pkey, xkey = jax.random.split(key)
    params = init_params(pkey, in_ch=4, num_classes=NUM_CLASSES)
    prepared = prepare_params(params)

    x = jax.random.normal(xkey, (2, 4, 16, 16), jnp.float32)

    logits = cnn_forward(prepared, x)
    logits = jax.block_until_ready(logits)
    assert logits.shape == (2, NUM_CLASSES) and logits.dtype == jnp.float32

    ref = cnn_reference(params, x)
    err = float(jnp.max(jnp.abs(logits - ref)))
    assert err < 5e-2, f"mismatch vs reference: max abs err {err}"

    print("KERNEL_OK")
</pallas_src>

<mosaic_0001>
module attributes {stable_mosaic.version = 11 : i64} {
  func.func @_cnn_fused_kernel(%arg0: i32, %arg1: memref<256x8x36xbf16, #tpu.memory_space<vmem>>, %arg2: memref<36x128xbf16, #tpu.memory_space<vmem>>, %arg3: memref<1x128xf32, #tpu.memory_space<vmem>>, %arg4: memref<9x128x128xbf16, #tpu.memory_space<vmem>>, %arg5: memref<1x128xf32, #tpu.memory_space<vmem>>, %arg6: memref<2048x128xbf16, #tpu.memory_space<vmem>>, %arg7: memref<1x128xf32, #tpu.memory_space<vmem>>, %arg8: memref<128x128xbf16, #tpu.memory_space<vmem>>, %arg9: memref<1x128xf32, #tpu.memory_space<vmem>>, %arg10: memref<8x128xf32, #tpu.memory_space<vmem>>, %arg11: memref<10x10x8x128xbf16, #tpu.memory_space<vmem>>, %arg12: memref<8x2048xf32, #tpu.memory_space<vmem>>) attributes {dimension_semantics = [#tpu.dimension_semantics<parallel>], iteration_bounds = array<i64: 1>, scalar_prefetch = 0 : i64, scratch_operands = 2 : i64, tpu.core_type = #tpu.core_type<tc>, window_params = [{transform_indices = @transform_0, window_bounds = array<i64: 256, 8, 36>}, {pipeline_mode = #tpu.pipeline_mode<synchronous>, transform_indices = @transform_1, window_bounds = array<i64: 36, 128>}, {pipeline_mode = #tpu.pipeline_mode<synchronous>, transform_indices = @transform_2, window_bounds = array<i64: 1, 128>}, {pipeline_mode = #tpu.pipeline_mode<synchronous>, transform_indices = @transform_3, window_bounds = array<i64: 9, 128, 128>}, {pipeline_mode = #tpu.pipeline_mode<synchronous>, transform_indices = @transform_4, window_bounds = array<i64: 1, 128>}, {pipeline_mode = #tpu.pipeline_mode<synchronous>, transform_indices = @transform_5, window_bounds = array<i64: 2048, 128>}, {pipeline_mode = #tpu.pipeline_mode<synchronous>, transform_indices = @transform_6, window_bounds = array<i64: 1, 128>}, {pipeline_mode = #tpu.pipeline_mode<synchronous>, transform_indices = @transform_7, window_bounds = array<i64: 128, 128>}, {pipeline_mode = #tpu.pipeline_mode<synchronous>, transform_indices = @transform_8, window_bounds = array<i64: 1, 128>}, {transform_indices = @transform_9, window_bounds = array<i64: 8, 128>}]} {
    %c0 = arith.constant 0 : index
    %c0_0 = arith.constant 0 : index
    %c0_1 = arith.constant 0 : index
    %0 = vector.load %arg1[%c0, %c0_0, %c0_1] : memref<256x8x36xbf16, #tpu.memory_space<vmem>>, vector<256x8x36xbf16>
    %1 = vector.shape_cast %0 : vector<256x8x36xbf16> to vector<2048x36xbf16>
    %c0_2 = arith.constant 0 : index
    %c0_3 = arith.constant 0 : index
    %2 = vector.load %arg2[%c0_2, %c0_3] : memref<36x128xbf16, #tpu.memory_space<vmem>>, vector<36x128xbf16>
    %cst = arith.constant dense<0.000000e+00> : vector<2048x128xf32>
    %3 = tpu.matmul %1, %2, %cst {dimension_numbers = #tpu.dot_dimension_numbers<[1], [0], [0], [1], [0, 0, 1, 1], [], []>} : vector<2048x36xbf16>, vector<36x128xbf16>, vector<2048x128xf32> -> vector<2048x128xf32>
    %4 = vector.shape_cast %3 : vector<2048x128xf32> to vector<2x2x512x128xf32>
    %5 = vector.extract_strided_slice %4 {offsets = [0, 0, 0, 0], sizes = [1, 1, 512, 128], strides = [1, 1, 1, 1]} : vector<2x2x512x128xf32> to vector<1x1x512x128xf32>
    %6 = vector.shape_cast %5 : vector<1x1x512x128xf32> to vector<512x128xf32>
    %7 = vector.extract_strided_slice %4 {offsets = [0, 1, 0, 0], sizes = [1, 1, 512, 128], strides = [1, 1, 1, 1]} : vector<2x2x512x128xf32> to vector<1x1x512x128xf32>
    %8 = vector.shape_cast %7 : vector<1x1x512x128xf32> to vector<512x128xf32>
    %9 = arith.maximumf %6, %8 : vector<512x128xf32>
    %10 = vector.extract_strided_slice %4 {offsets = [1, 0, 0, 0], sizes = [1, 1, 512, 128], strides = [1, 1, 1, 1]} : vector<2x2x512x128xf32> to vector<1x1x512x128xf32>
    %11 = vector.shape_cast %10 : vector<1x1x512x128xf32> to vector<512x128xf32>
    %12 = vector.extract_strided_slice %4 {offsets = [1, 1, 0, 0], sizes = [1, 1, 512, 128], strides = [1, 1, 1, 1]} : vector<2x2x512x128xf32> to vector<1x1x512x128xf32>
    %13 = vector.shape_cast %12 : vector<1x1x512x128xf32> to vector<512x128xf32>
    %14 = arith.maximumf %11, %13 : vector<512x128xf32>
    %15 = arith.maximumf %9, %14 : vector<512x128xf32>
    %c0_4 = arith.constant 0 : index
    %c0_5 = arith.constant 0 : index
    %16 = vector.load %arg3[%c0_4, %c0_5] : memref<1x128xf32, #tpu.memory_space<vmem>>, vector<1x128xf32>
    %17 = vector.broadcast %16 : vector<1x128xf32> to vector<512x128xf32>
    %18 = arith.addf %15, %17 : vector<512x128xf32>
    %cst_6 = arith.constant 0.000000e+00 : f32
    %19 = vector.broadcast %cst_6 : f32 to vector<512x128xf32>
    %20 = arith.maximumf %18, %19 : vector<512x128xf32>
    %cst_7 = arith.constant 0.000000e+00 : bf16
    %21 = vector.broadcast %cst_7 : bf16 to vector<1x10x8x128xbf16>
    %cst_8 = arith.constant 0.000000e+00 : bf16
    %22 = vector.broadcast %cst_8 : bf16 to vector<8x1x8x128xbf16>
    %c0_9 = arith.constant 0 : index
    %c0_10 = arith.constant 0 : index
    %c0_11 = arith.constant 0 : index
    %c0_12 = arith.constant 0 : index
    %23 = vector.load %arg11[%c0_9, %c0_10, %c0_11, %c0_12] : memref<10x10x8x128xbf16, #tpu.memory_space<vmem>>, vector<1x10x8x128xbf16>
    tpu.vector_store %arg11[%c0_9, %c0_10, %c0_11, %c0_12], %21 {strides = array<i32>} : memref<10x10x8x128xbf16, #tpu.memory_space<vmem>>, vector<1x10x8x128xbf16>,
    %c9 = arith.constant 9 : index
    %c0_13 = arith.constant 0 : index
    %c0_14 = arith.constant 0 : index
    %c0_15 = arith.constant 0 : index
    %24 = vector.load %arg11[%c9, %c0_13, %c0_14, %c0_15] : memref<10x10x8x128xbf16, #tpu.memory_space<vmem>>, vector<1x10x8x128xbf16>
    tpu.vector_store %arg11[%c9, %c0_13, %c0_14, %c0_15], %21 {strides = array<i32>} : memref<10x10x8x128xbf16, #tpu.memory_space<vmem>>, vector<1x10x8x128xbf16>,
    %c1 = arith.constant 1 : index
    %c0_16 = arith.constant 0 : index
    %c0_17 = arith.constant 0 : index
    %c0_18 = arith.constant 0 : index
    %25 = vector.load %arg11[%c1, %c0_16, %c0_17, %c0_18] : memref<10x10x8x128xbf16, #tpu.memory_space<vmem>>, vector<8x1x8x128xbf16>
    tpu.vector_store %arg11[%c1, %c0_16, %c0_17, %c0_18], %22 {strides = array<i32>} : memref<10x10x8x128xbf16, #tpu.memory_space<vmem>>, vector<8x1x8x128xbf16>,
    %c1_19 = arith.constant 1 : index
    %c9_20 = arith.constant 9 : index
    %c0_21 = arith.constant 0 : index
    %c0_22 = arith.constant 0 : index
    %26 = vector.load %arg11[%c1_19, %c9_20, %c0_21, %c0_22] : memref<10x10x8x128xbf16, #tpu.memory_space<vmem>>, vector<8x1x8x128xbf16>
    tpu.vector_store %arg11[%c1_19, %c9_20, %c0_21, %c0_22], %22 {strides = array<i32>} : memref<10x10x8x128xbf16, #tpu.memory_space<vmem>>, vector<8x1x8x128xbf16>,
    %27 = vector.shape_cast %20 : vector<512x128xf32> to vector<8x8x8x128xf32>
    %28 = arith.truncf %27 : vector<8x8x8x128xf32> to vector<8x8x8x128xbf16>
    %c1_23 = arith.constant 1 : index
    %c1_24 = arith.constant 1 : index
    %c0_25 = arith.constant 0 : index
    %c0_26 = arith.constant 0 : index
    %29 = vector.load %arg11[%c1_23, %c1_24, %c0_25, %c0_26] : memref<10x10x8x128xbf16, #tpu.memory_space<vmem>>, vector<8x8x8x128xbf16>
    tpu.vector_store %arg11[%c1_23, %c1_24, %c0_25, %c0_26], %28 {strides = array<i32>} : memref<10x10x8x128xbf16, #tpu.memory_space<vmem>>, vector<8x8x8x128xbf16>,
    %c0_27 = arith.constant 0 : index
    %c0_28 = arith.constant 0 : index
    %c0_29 = arith.constant 0 : index
    %c0_30 = arith.constant 0 : index
    %30 = vector.load %arg11[%c0_27, %c0_28, %c0_29, %c0_30] : memref<10x10x8x128xbf16, #tpu.memory_space<vmem>>, vector<8x8x8x128xbf16>
    %31 = vector.shape_cast %30 : vector<8x8x8x128xbf16> to vector<512x128xbf16>
    %c0_31 = arith.constant 0 : index
    %c0_32 = arith.constant 0 : index
    %c0_33 = arith.constant 0 : index
    %32 = vector.load %arg4[%c0_31, %c0_32, %c0_33] : memref<9x128x128xbf16, #tpu.memory_space<vmem>>, vector<1x128x128xbf16>
    %33 = vector.shape_cast %32 : vector<1x128x128xbf16> to vector<128x128xbf16>
    %cst_34 = arith.constant dense<0.000000e+00> : vector<512x128xf32>
    %34 = tpu.matmul %31, %33, %cst_34 {dimension_numbers = #tpu.dot_dimension_numbers<[1], [0], [0], [1], [0, 0, 1, 1], [], []>} : vector<512x128xbf16>, vector<128x128xbf16>, vector<512x128xf32> -> vector<512x128xf32>
    %c0_35 = arith.constant 0 : index
    %c1_36 = arith.constant 1 : index
    %c0_37 = arith.constant 0 : index
    %c0_38 = arith.constant 0 : index
    %35 = vector.load %arg11[%c0_35, %c1_36, %c0_37, %c0_38] : memref<10x10x8x128xbf16, #tpu.memory_space<vmem>>, vector<8x8x8x128xbf16>
    %36 = vector.shape_cast %35 : vector<8x8x8x128xbf16> to vector<512x128xbf16>
    %c1_39 = arith.constant 1 : index
    %c0_40 = arith.constant 0 : index
    %c0_41 = arith.constant 0 : index
    %37 = vector.load %arg4[%c1_39, %c0_40, %c0_41] : memref<9x128x128xbf16, #tpu.memory_space<vmem>>, vector<1x128x128xbf16>
    %38 = vector.shape_cast %37 : vector<1x128x128xbf16> to vector<128x128xbf16>
    %cst_42 = arith.constant dense<0.000000e+00> : vector<512x128xf32>
    %39 = tpu.matmul %36, %38, %cst_42 {dimension_numbers = #tpu.dot_dimension_numbers<[1], [0], [0], [1], [0, 0, 1, 1], [], []>} : vector<512x128xbf16>, vector<128x128xbf16>, vector<512x128xf32> -> vector<512x128xf32>
    %40 = arith.addf %34, %39 : vector<512x128xf32>
    %c0_43 = arith.constant 0 : index
    %c2 = arith.constant 2 : index
    %c0_44 = arith.constant 0 : index
    %c0_45 = arith.constant 0 : index
    %41 = vector.load %arg11[%c0_43, %c2, %c0_44, %c0_45] : memref<10x10x8x128xbf16, #tpu.memory_space<vmem>>, vector<8x8x8x128xbf16>
    %42 = vector.shape_cast %41 : vector<8x8x8x128xbf16> to vector<512x128xbf16>
    %c2_46 = arith.constant 2 : index
    %c0_47 = arith.constant 0 : index
    %c0_48 = arith.constant 0 : index
    %43 = vector.load %arg4[%c2_46, %c0_47, %c0_48] : memref<9x128x128xbf16, #tpu.memory_space<vmem>>, vector<1x128x128xbf16>
    %44 = vector.shape_cast %43 : vector<1x128x128xbf16> to vector<128x128xbf16>
    %cst_49 = arith.constant dense<0.000000e+00> : vector<512x128xf32>
    %45 = tpu.matmul %42, %44, %cst_49 {dimension_numbers = #tpu.dot_dimension_numbers<[1], [0], [0], [1], [0, 0, 1, 1], [], []>} : vector<512x128xbf16>, vector<128x128xbf16>, vector<512x128xf32> -> vector<512x128xf32>
    %46 = arith.addf %40, %45 : vector<512x128xf32>
    %c1_50 = arith.constant 1 : index
    %c0_51 = arith.constant 0 : index
    %c0_52 = arith.constant 0 : index
    %c0_53 = arith.constant 0 : index
    %47 = vector.load %arg11[%c1_50, %c0_51, %c0_52, %c0_53] : memref<10x10x8x128xbf16, #tpu.memory_space<vmem>>, vector<8x8x8x128xbf16>
    %48 = vector.shape_cast %47 : vector<8x8x8x128xbf16> to vector<512x128xbf16>
    %c3 = arith.constant 3 : index
    %c0_54 = arith.constant 0 : index
    %c0_55 = arith.constant 0 : index
    %49 = vector.load %arg4[%c3, %c0_54, %c0_55] : memref<9x128x128xbf16, #tpu.memory_space<vmem>>, vector<1x128x128xbf16>
    %50 = vector.shape_cast %49 : vector<1x128x128xbf16> to vector<128x128xbf16>
    %cst_56 = arith.constant dense<0.000000e+00> : vector<512x128xf32>
    %51 = tpu.matmul %48, %50, %cst_56 {dimension_numbers = #tpu.dot_dimension_numbers<[1], [0], [0], [1], [0, 0, 1, 1], [], []>} : vector<512x128xbf16>, vector<128x128xbf16>, vector<512x128xf32> -> vector<512x128xf32>
    %52 = arith.addf %46, %51 : vector<512x128xf32>
    %c1_57 = arith.constant 1 : index
    %c1_58 = arith.constant 1 : index
    %c0_59 = arith.constant 0 : index
    %c0_60 = arith.constant 0 : index
    %53 = vector.load %arg11[%c1_57, %c1_58, %c0_59, %c0_60] : memref<10x10x8x128xbf16, #tpu.memory_space<vmem>>, vector<8x8x8x128xbf16>
    %54 = vector.shape_cast %53 : vector<8x8x8x128xbf16> to vector<512x128xbf16>
    %c4 = arith.constant 4 : index
    %c0_61 = arith.constant 0 : index
    %c0_62 = arith.constant 0 : index
    %55 = vector.load %arg4[%c4, %c0_61, %c0_62] : memref<9x128x128xbf16, #tpu.memory_space<vmem>>, vector<1x128x128xbf16>
    %56 = vector.shape_cast %55 : vector<1x128x128xbf16> to vector<128x128xbf16>
    %cst_63 = arith.constant dense<0.000000e+00> : vector<512x128xf32>
    %57 = tpu.matmul %54, %56, %cst_63 {dimension_numbers = #tpu.dot_dimension_numbers<[1], [0], [0], [1], [0, 0, 1, 1], [], []>} : vector<512x128xbf16>, vector<128x128xbf16>, vector<512x128xf32> -> vector<512x128xf32>
    %58 = arith.addf %52, %57 : vector<512x128xf32>
    %c1_64 = arith.constant 1 : index
    %c2_65 = arith.constant 2 : index
    %c0_66 = arith.constant 0 : index
    %c0_67 = arith.constant 0 : index
    %59 = vector.load %arg11[%c1_64, %c2_65, %c0_66, %c0_67] : memref<10x10x8x128xbf16, #tpu.memory_space<vmem>>, vector<8x8x8x128xbf16>
    %60 = vector.shape_cast %59 : vector<8x8x8x128xbf16> to vector<512x128xbf16>
    %c5 = arith.constant 5 : index
    %c0_68 = arith.constant 0 : index
    %c0_69 = arith.constant 0 : index
    %61 = vector.load %arg4[%c5, %c0_68, %c0_69] : memref<9x128x128xbf16, #tpu.memory_space<vmem>>, vector<1x128x128xbf16>
    %62 = vector.shape_cast %61 : vector<1x128x128xbf16> to vector<128x128xbf16>
    %cst_70 = arith.constant dense<0.000000e+00> : vector<512x128xf32>
    %63 = tpu.matmul %60, %62, %cst_70 {dimension_numbers = #tpu.dot_dimension_numbers<[1], [0], [0], [1], [0, 0, 1, 1], [], []>} : vector<512x128xbf16>, vector<128x128xbf16>, vector<512x128xf32> -> vector<512x128xf32>
    %64 = arith.addf %58, %63 : vector<512x128xf32>
    %c2_71 = arith.constant 2 : index
    %c0_72 = arith.constant 0 : index
    %c0_73 = arith.constant 0 : index
    %c0_74 = arith.constant 0 : index
    %65 = vector.load %arg11[%c2_71, %c0_72, %c0_73, %c0_74] : memref<10x10x8x128xbf16, #tpu.memory_space<vmem>>, vector<8x8x8x128xbf16>
    %66 = vector.shape_cast %65 : vector<8x8x8x128xbf16> to vector<512x128xbf16>
    %c6 = arith.constant 6 : index
    %c0_75 = arith.constant 0 : index
    %c0_76 = arith.constant 0 : index
    %67 = vector.load %arg4[%c6, %c0_75, %c0_76] : memref<9x128x128xbf16, #tpu.memory_space<vmem>>, vector<1x128x128xbf16>
    %68 = vector.shape_cast %67 : vector<1x128x128xbf16> to vector<128x128xbf16>
    %cst_77 = arith.constant dense<0.000000e+00> : vector<512x128xf32>
    %69 = tpu.matmul %66, %68, %cst_77 {dimension_numbers = #tpu.dot_dimension_numbers<[1], [0], [0], [1], [0, 0, 1, 1], [], []>} : vector<512x128xbf16>, vector<128x128xbf16>, vector<512x128xf32> -> vector<512x128xf32>
    %70 = arith.addf %64, %69 : vector<512x128xf32>
    %c2_78 = arith.constant 2 : index
    %c1_79 = arith.constant 1 : index
    %c0_80 = arith.constant 0 : index
    %c0_81 = arith.constant 0 : index
    %71 = vector.load %arg11[%c2_78, %c1_79, %c0_80, %c0_81] : memref<10x10x8x128xbf16, #tpu.memory_space<vmem>>, vector<8x8x8x128xbf16>
    %72 = vector.shape_cast %71 : vector<8x8x8x128xbf16> to vector<512x128xbf16>
    %c7 = arith.constant 7 : index
    %c0_82 = arith.constant 0 : index
    %c0_83 = arith.constant 0 : index
    %73 = vector.load %arg4[%c7, %c0_82, %c0_83] : memref<9x128x128xbf16, #tpu.memory_space<vmem>>, vector<1x128x128xbf16>
    %74 = vector.shape_cast %73 : vector<1x128x128xbf16> to vector<128x128xbf16>
    %cst_84 = arith.constant dense<0.000000e+00> : vector<512x128xf32>
    %75 = tpu.matmul %72, %74, %cst_84 {dimension_numbers = #tpu.dot_dimension_numbers<[1], [0], [0], [1], [0, 0, 1, 1], [], []>} : vector<512x128xbf16>, vector<128x128xbf16>, vector<512x128xf32> -> vector<512x128xf32>
    %76 = arith.addf %70, %75 : vector<512x128xf32>
    %c2_85 = arith.constant 2 : index
    %c2_86 = arith.constant 2 : index
    %c0_87 = arith.constant 0 : index
    %c0_88 = arith.constant 0 : index
    %77 = vector.load %arg11[%c2_85, %c2_86, %c0_87, %c0_88] : memref<10x10x8x128xbf16, #tpu.memory_space<vmem>>, vector<8x8x8x128xbf16>
    %78 = vector.shape_cast %77 : vector<8x8x8x128xbf16> to vector<512x128xbf16>
    %c8 = arith.constant 8 : index
    %c0_89 = arith.constant 0 : index
    %c0_90 = arith.constant 0 : index
    %79 = vector.load %arg4[%c8, %c0_89, %c0_90] : memref<9x128x128xbf16, #tpu.memory_space<vmem>>, vector<1x128x128xbf16>
    %80 = vector.shape_cast %79 : vector<1x128x128xbf16> to vector<128x128xbf16>
    %cst_91 = arith.constant dense<0.000000e+00> : vector<512x128xf32>
    %81 = tpu.matmul %78, %80, %cst_91 {dimension_numbers = #tpu.dot_dimension_numbers<[1], [0], [0], [1], [0, 0, 1, 1], [], []>} : vector<512x128xbf16>, vector<128x128xbf16>, vector<512x128xf32> -> vector<512x128xf32>
    %82 = arith.addf %76, %81 : vector<512x128xf32>
    %83 = vector.shape_cast %82 : vector<512x128xf32> to vector<4x2x64x128xf32>
    %84 = vector.extract_strided_slice %83 {offsets = [0, 0, 0, 0], sizes = [4, 1, 64, 128], strides = [1, 1, 1, 1]} : vector<4x2x64x128xf32> to vector<4x1x64x128xf32>
    %85 = vector.shape_cast %84 : vector<4x1x64x128xf32> to vector<4x64x128xf32>
    %86 = vector.extract_strided_slice %83 {offsets = [0, 1, 0, 0], sizes = [4, 1, 64, 128], strides = [1, 1, 1, 1]} : vector<4x2x64x128xf32> to vector<4x1x64x128xf32>
    %87 = vector.shape_cast %86 : vector<4x1x64x128xf32> to vector<4x64x128xf32>
    %88 = arith.maximumf %85, %87 : vector<4x64x128xf32>
    %89 = vector.shape_cast %88 : vector<4x64x128xf32> to vector<4x4x2x8x128xf32>
    %90 = vector.extract_strided_slice %89 {offsets = [0, 0, 0, 0, 0], sizes = [4, 4, 1, 8, 128], strides = [1, 1, 1, 1, 1]} : vector<4x4x2x8x128xf32> to vector<4x4x1x8x128xf32>
    %91 = vector.shape_cast %90 : vector<4x4x1x8x128xf32> to vector<4x4x8x128xf32>
    %92 = vector.extract_strided_slice %89 {offsets = [0, 0, 1, 0, 0], sizes = [4, 4, 1, 8, 128], strides = [1, 1, 1, 1, 1]} : vector<4x4x2x8x128xf32> to vector<4x4x1x8x128xf32>
    %93 = vector.shape_cast %92 : vector<4x4x1x8x128xf32> to vector<4x4x8x128xf32>
    %94 = arith.maximumf %91, %93 : vector<4x4x8x128xf32>
    %c0_92 = arith.constant 0 : index
    %c0_93 = arith.constant 0 : index
    %95 = vector.load %arg5[%c0_92, %c0_93] : memref<1x128xf32, #tpu.memory_space<vmem>>, vector<1x128xf32>
    %96 = vector.shape_cast %95 : vector<1x128xf32> to vector<1x1x1x128xf32>
    %97 = vector.broadcast %96 : vector<1x1x1x128xf32> to vector<4x4x8x128xf32>
    %98 = arith.addf %94, %97 : vector<4x4x8x128xf32>
    %cst_94 = arith.constant 0.000000e+00 : f32
    %99 = vector.broadcast %cst_94 : f32 to vector<4x4x8x128xf32>
    %100 = arith.maximumf %98, %99 : vector<4x4x8x128xf32>
    %101 = vector.extract_strided_slice %100 {offsets = [0, 0, 0, 0], sizes = [1, 1, 8, 128], strides = [1, 1, 1, 1]} : vector<4x4x8x128xf32> to vector<1x1x8x128xf32>
    %102 = vector.shape_cast %101 : vector<1x1x8x128xf32> to vector<8x128xf32>
    %c0_95 = arith.constant 0 : index
    %c0_96 = arith.constant 0 : index
    %103 = vector.load %arg12[%c0_95, %c0_96] : memref<8x2048xf32, #tpu.memory_space<vmem>>, vector<8x128xf32>
    tpu.vector_store %arg12[%c0_95, %c0_96], %102 {strides = array<i32>} : memref<8x2048xf32, #tpu.memory_space<vmem>>, vector<8x128xf32>,
    %104 = vector.extract_strided_slice %100 {offsets = [0, 1, 0, 0], sizes = [1, 1, 8, 128], strides = [1, 1, 1, 1]} : vector<4x4x8x128xf32> to vector<1x1x8x128xf32>
    %105 = vector.shape_cast %104 : vector<1x1x8x128xf32> to vector<8x128xf32>
    %c0_97 = arith.constant 0 : index
    %c128 = arith.constant 128 : index
    %106 = vector.load %arg12[%c0_97, %c128] : memref<8x2048xf32, #tpu.memory_space<vmem>>, vector<8x128xf32>
    tpu.vector_store %arg12[%c0_97, %c128], %105 {strides = array<i32>} : memref<8x2048xf32, #tpu.memory_space<vmem>>, vector<8x128xf32>,
    %107 = vector.extract_strided_slice %100 {offsets = [0, 2, 0, 0], sizes = [1, 1, 8, 128], strides = [1, 1, 1, 1]} : vector<4x4x8x128xf32> to vector<1x1x8x128xf32>
    %108 = vector.shape_cast %107 : vector<1x1x8x128xf32> to vector<8x128xf32>
    %c0_98 = arith.constant 0 : index
    %c256 = arith.constant 256 : index
    %109 = vector.load %arg12[%c0_98, %c256] : memref<8x2048xf32, #tpu.memory_space<vmem>>, vector<8x128xf32>
    tpu.vector_store %arg12[%c0_98, %c256], %108 {strides = array<i32>} : memref<8x2048xf32, #tpu.memory_space<vmem>>, vector<8x128xf32>,
    %110 = vector.extract_strided_slice %100 {offsets = [0, 3, 0, 0], sizes = [1, 1, 8, 128], strides = [1, 1, 1, 1]} : vector<4x4x8x128xf32> to vector<1x1x8x128xf32>
    %111 = vector.shape_cast %110 : vector<1x1x8x128xf32> to vector<8x128xf32>
    %c0_99 = arith.constant 0 : index
    %c384 = arith.constant 384 : index
    %112 = vector.load %arg12[%c0_99, %c384] : memref<8x2048xf32, #tpu.memory_space<vmem>>, vector<8x128xf32>
    tpu.vector_store %arg12[%c0_99, %c384], %111 {strides = array<i32>} : memref<8x2048xf32, #tpu.memory_space<vmem>>, vector<8x128xf32>,
    %113 = vector.extract_strided_slice %100 {offsets = [1, 0, 0, 0], sizes = [1, 1, 8, 128], strides = [1, 1, 1, 1]} : vector<4x4x8x128xf32> to vector<1x1x8x128xf32>
    %114 = vector.shape_cast %113 : vector<1x1x8x128xf32> to vector<8x128xf32>
    %c0_100 = arith.constant 0 : index
    %c512 = arith.constant 512 : index
    %115 = vector.load %arg12[%c0_100, %c512] : memref<8x2048xf32, #tpu.memory_space<vmem>>, vector<8x128xf32>
    tpu.vector_store %arg12[%c0_100, %c512], %114 {strides = array<i32>} : memref<8x2048xf32, #tpu.memory_space<vmem>>, vector<8x128xf32>,
    %116 = vector.extract_strided_slice %100 {offsets = [1, 1, 0, 0], sizes = [1, 1, 8, 128], strides = [1, 1, 1, 1]} : vector<4x4x8x128xf32> to vector<1x1x8x128xf32>
    %117 = vector.shape_cast %116 : vector<1x1x8x128xf32> to vector<8x128xf32>
    %c0_101 = arith.constant 0 : index
    %c640 = arith.constant 640 : index
    %118 = vector.load %arg12[%c0_101, %c640] : memref<8x2048xf32, #tpu.memory_space<vmem>>, vector<8x128xf32>
    tpu.vector_store %arg12[%c0_101, %c640], %117 {strides = array<i32>} : memref<8x2048xf32, #tpu.memory_space<vmem>>, vector<8x128xf32>,
    %119 = vector.extract_strided_slice %100 {offsets = [1, 2, 0, 0], sizes = [1, 1, 8, 128], strides = [1, 1, 1, 1]} : vector<4x4x8x128xf32> to vector<1x1x8x128xf32>
    %120 = vector.shape_cast %119 : vector<1x1x8x128xf32> to vector<8x128xf32>
    %c0_102 = arith.constant 0 : index
    %c768 = arith.constant 768 : index
    %121 = vector.load %arg12[%c0_102, %c768] : memref<8x2048xf32, #tpu.memory_space<vmem>>, vector<8x128xf32>
    tpu.vector_store %arg12[%c0_102, %c768], %120 {strides = array<i32>} : memref<8x2048xf32, #tpu.memory_space<vmem>>, vector<8x128xf32>,
    %122 = vector.extract_strided_slice %100 {offsets = [1, 3, 0, 0], sizes = [1, 1, 8, 128], strides = [1, 1, 1, 1]} : vector<4x4x8x128xf32> to vector<1x1x8x128xf32>
    %123 = vector.shape_cast %122 : vector<1x1x8x128xf32> to vector<8x128xf32>
    %c0_103 = arith.constant 0 : index
    %c896 = arith.constant 896 : index
    %124 = vector.load %arg12[%c0_103, %c896] : memref<8x2048xf32, #tpu.memory_space<vmem>>, vector<8x128xf32>
    tpu.vector_store %arg12[%c0_103, %c896], %123 {strides = array<i32>} : memref<8x2048xf32, #tpu.memory_space<vmem>>, vector<8x128xf32>,
    %125 = vector.extract_strided_slice %100 {offsets = [2, 0, 0, 0], sizes = [1, 1, 8, 128], strides = [1, 1, 1, 1]} : vector<4x4x8x128xf32> to vector<1x1x8x128xf32>
    %126 = vector.shape_cast %125 : vector<1x1x8x128xf32> to vector<8x128xf32>
    %c0_104 = arith.constant 0 : index
    %c1024 = arith.constant 1024 : index
    %127 = vector.load %arg12[%c0_104, %c1024] : memref<8x2048xf32, #tpu.memory_space<vmem>>, vector<8x128xf32>
    tpu.vector_store %arg12[%c0_104, %c1024], %126 {strides = array<i32>} : memref<8x2048xf32, #tpu.memory_space<vmem>>, vector<8x128xf32>,
    %128 = vector.extract_strided_slice %100 {offsets = [2, 1, 0, 0], sizes = [1, 1, 8, 128], strides = [1, 1, 1, 1]} : vector<4x4x8x128xf32> to vector<1x1x8x128xf32>
    %129 = vector.shape_cast %128 : vector<1x1x8x128xf32> to vector<8x128xf32>
    %c0_105 = arith.constant 0 : index
    %c1152 = arith.constant 1152 : index
    %130 = vector.load %arg12[%c0_105, %c1152] : memref<8x2048xf32, #tpu.memory_space<vmem>>, vector<8x128xf32>
    tpu.vector_store %arg12[%c0_105, %c1152], %129 {strides = array<i32>} : memref<8x2048xf32, #tpu.memory_space<vmem>>, vector<8x128xf32>,
    %131 = vector.extract_strided_slice %100 {offsets = [2, 2, 0, 0], sizes = [1, 1, 8, 128], strides = [1, 1, 1, 1]} : vector<4x4x8x128xf32> to vector<1x1x8x128xf32>
    %132 = vector.shape_cast %131 : vector<1x1x8x128xf32> to vector<8x128xf32>
    %c0_106 = arith.constant 0 : index
    %c1280 = arith.constant 1280 : index
    %133 = vector.load %arg12[%c0_106, %c1280] : memref<8x2048xf32, #tpu.memory_space<vmem>>, vector<8x128xf32>
    tpu.vector_store %arg12[%c0_106, %c1280], %132 {strides = array<i32>} : memref<8x2048xf32, #tpu.memory_space<vmem>>, vector<8x128xf32>,
    %134 = vector.extract_strided_slice %100 {offsets = [2, 3, 0, 0], sizes = [1, 1, 8, 128], strides = [1, 1, 1, 1]} : vector<4x4x8x128xf32> to vector<1x1x8x128xf32>
    %135 = vector.shape_cast %134 : vector<1x1x8x128xf32> to vector<8x128xf32>
    %c0_107 = arith.constant 0 : index
    %c1408 = arith.constant 1408 : index
    %136 = vector.load %arg12[%c0_107, %c1408] : memref<8x2048xf32, #tpu.memory_space<vmem>>, vector<8x128xf32>
    tpu.vector_store %arg12[%c0_107, %c1408], %135 {strides = array<i32>} : memref<8x2048xf32, #tpu.memory_space<vmem>>, vector<8x128xf32>,
    %137 = vector.extract_strided_slice %100 {offsets = [3, 0, 0, 0], sizes = [1, 1, 8, 128], strides = [1, 1, 1, 1]} : vector<4x4x8x128xf32> to vector<1x1x8x128xf32>
    %138 = vector.shape_cast %137 : vector<1x1x8x128xf32> to vector<8x128xf32>
    %c0_108 = arith.constant 0 : index
    %c1536 = arith.constant 1536 : index
    %139 = vector.load %arg12[%c0_108, %c1536] : memref<8x2048xf32, #tpu.memory_space<vmem>>, vector<8x128xf32>
    tpu.vector_store %arg12[%c0_108, %c1536], %138 {strides = array<i32>} : memref<8x2048xf32, #tpu.memory_space<vmem>>, vector<8x128xf32>,
    %140 = vector.extract_strided_slice %100 {offsets = [3, 1, 0, 0], sizes = [1, 1, 8, 128], strides = [1, 1, 1, 1]} : vector<4x4x8x128xf32> to vector<1x1x8x128xf32>
    %141 = vector.shape_cast %140 : vector<1x1x8x128xf32> to vector<8x128xf32>
    %c0_109 = arith.constant 0 : index
    %c1664 = arith.constant 1664 : index
    %142 = vector.load %arg12[%c0_109, %c1664] : memref<8x2048xf32, #tpu.memory_space<vmem>>, vector<8x128xf32>
    tpu.vector_store %arg12[%c0_109, %c1664], %141 {strides = array<i32>} : memref<8x2048xf32, #tpu.memory_space<vmem>>, vector<8x128xf32>,
    %143 = vector.extract_strided_slice %100 {offsets = [3, 2, 0, 0], sizes = [1, 1, 8, 128], strides = [1, 1, 1, 1]} : vector<4x4x8x128xf32> to vector<1x1x8x128xf32>
    %144 = vector.shape_cast %143 : vector<1x1x8x128xf32> to vector<8x128xf32>
    %c0_110 = arith.constant 0 : index
    %c1792 = arith.constant 1792 : index
    %145 = vector.load %arg12[%c0_110, %c1792] : memref<8x2048xf32, #tpu.memory_space<vmem>>, vector<8x128xf32>
    tpu.vector_store %arg12[%c0_110, %c1792], %144 {strides = array<i32>} : memref<8x2048xf32, #tpu.memory_space<vmem>>, vector<8x128xf32>,
    %146 = vector.extract_strided_slice %100 {offsets = [3, 3, 0, 0], sizes = [1, 1, 8, 128], strides = [1, 1, 1, 1]} : vector<4x4x8x128xf32> to vector<1x1x8x128xf32>
    %147 = vector.shape_cast %146 : vector<1x1x8x128xf32> to vector<8x128xf32>
    %c0_111 = arith.constant 0 : index
    %c1920 = arith.constant 1920 : index
    %148 = vector.load %arg12[%c0_111, %c1920] : memref<8x2048xf32, #tpu.memory_space<vmem>>, vector<8x128xf32>
    tpu.vector_store %arg12[%c0_111, %c1920], %147 {strides = array<i32>} : memref<8x2048xf32, #tpu.memory_space<vmem>>, vector<8x128xf32>,
    %c0_112 = arith.constant 0 : index
    %c0_113 = arith.constant 0 : index
    %149 = vector.load %arg12[%c0_112, %c0_113] : memref<8x2048xf32, #tpu.memory_space<vmem>>, vector<8x2048xf32>
    %150 = arith.truncf %149 : vector<8x2048xf32> to vector<8x2048xbf16>
    %c0_114 = arith.constant 0 : index
    %c0_115 = arith.constant 0 : index
    %151 = vector.load %arg6[%c0_114, %c0_115] : memref<2048x128xbf16, #tpu.memory_space<vmem>>, vector<2048x128xbf16>
    %cst_116 = arith.constant dense<0.000000e+00> : vector<8x128xf32>
    %152 = tpu.matmul %150, %151, %cst_116 {dimension_numbers = #tpu.dot_dimension_numbers<[1], [0], [0], [1], [0, 0, 1, 1], [], []>} : vector<8x2048xbf16>, vector<2048x128xbf16>, vector<8x128xf32> -> vector<8x128xf32>
    %c0_117 = arith.constant 0 : index
    %c0_118 = arith.constant 0 : index
    %153 = vector.load %arg7[%c0_117, %c0_118] : memref<1x128xf32, #tpu.memory_space<vmem>>, vector<1x128xf32>
    %154 = vector.broadcast %153 : vector<1x128xf32> to vector<8x128xf32>
    %155 = arith.addf %152, %154 : vector<8x128xf32>
    %cst_119 = arith.constant 0.000000e+00 : f32
    %156 = vector.broadcast %cst_119 : f32 to vector<8x128xf32>
    %157 = arith.maximumf %155, %156 : vector<8x128xf32>
    %158 = arith.truncf %157 : vector<8x128xf32> to vector<8x128xbf16>
    %c0_120 = arith.constant 0 : index
    %c0_121 = arith.constant 0 : index
    %159 = vector.load %arg8[%c0_120, %c0_121] : memref<128x128xbf16, #tpu.memory_space<vmem>>, vector<128x128xbf16>
    %cst_122 = arith.constant dense<0.000000e+00> : vector<8x128xf32>
    %160 = tpu.matmul %158, %159, %cst_122 {dimension_numbers = #tpu.dot_dimension_numbers<[1], [0], [0], [1], [0, 0, 1, 1], [], []>} : vector<8x128xbf16>, vector<128x128xbf16>, vector<8x128xf32> -> vector<8x128xf32>
    %c0_123 = arith.constant 0 : index
    %c0_124 = arith.constant 0 : index
    %161 = vector.load %arg9[%c0_123, %c0_124] : memref<1x128xf32, #tpu.memory_space<vmem>>, vector<1x128xf32>
    %162 = vector.broadcast %161 : vector<1x128xf32> to vector<8x128xf32>
    %163 = arith.addf %160, %162 : vector<8x128xf32>
    %c0_125 = arith.constant 0 : index
    %c0_126 = arith.constant 0 : index
    %164 = vector.load %arg10[%c0_125, %c0_126] : memref<8x128xf32, #tpu.memory_space<vmem>>, vector<8x128xf32>
    tpu.vector_store %arg10[%c0_125, %c0_126], %163 {strides = array<i32>} : memref<8x128xf32, #tpu.memory_space<vmem>>, vector<8x128xf32>,
    return
  }
  func.func @transform_0(%arg0: i32) -> (i32, i32, i32) {
    %c0_i32 = arith.constant 0 : i32
    %c0_i32_0 = arith.constant 0 : i32
    %c0_i32_1 = arith.constant 0 : i32
    return %c0_i32, %arg0, %c0_i32_0 : i32, i32, i32
  }
  func.func @transform_1(%arg0: i32) -> (i32, i32) {
    %c0_i32 = arith.constant 0 : i32
    %c0_i32_0 = arith.constant 0 : i32
    %c0_i32_1 = arith.constant 0 : i32
    return %c0_i32, %c0_i32_0 : i32, i32
  }
  func.func @transform_2(%arg0: i32) -> (i32, i32) {
    %c0_i32 = arith.constant 0 : i32
    %c0_i32_0 = arith.constant 0 : i32
    %c0_i32_1 = arith.constant 0 : i32
    return %c0_i32, %c0_i32_0 : i32, i32
  }
  func.func @transform_3(%arg0: i32) -> (i32, i32, i32) {
    %c0_i32 = arith.constant 0 : i32
    %c0_i32_0 = arith.constant 0 : i32
    %c0_i32_1 = arith.constant 0 : i32
    %c0_i32_2 = arith.constant 0 : i32
    return %c0_i32, %c0_i32_0, %c0_i32_1 : i32, i32, i32
  }
  func.func @transform_4(%arg0: i32) -> (i32, i32) {
    %c0_i32 = arith.constant 0 : i32
    %c0_i32_0 = arith.constant 0 : i32
    %c0_i32_1 = arith.constant 0 : i32
    return %c0_i32, %c0_i32_0 : i32, i32
  }
  func.func @transform_5(%arg0: i32) -> (i32, i32) {
    %c0_i32 = arith.constant 0 : i32
    %c0_i32_0 = arith.constant 0 : i32
    %c0_i32_1 = arith.constant 0 : i32
    return %c0_i32, %c0_i32_0 : i32, i32
  }
  func.func @transform_6(%arg0: i32) -> (i32, i32) {
    %c0_i32 = arith.constant 0 : i32
    %c0_i32_0 = arith.constant 0 : i32
    %c0_i32_1 = arith.constant 0 : i32
    return %c0_i32, %c0_i32_0 : i32, i32
  }
  func.func @transform_7(%arg0: i32) -> (i32, i32) {
    %c0_i32 = arith.constant 0 : i32
    %c0_i32_0 = arith.constant 0 : i32
    %c0_i32_1 = arith.constant 0 : i32
    return %c0_i32, %c0_i32_0 : i32, i32
  }
  func.func @transform_8(%arg0: i32) -> (i32, i32) {
    %c0_i32 = arith.constant 0 : i32
    %c0_i32_0 = arith.constant 0 : i32
    %c0_i32_1 = arith.constant 0 : i32
    return %c0_i32, %c0_i32_0 : i32, i32
  }
  func.func @transform_9(%arg0: i32) -> (i32, i32) {
    %c0_i32 = arith.constant 0 : i32
    %c0_i32_0 = arith.constant 0 : i32
    return %arg0, %c0_i32 : i32, i32
  }
}

</mosaic_0001>

<bundles_post_ra>
// kernel: cnn_forward.1
= control target key start
LH: loop header
LB: loop body
LE: loop exit
PB: predicated region body
PF: predicated region fallthrough
CT: control target
= control target key end

     0   :  { %vm1334_vm0 = vcmask 1041408   ;;  %vm949_vm1 = vcmask 293888   ;;  %vm13782_vm2 = vmmov 0   ;;  %s17248_s1 = inlined_call_operand.vmem [shape: bf16[36,128], index: 1, kind: input, shape index: {}]   ;;  %s17249_s0 = inlined_call_operand.vmem [shape: bf16[256,8,36], index: 0, kind: input, shape index: {}]   ;;  %s17250_s3 = inlined_call_operand.vmem [shape: bf16[9,128,128], index: 3, kind: input, shape index: {}]   ;;  %s17251_s2 = inlined_call_operand.vmem [shape: f32[1,128], index: 2, kind: input, shape index: {}]   ;;  %s17252_s5 = inlined_call_operand.vmem [shape: bf16[2048,128], index: 5, kind: input, shape index: {}]   ;;  %s17253_s4 = inlined_call_operand.vmem [shape: f32[1,128], index: 4, kind: input, shape index: {}]   ;;  %s17254_s7 = inlined_call_operand.vmem [shape: bf16[128,128], index: 7, kind: input, shape index: {}]   ;;  %s17255_s6 = inlined_call_operand.vmem [shape: f32[1,128], index: 6, kind: input, shape index: {}]   ;;  %s17256_s8 = inlined_call_operand.vmem [shape: f32[1,128], index: 8, kind: input, shape index: {}]   ;;  %s17257_s9 = inlined_call_operand.vmem [shape: f32[8,128], index: 9, kind: output, shape index: {}]  }
   0x1   :  { %v13150_v0 = vld [vmem:[%s17248_s1 + $0x10] ss:$0 sps:$4 sm:$0x33]   ;;  %v13151_v1 = vld [vmem:[%s17248_s1 + $0x8] sm:$0xff]   ;;  %v13153_v3 = vld [vmem:[%s17249_s0] sm:$0xff]  }
   0x2   :  { %13146 = vmatprep.subr.msk.bf16.mxu0 %vm1334_vm0, %v13150_v0  ;;  %v1336_v2 = vsel %vm1334_vm0, %v13150_v0, 0  ;;  %v13152_v4 = vld [vmem:[%s17248_s1] sm:$0xff]   ;;  %12150 = vmatprep.mubr.msk.bf16.mxu0 %vm949_vm1, %v13153_v3  ;;  %v13154_v5 = vld [vmem:[%s17249_s0 + $0x8] sm:$0xff]   ;;  %v13155_v6 = vld [vmem:[%s17249_s0 + $0x10] sm:$0xff]  }
   0x3   :  { %12145 = vmatpush3.bf16.msra.mxu0 %v1336_v2  ;;  %v13156_v7 = vld [vmem:[%s17249_s0 + $0x18] sm:$0xff]   ;;  %v13157_v8 = vld [vmem:[%s17249_s0 + $0x20] sm:$0xff]   ;;  %v13158_v9 = vld [vmem:[%s17249_s0 + $0x28] sm:$0xff]  }
   0x4   :  { %12146 = vmatprep.subr.bf16.mxu0 %v13151_v1  ;;  %v13159_v10 = vld [vmem:[%s17249_s0 + $0x30] sm:$0xff]   ;;  %v13160_v11 = vld [vmem:[%s17249_s0 + $0x38] sm:$0xff]   ;;  %v13161_v12 = vld [vmem:[%s17249_s0 + $0x40] sm:$0xff]  }
   0x5   :  { %v13162_v13 = vld [vmem:[%s17249_s0 + $0x48] sm:$0xff]   ;;  %v13163_v14 = vld [vmem:[%s17249_s0 + $0x50] sm:$0xff]   ;;  %v13164_v15 = vld [vmem:[%s17249_s0 + $0x58] sm:$0xff]  }
   0x6   :  { %v13165_v16 = vld [vmem:[%s17249_s0 + $0x60] sm:$0xff]   ;;  %v13166_v17 = vld [vmem:[%s17249_s0 + $0x68] sm:$0xff]   ;;  %v13167_v18 = vld [vmem:[%s17249_s0 + $0x70] sm:$0xff]  }
   0x7   :  { %12147 = vmatpush3.bf16.msra.mxu0 %v13151_v1  ;;  %v13168_v19 = vld [vmem:[%s17249_s0 + $0x78] sm:$0xff]   ;;  %v13169_v20 = vld [vmem:[%s17249_s0 + $0x80] sm:$0xff]   ;;  %v13170_v21 = vld [vmem:[%s17249_s0 + $0x88] sm:$0xff]  }
   0x8   :  { %12148 = vmatprep.subr.bf16.mxu0 %v13152_v4  ;;  %v13171_v22 = vld [vmem:[%s17249_s0 + $0x90] sm:$0xff]   ;;  %v13172_v23 = vld [vmem:[%s17249_s0 + $0x98] sm:$0xff]   ;;  %v13173_v24 = vld [vmem:[%s17249_s0 + $0xa0] sm:$0xff]  }
   0x9   :  { %v13174_v25 = vld [vmem:[%s17249_s0 + $0xa8] sm:$0xff]   ;;  %v13175_v26 = vld [vmem:[%s17249_s0 + $0xb0] sm:$0xff]   ;;  %v13176_v27 = vld [vmem:[%s17249_s0 + $0xb8] sm:$0xff]  }
   0xa   :  { %v13177_v28 = vld [vmem:[%s17249_s0 + $0xc0] sm:$0xff]   ;;  %v13178_v29 = vld [vmem:[%s17249_s0 + $0xc8] sm:$0xff]   ;;  %v13179_v30 = vld [vmem:[%s17249_s0 + $0xd0] sm:$0xff]  }
   0xb   :  { %12149 = vmatpush3.bf16.msra.mxu0 %v13152_v4  ;;  %v13180_v31 = vld [vmem:[%s17249_s0 + $0xd8] sm:$0xff]   ;;  %v13181_v32 = vld [vmem:[%s17249_s0 + $0xe0] sm:$0xff]   ;;  %v13182_v33 = vld [vmem:[%s17249_s0 + $0xe8] sm:$0xff]  }
   0xc   :  { %v13183_v34 = vld [vmem:[%s17249_s0 + $0xf0] sm:$0xff]   ;;  %v13184_v35 = vld [vmem:[%s17249_s0 + $0xf8] sm:$0xff]   ;;  %v13185_v36 = vld [vmem:[%s17249_s0 + $0x100] sm:$0xff]  }
   0xd   :  { %v13186_v37 = vld [vmem:[%s17249_s0 + $0x108] sm:$0xff]   ;;  %v13187_v38 = vld [vmem:[%s17249_s0 + $0x110] sm:$0xff]   ;;  %v13188_v39 = vld [vmem:[%s17249_s0 + $0x118] sm:$0xff]  }
   0xe   :  { %12151 = vmatmul.mubr.msk.bf16.vlgmr.msra.gmra.mxu0 %vm949_vm1, %v13154_v5  ;;  %v13189_v40 = vld [vmem:[%s17249_s0 + $0x120] sm:$0xff]   ;;  %v13190_v41 = vld [vmem:[%s17249_s0 + $0x128] sm:$0xff]   ;;  %v13191_v42 = vld [vmem:[%s17249_s0 + $0x130] sm:$0xff]  }
   0xf   :  { %12154 = vmatprep.mubr.msk.bf16.mxu0 %vm949_vm1, %v13155_v6  ;;  %v13192_v43 = vld [vmem:[%s17249_s0 + $0x138] sm:$0xff]   ;;  %v13193_v44 = vld [vmem:[%s17249_s0 + $0x140] sm:$0xff]   ;;  %v13194_v45 = vld [vmem:[%s17249_s0 + $0x148] sm:$0xff]  }
  0x10   :  { %v13195_v46 = vld [vmem:[%s17249_s0 + $0x150] sm:$0xff]   ;;  %v13196_v47 = vld [vmem:[%s17249_s0 + $0x158] sm:$0xff]   ;;  %v13197_v48 = vld [vmem:[%s17249_s0 + $0x160] sm:$0xff]  }
  0x11   :  { %v13198_v49 = vld [vmem:[%s17249_s0 + $0x168] sm:$0xff]   ;;  %v13199_v50 = vld [vmem:[%s17249_s0 + $0x170] sm:$0xff]   ;;  %v13200_v51 = vld [vmem:[%s17249_s0 + $0x178] sm:$0xff]  }
  0x12   :  { %v13201_v52 = vld [vmem:[%s17249_s0 + $0x180] sm:$0xff]   ;;  %v13202_v53 = vld [vmem:[%s17249_s0 + $0x188] sm:$0xff]   ;;  %v13203_v54 = vld [vmem:[%s17249_s0 + $0x190] sm:$0xff]  }
  0x13   :  { %v13204_v58 = vld [vmem:[%s17249_s0 + $0x198] sm:$0xff]   ;;  %v13205_v59 = vld [vmem:[%s17249_s0 + $0x1a0] sm:$0xff]   ;;  %v13206_v0 = vld [vmem:[%s17249_s0 + $0x1a8] sm:$0xff]  }
  0x14   :  { %v13207_v1 = vld [vmem:[%s17249_s0 + $0x1b0] sm:$0xff]   ;;  %v13208_v6 = vld [vmem:[%s17249_s0 + $0x1b8] sm:$0xff]  }
  0x16   :  { %12155 = vmatmul.mubr.msk.bf16.gmra.mxu0 %vm949_vm1, %v13156_v7  ;;  %v13209_v7 = vld [vmem:[%s17249_s0 + $0x1c0] sm:$0xff]  }
  0x17   :  { %12158 = vmatprep.mubr.msk.bf16.mxu0 %vm949_vm1, %v13157_v8 }
  0x1e   :  { %12159 = vmatmul.mubr.msk.bf16.gmra.mxu0 %vm949_vm1, %v13158_v9 }
  0x1f   :  { %12162 = vmatprep.mubr.msk.bf16.mxu0 %vm949_vm1, %v13159_v10 }
  0x26   :  { %12163 = vmatmul.mubr.msk.bf16.gmra.mxu0 %vm949_vm1, %v13160_v11 }
  0x27   :  { %12166 = vmatprep.mubr.msk.bf16.mxu0 %vm949_vm1, %v13161_v12  ;;  %v13210_v12 = vld [vmem:[%s17249_s0 + $0x1c8] sm:$0xff]  }
  0x2e   :  { %12167 = vmatmul.mubr.msk.bf16.gmra.mxu0 %vm949_vm1, %v13162_v13  ;;  %v13211_v13 = vld [vmem:[%s17249_s0 + $0x1d0] sm:$0xff]  }
  0x2f   :  { %12170 = vmatprep.mubr.msk.bf16.mxu0 %vm949_vm1, %v13163_v14 }
  0x36   :  { %12171 = vmatmul.mubr.msk.bf16.gmra.mxu0 %vm949_vm1, %v13164_v15 }
  0x37   :  { %12174 = vmatprep.mubr.msk.bf16.mxu0 %vm949_vm1, %v13165_v16 }
  0x3e   :  { %12175 = vmatmul.mubr.msk.bf16.gmra.mxu0 %vm949_vm1, %v13166_v17 }
  0x3f   :  { %12178 = vmatprep.mubr.msk.bf16.mxu0 %vm949_vm1, %v13167_v18  ;;  %v13212_v18 = vld [vmem:[%s17249_s0 + $0x1d8] sm:$0xff]  }
  0x46   :  { %12179 = vmatmul.mubr.msk.bf16.gmra.mxu0 %vm949_vm1, %v13168_v19  ;;  %v13213_v19 = vld [vmem:[%s17249_s0 + $0x1e0] sm:$0xff]  }
  0x47   :  { %12182 = vmatprep.mubr.msk.bf16.mxu0 %vm949_vm1, %v13169_v20 }
  0x4e   :  { %12183 = vmatmul.mubr.msk.bf16.gmra.mxu0 %vm949_vm1, %v13170_v21 }
  0x4f   :  { %12186 = vmatprep.mubr.msk.bf16.mxu0 %vm949_vm1, %v13171_v22 }
  0x56   :  { %12187 = vmatmul.mubr.msk.bf16.gmra.mxu0 %vm949_vm1, %v13172_v23 }
  0x57   :  { %12190 = vmatprep.mubr.msk.bf16.mxu0 %vm949_vm1, %v13173_v24  ;;  %v13214_v24 = vld [vmem:[%s17249_s0 + $0x1e8] sm:$0xff]  }
  0x5e   :  { %12191 = vmatmul.mubr.msk.bf16.gmra.mxu0 %vm949_vm1, %v13174_v25  ;;  %v13215_v25 = vld [vmem:[%s17249_s0 + $0x1f0] sm:$0xff]  }
  0x5f   :  { %12194 = vmatprep.mubr.msk.bf16.mxu0 %vm949_vm1, %v13175_v26 }
  0x66   :  { %12195 = vmatmul.mubr.msk.bf16.gmra.mxu0 %vm949_vm1, %v13176_v27 }
  0x67   :  { %12198 = vmatprep.mubr.msk.bf16.mxu0 %vm949_vm1, %v13177_v28 }
  0x6e   :  { %12199 = vmatmul.mubr.msk.bf16.gmra.mxu0 %vm949_vm1, %v13178_v29 }
  0x6f   :  { %12202 = vmatprep.mubr.msk.bf16.mxu0 %vm949_vm1, %v13179_v30  ;;  %v13216_v30 = vld [vmem:[%s17249_s0 + $0x1f8] sm:$0xff]  }
  0x76   :  { %12203 = vmatmul.mubr.msk.bf16.gmra.mxu0 %vm949_vm1, %v13180_v31  ;;  %v13217_v31 = vld [vmem:[%s17249_s0 + $0x200] sm:$0xff]  }
  0x77   :  { %12206 = vmatprep.mubr.msk.bf16.mxu0 %vm949_vm1, %v13181_v32 }
  0x7e   :  { %12207 = vmatmul.mubr.msk.bf16.gmra.mxu0 %vm949_vm1, %v13182_v33 }
  0x7f   :  { %12210 = vmatprep.mubr.msk.bf16.mxu0 %vm949_vm1, %v13183_v34 }
  0x86   :  { %12211 = vmatmul.mubr.msk.bf16.gmra.mxu0 %vm949_vm1, %v13184_v35 }
  0x87   :  { %12214 = vmatprep.mubr.msk.bf16.mxu0 %vm949_vm1, %v13185_v36  ;;  %v13218_v36 = vld [vmem:[%s17249_s0 + $0x208] sm:$0xff]  }
  0x8e   :  { %12215 = vmatmul.mubr.msk.bf16.gmra.mxu0 %vm949_vm1, %v13186_v37  ;;  %v13219_v37 = vld [vmem:[%s17249_s0 + $0x210] sm:$0xff]  }
  0x8f   :  { %12218 = vmatprep.mubr.msk.bf16.mxu0 %vm949_vm1, %v13187_v38 }
  0x96   :  { %12219 = vmatmul.mubr.msk.bf16.gmra.mxu0 %vm949_vm1, %v13188_v39 }
  0x97   :  { %12222 = vmatprep.mubr.msk.bf16.mxu0 %vm949_vm1, %v13189_v40 }
  0x9e   :  { %12223 = vmatmul.mubr.msk.bf16.gmra.mxu0 %vm949_vm1, %v13190_v41 }
  0x9f   :  { %12226 = vmatprep.mubr.msk.bf16.mxu0 %vm949_vm1, %v13191_v42  ;;  %v13220_v42 = vld [vmem:[%s17249_s0 + $0x218] sm:$0xff]  }
  0xa6   :  { %12227 = vmatmul.mubr.msk.bf16.gmra.mxu0 %vm949_vm1, %v13192_v43  ;;  %v13221_v43 = vld [vmem:[%s17249_s0 + $0x220] sm:$0xff]  }
  0xa7   :  { %12230 = vmatprep.mubr.msk.bf16.mxu0 %vm949_vm1, %v13193_v44 }
  0xae   :  { %12231 = vmatmul.mubr.msk.bf16.gmra.mxu0 %vm949_vm1, %v13194_v45 }
  0xaf   :  { %12234 = vmatprep.mubr.msk.bf16.mxu0 %vm949_vm1, %v13195_v46 }
  0xb6   :  { %12235 = vmatmul.mubr.msk.bf16.gmra.mxu0 %vm949_vm1, %v13196_v47 }
  0xb7   :  { %12238 = vmatprep.mubr.msk.bf16.mxu0 %vm949_vm1, %v13197_v48  ;;  %v13222_v48 = vld [vmem:[%s17249_s0 + $0x228] sm:$0xff]  }
  0xbe   :  { %12239 = vmatmul.mubr.msk.bf16.gmra.mxu0 %vm949_vm1, %v13198_v49  ;;  %v13223_v49 = vld [vmem:[%s17249_s0 + $0x230] sm:$0xff]  }
  0xbf   :  { %12242 = vmatprep.mubr.msk.bf16.mxu0 %vm949_vm1, %v13199_v50 }
  0xc6   :  { %12243 = vmatmul.mubr.msk.bf16.gmra.mxu0 %vm949_vm1, %v13200_v51 }
  0xc7   :  { %12246 = vmatprep.mubr.msk.bf16.mxu0 %vm949_vm1, %v13201_v52 }
  0xce   :  { %v14044_v55 = vpop.f32.mrf.mxu0  ;;  %12247 = vmatmul.mubr.msk.bf16.gmra.mxu0 %vm949_vm1, %v13202_v53 }
  0xcf   :  { %12250 = vmatprep.mubr.msk.bf16.mxu0 %vm949_vm1, %v13203_v54  ;;  %v13224_v54 = vld [vmem:[%s17249_s0 + $0x238] sm:$0xff]  }
  0xd0   :  { %v14048_v56 = vpop.f32.mrf.mxu0 }
  0xd2   :  { %v14050_v57 = vpop.f32.mrf.mxu0 }
  0xd4   :  { %v14058_v60 = vpop.f32.mrf.mxu0 }
  0xd6   :  { %v14060_v61 = vpop.f32.mrf.mxu0  ;;  %12251 = vmatmul.mubr.msk.bf16.gmra.mxu0 %vm949_vm1, %v13204_v58  ;;  %v13225_v58 = vld [vmem:[%s17249_s0 + $0x240] sm:$0xff]  }
  0xd7   :  { %12254 = vmatprep.mubr.msk.bf16.mxu0 %vm949_vm1, %v13205_v59 }
  0xd8   :  { %v14064_v62 = vpop.f32.mrf.mxu0 }
  0xda   :  { %v14066_v63 = vpop.f32.mrf.mxu0 }
  0xdc   :  { %v14074_v2 = vpop.f32.mrf.mxu0 }
  0xde   :  { %v14076_v3 = vpop.f32.mrf.mxu0  ;;  %12255 = vmatmul.mubr.msk.bf16.gmra.mxu0 %vm949_vm1, %v13206_v0 }
  0xdf   :  { %12258 = vmatprep.mubr.msk.bf16.mxu0 %vm949_vm1, %v13207_v1 }
  0xe0   :  { %v14080_v4 = vpop.f32.mrf.mxu0 }
  0xe2   :  { %v14082_v5 = vpop.f32.mrf.mxu0 }
  0xe4   :  { %v14090_v8 = vpop.f32.mrf.mxu0 }
  0xe6   :  { %v14092_v9 = vpop.f32.mrf.mxu0  ;;  %12259 = vmatmul.mubr.msk.bf16.gmra.mxu0 %vm949_vm1, %v13208_v6 }
  0xe7   :  { %12262 = vmatprep.mubr.msk.bf16.mxu0 %vm949_vm1, %v13209_v7  ;;  %v13226_v7 = vld [vmem:[%s17249_s0 + $0x248] sm:$0xff]  }
  0xe8   :  { %v14096_v10 = vpop.f32.mrf.mxu0 }
  0xea   :  { %v14098_v11 = vpop.f32.mrf.mxu0 }
  0xec   :  { %v14106_v14 = vpop.f32.mrf.mxu0 }
  0xee   :  { %v14108_v15 = vpop.f32.mrf.mxu0  ;;  %12263 = vmatmul.mubr.msk.bf16.gmra.mxu0 %vm949_vm1, %v13210_v12  ;;  %v13227_v12 = vld [vmem:[%s17249_s0 + $0x250] sm:$0xff]  }
  0xef   :  { %12266 = vmatprep.mubr.msk.bf16.mxu0 %vm949_vm1, %v13211_v13 }
  0xf0   :  { %v14112_v16 = vpop.f32.mrf.mxu0 }
  0xf1   :  { %17259 = vst [vmem:[#allocation4_spill] sm:$0xff] %v14112_v16 }
  0xf2   :  { %v14114_v17 = vpop.f32.mrf.mxu0 }
  0xf3   :  { %17260 = vst [vmem:[#allocation5_spill] sm:$0xff] %v14114_v17 }
  0xf4   :  { %v14122_v20 = vpop.f32.mrf.mxu0 }
  0xf5   :  { %17261 = vst [vmem:[#allocation6_spill] sm:$0xff] %v14122_v20  ;;  %v13279_v20 = vld [vmem:[%s17249_s0 + $0x3e8] sm:$0xff]  }
  0xf6   :  { %v14124_v21 = vpop.f32.mrf.mxu0  ;;  %12267 = vmatmul.mubr.msk.bf16.gmra.mxu0 %vm949_vm1, %v13212_v18 }
  0xf7   :  { %17262 = vst [vmem:[#allocation7_spill] sm:$0xff] %v14124_v21  ;;  %12270 = vmatprep.mubr.msk.bf16.mxu0 %vm949_vm1, %v13213_v19  ;;  %v13277_v21 = vld [vmem:[%s17249_s0 + $0x3d8] sm:$0xff]  }
  0xf8   :  { %v14128_v22 = vpop.f32.mrf.mxu0 }
  0xf9   :  { %17263 = vst [vmem:[#allocation8_spill] sm:$0xff] %v14128_v22 }
  0xfa   :  { %v14130_v23 = vpop.f32.mrf.mxu0 }
  0xfb   :  { %17264 = vst [vmem:[#allocation9_spill] sm:$0xff] %v14130_v23 }
  0xfc   :  { %v14138_v26 = vpop.f32.mrf.mxu0 }
  0xfd   :  { %17265 = vst [vmem:[#allocation10_spill] sm:$0xff] %v14138_v26  ;;  %v13273_v26 = vld [vmem:[%s17249_s0 + $0x3b8] sm:$0xff]  }
  0xfe   :  { %v14140_v27 = vpop.f32.mrf.mxu0  ;;  %12271 = vmatmul.mubr.msk.bf16.gmra.mxu0 %vm949_vm1, %v13214_v24 }
  0xff   :  { %17266 = vst [vmem:[#allocation11_spill] sm:$0xff] %v14140_v27  ;;  %12274 = vmatprep.mubr.msk.bf16.mxu0 %vm949_vm1, %v13215_v25  ;;  %v13228_v25 = vld [vmem:[%s17249_s0 + $0x258] sm:$0xff]  }
 0x100   :  { %v14144_v28 = vpop.f32.mrf.mxu0 }
 0x101   :  { %17267 = vst [vmem:[#allocation12_spill] sm:$0xff] %v14144_v28 }
 0x102   :  { %v14146_v29 = vpop.f32.mrf.mxu0 }
 0x103   :  { %17268 = vst [vmem:[#allocation13_spill] sm:$0xff] %v14146_v29 }
 0x104   :  { %v14154_v32 = vpop.f32.mrf.mxu0 }
 0x105   :  { %17269 = vst [vmem:[#allocation14_spill] sm:$0xff] %v14154_v32 }
 0x106   :  { %v14156_v33 = vpop.f32.mrf.mxu0  ;;  %12275 = vmatmul.mubr.msk.bf16.gmra.mxu0 %vm949_vm1, %v13216_v30  ;;  %v13229_v30 = vld [vmem:[%s17249_s0 + $0x260] sm:$0xff]  }
 0x107   :  { %17270 = vst [vmem:[#allocation15_spill] sm:$0xff] %v14156_v33  ;;  %12278 = vmatprep.mubr.msk.bf16.mxu0 %vm949_vm1, %v13217_v31 }
 0x108   :  { %v14160_v34 = vpop.f32.mrf.mxu0 }
 0x109   :  { %17271 = vst [vmem:[#allocation16_spill] sm:$0xff] %v14160_v34 }
 0x10a   :  { %v14162_v35 = vpop.f32.mrf.mxu0 }
 0x10b   :  { %17272 = vst [vmem:[#allocation17_spill] sm:$0xff] %v14162_v35  ;;  %v13251_v35 = vld [vmem:[%s17249_s0 + $0x310] sm:$0xff]  }
 0x10c   :  { %v14170_v38 = vpop.f32.mrf.mxu0 }
 0x10d   :  { %17273 = vst [vmem:[#allocation18_spill] sm:$0xff] %v14170_v38 }
 0x10e   :  { %v14172_v39 = vpop.f32.mrf.mxu0  ;;  %12279 = vmatmul.mubr.msk.bf16.gmra.mxu0 %vm949_vm1, %v13218_v36 }
 0x10f   :  { %17274 = vst [vmem:[#allocation19_spill] sm:$0xff] %v14172_v39  ;;  %12282 = vmatprep.mubr.msk.bf16.mxu0 %vm949_vm1, %v13219_v37 }
 0x110   :  { %v14176_v40 = vpop.f32.mrf.mxu0 }
 0x111   :  { %17275 = vst [vmem:[#allocation20_spill] sm:$0xff] %v14176_v40  ;;  %v13249_v40 = vld [vmem:[%s17249_s0 + $0x300] sm:$0xff]  }
 0x112   :  { %v14178_v41 = vpop.f32.mrf.mxu0 }
 0x113   :  { %17276 = vst [vmem:[#allocation21_spill] sm:$0xff] %v14178_v41 }
 0x114   :  { %v14186_v44 = vpop.f32.mrf.mxu0 }
 0x115   :  { %17277 = vst [vmem:[#allocation22_spill] sm:$0xff] %v14186_v44 }
 0x116   :  { %v14188_v45 = vpop.f32.mrf.mxu0  ;;  %12283 = vmatmul.mubr.msk.bf16.gmra.mxu0 %vm949_vm1, %v13220_v42 }
 0x117   :  { %17278 = vst [vmem:[#allocation23_spill] sm:$0xff] %v14188_v45  ;;  %12286 = vmatprep.mubr.msk.bf16.mxu0 %vm949_vm1, %v13221_v43  ;;  %v13230_v43 = vld [vmem:[%s17249_s0 + $0x268] sm:$0xff]  }
 0x118   :  { %v14192_v46 = vpop.f32.mrf.mxu0 }
 0x119   :  { %17279 = vst [vmem:[#allocation24_spill] sm:$0xff] %v14192_v46  ;;  %v13247_v46 = vld [vmem:[%s17249_s0 + $0x2f0] sm:$0xff]  }
 0x11a   :  { %v14194_v47 = vpop.f32.mrf.mxu0 }
 0x11b   :  { %17280 = vst [vmem:[#allocation25_spill] sm:$0xff] %v14194_v47 }
 0x11c   :  { %v14202_v50 = vpop.f32.mrf.mxu0 }
 0x11d   :  { %17281 = vst [vmem:[#allocation26_spill] sm:$0xff] %v14202_v50 }
 0x11e   :  { %v14204_v51 = vpop.f32.mrf.mxu0  ;;  %12287 = vmatmul.mubr.msk.bf16.gmra.mxu0 %vm949_vm1, %v13222_v48  ;;  %v13231_v48 = vld [vmem:[%s17249_s0 + $0x270] sm:$0xff]  }
 0x11f   :  { %17282 = vst [vmem:[#allocation27_spill] sm:$0xff] %v14204_v51  ;;  %12290 = vmatprep.mubr.msk.bf16.mxu0 %vm949_vm1, %v13223_v49 }
 0x120   :  { %v14208_v52 = vpop.f32.mrf.mxu0 }
 0x121   :  { %17283 = vst [vmem:[#allocation28_spill] sm:$0xff] %v14208_v52  ;;  %v13245_v52 = vld [vmem:[%s17249_s0 + $0x2e0] sm:$0xff]  }
 0x122   :  { %v14210_v53 = vpop.f32.mrf.mxu0 }
 0x123   :  { %17284 = vst [vmem:[#allocation29_spill] sm:$0xff] %v14210_v53 }
 0x124   :  { %v14218_v59 = vpop.f32.mrf.mxu0 }
 0x125   :  { %17285 = vst [vmem:[#allocation30_spill] sm:$0xff] %v14218_v59 }
 0x126   :  { %v14220_v0 = vpop.f32.mrf.mxu0  ;;  %12291 = vmatmul.mubr.msk.bf16.gmra.mxu0 %vm949_vm1, %v13224_v54 }
 0x127   :  { %17286 = vst [vmem:[#allocation31_spill] sm:$0xff] %v14220_v0  ;;  %12294 = vmatprep.mubr.msk.bf16.mxu0 %vm949_vm1, %v13225_v58 }
 0x128   :  { %v14224_v1 = vpop.f32.mrf.mxu0 }
 0x129   :  { %17287 = vst [vmem:[#allocation32_spill] sm:$0xff] %v14224_v1 }
 0x12a   :  { %v14226_v6 = vpop.f32.mrf.mxu0 }
 0x12b   :  { %17288 = vst [vmem:[#allocation33_spill] sm:$0xff] %v14226_v6  ;;  %v13242_v6 = vld [vmem:[%s17249_s0 + $0x2c8] sm:$0xff]  }
 0x12c   :  { %v14234_v13 = vpop.f32.mrf.mxu0 }
 0x12d   :  { %17289 = vst [vmem:[#allocation34_spill] sm:$0xff] %v14234_v13 }
 0x12e   :  { %v14236_v18 = vpop.f32.mrf.mxu0  ;;  %12295 = vmatmul.mubr.msk.bf16.gmra.mxu0 %vm949_vm1, %v13226_v7 }
 0x12f   :  { %17290 = vst [vmem:[#allocation35_spill] sm:$0xff] %v14236_v18  ;;  %12298 = vmatprep.mubr.msk.bf16.mxu0 %vm949_vm1, %v13227_v12  ;;  %v13232_v12 = vld [vmem:[%s17249_s0 + $0x278] sm:$0xff]  }
 0x130   :  { %v14240_v19 = vpop.f32.mrf.mxu0 }
 0x131   :  { %17291 = vst [vmem:[#allocation36_spill] sm:$0xff] %v14240_v19 }
 0x132   :  { %v14242_v24 = vpop.f32.mrf.mxu0 }
 0x133   :  { %17292 = vst [vmem:[#allocation37_spill] sm:$0xff] %v14242_v24 }
 0x134   :  { %v14250_v31 = vpop.f32.mrf.mxu0 }
 0x135   :  { %17293 = vst [vmem:[#allocation38_spill] sm:$0xff] %v14250_v31  ;;  %v13240_v31 = vld [vmem:[%s17249_s0 + $0x2b8] sm:$0xff]  }
 0x136   :  { %v14252_v36 = vpop.f32.mrf.mxu0  ;;  %12299 = vmatmul.mubr.msk.bf16.gmra.mxu0 %vm949_vm1, %v13228_v25  ;;  %v13233_v25 = vld [vmem:[%s17249_s0 + $0x280] sm:$0xff]  }
 0x137   :  { %17294 = vst [vmem:[#allocation39_spill] sm:$0xff] %v14252_v36  ;;  %12302 = vmatprep.mubr.msk.bf16.mxu0 %vm949_vm1, %v13229_v30 }
 0x138   :  { %v14256_v37 = vpop.f32.mrf.mxu0 }
 0x139   :  { %17295 = vst [vmem:[#allocation40_spill] sm:$0xff] %v14256_v37  ;;  %v13239_v37 = vld [vmem:[%s17249_s0 + $0x2b0] sm:$0xff]  }
 0x13a   :  { %v14258_v42 = vpop.f32.mrf.mxu0 }
 0x13b   :  { %17296 = vst [vmem:[#allocation41_spill] sm:$0xff] %v14258_v42  ;;  %v13238_v42 = vld [vmem:[%s17249_s0 + $0x2a8] sm:$0xff]  }
 0x13c   :  { %v14266_v49 = vpop.f32.mrf.mxu0 }
 0x13d   :  { %17297 = vst [vmem:[#allocation42_spill] sm:$0xff] %v14266_v49 }
 0x13e   :  { %v14268_v54 = vpop.f32.mrf.mxu0  ;;  %12303 = vmatmul.mubr.msk.bf16.gmra.mxu0 %vm949_vm1, %v13230_v43 }
 0x13f   :  { %17298 = vst [vmem:[#allocation43_spill] sm:$0xff] %v14268_v54  ;;  %12306 = vmatprep.mubr.msk.bf16.mxu0 %vm949_vm1, %v13231_v48 }
 0x140   :  { %v14272_v58 = vpop.f32.mrf.mxu0 }
 0x141   :  { %17299 = vst [vmem:[#allocation44_spill] sm:$0xff] %v14272_v58  ;;  %v13235_v58 = vld [vmem:[%s17249_s0 + $0x290] sm:$0xff]  }
 0x142   :  { %v14274_v7 = vpop.f32.mrf.mxu0 }
 0x143   :  { %17300 = vst [vmem:[#allocation45_spill] sm:$0xff] %v14274_v7  ;;  %v13234_v7 = vld [vmem:[%s17249_s0 + $0x288] sm:$0xff]  }
 0x144   :  { %v14282_v30 = vpop.f32.mrf.mxu0 }
 0x145   :  { %17301 = vst [vmem:[#allocation46_spill] sm:$0xff] %v14282_v30 }
 0x146   :  { %v14284_v49 = vpop.f32.mrf.mxu0  ;;  %12307 = vmatmul.mubr.msk.bf16.gmra.mxu0 %vm949_vm1, %v13232_v12 }
 0x147   :  { %17302 = vst [vmem:[#allocation47_spill] sm:$0xff] %v14284_v49  ;;  %12310 = vmatprep.mubr.msk.bf16.mxu0 %vm949_vm1, %v13233_v25 }
 0x148   :  { %v14288_v43 = vpop.f32.mrf.mxu0 }
 0x149   :  { %17303 = vst [vmem:[#allocation48_spill] sm:$0xff] %v14288_v43  ;;  %v13237_v43 = vld [vmem:[%s17249_s0 + $0x2a0] sm:$0xff]  }
 0x14a   :  { %v14290_v48 = vpop.f32.mrf.mxu0 }
 0x14b   :  { %17304 = vst [vmem:[#allocation49_spill] sm:$0xff] %v14290_v48  ;;  %v13236_v48 = vld [vmem:[%s17249_s0 + $0x298] sm:$0xff]  }
 0x14c   :  { %v14298_v54 = vpop.f32.mrf.mxu0 }
 0x14d   :  { %17305 = vst [vmem:[#allocation50_spill] sm:$0xff] %v14298_v54 }
 0x14e   :  { %v14300_v30 = vpop.f32.mrf.mxu0  ;;  %12311 = vmatmul.mubr.msk.bf16.gmra.mxu0 %vm949_vm1, %v13234_v7 }
 0x14f   :  { %12314 = vmatprep.mubr.msk.bf16.mxu0 %vm949_vm1, %v13235_v58 }
 0x150   :  { %v14304_v12 = vpop.f32.mrf.mxu0 }
 0x152   :  { %v14306_v25 = vpop.f32.mrf.mxu0 }
 0x154   :  { %v14314_v49 = vpop.f32.mrf.mxu0 }
 0x155   :  { %v2396_v16 = vmax.f32 %v14058_v60, %v14314_v49  ;;  %v13358_v60 = vld [vmem:[%s17250_s3] sm:$0xff]  }
 0x156   :  { %v14316_v54 = vpop.f32.mrf.mxu0  ;;  %12315 = vmatmul.mubr.msk.bf16.gmra.mxu0 %vm949_vm1, %v13236_v48 }
 0x157   :  { %12318 = vmatprep.mubr.msk.bf16.mxu0 %vm949_vm1, %v13237_v43  ;;  %v13271_v43 = vld [vmem:[%s17250_s3 + $0x138] sm:$0xff]   ;;  %v2401_v49 = vmax.f32 %v14060_v61, %v14316_v54 }
 0x158   :  { %v14320_v58 = vpop.f32.mrf.mxu0  ;;  %12726 = vmatprep.subr.bf16.mxu0 %v13271_v43 }
 0x159   :  { %12727 = vmatpush3.bf16.msra.mxu0 %v13271_v43  ;;  %v13243_v43 = vld [vmem:[%s17249_s0 + $0x2d0] sm:$0xff]  }
 0x15a   :  { %v14322_v7 = vpop.f32.mrf.mxu0 }
 0x15c   :  { %v14330_v36 = vpop.f32.mrf.mxu0 }
 0x15e   :  { %v14332_v24 = vpop.f32.mrf.mxu0  ;;  %12319 = vmatmul.mubr.msk.bf16.gmra.mxu0 %vm949_vm1, %v13238_v42  ;;  %v13241_v42 = vld [vmem:[%s17249_s0 + $0x2c0] sm:$0xff]  }
 0x15f   :  { %12322 = vmatprep.mubr.msk.bf16.mxu0 %vm949_vm1, %v13239_v37 }
 0x160   :  { %v14339_v48 = vpop.f32.mrf.mxu0 }
 0x162   :  { %v14344_v19 = vpop.f32.mrf.mxu0 }
 0x164   :  { %v14349_v18 = vpop.f32.mrf.mxu0 }
 0x166   :  { %v14351_v37 = vpop.f32.mrf.mxu0  ;;  %12323 = vmatmul.mubr.msk.bf16.gmra.mxu0 %vm949_vm1, %v13240_v31 }
 0x167   :  { %12326 = vmatprep.mubr.msk.bf16.mxu0 %vm949_vm1, %v13241_v42  ;;  %v13244_v42 = vld [vmem:[%s17249_s0 + $0x2d8] sm:$0xff]  }
 0x168   :  { %v14355_v13 = vpop.f32.mrf.mxu0 }
 0x16a   :  { %v14360_v1 = vpop.f32.mrf.mxu0 }
 0x16c   :  { %v14365_v0 = vpop.f32.mrf.mxu0 }
 0x16e   :  { %v14367_v59 = vpop.f32.mrf.mxu0  ;;  %12327 = vmatmul.mubr.msk.bf16.gmra.mxu0 %vm949_vm1, %v13242_v6 }
 0x16f   :  { %12330 = vmatprep.mubr.msk.bf16.mxu0 %vm949_vm1, %v13243_v43  ;;  %v13246_v43 = vld [vmem:[%s17249_s0 + $0x2e8] sm:$0xff]  }
 0x170   :  { %v14371_v31 = vpop.f32.mrf.mxu0 }
 0x172   :  { %v14376_v53 = vpop.f32.mrf.mxu0 }
 0x173   :  { %17306 = vst [vmem:[#allocation51_spill] sm:$0xff] %v14376_v53 }
 0x174   :  { %v14381_v51 = vpop.f32.mrf.mxu0 }
 0x175   :  { %17307 = vst [vmem:[#allocation52_spill] sm:$0xff] %v14381_v51 }
 0x176   :  { %v14383_v50 = vpop.f32.mrf.mxu0  ;;  %12331 = vmatmul.mubr.msk.bf16.gmra.mxu0 %vm949_vm1, %v13244_v42  ;;  %v13248_v42 = vld [vmem:[%s17249_s0 + $0x2f8] sm:$0xff]  }
 0x177   :  { %17308 = vst [vmem:[#allocation53_spill] sm:$0xff] %v14383_v50  ;;  %12334 = vmatprep.mubr.msk.bf16.mxu0 %vm949_vm1, %v13245_v52  ;;  %v13278_v50 = vld [vmem:[%s17249_s0 + $0x3e0] sm:$0xff]  }
 0x178   :  { %v14387_v6 = vpop.f32.mrf.mxu0 }
 0x179   :  { %17309 = vst [vmem:[#allocation54_spill] sm:$0xff] %v14387_v6 }
 0x17a   :  { %v14392_v47 = vpop.f32.mrf.mxu0 }
 0x17b   :  { %17310 = vst [vmem:[#allocation55_spill] sm:$0xff] %v14392_v47  ;;  %v13275_v47 = vld [vmem:[%s17249_s0 + $0x3c8] sm:$0xff]  }
 0x17c   :  { %v14397_v45 = vpop.f32.mrf.mxu0 }
 0x17d   :  { %17311 = vst [vmem:[#allocation56_spill] sm:$0xff] %v14397_v45  ;;  %v13274_v45 = vld [vmem:[%s17249_s0 + $0x3c0] sm:$0xff]  }
 0x17e   :  { %v14399_v41 = vpop.f32.mrf.mxu0  ;;  %12335 = vmatmul.mubr.msk.bf16.gmra.mxu0 %vm949_vm1, %v13246_v43  ;;  %v13250_v43 = vld [vmem:[%s17249_s0 + $0x308] sm:$0xff]  }
 0x17f   :  { %17312 = vst [vmem:[#allocation57_spill] sm:$0xff] %v14399_v41  ;;  %12338 = vmatprep.mubr.msk.bf16.mxu0 %vm949_vm1, %v13247_v46 }
 0x180   :  { %v14403_v52 = vpop.f32.mrf.mxu0 }
 0x181   :  { %17313 = vst [vmem:[#allocation58_spill] sm:$0xff] %v14403_v52 }
 0x182   :  { %v14408_v44 = vpop.f32.mrf.mxu0 }
 0x183   :  { %17314 = vst [vmem:[#allocation59_spill] sm:$0xff] %v14408_v44  ;;  %v13294_v44 = vld [vmem:[%s17250_s3 + $0x120] sm:$0xff]  }
 0x184   :  { %v14413_v39 = vpop.f32.mrf.mxu0 }
 0x185   :  { %17315 = vst [vmem:[#allocation60_spill] sm:$0xff] %v14413_v39 }
 0x186   :  { %v14415_v38 = vpop.f32.mrf.mxu0  ;;  %12339 = vmatmul.mubr.msk.bf16.gmra.mxu0 %vm949_vm1, %v13248_v42 }
 0x187   :  { %17316 = vst [vmem:[#allocation61_spill] sm:$0xff] %v14415_v38  ;;  %12342 = vmatprep.mubr.msk.bf16.mxu0 %vm949_vm1, %v13249_v40 }
 0x188   :  { %v14419_v46 = vpop.f32.mrf.mxu0 }
 0x189   :  { %17317 = vst [vmem:[#allocation62_spill] sm:$0xff] %v14419_v46  ;;  %v13252_v46 = vld [vmem:[%s17249_s0 + $0x318] sm:$0xff]  }
 0x18a   :  { %v14427_v34 = vpop.f32.mrf.mxu0 }
 0x18b   :  { %17318 = vst [vmem:[#allocation63_spill] sm:$0xff] %v14427_v34  ;;  %v13253_v34 = vld [vmem:[%s17249_s0 + $0x320] sm:$0xff]  }
 0x18c   :  { %v14429_v33 = vpop.f32.mrf.mxu0 }
 0x18d   :  { %17319 = vst [vmem:[#allocation64_spill] sm:$0xff] %v14429_v33 }
 0x18e   :  { %v14431_v32 = vpop.f32.mrf.mxu0  ;;  %12343 = vmatmul.mubr.msk.bf16.gmra.mxu0 %vm949_vm1, %v13250_v43 }
 0x18f   :  { %17320 = vst [vmem:[#allocation65_spill] sm:$0xff] %v14431_v32  ;;  %12346 = vmatprep.mubr.msk.bf16.mxu0 %vm949_vm1, %v13251_v35 }
 0x190   :  { %v14435_v40 = vpop.f32.mrf.mxu0 }
 0x191   :  { %17321 = vst [vmem:[#allocation66_spill] sm:$0xff] %v14435_v40  ;;  %v13255_v40 = vld [vmem:[%s17249_s0 + $0x330] sm:$0xff]  }
 0x192   :  { %v14437_v42 = vpop.f32.mrf.mxu0 }
 0x193   :  { %17322 = vst [vmem:[#allocation67_spill] sm:$0xff] %v14437_v42  ;;  %v13254_v42 = vld [vmem:[%s17249_s0 + $0x328] sm:$0xff]  }
 0x194   :  { %v14445_v38 = vpop.f32.mrf.mxu0 }
 0x195   :  { %17323 = vst [vmem:[#allocation68_spill] sm:$0xff] %v14445_v38 }
 0x196   :  { %v14447_v33 = vpop.f32.mrf.mxu0  ;;  %12347 = vmatmul.mubr.msk.bf16.gmra.mxu0 %vm949_vm1, %v13252_v46 }
 0x197   :  { %17324 = vst [vmem:[#allocation69_spill] sm:$0xff] %v14447_v33  ;;  %12350 = vmatprep.mubr.msk.bf16.mxu0 %vm949_vm1, %v13253_v34  ;;  %v13282_v34 = vld [vmem:[%s17250_s3 + $0x130] sm:$0xff]  }
 0x198   :  { %v14451_v35 = vpop.f32.mrf.mxu0  ;;  %12728 = vmatprep.subr.bf16.mxu0 %v13282_v34 }
 0x199   :  { %17325 = vst [vmem:[#allocation70_spill] sm:$0xff] %v14451_v35  ;;  %12729 = vmatpush3.bf16.msra.mxu0 %v13282_v34 }
 0x19a   :  { %v14453_v43 = vpop.f32.mrf.mxu0 }
 0x19b   :  { %17326 = vst [vmem:[#allocation71_spill] sm:$0xff] %v14453_v43 }
 0x19c   :  { %v14461_v32 = vpop.f32.mrf.mxu0 }
 0x19d   :  { %17327 = vst [vmem:[#allocation72_spill] sm:$0xff] %v14461_v32  ;;  %v13256_v32 = vld [vmem:[%s17249_s0 + $0x338] sm:$0xff]  }
 0x19e   :  { %v14463_v38 = vpop.f32.mrf.mxu0  ;;  %12351 = vmatmul.mubr.msk.bf16.gmra.mxu0 %vm949_vm1, %v13254_v42  ;;  %v13257_v42 = vld [vmem:[%s17249_s0 + $0x340] sm:$0xff]  }
 0x19f   :  { %17328 = vst [vmem:[#allocation73_spill] sm:$0xff] %v14463_v38  ;;  %12354 = vmatprep.mubr.msk.bf16.mxu0 %vm949_vm1, %v13255_v40 }
 0x1a0   :  { %v14470_v46 = vpop.f32.mrf.mxu0 }
 0x1a1   :  { %17329 = vst [vmem:[#allocation74_spill] sm:$0xff] %v14470_v46  ;;  %v13259_v46 = vld [vmem:[%s17249_s0 + $0x350] sm:$0xff]  }
 0x1a2   :  { %v14472_v43 = vpop.f32.mrf.mxu0 }
 0x1a3   :  { %17330 = vst [vmem:[#allocation75_spill] sm:$0xff] %v14472_v43  ;;  %v13258_v43 = vld [vmem:[%s17249_s0 + $0x348] sm:$0xff]  }
 0x1a4   :  { %v14480_v38 = vpop.f32.mrf.mxu0 }
 0x1a5   :  { %17331 = vst [vmem:[#allocation76_spill] sm:$0xff] %v14480_v38 }
 0x1a6   :  { %v14482_v35 = vpop.f32.mrf.mxu0  ;;  %12355 = vmatmul.mubr.msk.bf16.gmra.mxu0 %vm949_vm1, %v13256_v32 }
 0x1a7   :  { %17332 = vst [vmem:[#allocation77_spill] sm:$0xff] %v14482_v35  ;;  %12358 = vmatprep.mubr.msk.bf16.mxu0 %vm949_vm1, %v13257_v42 }
 0x1a8   :  { %v14486_v40 = vpop.f32.mrf.mxu0 }
 0x1a9   :  { %17333 = vst [vmem:[#allocation78_spill] sm:$0xff] %v14486_v40  ;;  %v13261_v40 = vld [vmem:[%s17249_s0 + $0x360] sm:$0xff]  }
 0x1aa   :  { %v14488_v34 = vpop.f32.mrf.mxu0 }
 0x1ab   :  { %17334 = vst [vmem:[#allocation79_spill] sm:$0xff] %v14488_v34  ;;  %v13260_v34 = vld [vmem:[%s17249_s0 + $0x358] sm:$0xff]  }
 0x1ac   :  { %v14496_v33 = vpop.f32.mrf.mxu0 }
 0x1ad   :  { %17335 = vst [vmem:[#allocation80_spill] sm:$0xff] %v14496_v33 }
 0x1ae   :  { %v14498_v38 = vpop.f32.mrf.mxu0  ;;  %12359 = vmatmul.mubr.msk.bf16.gmra.mxu0 %vm949_vm1, %v13258_v43  ;;  %v13283_v43 = vld [vmem:[%s17250_s3 + $0x78] sm:$0xff]  }
 0x1af   :  { %17336 = vst [vmem:[#allocation81_spill] sm:$0xff] %v14498_v38  ;;  %12362 = vmatprep.mubr.msk.bf16.mxu0 %vm949_vm1, %v13259_v46  ;;  %12406 = vmatprep.subr.bf16.mxu1 %v13283_v43 }
 0x1b0   :  { %v14502_v32 = vpop.f32.mrf.mxu0  ;;  %12407 = vmatpush3.bf16.msra.mxu1 %v13283_v43  ;;  %v13285_v43 = vld [vmem:[%s17250_s3 + $0x68] sm:$0xff]  }
 0x1b1   :  { %17337 = vst [vmem:[#allocation82_spill] sm:$0xff] %v14502_v32 }
 0x1b2   :  { %v14504_v42 = vpop.f32.mrf.mxu0 }
 0x1b3   :  { %17338 = vst [vmem:[#allocation83_spill] sm:$0xff] %v14504_v42  ;;  %v13284_v42 = vld [vmem:[%s17250_s3 + $0x70] sm:$0xff]  }
 0x1b4   :  { %v14512_v35 = vpop.f32.mrf.mxu0  ;;  %12408 = vmatprep.subr.bf16.mxu1 %v13284_v42 }
 0x1b5   :  { %17339 = vst [vmem:[#allocation84_spill] sm:$0xff] %v14512_v35  ;;  %v13262_v35 = vld [vmem:[%s17249_s0 + $0x368] sm:$0xff]   ;;  %12409 = vmatpush3.bf16.msra.mxu1 %v13284_v42  ;;  %v13286_v42 = vld [vmem:[%s17250_s3 + $0x60] sm:$0xff]  }
 0x1b6   :  { %v14517_v38 = vpop.f32.mrf.mxu0  ;;  %12363 = vmatmul.mubr.msk.bf16.gmra.mxu0 %vm949_vm1, %v13260_v34  ;;  %v13263_v34 = vld [vmem:[%s17249_s0 + $0x370] sm:$0xff]   ;;  %12410 = vmatprep.subr.bf16.mxu1 %v13285_v43 }
 0x1b7   :  { %17340 = vst [vmem:[#allocation85_spill] sm:$0xff] %v14517_v38  ;;  %12366 = vmatprep.mubr.msk.bf16.mxu0 %vm949_vm1, %v13261_v40 }
 0x1b8   :  { %v14521_v46 = vpop.f32.mrf.mxu0 }
 0x1b9   :  { %17341 = vst [vmem:[#allocation86_spill] sm:$0xff] %v14521_v46  ;;  %12411 = vmatpush3.bf16.msra.mxu1 %v13285_v43  ;;  %v13287_v43 = vld [vmem:[%s17250_s3 + $0x58] sm:$0xff]  }
 0x1ba   :  { %v14526_v32 = vpop.f32.mrf.mxu0  ;;  %12412 = vmatprep.subr.bf16.mxu1 %v13286_v42 }
 0x1bb   :  { %17342 = vst [vmem:[#allocation87_spill] sm:$0xff] %v14526_v32 }
 0x1bc   :  { %v14534_v40 = vpop.f32.mrf.mxu0 }
 0x1bd   :  { %17343 = vst [vmem:[#allocation88_spill] sm:$0xff] %v14534_v40  ;;  %v13264_v40 = vld [vmem:[%s17249_s0 + $0x378] sm:$0xff]   ;;  %12413 = vmatpush3.bf16.msra.mxu1 %v13286_v42  ;;  %v13288_v42 = vld [vmem:[%s17250_s3 + $0x50] sm:$0xff]  }
 0x1be   :  { %v14539_v46 = vpop.f32.mrf.mxu0  ;;  %12367 = vmatmul.mubr.msk.bf16.gmra.mxu0 %vm949_vm1, %v13262_v35  ;;  %v13265_v35 = vld [vmem:[%s17249_s0 + $0x380] sm:$0xff]   ;;  %12414 = vmatprep.subr.bf16.mxu1 %v13287_v43 }
 0x1bf   :  { %17344 = vst [vmem:[#allocation89_spill] sm:$0xff] %v14539_v46  ;;  %12370 = vmatprep.mubr.msk.bf16.mxu0 %vm949_vm1, %v13263_v34 }
 0x1c0   :  { %v14543_v32 = vpop.f32.mrf.mxu0 }
 0x1c1   :  { %17345 = vst [vmem:[#allocation90_spill] sm:$0xff] %v14543_v32  ;;  %12415 = vmatpush3.bf16.msra.mxu1 %v13287_v43  ;;  %v13289_v43 = vld [vmem:[%s17250_s3 + $0x48] sm:$0xff]  }
 0x1c2   :  { %v14548_v38 = vpop.f32.mrf.mxu0  ;;  %12416 = vmatprep.subr.bf16.mxu1 %v13288_v42 }
 0x1c3   :  { %17346 = vst [vmem:[#allocation91_spill] sm:$0xff] %v14548_v38 }
 0x1c4   :  { %v14556_v34 = vpop.f32.mrf.mxu0 }
 0x1c5   :  { %17347 = vst [vmem:[#allocation92_spill] sm:$0xff] %v14556_v34  ;;  %v13266_v34 = vld [vmem:[%s17249_s0 + $0x388] sm:$0xff]   ;;  %12417 = vmatpush3.bf16.msra.mxu1 %v13288_v42 }
 0x1c6   :  { %v14561_v32 = vpop.f32.mrf.mxu0  ;;  %12371 = vmatmul.mubr.msk.bf16.gmra.mxu0 %vm949_vm1, %v13264_v40  ;;  %v13267_v40 = vld [vmem:[%s17249_s0 + $0x390] sm:$0xff]   ;;  %12418 = vmatprep.subr.bf16.mxu1 %v13289_v43 }
 0x1c7   :  { %17348 = vst [vmem:[#allocation93_spill] sm:$0xff] %v14561_v32  ;;  %12374 = vmatprep.mubr.msk.bf16.mxu0 %vm949_vm1, %v13265_v35 }
 0x1c8   :  { %v14565_v38 = vpop.f32.mrf.mxu0 }
 0x1c9   :  { %17349 = vst [vmem:[#allocation94_spill] sm:$0xff] %v14565_v38  ;;  %v13780_v38 = vmov 0   ;;  %12419 = vmatpush3.bf16.msra.mxu1 %v13289_v43 }
 0x1ca   :  { %v14570_v46 = vpop.f32.mrf.mxu0  ;;  %2723 = vst [vmem:[#allocation2 + $0x4] sm:$0xf] %v13780_v38  ;;  %2724 = vst [vmem:[#allocation2 + $0x8] sm:$0xf] %v13780_v38 }
 0x1cb   :  { %17350 = vst [vmem:[#allocation95_spill] sm:$0xff] %v14570_v46  ;;  %2722 = vst [vmem:[#allocation2] sm:$0xf] %v13780_v38  ;;  %v13290_v46 = vld [vmem:[%s17250_s3 + $0x40] sm:$0xff]  }
 0x1cc   :  { %v14578_v35 = vpop.f32.mrf.mxu0  ;;  %2725 = vst [vmem:[#allocation2 + $0xc] sm:$0xf] %v13780_v38  ;;  %2726 = vst [vmem:[#allocation2 + $0x10] sm:$0xf] %v13780_v38  ;;  %12420 = vmatprep.subr.bf16.mxu1 %v13290_v46 }
 0x1cd   :  { %17351 = vst [vmem:[#allocation96_spill] sm:$0xff] %v14578_v35  ;;  %2727 = vst [vmem:[#allocation2 + $0x14] sm:$0xf] %v13780_v38  ;;  %12421 = vmatpush3.bf16.msra.mxu1 %v13290_v46  ;;  %v13270_v46 = vld [vmem:[%s17249_s0 + $0x3a8] sm:$0xff]  }
 0x1ce   :  { %2728 = vst [vmem:[#allocation2 + $0x18] sm:$0xf] %v13780_v38  ;;  %2729 = vst [vmem:[#allocation2 + $0x1c] sm:$0xf] %v13780_v38  ;;  %v14583_v42 = vpop.f32.mrf.mxu0  ;;  %12375 = vmatmul.mubr.msk.bf16.gmra.mxu0 %vm949_vm1, %v13266_v34  ;;  %v13269_v34 = vld [vmem:[%s17249_s0 + $0x3a0] sm:$0xff]  }
 0x1cf   :  { %2730 = vst [vmem:[#allocation2 + $0x20] sm:$0xf] %v13780_v38  ;;  %2731 = vst [vmem:[#allocation2 + $0x24] sm:$0xf] %v13780_v38  ;;  %12378 = vmatprep.mubr.msk.bf16.mxu0 %vm949_vm1, %v13267_v40  ;;  %v13291_v40 = vld [vmem:[%s17250_s3 + $0x128] sm:$0xff]  }
 0x1d0   :  { %2733 = vst [vmem:[#allocation2 + $0x168] sm:$0xf] %v13780_v38  ;;  %2734 = vst [vmem:[#allocation2 + $0x16c] sm:$0xf] %v13780_v38  ;;  %v14587_v35 = vpop.f32.mrf.mxu0  ;;  %12730 = vmatprep.subr.bf16.mxu0 %v13291_v40 }
 0x1d1   :  { %2735 = vst [vmem:[#allocation2 + $0x170] sm:$0xf] %v13780_v38  ;;  %2736 = vst [vmem:[#allocation2 + $0x174] sm:$0xf] %v13780_v38  ;;  %v13292_v43 = vld [vmem:[#allocation2 + $0x4] sm:$0xff]   ;;  %12731 = vmatpush3.bf16.msra.mxu0 %v13291_v40  ;;  %v13272_v40 = vld [vmem:[%s17249_s0 + $0x3b0] sm:$0xff]  }
 0x1d2   :  { %2737 = vst [vmem:[#allocation2 + $0x178] sm:$0xf] %v13780_v38  ;;  %2738 = vst [vmem:[#allocation2 + $0x17c] sm:$0xf] %v13780_v38  ;;  %v14592_v32 = vpop.f32.mrf.mxu0  ;;  %12422 = vmatprep.mubr.bf16.mxu1 %v13292_v43  ;;  %12732 = vmatprep.subr.bf16.mxu0 %v13294_v44 }
 0x1d3   :  { %2739 = vst [vmem:[#allocation2 + $0x180] sm:$0xf] %v13780_v38  ;;  %2740 = vst [vmem:[#allocation2 + $0x184] sm:$0xf] %v13780_v38  ;;  %v13293_v39 = vld [vmem:[#allocation2 + $0xc] sm:$0xff]  }
 0x1d4   :  { %2741 = vst [vmem:[#allocation2 + $0x188] sm:$0xf] %v13780_v38  ;;  %2742 = vst [vmem:[#allocation2 + $0x18c] sm:$0xf] %v13780_v38  ;;  %v14603_v33 = vpop.f32.mrf.mxu0  ;;  %12423 = vmatmul.mubr.bf16.vlgmr.msra.gmra.mxu1 %v13293_v39  ;;  %v13296_v39 = vld [vmem:[%s17250_s3 + $0x118] sm:$0xff]  }
 0x1d5   :  { %2744 = vst [vmem:[#allocation2 + $0x28] sm:$0xf] %v13780_v38  ;;  %2745 = vst [vmem:[#allocation2 + $0x50] sm:$0xf] %v13780_v38  ;;  %12733 = vmatpush3.bf16.msra.mxu0 %v13294_v44  ;;  %v13299_v44 = vld [vmem:[%s17250_s3 + $0x110] sm:$0xff]  }
 0x1d6   :  { %2746 = vst [vmem:[#allocation2 + $0x78] sm:$0xf] %v13780_v38  ;;  %2747 = vst [vmem:[#allocation2 + $0xa0] sm:$0xf] %v13780_v38  ;;  %v14605_v29 = vpop.f32.mrf.mxu0  ;;  %12734 = vmatprep.subr.bf16.mxu0 %v13296_v39  ;;  %v13298_v52 = vld [vmem:[#allocation2 + $0x1c] sm:$0xff]  }
 0x1d7   :  { %2748 = vst [vmem:[#allocation2 + $0xc8] sm:$0xf] %v13780_v38  ;;  %2749 = vst [vmem:[#allocation2 + $0xf0] sm:$0xf] %v13780_v38 }
 0x1d8   :  { %2750 = vst [vmem:[#allocation2 + $0x118] sm:$0xf] %v13780_v38  ;;  %2751 = vst [vmem:[#allocation2 + $0x140] sm:$0xf] %v13780_v38  ;;  %v14612_v28 = vpop.f32.mrf.mxu0 }
 0x1d9   :  { %2753 = vst [vmem:[#allocation2 + $0x4c] sm:$0xf] %v13780_v38  ;;  %2754 = vst [vmem:[#allocation2 + $0x74] sm:$0xf] %v13780_v38  ;;  %12735 = vmatpush3.bf16.msra.mxu0 %v13296_v39 }
 0x1da   :  { %2755 = vst [vmem:[#allocation2 + $0x9c] sm:$0xf] %v13780_v38  ;;  %2756 = vst [vmem:[#allocation2 + $0xc4] sm:$0xf] %v13780_v38  ;;  %v14620_v43 = vpop.f32.mrf.mxu0  ;;  %12736 = vmatprep.subr.bf16.mxu0 %v13299_v44 }
 0x1db   :  { %2757 = vst [vmem:[#allocation2 + $0xec] sm:$0xf] %v13780_v38  ;;  %2758 = vst [vmem:[#allocation2 + $0x114] sm:$0xf] %v13780_v38 }
 0x1dc   :  { %2759 = vst [vmem:[#allocation2 + $0x13c] sm:$0xf] %v13780_v38  ;;  %2760 = vst [vmem:[#allocation2 + $0x164] sm:$0xf] %v13780_v38  ;;  %v13268_v38 = vld [vmem:[%s17249_s0 + $0x398] sm:$0xff]  }
 0x1dd   :  { %12379 = vmatmul.mubr.msk.bf16.gmra.mxu0 %vm949_vm1, %v13268_v38  ;;  %v14625_v38 = vpop.f32.mrf.mxu0 }
 0x1de   :  { %12382 = vmatprep.mubr.msk.bf16.mxu0 %vm949_vm1, %v13269_v34  ;;  %v13297_v34 = vld [vmem:[#allocation2 + $0x14] sm:$0xff]   ;;  %12737 = vmatpush3.bf16.msra.mxu0 %v13299_v44  ;;  %v13302_v44 = vld [vmem:[%s17250_s3 + $0x100] sm:$0xff]  }
 0x1df   :  { %v14627_v27 = vpop.f32.mrf.mxu0  ;;  %12426 = vmatprep.mubr.bf16.mxu1 %v13297_v34 }
 0x1e0   :  { %12427 = vmatmul.mubr.bf16.gmra.mxu1 %v13298_v52  ;;  %v13295_v52 = vld [vmem:[%s17250_s3 + $0x38] sm:$0xff]  }
 0x1e1   :  { %v14634_v41 = vpop.f32.mrf.mxu0  ;;  %12486 = vmatprep.subr.bf16.mxu1 %v13295_v52 }
 0x1e2   :  { %12487 = vmatpush3.bf16.msra.mxu1 %v13295_v52 }
 0x1e5   :  { %12383 = vmatmul.mubr.msk.bf16.gmra.mxu0 %vm949_vm1, %v13270_v46  ;;  %v14642_v46 = vpop.f32.mrf.mxu0 }
 0x1e6   :  { %12386 = vmatprep.mubr.msk.bf16.mxu0 %vm949_vm1, %v13272_v40  ;;  %v13300_v40 = vld [vmem:[%s17250_s3 + $0x108] sm:$0xff]  }
 0x1e7   :  { %v14647_v39 = vpop.f32.mrf.mxu0  ;;  %12738 = vmatprep.subr.bf16.mxu0 %v13300_v40 }
 0x1e8   :  { %12739 = vmatpush3.bf16.msra.mxu0 %v13300_v40 }
 0x1e9   :  { %v14649_v34 = vpop.f32.mrf.mxu0  ;;  %12740 = vmatprep.subr.bf16.mxu0 %v13302_v44 }
 0x1eb   :  { %v14659_v23 = vpop.f32.mrf.mxu0 }
 0x1ec   :  { %12741 = vmatpush3.bf16.msra.mxu0 %v13302_v44 }
 0x1ed   :  { %12387 = vmatmul.mubr.msk.bf16.gmra.mxu0 %vm949_vm1, %v13273_v26  ;;  %v13276_v26 = vld [vmem:[%s17249_s0 + $0x3d0] sm:$0xff]  }
 0x1ee   :  { %12390 = vmatprep.mubr.msk.bf16.mxu0 %vm949_vm1, %v13274_v45  ;;  %v14667_v45 = vpop.f32.mrf.mxu0 }
 0x1f0   :  { %v14669_v40 = vpop.f32.mrf.mxu0 }
 0x1f2   :  { %v14671_v22 = vpop.f32.mrf.mxu0 }
 0x1f4   :  { %v14675_v6 = vpop.f32.mrf.mxu0 }
 0x1f5   :  { %12391 = vmatmul.mubr.msk.bf16.gmra.mxu0 %vm949_vm1, %v13275_v47  ;;  %17352 = vst [vmem:[#allocation97_spill] sm:$0xff] %v14675_v6  ;;  %v14822_v6 = vld [vmem:[%s17251_s2] ss:$0 sm:$0xff] }
 0x1f6   :  { %12394 = vmatprep.mubr.msk.bf16.mxu0 %vm949_vm1, %v13276_v26  ;;  %v14683_v52 = vpop.f32.mrf.mxu0  ;;  %v13304_v26 = vld [vmem:[%s17250_s3 + $0x30] sm:$0xff]  }
 0x1f7   :  { %17353 = vst [vmem:[#allocation98_spill] sm:$0xff] %v14683_v52  ;;  %12488 = vmatprep.subr.bf16.mxu1 %v13304_v26 }
 0x1f8   :  { %v14685_v44 = vpop.f32.mrf.mxu0  ;;  %12489 = vmatpush3.bf16.msra.mxu1 %v13304_v26 }
 0x1f9   :  { %17354 = vst [vmem:[#allocation99_spill] sm:$0xff] %v14685_v44  ;;  %v13281_v44 = vld [vmem:[%s17249_s0 + $0x3f8] sm:$0xff]  }
 0x1fa   :  { %v14687_v17 = vpop.f32.mrf.mxu0 }
 0x1fb   :  { %17355 = vst [vmem:[#allocation100_spill] sm:$0xff] %v14687_v17  ;;  %v13280_v17 = vld [vmem:[%s17249_s0 + $0x3f0] sm:$0xff]  }
 0x1fc   :  { %v14691_v47 = vpop.f32.mrf.mxu0 }
 0x1fd   :  { %12395 = vmatmul.mubr.msk.bf16.gmra.mxu0 %vm949_vm1, %v13277_v21  ;;  %17356 = vst [vmem:[#allocation101_spill] sm:$0xff] %v14691_v47 }
 0x1fe   :  { %12398 = vmatprep.mubr.msk.bf16.mxu0 %vm949_vm1, %v13278_v50  ;;  %v14696_v53 = vpop.f32.mrf.mxu0 }
 0x1ff   :  { %17357 = vst [vmem:[#allocation102_spill] sm:$0xff] %v14696_v53 }
 0x200   :  { %v14704_v21 = vpop.f32.mrf.mxu0 }
 0x201   :  { %17358 = vst [vmem:[#allocation103_spill] sm:$0xff] %v14704_v21 }
 0x202   :  { %v14706_v50 = vpop.f32.mrf.mxu0 }
 0x203   :  { %17359 = vst [vmem:[#allocation104_spill] sm:$0xff] %v14706_v50 }
 0x204   :  { %v14710_v47 = vpop.f32.mrf.mxu0 }
 0x205   :  { %12399 = vmatmul.mubr.msk.bf16.gmra.mxu0 %vm949_vm1, %v13279_v20  ;;  %17360 = vst [vmem:[#allocation105_spill] sm:$0xff] %v14710_v47  ;;  %v13313_v20 = vld [vmem:[%s17250_s3 + $0x28] sm:$0xff]  }
 0x206   :  { %12402 = vmatprep.mubr.msk.bf16.mxu0 %vm949_vm1, %v13280_v17  ;;  %v14712_v53 = vpop.f32.mrf.mxu0  ;;  %12490 = vmatprep.subr.bf16.mxu1 %v13313_v20 }
 0x207   :  { %17361 = vst [vmem:[#allocation106_spill] sm:$0xff] %v14712_v53  ;;  %12491 = vmatpush3.bf16.msra.mxu1 %v13313_v20 }
 0x208   :  { %v14717_v51 = vpop.f32.mrf.mxu0 }
 0x209   :  { %17362 = vst [vmem:[#allocation107_spill] sm:$0xff] %v14717_v51 }
 0x20a   :  { %v14719_v52 = vpop.f32.mrf.mxu0 }
 0x20b   :  { %17363 = vst [vmem:[#allocation108_spill] sm:$0xff] %v14719_v52 }
 0x20c   :  { %v14725_v26 = vpop.f32.mrf.mxu0 }
 0x20d   :  { %12403 = vmatmul.mubr.msk.bf16.gmra.mxu0 %vm949_vm1, %v13281_v44  ;;  %17364 = vst [vmem:[#allocation109_spill] sm:$0xff] %v14725_v26  ;;  %v13322_v26 = vld [vmem:[%s17250_s3 + $0x20] sm:$0xff]  }
 0x20e   :  { %v14727_v17 = vpop.f32.mrf.mxu0  ;;  %12492 = vmatprep.subr.bf16.mxu1 %v13322_v26 }
 0x20f   :  { %17365 = vst [vmem:[#allocation110_spill] sm:$0xff] %v14727_v17  ;;  %12493 = vmatpush3.bf16.msra.mxu1 %v13322_v26 }
 0x210   :  { %v14729_v53 = vpop.f32.mrf.mxu0 }
 0x211   :  { %17366 = vst [vmem:[#allocation111_spill] sm:$0xff] %v14729_v53 }
 0x212   :  { %v14731_v47 = vpop.f32.mrf.mxu0 }
 0x213   :  { %17367 = vst [vmem:[#allocation112_spill] sm:$0xff] %v14731_v47 }
 0x214   :  { %v14733_v50 = vpop.f32.mrf.mxu0 }
 0x215   :  { %17368 = vst [vmem:[#allocation113_spill] sm:$0xff] %v14733_v50 }
 0x216   :  { %v14735_v51 = vpop.f32.mrf.mxu0 }
 0x217   :  { %17369 = vst [vmem:[#allocation114_spill] sm:$0xff] %v14735_v51 }
 0x218   :  { %v14737_v52 = vpop.f32.mrf.mxu0 }
 0x219   :  { %17370 = vst [vmem:[#allocation115_spill] sm:$0xff] %v14737_v52 }
 0x21a   :  { %v14739_v44 = vpop.f32.mrf.mxu0 }
 0x21b   :  { %17371 = vst [vmem:[#allocation116_spill] sm:$0xff] %v14739_v44 }
 0x21c   :  { %v14741_v21 = vpop.f32.mrf.mxu0 }
 0x21d   :  { %17372 = vst [vmem:[#allocation117_spill] sm:$0xff] %v14741_v21  ;;  %v13331_v21 = vld [vmem:[%s17250_s3 + $0x18] sm:$0xff]  }
 0x21e   :  { %v14746_v17 = vpop.f32.mrf.mxu0  ;;  %12494 = vmatprep.subr.bf16.mxu1 %v13331_v21 }
 0x21f   :  { %17373 = vst [vmem:[#allocation118_spill] sm:$0xff] %v14746_v17  ;;  %12495 = vmatpush3.bf16.msra.mxu1 %v13331_v21 }
 0x220   :  { %v14748_v20 = vpop.f32.mrf.mxu0 }
 0x221   :  { %17374 = vst [vmem:[#allocation119_spill] sm:$0xff] %v14748_v20 }
 0x222   :  { %v14750_v47 = vpop.f32.mrf.mxu0 }
 0x223   :  { %17375 = vst [vmem:[#allocation120_spill] sm:$0xff] %v14750_v47 }
 0x224   :  { %v14752_v50 = vpop.f32.mrf.mxu0 }
 0x225   :  { %17376 = vst [vmem:[#allocation121_spill] sm:$0xff] %v14752_v50 }
 0x226   :  { %v14754_v51 = vpop.f32.mrf.mxu0 }
 0x227   :  { %17377 = vst [vmem:[#allocation122_spill] sm:$0xff] %v14754_v51 }
 0x228   :  { %v14756_v52 = vpop.f32.mrf.mxu0 }
 0x229   :  { %17378 = vst [vmem:[#allocation123_spill] sm:$0xff] %v14756_v52 }
 0x22a   :  { %v14758_v44 = vpop.f32.mrf.mxu0 }
 0x22b   :  { %17379 = vst [vmem:[#allocation124_spill] sm:$0xff] %v14758_v44 }
 0x22c   :  { %v14763_v53 = vpop.f32.mrf.mxu0 }
 0x22d   :  { %17380 = vst [vmem:[#allocation125_spill] sm:$0xff] %v14763_v53  ;;  %v13340_v53 = vld [vmem:[%s17250_s3 + $0x10] sm:$0xff]  }
 0x22e   :  { %v14765_v26 = vpop.f32.mrf.mxu0  ;;  %12496 = vmatprep.subr.bf16.mxu1 %v13340_v53 }
 0x22f   :  { %17381 = vst [vmem:[#allocation126_spill] sm:$0xff] %v14765_v26  ;;  %12497 = vmatpush3.bf16.msra.mxu1 %v13340_v53 }
 0x230   :  { %v14767_v20 = vpop.f32.mrf.mxu0 }
 0x231   :  { %17382 = vst [vmem:[#allocation127_spill] sm:$0xff] %v14767_v20 }
 0x232   :  { %v14769_v47 = vpop.f32.mrf.mxu0 }
 0x233   :  { %17383 = vst [vmem:[#allocation128_spill] sm:$0xff] %v14769_v47 }
 0x234   :  { %v14771_v50 = vpop.f32.mrf.mxu0 }
 0x235   :  { %17384 = vst [vmem:[#allocation129_spill] sm:$0xff] %v14771_v50 }
 0x236   :  { %v14773_v51 = vpop.f32.mrf.mxu0 }
 0x237   :  { %17385 = vst [vmem:[#allocation130_spill] sm:$0xff] %v14773_v51 }
 0x238   :  { %v14775_v52 = vpop.f32.mrf.mxu0 }
 0x239   :  { %17386 = vst [vmem:[#allocation131_spill] sm:$0xff] %v14775_v52 }
 0x23a   :  { %v14777_v44 = vpop.f32.mrf.mxu0 }
 0x23b   :  { %17387 = vst [vmem:[#allocation132_spill] sm:$0xff] %v14777_v44 }
 0x23c   :  { %v14779_v17 = vpop.f32.mrf.mxu0 }
 0x23d   :  { %17388 = vst [vmem:[#allocation133_spill] sm:$0xff] %v14779_v17  ;;  %v13349_v17 = vld [vmem:[%s17250_s3 + $0x8] sm:$0xff]  }
 0x23e   :  { %v14784_v26 = vpop.f32.mrf.mxu0  ;;  %12498 = vmatprep.subr.bf16.mxu1 %v13349_v17 }
 0x23f   :  { %17389 = vst [vmem:[#allocation134_spill] sm:$0xff] %v14784_v26  ;;  %12499 = vmatpush3.bf16.msra.mxu1 %v13349_v17 }
 0x240   :  { %v14786_v21 = vpop.f32.mrf.mxu0  ;;  %12500 = vmatprep.subr.bf16.mxu1 %v13358_v60 }
 0x241   :  { %17390 = vst [vmem:[#allocation135_spill] sm:$0xff] %v14786_v21 }
 0x242   :  { %v14788_v47 = vpop.f32.mrf.mxu0 }
 0x243   :  { %17391 = vst [vmem:[#allocation136_spill] sm:$0xff] %v14788_v47  ;;  %12501 = vmatpush3.bf16.msra.mxu1 %v13358_v60 }
 0x244   :  { %v14790_v50 = vpop.f32.mrf.mxu0 }
 0x245   :  { %17392 = vst [vmem:[#allocation137_spill] sm:$0xff] %v14790_v50 }
 0x246   :  { %v14792_v51 = vpop.f32.mrf.mxu0 }
 0x247   :  { %17393 = vst [vmem:[#allocation138_spill] sm:$0xff] %v14792_v51  ;;  %v14810_v51 = vld [vmem:[%s17250_s3 + $0x1b8] sm:$0xff]  }
 0x248   :  { %v14794_v52 = vpop.f32.mrf.mxu0  ;;  %12886 = vmatprep.subr.bf16.mxu0 %v14810_v51 }
 0x249   :  { %17394 = vst [vmem:[#allocation139_spill] sm:$0xff] %v14794_v52 }
 0x24a   :  { %v14796_v44 = vpop.f32.mrf.mxu0 }
 0x24b   :  { %17395 = vst [vmem:[#allocation140_spill] sm:$0xff] %v14796_v44 }
 0x24c   :  { %v14801_v20 = vpop.f32.mrf.mxu0 }
 0x24d   :  { %17396 = vst [vmem:[#allocation141_spill] sm:$0xff] %v14801_v20  ;;  %v2397_v20 = vmax.f32 %v14044_v55, %v14300_v30  ;;  %v2398_v30 = vmax.f32 %v14050_v57, %v14306_v25  ;;  %v13371_v57 = vld [vmem:[%s17250_s3 + $0xb8] sm:$0xff]  }
 0x24e   :  { %v14803_v53 = vpop.f32.mrf.mxu0  ;;  %12566 = vmatprep.subr.bf16.mxu1 %v13371_v57 }
 0x24f   :  { %17397 = vst [vmem:[#allocation142_spill] sm:$0xff] %v14803_v53  ;;  %v2395_v53 = vmax.f32 %v14048_v56, %v14304_v12 }
 0x250   :  { %v14805_v21 = vpop.f32.mrf.mxu0 }
 0x251   :  { %17398 = vst [vmem:[#allocation143_spill] sm:$0xff] %v14805_v21 }
 0x252   :  { %v12344_v52 = vpop.f32.mrf.mxu0 }
 0x253   :  { %v2461_v44 = vmax.f32 %v14583_v42, %v12344_v52 }
 0x254   :  { %v2140_v50 = vpop.f32.mrf.mxu0 }
 0x255   :  { %v2459_v17 = vmax.f32 %v14587_v35, %v2140_v50  ;;  %v2525_v47 = vmax.f32 %v2397_v20, %v2461_v44 }
 0x256   :  { %v12345_v21 = vpop.f32.mrf.mxu0 }
 0x257   :  { %v2523_v26 = vmax.f32 %v2395_v53, %v2459_v17  ;;  %v2462_v42 = vmax.f32 %v14592_v32, %v12345_v21  ;;  %v2596_v35 = vadd.f32 %v14822_v6, %v2525_v47 }
 0x258   :  { %v2143_v52 = vpop.f32.mrf.mxu0 }
 0x259   :  { %v2594_v55 = vadd.f32 %v14822_v6, %v2523_v26  ;;  %v2460_v56 = vmax.f32 %v14603_v33, %v2143_v52  ;;  %v2526_v53 = vmax.f32 %v2398_v30, %v2462_v42  ;;  %v2660_v21 = vmax.f32 %v2596_v35, 0.0 }
 0x25a   :  { %v12348_v12 = vpop.f32.mrf.mxu0 }
 0x25b   :  { %v2658_v50 = vmax.f32 %v2594_v55, 0.0  ;;  %v2524_v44 = vmax.f32 %v2396_v16, %v2460_v56  ;;  %v2465_v20 = vmax.f32 %v14605_v29, %v12348_v12  ;;  %v2399_v16 = vmax.f32 %v14064_v62, %v14320_v58 }
 0x25c   :  { %v2156_v32 = vpop.f32.mrf.mxu0  ;;  %v2402_v29 = vmax.f32 %v14066_v63, %v14322_v7  ;;  %v2597_v42 = vadd.f32 %v14822_v6, %v2526_v53  ;;  %v2400_v62 = vmax.f32 %v14074_v2, %v14330_v36 }
 0x25d   :  { %v2761_v33 = vpack.c.bf16 %v2658_v50, %v2658_v50  ;;  %v2595_v26 = vadd.f32 %v14822_v6, %v2524_v44  ;;  %v2463_v25 = vmax.f32 %v14612_v28, %v2156_v32  ;;  %v2529_v54 = vmax.f32 %v2401_v49, %v2465_v20 }
 0x25e   :  { %v12349_v47 = vpop.f32.mrf.mxu0  ;;  %v2405_v50 = vmax.f32 %v14076_v3, %v14332_v24  ;;  %v2661_v44 = vmax.f32 %v2597_v42, 0.0  ;;  %v2406_v3 = vmax.f32 %v14082_v5, %v14344_v19  ;;  %v2407_v42 = vmax.f32 %v14096_v10, %v14355_v13 }
 0x25f   :  { %2826 = vst [vmem:[#allocation2 + $0x2c] sm:$0xf] %v2761_v33  ;;  %v2659_v61 = vmax.f32 %v2595_v26, 0.0  ;;  %v2466_v17 = vmax.f32 %v14620_v43, %v12349_v47  ;;  %v2527_v52 = vmax.f32 %v2399_v16, %v2463_v25  ;;  %v2600_v30 = vadd.f32 %v14822_v6, %v2529_v54 }
 0x260   :  { %v2159_v55 = vpop.f32.mrf.mxu0 }
 0x261   :  { %v11327_v63 = vpack.c.bf16 %v2660_v21, %v2659_v61  ;;  %v2530_v58 = vmax.f32 %v2402_v29, %v2466_v17  ;;  %v2464_v28 = vmax.f32 %v14625_v38, %v2159_v55  ;;  %v2598_v7 = vadd.f32 %v14822_v6, %v2527_v52 }
 0x262   :  { %v12352_v56 = vpop.f32.mrf.mxu0  ;;  %v2403_v38 = vmax.f32 %v14080_v4, %v14339_v48  ;;  %v2664_v26 = vmax.f32 %v2600_v30, 0.0  ;;  %v2404_v4 = vmax.f32 %v14090_v8, %v14349_v18  ;;  %v2409_v8 = vmax.f32 %v14092_v9, %v14351_v37  ;;  %v13364_v9 = vld [vmem:[%s17250_s3 + $0x1b0] sm:$0xff]  }
 0x263   :  { %11444 = vst [vmem:[#allocation2 + $0x30] sm:$0xff] %v11327_v63   ;;  %v2601_v43 = vadd.f32 %v14822_v6, %v2530_v58  ;;  %v2528_v12 = vmax.f32 %v2400_v62, %v2464_v28  ;;  %v2469_v35 = vmax.f32 %v14627_v27, %v12352_v56  ;;  %v2662_v2 = vmax.f32 %v2598_v7, 0.0 }
 0x264   :  { %v2172_v36 = vpop.f32.mrf.mxu0  ;;  %v2410_v62 = vmax.f32 %v14098_v11, %v14360_v1 }
 0x265   :  { %v2665_v20 = vmax.f32 %v2601_v43, 0.0  ;;  %v2599_v53 = vadd.f32 %v14822_v6, %v2528_v12  ;;  %v2467_v32 = vmax.f32 %v14634_v41, %v2172_v36  ;;  %v11332_v60 = vpack.c.bf16 %v2662_v2, %v2661_v44 }
 0x266   :  { %v2533_v49 = vmax.f32 %v2405_v50, %v2469_v35  ;;  %v12353_v33 = vpop.f32.mrf.mxu0  ;;  %v2408_v43 = vmax.f32 %v14106_v14, %v14365_v0  ;;  %v2413_v14 = vmax.f32 %v14108_v15, %v14367_v59  ;;  %v13369_v59 = vld [vmem:[%s17250_s3 + $0x1a0] sm:$0xff]  }
 0x267   :  { %v2768_v57 = vpack.c.bf16 %v2665_v20, %v2665_v20  ;;  %v2663_v27 = vmax.f32 %v2599_v53, 0.0  ;;  %v2531_v16 = vmax.f32 %v2403_v38, %v2467_v32  ;;  %11445 = vst [vmem:[#allocation2 + $0x38] sm:$0xff] %v11332_v60   ;;  %v2470_v24 = vmax.f32 %v14642_v46, %v12353_v33  ;;  %v17399_v32 = vld [vmem:[#allocation4_spill] sm:$0xff] }
 0x268   :  { %v2175_v29 = vpop.f32.mrf.mxu0  ;;  %v2604_v47 = vadd.f32 %v14822_v6, %v2533_v49  ;;  %v2411_v60 = vmax.f32 %v17399_v32, %v14371_v31 }
 0x269   :  { %2833 = vst [vmem:[#allocation2 + $0x48] sm:$0xf] %v2768_v57  ;;  %v11337_v48 = vpack.c.bf16 %v2664_v26, %v2663_v27  ;;  %v2602_v41 = vadd.f32 %v14822_v6, %v2531_v16  ;;  %v2468_v25 = vmax.f32 %v14647_v39, %v2175_v29  ;;  %v2534_v21 = vmax.f32 %v2406_v3, %v2470_v24  ;;  %v17401_v29 = vld [vmem:[#allocation98_spill] sm:$0xff] }
 0x26a   :  { %v12356_v61 = vpop.f32.mrf.mxu0  ;;  %v13301_v54 = vld [vmem:[#allocation2 + $0x2c] sm:$0xff]   ;;  %v2668_v63 = vmax.f32 %v2604_v47, 0.0  ;;  %v17403_v47 = vld [vmem:[#allocation6_spill] sm:$0xff] }
 0x26b   :  { %11446 = vst [vmem:[#allocation2 + $0x40] sm:$0xff] %v11337_v48   ;;  %v2666_v5 = vmax.f32 %v2602_v41, 0.0  ;;  %v2532_v19 = vmax.f32 %v2404_v4, %v2468_v25  ;;  %v2473_v46 = vmax.f32 %v14649_v34, %v12356_v61  ;;  %v13303_v17 = vld [vmem:[#allocation2 + $0x2c] sm:$0xff]   ;;  %12430 = vmatprep.mubr.bf16.mxu1 %v13301_v54  ;;  %v2605_v34 = vadd.f32 %v14822_v6, %v2534_v21 }
 0x26c   :  { %v2188_v18 = vpop.f32.mrf.mxu0  ;;  %12742 = vmatprep.mubr.bf16.mxu0 %v13303_v17  ;;  %v17402_v25 = vld [vmem:[#allocation52_spill] sm:$0xff]  ;;  %v17404_v54 = vld [vmem:[#allocation99_spill] sm:$0xff] }
 0x26d   :  { %v2769_v39 = vpack.c.bf16 %v2666_v5, %v2666_v5  ;;  %v2603_v52 = vadd.f32 %v14822_v6, %v2532_v19  ;;  %v2471_v55 = vmax.f32 %v14659_v23, %v2188_v18  ;;  %v2537_v10 = vmax.f32 %v2409_v8, %v2473_v46  ;;  %v17405_v19 = vld [vmem:[#allocation51_spill] sm:$0xff]  ;;  %v17406_v46 = vld [vmem:[#allocation5_spill] sm:$0xff] }
 0x26e   :  { %v12357_v58 = vpop.f32.mrf.mxu0  ;;  %v13305_v7 = vld [vmem:[#allocation2 + $0x34] sm:$0xff]   ;;  %v2669_v12 = vmax.f32 %v2605_v34, 0.0  ;;  %v2412_v21 = vmax.f32 %v17403_v47, %v17402_v25  ;;  %v2414_v17 = vmax.f32 %v17406_v46, %v17405_v19  ;;  %v17422_v19 = vld [vmem:[#allocation58_spill] sm:$0xff] }
 0x26f   :  { %2834 = vst [vmem:[#allocation2 + $0x54] sm:$0xf] %v2769_v39  ;;  %v2667_v37 = vmax.f32 %v2603_v52, 0.0  ;;  %v2535_v13 = vmax.f32 %v2407_v42, %v2471_v55  ;;  %v2474_v28 = vmax.f32 %v14667_v45, %v12357_v58  ;;  %v13306_v56 = vld [vmem:[#allocation2 + $0x34] sm:$0xff]   ;;  %12431 = vmatmul.mubr.bf16.gmra.mxu1 %v13305_v7  ;;  %v2608_v45 = vadd.f32 %v14822_v6, %v2537_v10 }
 0x270   :  { %v2191_v23 = vpop.f32.mrf.mxu0  ;;  %12743 = vmatmul.mubr.bf16.vlgmr.msra.gmra.mxu0 %v13306_v56  ;;  %v17408_v10 = vld [vmem:[#allocation53_spill] sm:$0xff]  ;;  %v17410_v56 = vld [vmem:[#allocation54_spill] sm:$0xff]  ;;  %v17423_v46 = vld [vmem:[#allocation12_spill] sm:$0xff] }
 0x271   :  { %v11342_v30 = vpack.c.bf16 %v2668_v63, %v2667_v37  ;;  %v2606_v11 = vadd.f32 %v14822_v6, %v2535_v13  ;;  %v2538_v1 = vmax.f32 %v2410_v62, %v2474_v28  ;;  %v2472_v35 = vmax.f32 %v14669_v40, %v2191_v23  ;;  %12887 = vmatpush3.bf16.msra.mxu0 %v14810_v51  ;;  %v13367_v40 = vld [vmem:[%s17250_s3 + $0x1a8] sm:$0xff]   ;;  %v17407_v62 = vld [vmem:[#allocation100_spill] sm:$0xff]  ;;  %v13374_v37 = vld [vmem:[%s17250_s3 + $0x198] sm:$0xff]  }
 0x272   :  { %v12360_v50 = vpop.f32.mrf.mxu0  ;;  %v13307_v44 = vld [vmem:[#allocation2 + $0x3c] sm:$0xff]   ;;  %12888 = vmatprep.subr.bf16.mxu0 %v13364_v9  ;;  %v2672_v27 = vmax.f32 %v2608_v45, 0.0  ;;  %v13309_v24 = vld [vmem:[#allocation2 + $0x44] sm:$0xff]  }
 0x273   :  { %11447 = vst [vmem:[#allocation2 + $0x58] sm:$0xff] %v11342_v30   ;;  %v2670_v2 = vmax.f32 %v2606_v11, 0.0  ;;  %v2609_v36 = vadd.f32 %v14822_v6, %v2538_v1  ;;  %v2477_v38 = vmax.f32 %v14671_v22, %v12360_v50  ;;  %v13308_v20 = vld [vmem:[#allocation2 + $0x3c] sm:$0xff]   ;;  %v2536_v0 = vmax.f32 %v2408_v43, %v2472_v35  ;;  %12434 = vmatprep.mubr.bf16.mxu1 %v13307_v44  ;;  %v13310_v41 = vld [vmem:[#allocation2 + $0x44] sm:$0xff]   ;;  %v17411_v30 = vld [vmem:[#allocation8_spill] sm:$0xff] }
 0x274   :  { %v2204_v53 = vpop.f32.mrf.mxu0  ;;  %v17400_v22 = vld [vmem:[#allocation97_spill] sm:$0xff]  ;;  %12746 = vmatprep.mubr.bf16.mxu0 %v13308_v20  ;;  %v17409_v13 = vld [vmem:[#allocation7_spill] sm:$0xff]  ;;  %v2415_v11 = vmax.f32 %v17411_v30, %v17410_v56  ;;  %v13376_v44 = vld [vmem:[%s17250_s3 + $0x190] sm:$0xff]  }
 0x275   :  { %v11347_v49 = vpack.c.bf16 %v2670_v2, %v2669_v12  ;;  %v2673_v33 = vmax.f32 %v2609_v36, 0.0  ;;  %v2475_v26 = vmax.f32 %v17400_v22, %v2204_v53  ;;  %v2607_v51 = vadd.f32 %v14822_v6, %v2536_v0  ;;  %12889 = vmatpush3.bf16.msra.mxu0 %v13364_v9  ;;  %v17412_v43 = vld [vmem:[#allocation101_spill] sm:$0xff]  ;;  %v17413_v45 = vld [vmem:[#allocation55_spill] sm:$0xff] }
 0x276   :  { %v2541_v57 = vmax.f32 %v2413_v14, %v2477_v38  ;;  %v12361_v15 = vpop.f32.mrf.mxu0  ;;  %12890 = vmatprep.subr.bf16.mxu0 %v13367_v40  ;;  %v2417_v28 = vmax.f32 %v17409_v13, %v17408_v10  ;;  %v17414_v2 = vld [vmem:[#allocation9_spill] sm:$0xff]  ;;  %v17415_v14 = vld [vmem:[#allocation102_spill] sm:$0xff]  ;;  %v17425_v13 = vld [vmem:[#allocation59_spill] sm:$0xff] }
 0x277   :  { %11448 = vst [vmem:[#allocation2 + $0x60] sm:$0xff] %v11347_v49   ;;  %v2776_v16 = vpack.c.bf16 %v2673_v33, %v2673_v33  ;;  %v2539_v3 = vmax.f32 %v2411_v60, %v2475_v26  ;;  %v2671_v31 = vmax.f32 %v2607_v51, 0.0  ;;  %v2478_v4 = vmax.f32 %v17401_v29, %v12361_v15  ;;  %12435 = vmatmul.mubr.bf16.gmra.mxu1 %v13309_v24  ;;  %v17416_v49 = vld [vmem:[#allocation56_spill] sm:$0xff]  ;;  %v17417_v33 = vld [vmem:[#allocation10_spill] sm:$0xff] }
 0x278   :  { %v2207_v48 = vpop.f32.mrf.mxu0  ;;  %v2612_v18 = vadd.f32 %v14822_v6, %v2541_v57  ;;  %12747 = vmatmul.mubr.bf16.gmra.mxu0 %v13310_v41  ;;  %v2418_v36 = vmax.f32 %v17414_v2, %v17413_v45  ;;  %v2416_v22 = vmax.f32 %v17417_v33, %v17416_v49  ;;  %v17418_v57 = vld [vmem:[#allocation103_spill] sm:$0xff]  ;;  %v13383_v10 = vld [vmem:[%s17250_s3 + $0x180] sm:$0xff]  }
 0x279   :  { %2841 = vst [vmem:[#allocation2 + $0x70] sm:$0xf] %v2776_v16  ;;  %v2610_v61 = vadd.f32 %v14822_v6, %v2539_v3  ;;  %v2476_v5 = vmax.f32 %v17404_v54, %v2207_v48  ;;  %v11352_v8 = vpack.c.bf16 %v2672_v27, %v2671_v31  ;;  %12891 = vmatpush3.bf16.msra.mxu0 %v13367_v40  ;;  %v17419_v31 = vld [vmem:[#allocation104_spill] sm:$0xff]  ;;  %v17420_v48 = vld [vmem:[#allocation57_spill] sm:$0xff]  ;;  %v17421_v41 = vld [vmem:[#allocation11_spill] sm:$0xff] }
 0x27a   :  { %v12364_v42 = vpop.f32.mrf.mxu0  ;;  %v13311_v39 = vld [vmem:[#allocation2 + $0x54] sm:$0xff]   ;;  %v2542_v58 = vmax.f32 %v2414_v17, %v2478_v4  ;;  %12892 = vmatprep.subr.bf16.mxu0 %v13369_v59  ;;  %v2676_v1 = vmax.f32 %v2612_v18, 0.0  ;;  %v2421_v25 = vmax.f32 %v17421_v41, %v17420_v48  ;;  %v2419_v17 = vmax.f32 %v17423_v46, %v17422_v19  ;;  %v17433_v49 = vld [vmem:[#allocation15_spill] sm:$0xff] }
 0x27b   :  { %v2674_v52 = vmax.f32 %v2610_v61, 0.0  ;;  %v2540_v55 = vmax.f32 %v2412_v21, %v2476_v5  ;;  %v2481_v63 = vmax.f32 %v17407_v62, %v12364_v42  ;;  %v13312_v34 = vld [vmem:[#allocation2 + $0x54] sm:$0xff]   ;;  %11449 = vst [vmem:[#allocation2 + $0x68] sm:$0xff] %v11352_v8   ;;  %12438 = vmatprep.mubr.bf16.mxu1 %v13311_v39  ;;  %v13380_v5 = vld [vmem:[%s17250_s3 + $0x188] sm:$0xff]  }
 0x27c   :  { %v2220_v9 = vpop.f32.mrf.mxu0  ;;  %12750 = vmatprep.mubr.bf16.mxu0 %v13312_v34  ;;  %v2613_v40 = vadd.f32 %v14822_v6, %v2542_v58  ;;  %v17424_v42 = vld [vmem:[#allocation105_spill] sm:$0xff] }
 0x27d   :  { %v2777_v7 = vpack.c.bf16 %v2674_v52, %v2674_v52  ;;  %v2611_v23 = vadd.f32 %v14822_v6, %v2540_v55  ;;  %v2479_v12 = vmax.f32 %v17412_v43, %v2220_v9  ;;  %v2545_v20 = vmax.f32 %v2417_v28, %v2481_v63  ;;  %12893 = vmatpush3.bf16.msra.mxu0 %v13369_v59  ;;  %v17426_v28 = vld [vmem:[#allocation13_spill] sm:$0xff]  ;;  %v17429_v43 = vld [vmem:[#allocation14_spill] sm:$0xff] }
 0x27e   :  { %v12365_v35 = vpop.f32.mrf.mxu0  ;;  %v13314_v50 = vld [vmem:[#allocation2 + $0x5c] sm:$0xff]   ;;  %12894 = vmatprep.subr.bf16.mxu0 %v13374_v37  ;;  %v2677_v47 = vmax.f32 %v2613_v40, 0.0 }
 0x27f   :  { %2842 = vst [vmem:[#allocation2 + $0x7c] sm:$0xf] %v2777_v7  ;;  %v2675_v38 = vmax.f32 %v2611_v23, 0.0  ;;  %v2482_v0 = vmax.f32 %v17415_v14, %v12365_v35  ;;  %v13315_v53 = vld [vmem:[#allocation2 + $0x5c] sm:$0xff]   ;;  %v2543_v32 = vmax.f32 %v2415_v11, %v2479_v12  ;;  %12439 = vmatmul.mubr.bf16.gmra.mxu1 %v13314_v50  ;;  %v2616_v59 = vadd.f32 %v14822_v6, %v2545_v20 }
 0x280   :  { %v2223_v60 = vpop.f32.mrf.mxu0  ;;  %12751 = vmatmul.mubr.bf16.gmra.mxu0 %v13315_v53  ;;  %v2422_v7 = vmax.f32 %v17426_v28, %v17425_v13  ;;  %v17427_v23 = vld [vmem:[#allocation106_spill] sm:$0xff]  ;;  %v17431_v53 = vld [vmem:[#allocation108_spill] sm:$0xff] }
 0x281   :  { %v11357_v26 = vpack.c.bf16 %v2676_v1, %v2675_v38  ;;  %v2546_v51 = vmax.f32 %v2418_v36, %v2482_v0  ;;  %v2480_v15 = vmax.f32 %v17418_v57, %v2223_v60  ;;  %v2614_v27 = vadd.f32 %v14822_v6, %v2543_v32  ;;  %12895 = vmatpush3.bf16.msra.mxu0 %v13374_v37  ;;  %v17428_v1 = vld [vmem:[#allocation60_spill] sm:$0xff]  ;;  %v17432_v60 = vld [vmem:[#allocation61_spill] sm:$0xff] }
 0x282   :  { %v12368_v16 = vpop.f32.mrf.mxu0  ;;  %v13316_v4 = vld [vmem:[#allocation2 + $0x64] sm:$0xff]   ;;  %12896 = vmatprep.subr.bf16.mxu0 %v13376_v44  ;;  %v2680_v63 = vmax.f32 %v2616_v59, 0.0  ;;  %v13318_v37 = vld [vmem:[#allocation2 + $0x6c] sm:$0xff]   ;;  %v2420_v12 = vmax.f32 %v17429_v43, %v17428_v1  ;;  %v2425_v33 = vmax.f32 %v17433_v49, %v17432_v60 }
 0x283   :  { %11450 = vst [vmem:[#allocation2 + $0x80] sm:$0xff] %v11357_v26   ;;  %v2617_v3 = vadd.f32 %v14822_v6, %v2546_v51  ;;  %v2544_v24 = vmax.f32 %v2416_v22, %v2480_v15  ;;  %v2485_v29 = vmax.f32 %v17419_v31, %v12368_v16  ;;  %v2678_v21 = vmax.f32 %v2614_v27, 0.0  ;;  %v13317_v54 = vld [vmem:[#allocation2 + $0x64] sm:$0xff]   ;;  %12442 = vmatprep.mubr.bf16.mxu1 %v13316_v4  ;;  %v13319_v11 = vld [vmem:[#allocation2 + $0x6c] sm:$0xff]   ;;  %v17436_v16 = vld [vmem:[#allocation109_spill] sm:$0xff] }
 0x284   :  { %v2236_v61 = vpop.f32.mrf.mxu0  ;;  %12754 = vmatprep.mubr.bf16.mxu0 %v13317_v54  ;;  %v17434_v26 = vld [vmem:[#allocation62_spill] sm:$0xff]  ;;  %v17435_v51 = vld [vmem:[#allocation16_spill] sm:$0xff] }
 0x285   :  { %v2681_v8 = vmax.f32 %v2617_v3, 0.0  ;;  %v2615_v18 = vadd.f32 %v14822_v6, %v2544_v24  ;;  %v2483_v39 = vmax.f32 %v17424_v42, %v2236_v61  ;;  %v11362_v52 = vpack.c.bf16 %v2678_v21, %v2677_v47  ;;  %12897 = vmatpush3.bf16.msra.mxu0 %v13376_v44  ;;  %v17430_v44 = vld [vmem:[#allocation107_spill] sm:$0xff]  ;;  %v17438_v24 = vld [vmem:[#allocation17_spill] sm:$0xff]  ;;  %v17439_v21 = vld [vmem:[#allocation110_spill] sm:$0xff] }
 0x286   :  { %v2549_v55 = vmax.f32 %v2421_v25, %v2485_v29  ;;  %v12369_v62 = vpop.f32.mrf.mxu0  ;;  %12898 = vmatprep.subr.bf16.mxu0 %v13380_v5  ;;  %v2423_v57 = vmax.f32 %v17435_v51, %v17434_v26  ;;  %v17437_v3 = vld [vmem:[#allocation63_spill] sm:$0xff]  ;;  %v17441_v42 = vld [vmem:[#allocation18_spill] sm:$0xff]  ;;  %v17447_v43 = vld [vmem:[#allocation20_spill] sm:$0xff] }
 0x287   :  { %v2784_v34 = vpack.c.bf16 %v2681_v8, %v2681_v8  ;;  %v2679_v58 = vmax.f32 %v2615_v18, 0.0  ;;  %v2547_v9 = vmax.f32 %v2419_v17, %v2483_v39  ;;  %11451 = vst [vmem:[#allocation2 + $0x88] sm:$0xff] %v11362_v52   ;;  %v2486_v56 = vmax.f32 %v17427_v23, %v12369_v62  ;;  %12443 = vmatmul.mubr.bf16.gmra.mxu1 %v13318_v37  ;;  %v17440_v18 = vld [vmem:[#allocation64_spill] sm:$0xff]  ;;  %v17445_v23 = vld [vmem:[#allocation19_spill] sm:$0xff]  ;;  %v17446_v1 = vld [vmem:[#allocation66_spill] sm:$0xff] }
 0x288   :  { %v2239_v30 = vpop.f32.mrf.mxu0  ;;  %v2620_v2 = vadd.f32 %v14822_v6, %v2549_v55  ;;  %12755 = vmatmul.mubr.bf16.gmra.mxu0 %v13319_v11  ;;  %v2426_v31 = vmax.f32 %v17438_v24, %v17437_v3  ;;  %v2424_v39 = vmax.f32 %v17441_v42, %v17440_v18  ;;  %v17442_v55 = vld [vmem:[#allocation111_spill] sm:$0xff]  ;;  %v17451_v26 = vld [vmem:[#allocation22_spill] sm:$0xff]  ;;  %v17459_v42 = vld [vmem:[#allocation24_spill] sm:$0xff] }
 0x289   :  { %2849 = vst [vmem:[#allocation2 + $0x98] sm:$0xf] %v2784_v34  ;;  %v11367_v35 = vpack.c.bf16 %v2680_v63, %v2679_v58  ;;  %v2618_v50 = vadd.f32 %v14822_v6, %v2547_v9  ;;  %v2484_v45 = vmax.f32 %v17430_v44, %v2239_v30  ;;  %v2550_v36 = vmax.f32 %v2422_v7, %v2486_v56  ;;  %v17444_v7 = vld [vmem:[#allocation65_spill] sm:$0xff]  ;;  %v17458_v18 = vld [vmem:[#allocation70_spill] sm:$0xff] }
 0x28a   :  { %v12372_v38 = vpop.f32.mrf.mxu0  ;;  %v13320_v20 = vld [vmem:[#allocation2 + $0x7c] sm:$0xff]   ;;  %12899 = vmatpush3.bf16.msra.mxu0 %v13380_v5  ;;  %v2684_v29 = vmax.f32 %v2620_v2, 0.0  ;;  %v2429_v56 = vmax.f32 %v17445_v23, %v17444_v7 }
 0x28b   :  { %11452 = vst [vmem:[#allocation2 + $0x90] sm:$0xff] %v11367_v35   ;;  %v2682_v14 = vmax.f32 %v2618_v50, 0.0  ;;  %v2548_v0 = vmax.f32 %v2420_v12, %v2484_v45  ;;  %v2489_v40 = vmax.f32 %v17431_v53, %v12372_v38  ;;  %v13321_v32 = vld [vmem:[#allocation2 + $0x7c] sm:$0xff]   ;;  %12446 = vmatprep.mubr.bf16.mxu1 %v13320_v20  ;;  %12900 = vmatprep.subr.bf16.mxu0 %v13383_v10 }
 0x28c   :  { %v2252_v22 = vpop.f32.mrf.mxu0  ;;  %12758 = vmatprep.mubr.bf16.mxu0 %v13321_v32  ;;  %v2621_v4 = vadd.f32 %v14822_v6, %v2550_v36  ;;  %v2427_v12 = vmax.f32 %v17447_v43, %v17446_v1  ;;  %v17448_v44 = vld [vmem:[#allocation113_spill] sm:$0xff]  ;;  %v17449_v32 = vld [vmem:[#allocation114_spill] sm:$0xff]  ;;  %v17464_v1 = vld [vmem:[#allocation72_spill] sm:$0xff] }
 0x28d   :  { %v2785_v15 = vpack.c.bf16 %v2682_v14, %v2682_v14  ;;  %v2619_v27 = vadd.f32 %v14822_v6, %v2548_v0  ;;  %v2487_v59 = vmax.f32 %v17436_v16, %v2252_v22  ;;  %v2553_v25 = vmax.f32 %v2425_v33, %v2489_v40  ;;  %v17450_v22 = vld [vmem:[#allocation68_spill] sm:$0xff]  ;;  %v17453_v16 = vld [vmem:[#allocation67_spill] sm:$0xff]  ;;  %v17465_v43 = vld [vmem:[#allocation26_spill] sm:$0xff] }
 0x28e   :  { %v12373_v48 = vpop.f32.mrf.mxu0  ;;  %v13323_v54 = vld [vmem:[#allocation2 + $0x84] sm:$0xff]   ;;  %12901 = vmatpush3.bf16.msra.mxu0 %v13383_v10  ;;  %v2685_v52 = vmax.f32 %v2621_v4, 0.0  ;;  %v17443_v10 = vld [vmem:[#allocation112_spill] sm:$0xff]  ;;  %v2428_v51 = vmax.f32 %v17451_v26, %v17450_v22 }
 0x28f   :  { %2850 = vst [vmem:[#allocation2 + $0xa4] sm:$0xf] %v2785_v15  ;;  %v2683_v41 = vmax.f32 %v2619_v27, 0.0  ;;  %v2551_v47 = vmax.f32 %v2423_v57, %v2487_v59  ;;  %v2490_v61 = vmax.f32 %v17439_v21, %v12373_v48  ;;  %v13324_v19 = vld [vmem:[#allocation2 + $0x84] sm:$0xff]   ;;  %12447 = vmatmul.mubr.bf16.gmra.mxu1 %v13323_v54  ;;  %v2624_v58 = vadd.f32 %v14822_v6, %v2553_v25  ;;  %v17454_v59 = vld [vmem:[#allocation21_spill] sm:$0xff]  ;;  %v17455_v25 = vld [vmem:[#allocation116_spill] sm:$0xff] }
 0x290   :  { %v2255_v5 = vpop.f32.mrf.mxu0  ;;  %12759 = vmatmul.mubr.bf16.gmra.mxu0 %v13324_v19  ;;  %v17452_v15 = vld [vmem:[#allocation115_spill] sm:$0xff]  ;;  %v2430_v3 = vmax.f32 %v17454_v59, %v17453_v16 }
 0x291   :  { %v11372_v46 = vpack.c.bf16 %v2684_v29, %v2683_v41  ;;  %v2622_v17 = vadd.f32 %v14822_v6, %v2551_v47  ;;  %v2554_v8 = vmax.f32 %v2426_v31, %v2490_v61  ;;  %v2488_v62 = vmax.f32 %v17442_v55, %v2255_v5  ;;  %v17456_v5 = vld [vmem:[#allocation69_spill] sm:$0xff]  ;;  %v17457_v19 = vld [vmem:[#allocation23_spill] sm:$0xff] }
 0x292   :  { %v12376_v63 = vpop.f32.mrf.mxu0  ;;  %v13325_v34 = vld [vmem:[#allocation2 + $0x8c] sm:$0xff]   ;;  %v2688_v20 = vmax.f32 %v2624_v58, 0.0  ;;  %v13327_v53 = vld [vmem:[#allocation2 + $0x94] sm:$0xff]  }
 0x293   :  { %11453 = vst [vmem:[#allocation2 + $0xa8] sm:$0xff] %v11372_v46   ;;  %v2686_v9 = vmax.f32 %v2622_v17, 0.0  ;;  %v2625_v37 = vadd.f32 %v14822_v6, %v2554_v8  ;;  %v2493_v13 = vmax.f32 %v17443_v10, %v12376_v63  ;;  %v13326_v28 = vld [vmem:[#allocation2 + $0x8c] sm:$0xff]   ;;  %v2552_v30 = vmax.f32 %v2424_v39, %v2488_v62  ;;  %12450 = vmatprep.mubr.bf16.mxu1 %v13325_v34  ;;  %v13328_v33 = vld [vmem:[#allocation2 + $0x94] sm:$0xff]  }
 0x294   :  { %v2268_v11 = vpop.f32.mrf.mxu0  ;;  %12762 = vmatprep.mubr.bf16.mxu0 %v13326_v28  ;;  %v2433_v46 = vmax.f32 %v17457_v19, %v17456_v5  ;;  %v2431_v39 = vmax.f32 %v17459_v42, %v17458_v18  ;;  %v17460_v55 = vld [vmem:[#allocation117_spill] sm:$0xff]  ;;  %v17461_v58 = vld [vmem:[#allocation71_spill] sm:$0xff]  ;;  %v17463_v28 = vld [vmem:[#allocation118_spill] sm:$0xff] }
 0x295   :  { %v11377_v35 = vpack.c.bf16 %v2686_v9, %v2685_v52  ;;  %v2689_v50 = vmax.f32 %v2625_v37, 0.0  ;;  %v2491_v45 = vmax.f32 %v17448_v44, %v2268_v11  ;;  %v2623_v2 = vadd.f32 %v14822_v6, %v2552_v30  ;;  %v17462_v9 = vld [vmem:[#allocation25_spill] sm:$0xff]  ;;  %v17466_v44 = vld [vmem:[#allocation119_spill] sm:$0xff]  ;;  %v17475_v19 = vld [vmem:[#allocation122_spill] sm:$0xff] }
 0x296   :  { %v2557_v36 = vmax.f32 %v2429_v56, %v2493_v13  ;;  %v12377_v38 = vpop.f32.mrf.mxu0  ;;  %v2434_v37 = vmax.f32 %v17462_v9, %v17461_v58  ;;  %v17476_v18 = vld [vmem:[#allocation76_spill] sm:$0xff]  ;;  %v17477_v42 = vld [vmem:[#allocation30_spill] sm:$0xff] }
 0x297   :  { %11454 = vst [vmem:[#allocation2 + $0xb0] sm:$0xff] %v11377_v35   ;;  %v2792_v14 = vpack.c.bf16 %v2689_v50, %v2689_v50  ;;  %v2555_v0 = vmax.f32 %v2427_v12, %v2491_v45  ;;  %v2687_v40 = vmax.f32 %v2623_v2, 0.0  ;;  %v2494_v60 = vmax.f32 %v17449_v32, %v12377_v38  ;;  %12451 = vmatmul.mubr.bf16.gmra.mxu1 %v13327_v53  ;;  %v17468_v32 = vld [vmem:[#allocation73_spill] sm:$0xff] }
 0x298   :  { %v2271_v49 = vpop.f32.mrf.mxu0  ;;  %v2628_v31 = vadd.f32 %v14822_v6, %v2557_v36  ;;  %12763 = vmatmul.mubr.bf16.gmra.mxu0 %v13328_v33  ;;  %v2432_v12 = vmax.f32 %v17465_v43, %v17464_v1  ;;  %v17482_v43 = vld [vmem:[#allocation78_spill] sm:$0xff] }
 0x299   :  { %2857 = vst [vmem:[#allocation2 + $0xc0] sm:$0xf] %v2792_v14  ;;  %v2626_v57 = vadd.f32 %v14822_v6, %v2555_v0  ;;  %v2492_v27 = vmax.f32 %v17452_v15, %v2271_v49  ;;  %v11382_v24 = vpack.c.bf16 %v2688_v20, %v2687_v40  ;;  %v2558_v61 = vmax.f32 %v2430_v3, %v2494_v60  ;;  %v17467_v0 = vld [vmem:[#allocation120_spill] sm:$0xff]  ;;  %v17469_v60 = vld [vmem:[#allocation27_spill] sm:$0xff]  ;;  %v17472_v3 = vld [vmem:[#allocation121_spill] sm:$0xff] }
 0x29a   :  { %v13329_v4 = vld [vmem:[#allocation2 + $0xa4] sm:$0xff]   ;;  %v2692_v52 = vmax.f32 %v2628_v31, 0.0  ;;  %v2437_v49 = vmax.f32 %v17469_v60, %v17468_v32  ;;  %v17471_v15 = vld [vmem:[#allocation28_spill] sm:$0xff] }
 0x29b   :  { %v2690_v48 = vmax.f32 %v2626_v57, 0.0  ;;  %v2556_v41 = vmax.f32 %v2428_v51, %v2492_v27  ;;  %v13330_v21 = vld [vmem:[#allocation2 + $0xa4] sm:$0xff]   ;;  %11455 = vst [vmem:[#allocation2 + $0xb8] sm:$0xff] %v11382_v24   ;;  %12454 = vmatprep.mubr.bf16.mxu1 %v13329_v4  ;;  %v2629_v56 = vadd.f32 %v14822_v6, %v2558_v61 }
 0x29c   :  { %12766 = vmatprep.mubr.bf16.mxu0 %v13330_v21  ;;  %v17470_v57 = vld [vmem:[#allocation74_spill] sm:$0xff]  ;;  %v17473_v61 = vld [vmem:[#allocation75_spill] sm:$0xff] }
 0x29d   :  { %v12380_v29 = vpop.f32.mrf.mxu0  ;;  %v2793_v17 = vpack.c.bf16 %v2690_v48, %v2690_v48  ;;  %v2627_v8 = vadd.f32 %v14822_v6, %v2556_v41  ;;  %v2693_v33 = vmax.f32 %v2629_v56, 0.0  ;;  %v2435_v27 = vmax.f32 %v17471_v15, %v17470_v57  ;;  %v17480_v56 = vld [vmem:[#allocation77_spill] sm:$0xff] }
 0x29e   :  { %v2497_v47 = vmax.f32 %v17455_v25, %v12380_v29  ;;  %v13332_v34 = vld [vmem:[#allocation2 + $0xac] sm:$0xff]  }
 0x29f   :  { %v2284_v54 = vpop.f32.mrf.mxu0  ;;  %2858 = vst [vmem:[#allocation2 + $0xcc] sm:$0xf] %v2793_v17  ;;  %v2691_v10 = vmax.f32 %v2627_v8, 0.0  ;;  %v13333_v23 = vld [vmem:[#allocation2 + $0xac] sm:$0xff]   ;;  %12455 = vmatmul.mubr.bf16.gmra.mxu1 %v13332_v34  ;;  %v15022_v34 = vld [vmem:[%s17251_s2] ss:$0 sm:$0xff] }
 0x2a0   :  { %v2495_v62 = vmax.f32 %v17460_v55, %v2284_v54  ;;  %v2561_v13 = vmax.f32 %v2433_v46, %v2497_v47  ;;  %12767 = vmatmul.mubr.bf16.gmra.mxu0 %v13333_v23  ;;  %v17474_v54 = vld [vmem:[#allocation29_spill] sm:$0xff] }
 0x2a1   :  { %v12381_v63 = vpop.f32.mrf.mxu0  ;;  %v11387_v35 = vpack.c.bf16 %v2692_v52, %v2691_v10  ;;  %v2438_v5 = vmax.f32 %v17474_v54, %v17473_v61 }
 0x2a2   :  { %v2498_v7 = vmax.f32 %v17463_v28, %v12381_v63  ;;  %v2559_v30 = vmax.f32 %v2431_v39, %v2495_v62  ;;  %v2632_v38 = vadd.f32 %v14822_v6, %v2561_v13  ;;  %v13334_v40 = vld [vmem:[#allocation2 + $0xb4] sm:$0xff]   ;;  %v13336_v21 = vld [vmem:[#allocation2 + $0xbc] sm:$0xff]   ;;  %v2436_v39 = vmax.f32 %v17477_v42, %v17476_v18  ;;  %v17478_v62 = vld [vmem:[#allocation123_spill] sm:$0xff] }
 0x2a3   :  { %v2287_v11 = vpop.f32.mrf.mxu0  ;;  %11456 = vst [vmem:[#allocation2 + $0xd0] sm:$0xff] %v11387_v35   ;;  %v13335_v51 = vld [vmem:[#allocation2 + $0xb4] sm:$0xff]   ;;  %12458 = vmatprep.mubr.bf16.mxu1 %v13334_v40  ;;  %v13337_v8 = vld [vmem:[#allocation2 + $0xbc] sm:$0xff]  }
 0x2a4   :  { %v2562_v50 = vmax.f32 %v2434_v37, %v2498_v7  ;;  %v2496_v45 = vmax.f32 %v17466_v44, %v2287_v11  ;;  %v2630_v2 = vadd.f32 %v14822_v6, %v2559_v30  ;;  %12770 = vmatprep.mubr.bf16.mxu0 %v13335_v51  ;;  %v2696_v48 = vmax.f32 %v2632_v38, 0.0  ;;  %v17479_v7 = vld [vmem:[#allocation124_spill] sm:$0xff]  ;;  %v17481_v30 = vld [vmem:[#allocation31_spill] sm:$0xff]  ;;  %v17486_v38 = vld [vmem:[#allocation33_spill] sm:$0xff] }
 0x2a5   :  { %v12384_v36 = vpop.f32.mrf.mxu0  ;;  %v2441_v11 = vmax.f32 %v17481_v30, %v17480_v56  ;;  %v17494_v18 = vld [vmem:[#allocation82_spill] sm:$0xff]  ;;  %v17495_v42 = vld [vmem:[#allocation36_spill] sm:$0xff] }
 0x2a6   :  { %v2633_v20 = vadd.f32 %v14822_v6, %v2562_v50  ;;  %v2560_v14 = vmax.f32 %v2432_v12, %v2496_v45  ;;  %v2501_v53 = vmax.f32 %v17467_v0, %v12384_v36  ;;  %v2694_v22 = vmax.f32 %v2630_v2, 0.0  ;;  %v17483_v12 = vld [vmem:[#allocation32_spill] sm:$0xff]  ;;  %v17484_v45 = vld [vmem:[#allocation125_spill] sm:$0xff]  ;;  %v17485_v36 = vld [vmem:[#allocation79_spill] sm:$0xff] }
 0x2a7   :  { %v2300_v26 = vpop.f32.mrf.mxu0  ;;  %12459 = vmatmul.mubr.bf16.gmra.mxu1 %v13336_v21  ;;  %v2439_v35 = vmax.f32 %v17483_v12, %v17482_v43  ;;  %v17491_v21 = vld [vmem:[#allocation128_spill] sm:$0xff]  ;;  %v17499_v43 = vld [vmem:[#allocation38_spill] sm:$0xff] }
 0x2a8   :  { %v2697_v16 = vmax.f32 %v2633_v20, 0.0  ;;  %v2631_v59 = vadd.f32 %v14822_v6, %v2560_v14  ;;  %v2499_v24 = vmax.f32 %v17472_v3, %v2300_v26  ;;  %v11392_v31 = vpack.c.bf16 %v2694_v22, %v2693_v33  ;;  %12771 = vmatmul.mubr.bf16.gmra.mxu0 %v13337_v8 }
 0x2a9   :  { %v2565_v29 = vmax.f32 %v2437_v49, %v2501_v53  ;;  %v12385_v4 = vpop.f32.mrf.mxu0  ;;  %v2442_v20 = vmax.f32 %v17486_v38, %v17485_v36  ;;  %v17487_v49 = vld [vmem:[#allocation126_spill] sm:$0xff] }
 0x2aa   :  { %v2800_v41 = vpack.c.bf16 %v2697_v16, %v2697_v16  ;;  %v2695_v25 = vmax.f32 %v2631_v59, 0.0  ;;  %v2563_v47 = vmax.f32 %v2435_v27, %v2499_v24  ;;  %11457 = vst [vmem:[#allocation2 + $0xd8] sm:$0xff] %v11392_v31   ;;  %v2502_v46 = vmax.f32 %v17475_v19, %v12385_v4  ;;  %v13338_v10 = vld [vmem:[#allocation2 + $0xcc] sm:$0xff]   ;;  %v17489_v59 = vld [vmem:[#allocation34_spill] sm:$0xff] }
 0x2ab   :  { %v2303_v17 = vpop.f32.mrf.mxu0  ;;  %v2636_v58 = vadd.f32 %v15022_v34, %v2565_v29  ;;  %12462 = vmatprep.mubr.bf16.mxu1 %v13338_v10  ;;  %v17488_v16 = vld [vmem:[#allocation80_spill] sm:$0xff]  ;;  %v17490_v31 = vld [vmem:[#allocation127_spill] sm:$0xff] }
 0x2ac   :  { %2865 = vst [vmem:[#allocation2 + $0xe8] sm:$0xf] %v2800_v41  ;;  %v11397_v52 = vpack.c.bf16 %v2696_v48, %v2695_v25  ;;  %v2634_v55 = vadd.f32 %v14822_v6, %v2563_v47  ;;  %v2500_v63 = vmax.f32 %v17478_v62, %v2303_v17  ;;  %v2566_v9 = vmax.f32 %v2438_v5, %v2502_v46  ;;  %v13339_v6 = vld [vmem:[#allocation2 + $0xcc] sm:$0xff]   ;;  %v17492_v5 = vld [vmem:[#allocation81_spill] sm:$0xff] }
 0x2ad   :  { %v12388_v37 = vpop.f32.mrf.mxu0  ;;  %12774 = vmatprep.mubr.bf16.mxu0 %v13339_v6  ;;  %v2700_v14 = vmax.f32 %v2636_v58, 0.0  ;;  %v2440_v3 = vmax.f32 %v17489_v59, %v17488_v16  ;;  %v17493_v19 = vld [vmem:[#allocation35_spill] sm:$0xff]  ;;  %v17496_v62 = vld [vmem:[#allocation129_spill] sm:$0xff]  ;;  %v17497_v6 = vld [vmem:[#allocation130_spill] sm:$0xff] }
 0x2ae   :  { %11458 = vst [vmem:[#allocation2 + $0xe0] sm:$0xff] %v11397_v52   ;;  %v2698_v13 = vmax.f32 %v2634_v55, 0.0  ;;  %v2564_v28 = vmax.f32 %v2436_v39, %v2500_v63  ;;  %v2505_v23 = vmax.f32 %v17479_v7, %v12388_v37  ;;  %v2637_v0 = vadd.f32 %v15022_v34, %v2566_v9  ;;  %v17506_v16 = vld [vmem:[#allocation86_spill] sm:$0xff]  ;;  %v17507_v59 = vld [vmem:[#allocation40_spill] sm:$0xff] }
 0x2af   :  { %v2316_v1 = vpop.f32.mrf.mxu0  ;;  %v2445_v46 = vmax.f32 %v17493_v19, %v17492_v5  ;;  %v2443_v39 = vmax.f32 %v17495_v42, %v17494_v18  ;;  %v17512_v18 = vld [vmem:[#allocation88_spill] sm:$0xff]  ;;  %v17513_v42 = vld [vmem:[#allocation42_spill] sm:$0xff] }
 0x2b0   :  { %v2801_v50 = vpack.c.bf16 %v2698_v13, %v2698_v13  ;;  %v2635_v44 = vadd.f32 %v15022_v34, %v2564_v28  ;;  %v2503_v2 = vmax.f32 %v17484_v45, %v2316_v1  ;;  %v2569_v32 = vmax.f32 %v2441_v11, %v2505_v23  ;;  %v17498_v1 = vld [vmem:[#allocation84_spill] sm:$0xff]  ;;  %v17501_v45 = vld [vmem:[#allocation83_spill] sm:$0xff] }
 0x2b1   :  { %v12389_v53 = vpop.f32.mrf.mxu0  ;;  %v13341_v22 = vld [vmem:[#allocation2 + $0xd4] sm:$0xff]   ;;  %v2701_v24 = vmax.f32 %v2637_v0, 0.0  ;;  %v2444_v12 = vmax.f32 %v17499_v43, %v17498_v1 }
 0x2b2   :  { %2866 = vst [vmem:[#allocation2 + $0xf4] sm:$0xf] %v2801_v50  ;;  %v2699_v40 = vmax.f32 %v2635_v44, 0.0  ;;  %v2567_v60 = vmax.f32 %v2439_v35, %v2503_v2  ;;  %v2506_v33 = vmax.f32 %v17487_v49, %v12389_v53  ;;  %v13342_v51 = vld [vmem:[#allocation2 + $0xd4] sm:$0xff]   ;;  %12463 = vmatmul.mubr.bf16.gmra.mxu1 %v13341_v22  ;;  %v2640_v41 = vadd.f32 %v15022_v34, %v2569_v32  ;;  %v17500_v50 = vld [vmem:[#allocation131_spill] sm:$0xff] }
 0x2b3   :  { %v2319_v26 = vpop.f32.mrf.mxu0  ;;  %12775 = vmatmul.mubr.bf16.gmra.mxu0 %v13342_v51  ;;  %v17502_v2 = vld [vmem:[#allocation37_spill] sm:$0xff]  ;;  %v17503_v32 = vld [vmem:[#allocation132_spill] sm:$0xff]  ;;  %v17505_v51 = vld [vmem:[#allocation39_spill] sm:$0xff] }
 0x2b4   :  { %v11402_v57 = vpack.c.bf16 %v2700_v14, %v2699_v40  ;;  %v2638_v15 = vadd.f32 %v15022_v34, %v2567_v60  ;;  %v2570_v27 = vmax.f32 %v2442_v20, %v2506_v33  ;;  %v2504_v29 = vmax.f32 %v17490_v31, %v2319_v26  ;;  %v17504_v26 = vld [vmem:[#allocation85_spill] sm:$0xff] }
 0x2b5   :  { %v12392_v4 = vpop.f32.mrf.mxu0  ;;  %v13343_v48 = vld [vmem:[#allocation2 + $0xdc] sm:$0xff]   ;;  %v2704_v10 = vmax.f32 %v2640_v41, 0.0  ;;  %v13345_v7 = vld [vmem:[#allocation2 + $0xe4] sm:$0xff]   ;;  %v2446_v36 = vmax.f32 %v17502_v2, %v17501_v45 }
 0x2b6   :  { %11459 = vst [vmem:[#allocation2 + $0xf8] sm:$0xff] %v11402_v57   ;;  %v2702_v25 = vmax.f32 %v2638_v15, 0.0  ;;  %v2641_v47 = vadd.f32 %v15022_v34, %v2570_v27  ;;  %v2509_v61 = vmax.f32 %v17491_v21, %v12392_v4  ;;  %v13344_v54 = vld [vmem:[#allocation2 + $0xdc] sm:$0xff]   ;;  %v2568_v17 = vmax.f32 %v2440_v3, %v2504_v29  ;;  %12466 = vmatprep.mubr.bf16.mxu1 %v13343_v48  ;;  %v13346_v11 = vld [vmem:[#allocation2 + $0xe4] sm:$0xff]  }
 0x2b7   :  { %v2332_v8 = vpop.f32.mrf.mxu0  ;;  %12778 = vmatprep.mubr.bf16.mxu0 %v13344_v54  ;;  %v2449_v57 = vmax.f32 %v17505_v51, %v17504_v26  ;;  %v2447_v3 = vmax.f32 %v17507_v59, %v17506_v16  ;;  %v17508_v31 = vld [vmem:[#allocation133_spill] sm:$0xff]  ;;  %v17509_v41 = vld [vmem:[#allocation87_spill] sm:$0xff]  ;;  %v17511_v54 = vld [vmem:[#allocation134_spill] sm:$0xff] }
 0x2b8   :  { %v11407_v52 = vpack.c.bf16 %v2702_v25, %v2701_v24  ;;  %v2705_v55 = vmax.f32 %v2641_v47, 0.0  ;;  %v2507_v63 = vmax.f32 %v17496_v62, %v2332_v8  ;;  %v2639_v58 = vadd.f32 %v15022_v34, %v2568_v17  ;;  %v17510_v25 = vld [vmem:[#allocation41_spill] sm:$0xff]  ;;  %v17514_v62 = vld [vmem:[#allocation135_spill] sm:$0xff]  ;;  %v17523_v51 = vld [vmem:[#allocation138_spill] sm:$0xff] }
 0x2b9   :  { %v2573_v9 = vmax.f32 %v2445_v46, %v2509_v61  ;;  %v12393_v37 = vpop.f32.mrf.mxu0  ;;  %v2450_v47 = vmax.f32 %v17510_v25, %v17509_v41  ;;  %v17524_v16 = vld [vmem:[#allocation92_spill] sm:$0xff]  ;;  %v17525_v59 = vld [vmem:[#allocation46_spill] sm:$0xff] }
 0x2ba   :  { %11460 = vst [vmem:[#allocation2 + $0x100] sm:$0xff] %v11407_v52   ;;  %v2808_v13 = vpack.c.bf16 %v2705_v55, %v2705_v55  ;;  %v2571_v28 = vmax.f32 %v2443_v39, %v2507_v63  ;;  %v2703_v23 = vmax.f32 %v2639_v58, 0.0  ;;  %v2510_v56 = vmax.f32 %v17497_v6, %v12393_v37  ;;  %12467 = vmatmul.mubr.bf16.gmra.mxu1 %v13345_v7  ;;  %v17516_v6 = vld [vmem:[#allocation89_spill] sm:$0xff] }
 0x2bb   :  { %v2335_v30 = vpop.f32.mrf.mxu0  ;;  %v2644_v20 = vadd.f32 %v15022_v34, %v2573_v9  ;;  %12779 = vmatmul.mubr.bf16.gmra.mxu0 %v13346_v11  ;;  %v2448_v39 = vmax.f32 %v17513_v42, %v17512_v18  ;;  %v17530_v42 = vld [vmem:[#allocation94_spill] sm:$0xff] }
 0x2bc   :  { %2873 = vst [vmem:[#allocation2 + $0x110] sm:$0xf] %v2808_v13  ;;  %v2642_v35 = vadd.f32 %v15022_v34, %v2571_v28  ;;  %v2508_v44 = vmax.f32 %v17500_v50, %v2335_v30  ;;  %v11412_v38 = vpack.c.bf16 %v2704_v10, %v2703_v23  ;;  %v2574_v33 = vmax.f32 %v2446_v36, %v2510_v56  ;;  %v17515_v28 = vld [vmem:[#allocation136_spill] sm:$0xff]  ;;  %v17517_v56 = vld [vmem:[#allocation43_spill] sm:$0xff]  ;;  %v17520_v36 = vld [vmem:[#allocation137_spill] sm:$0xff] }
 0x2bd   :  { %v12396_v14 = vpop.f32.mrf.mxu0  ;;  %v13347_v0 = vld [vmem:[#allocation2 + $0xf4] sm:$0xff]   ;;  %v2708_v24 = vmax.f32 %v2644_v20, 0.0  ;;  %v2453_v30 = vmax.f32 %v17517_v56, %v17516_v6 }
 0x2be   :  { %v2706_v53 = vmax.f32 %v2642_v35, 0.0  ;;  %v2572_v40 = vmax.f32 %v2444_v12, %v2508_v44  ;;  %v2513_v60 = vmax.f32 %v17503_v32, %v12396_v14  ;;  %v13348_v49 = vld [vmem:[#allocation2 + $0xf4] sm:$0xff]   ;;  %11461 = vst [vmem:[#allocation2 + $0x108] sm:$0xff] %v11412_v38   ;;  %12470 = vmatprep.mubr.bf16.mxu1 %v13347_v0  ;;  %v2645_v46 = vadd.f32 %v15022_v34, %v2574_v33  ;;  %v17518_v35 = vld [vmem:[#allocation90_spill] sm:$0xff]  ;;  %v17521_v33 = vld [vmem:[#allocation91_spill] sm:$0xff] }
 0x2bf   :  { %v2348_v22 = vpop.f32.mrf.mxu0  ;;  %12782 = vmatprep.mubr.bf16.mxu0 %v13348_v49  ;;  %v17519_v50 = vld [vmem:[#allocation44_spill] sm:$0xff] }
 0x2c0   :  { %v2809_v15 = vpack.c.bf16 %v2706_v53, %v2706_v53  ;;  %v2643_v27 = vadd.f32 %v15022_v34, %v2572_v40  ;;  %v2511_v29 = vmax.f32 %v17508_v31, %v2348_v22  ;;  %v2577_v61 = vmax.f32 %v2449_v57, %v2513_v60  ;;  %v17522_v22 = vld [vmem:[#allocation45_spill] sm:$0xff] }
 0x2c1   :  { %v12397_v4 = vpop.f32.mrf.mxu0  ;;  %v13350_v48 = vld [vmem:[#allocation2 + $0xfc] sm:$0xff]   ;;  %v2709_v11 = vmax.f32 %v2645_v46, 0.0  ;;  %v2451_v44 = vmax.f32 %v17519_v50, %v17518_v35  ;;  %v2454_v26 = vmax.f32 %v17522_v22, %v17521_v33 }
 0x2c2   :  { %2874 = vst [vmem:[#allocation2 + $0x11c] sm:$0xf] %v2809_v15  ;;  %v2707_v21 = vmax.f32 %v2643_v27, 0.0  ;;  %v2514_v5 = vmax.f32 %v17511_v54, %v12397_v4  ;;  %v13351_v19 = vld [vmem:[#allocation2 + $0xfc] sm:$0xff]   ;;  %v2575_v17 = vmax.f32 %v2447_v3, %v2511_v29  ;;  %12471 = vmatmul.mubr.bf16.gmra.mxu1 %v13350_v48  ;;  %v2648_v37 = vadd.f32 %v15022_v34, %v2577_v61  ;;  %v17526_v29 = vld [vmem:[#allocation139_spill] sm:$0xff]  ;;  %v17527_v54 = vld [vmem:[#allocation140_spill] sm:$0xff] }
 0x2c3   :  { %v2351_v8 = vpop.f32.mrf.mxu0  ;;  %12783 = vmatmul.mubr.bf16.gmra.mxu0 %v13351_v19  ;;  %v2452_v3 = vmax.f32 %v17525_v59, %v17524_v16  ;;  %v17528_v46 = vld [vmem:[#allocation93_spill] sm:$0xff] }
 0x2c4   :  { %v11417_v52 = vpack.c.bf16 %v2708_v24, %v2707_v21  ;;  %v2578_v55 = vmax.f32 %v2450_v47, %v2514_v5  ;;  %v2512_v63 = vmax.f32 %v17514_v62, %v2351_v8  ;;  %v2646_v58 = vadd.f32 %v15022_v34, %v2575_v17  ;;  %v17529_v17 = vld [vmem:[#allocation47_spill] sm:$0xff]  ;;  %v13441_v16 = vld [vmem:[%s17250_s3 + $0x238] sm:$0xff]  }
 0x2c5   :  { %v12400_v9 = vpop.f32.mrf.mxu0  ;;  %v13352_v23 = vld [vmem:[#allocation2 + $0x104] sm:$0xff]   ;;  %v2712_v53 = vmax.f32 %v2648_v37, 0.0  ;;  %v13354_v49 = vld [vmem:[#allocation2 + $0x10c] sm:$0xff]   ;;  %v2457_v8 = vmax.f32 %v17529_v17, %v17528_v46  ;;  %v17534_v37 = vld [vmem:[#allocation49_spill] sm:$0xff]  ;;  %13046 = vmatprep.subr.bf16.mxu0 %v13441_v16 }
 0x2c6   :  { %11462 = vst [vmem:[#allocation2 + $0x120] sm:$0xff] %v11417_v52   ;;  %v2649_v10 = vadd.f32 %v15022_v34, %v2578_v55  ;;  %v2576_v13 = vmax.f32 %v2448_v39, %v2512_v63  ;;  %v2517_v7 = vmax.f32 %v17515_v28, %v12400_v9  ;;  %v2710_v1 = vmax.f32 %v2646_v58, 0.0  ;;  %v13353_v12 = vld [vmem:[#allocation2 + $0x104] sm:$0xff]   ;;  %12474 = vmatprep.mubr.bf16.mxu1 %v13352_v23  ;;  %v13355_v27 = vld [vmem:[#allocation2 + $0x10c] sm:$0xff]   ;;  %v17532_v63 = vld [vmem:[#allocation141_spill] sm:$0xff] }
 0x2c7   :  { %v2364_v43 = vpop.f32.mrf.mxu0  ;;  %12786 = vmatprep.mubr.bf16.mxu0 %v13353_v12  ;;  %v17531_v39 = vld [vmem:[#allocation48_spill] sm:$0xff]  ;;  %v17533_v9 = vld [vmem:[#allocation95_spill] sm:$0xff]  ;;  %v13411_v46 = vld [vmem:[%s17250_s3 + $0x98] sm:$0xff]  }
 0x2c8   :  { %v2713_v45 = vmax.f32 %v2649_v10, 0.0  ;;  %v2647_v2 = vadd.f32 %v15022_v34, %v2576_v13  ;;  %v2515_v38 = vmax.f32 %v17520_v36, %v2364_v43  ;;  %v11422_v20 = vpack.c.bf16 %v2710_v1, %v2709_v11  ;;  %v13385_v17 = vld [vmem:[#allocation2 + $0x30] sm:$0xff]  }
 0x2c9   :  { %v2581_v14 = vmax.f32 %v2453_v30, %v2517_v7  ;;  %v12401_v0 = vpop.f32.mrf.mxu0  ;;  %v2455_v52 = vmax.f32 %v17531_v39, %v17530_v42  ;;  %v2458_v10 = vmax.f32 %v17534_v37, %v17533_v9  ;;  %v17535_v30 = vld [vmem:[#allocation142_spill] sm:$0xff]  ;;  %v13420_v39 = vld [vmem:[%s17250_s3 + $0x90] sm:$0xff]   ;;  %v13392_v37 = vld [vmem:[#allocation2 + $0x78] sm:$0xff]  }
 0x2ca   :  { %v2816_v40 = vpack.c.bf16 %v2713_v45, %v2713_v45  ;;  %v2711_v32 = vmax.f32 %v2647_v2, 0.0  ;;  %v2579_v60 = vmax.f32 %v2451_v44, %v2515_v38  ;;  %11463 = vst [vmem:[#allocation2 + $0x128] sm:$0xff] %v11422_v20   ;;  %v2518_v57 = vmax.f32 %v17523_v51, %v12401_v0  ;;  %12475 = vmatmul.mubr.bf16.gmra.mxu1 %v13354_v49  ;;  %v17536_v45 = vld [vmem:[#allocation96_spill] sm:$0xff]  ;;  %v17537_v2 = vld [vmem:[#allocation50_spill] sm:$0xff]  ;;  %v17538_v38 = vld [vmem:[#allocation143_spill] sm:$0xff] }
 0x2cb   :  { %v2367_v15 = vpop.f32.mrf.mxu0  ;;  %v2652_v48 = vadd.f32 %v15022_v34, %v2581_v14  ;;  %12787 = vmatmul.mubr.bf16.gmra.mxu0 %v13355_v27  ;;  %v2456_v36 = vmax.f32 %v17537_v2, %v17536_v45  ;;  %v13388_v42 = vld [vmem:[#allocation2 + $0x60] sm:$0xff]   ;;  %v13391_v9 = vld [vmem:[#allocation2 + $0x50] sm:$0xff]   ;;  %v13404_v2 = vld [vmem:[#allocation2 + $0xa8] sm:$0xff]  }
 0x2cc   :  { %2881 = vst [vmem:[#allocation2 + $0x138] sm:$0xf] %v2816_v40  ;;  %v11427_v24 = vpack.c.bf16 %v2712_v53, %v2711_v32  ;;  %v2650_v31 = vadd.f32 %v15022_v34, %v2579_v60  ;;  %v2516_v4 = vmax.f32 %v17526_v29, %v2367_v15  ;;  %v2582_v41 = vmax.f32 %v2454_v26, %v2518_v57  ;;  %v13370_v26 = vld [vmem:[#allocation2] sm:$0xff]   ;;  %v13377_v29 = vld [vmem:[#allocation2 + $0x10] sm:$0xff]  }
 0x2cd   :  { %v12404_v25 = vpop.f32.mrf.mxu0  ;;  %v13356_v47 = vld [vmem:[#allocation2 + $0x11c] sm:$0xff]   ;;  %v2716_v13 = vmax.f32 %v2652_v48, 0.0  ;;  %v13384_v48 = vld [vmem:[%s17250_s3 + $0xb0] sm:$0xff]  }
 0x2ce   :  { %11464 = vst [vmem:[#allocation2 + $0x130] sm:$0xff] %v11427_v24   ;;  %v2714_v21 = vmax.f32 %v2650_v31, 0.0  ;;  %v2580_v61 = vmax.f32 %v2452_v3, %v2516_v4  ;;  %v2521_v5 = vmax.f32 %v17527_v54, %v12404_v25  ;;  %v13357_v19 = vld [vmem:[#allocation2 + $0x11c] sm:$0xff]   ;;  %12478 = vmatprep.mubr.bf16.mxu1 %v13356_v47  ;;  %v2653_v28 = vadd.f32 %v15022_v34, %v2582_v41  ;;  %v13393_v25 = vld [vmem:[%s17250_s3 + $0xa8] sm:$0xff]  }
 0x2cf   :  { %v2380_v18 = vpop.f32.mrf.mxu0  ;;  %12790 = vmatprep.mubr.bf16.mxu0 %v13357_v19  ;;  %v13778_v41 = vld [vmem:[%s17250_s3 + $0xb8] sm:$0xff]   ;;  %v13382_v19 = vld [vmem:[#allocation2 + $0x50] sm:$0xff]   ;;  %v13403_v45 = vld [vmem:[#allocation2 + $0x80] sm:$0xff]  }
 0x2d0   :  { %v2817_v55 = vpack.c.bf16 %v2714_v21, %v2714_v21  ;;  %v2651_v62 = vadd.f32 %v15022_v34, %v2580_v61  ;;  %v2519_v58 = vmax.f32 %v17532_v63, %v2380_v18  ;;  %v2585_v6 = vmax.f32 %v2457_v8, %v2521_v5  ;;  %v13378_v21 = vld [vmem:[#allocation2 + $0x18] sm:$0xff]   ;;  %v13381_v61 = vld [vmem:[#allocation2 + $0x28] sm:$0xff]   ;;  %v13402_v5 = vld [vmem:[%s17250_s3 + $0xa0] sm:$0xff]  }
 0x2d1   :  { %v12405_v7 = vpop.f32.mrf.mxu0  ;;  %v13359_v1 = vld [vmem:[#allocation2 + $0x124] sm:$0xff]   ;;  %v2717_v0 = vmax.f32 %v2653_v28, 0.0  ;;  %v13387_v8 = vld [vmem:[#allocation2 + $0x38] sm:$0xff]  }
 0x2d2   :  { %2882 = vst [vmem:[#allocation2 + $0x144] sm:$0xf] %v2817_v55  ;;  %v2715_v23 = vmax.f32 %v2651_v62, 0.0  ;;  %v2583_v56 = vmax.f32 %v2455_v52, %v2519_v58  ;;  %v2522_v11 = vmax.f32 %v17535_v30, %v12405_v7  ;;  %v13360_v12 = vld [vmem:[#allocation2 + $0x124] sm:$0xff]   ;;  %12479 = vmatmul.mubr.bf16.gmra.mxu1 %v13359_v1  ;;  %v2656_v53 = vadd.f32 %v15022_v34, %v2585_v6  ;;  %v13386_v18 = vld [vmem:[#allocation2 + $0x58] sm:$0xff]   ;;  %v13444_v52 = vld [vmem:[%s17250_s3 + $0x230] sm:$0xff]  }
 0x2d3   :  { %v2383_v43 = vpop.f32.mrf.mxu0  ;;  %12791 = vmatmul.mubr.bf16.gmra.mxu0 %v13360_v12  ;;  %v13429_v55 = vld [vmem:[%s17250_s3 + $0x88] sm:$0xff]   ;;  %v13389_v62 = vld [vmem:[#allocation2 + $0x40] sm:$0xff]   ;;  %v15146_v28 = vld [vmem:[%s17250_s3 + $0xf8] sm:$0xff]  }
 0x2d4   :  { %v11432_v35 = vpack.c.bf16 %v2716_v13, %v2715_v23  ;;  %v2654_v50 = vadd.f32 %v15022_v34, %v2583_v56  ;;  %v2586_v44 = vmax.f32 %v2458_v10, %v2522_v11  ;;  %v2520_v20 = vmax.f32 %v17538_v38, %v2383_v43  ;;  %v13447_v63 = vld [vmem:[%s17250_s3 + $0x228] sm:$0xff]   ;;  %v13438_v10 = vld [vmem:[%s17250_s3 + $0x80] sm:$0xff]   ;;  %v13454_v7 = vld [vmem:[%s17250_s3 + $0x218] sm:$0xff]  }
 0x2d5   :  { %v13362_v14 = vld [vmem:[#allocation2 + $0x12c] sm:$0xff]   ;;  %v2720_v57 = vmax.f32 %v2656_v53, 0.0  ;;  %v13365_v27 = vld [vmem:[#allocation2 + $0x134] sm:$0xff]   ;;  %v13448_v13 = vld [vmem:[%s17250_s3 + $0x220] sm:$0xff]  }
 0x2d6   :  { %11465 = vst [vmem:[#allocation2 + $0x148] sm:$0xff] %v11432_v35   ;;  %v2718_v40 = vmax.f32 %v2654_v50, 0.0  ;;  %v2657_v32 = vadd.f32 %v15022_v34, %v2586_v44  ;;  %v13363_v60 = vld [vmem:[#allocation2 + $0x12c] sm:$0xff]   ;;  %v2584_v49 = vmax.f32 %v2456_v36, %v2520_v20  ;;  %12482 = vmatprep.mubr.bf16.mxu1 %v13362_v14  ;;  %v13366_v3 = vld [vmem:[#allocation2 + $0x134] sm:$0xff]   ;;  %v13396_v6 = vld [vmem:[#allocation2 + $0x60] sm:$0xff]   ;;  %v15161_v20 = vpop.f32.mrf.mxu1 }
 0x2d7   :  { %12794 = vmatprep.mubr.bf16.mxu0 %v13363_v60  ;;  %v13390_v58 = vld [vmem:[#allocation2 + $0x68] sm:$0xff]   ;;  %v13394_v23 = vld [vmem:[#allocation2 + $0x58] sm:$0xff]   ;;  %v13395_v56 = vld [vmem:[#allocation2 + $0x80] sm:$0xff]  }
 0x2d8   :  { %v11437_v33 = vpack.c.bf16 %v2718_v40, %v2717_v0  ;;  %v2721_v22 = vmax.f32 %v2657_v32, 0.0  ;;  %v2655_v51 = vadd.f32 %v15022_v34, %v2584_v49  ;;  %v13372_v34 = vld [vmem:[#allocation2 + $0x8] sm:$0xff]   ;;  %v13455_v11 = vld [vmem:[%s17250_s3 + $0x210] sm:$0xff]   ;;  %v13400_v12 = vld [vmem:[#allocation2 + $0x78] sm:$0xff]   ;;  %v15163_v53 = vpop.f32.mrf.mxu1 }
 0x2d9   :  { %v13397_v30 = vld [vmem:[#allocation2 + $0x88] sm:$0xff]   ;;  %v13399_v35 = vld [vmem:[#allocation2 + $0x90] sm:$0xff]   ;;  %v13401_v50 = vld [vmem:[#allocation2 + $0xa0] sm:$0xff]  }
 0x2da   :  { %11466 = vst [vmem:[#allocation2 + $0x150] sm:$0xff] %v11437_v33   ;;  %v2824_v15 = vpack.c.bf16 %v2721_v22, %v2721_v22  ;;  %v2719_v59 = vmax.f32 %v2655_v51, 0.0  ;;  %12483 = vmatmul.mubr.bf16.gmra.mxu1 %v13365_v27  ;;  %v13398_v1 = vld [vmem:[#allocation2 + $0x68] sm:$0xff]   ;;  %v13463_v44 = vld [vmem:[%s17250_s3 + $0x200] sm:$0xff]   ;;  %v13406_v38 = vld [vmem:[#allocation2 + $0xb0] sm:$0xff]   ;;  %v15165_v60 = vpop.f32.mrf.mxu1 }
 0x2db   :  { %12795 = vmatmul.mubr.bf16.gmra.mxu0 %v13366_v3  ;;  %12502 = vmatprep.mubr.bf16.mxu1 %v13370_v26  ;;  %v13460_v43 = vld [vmem:[%s17250_s3 + $0x208] sm:$0xff]   ;;  %v13407_v14 = vld [vmem:[#allocation2 + $0x90] sm:$0xff]   ;;  %v13409_v0 = vld [vmem:[#allocation2 + $0xa0] sm:$0xff]  }
 0x2dc   :  { %2889 = vst [vmem:[#allocation2 + $0x160] sm:$0xf] %v2824_v15  ;;  %v11442_v24 = vpack.c.bf16 %v2720_v57, %v2719_v59  ;;  %v13405_v36 = vld [vmem:[#allocation2 + $0x88] sm:$0xff]   ;;  %v13408_v40 = vld [vmem:[#allocation2 + $0xb8] sm:$0xff]   ;;  %v15167_v49 = vpop.f32.mrf.mxu1  ;;  %v13413_v22 = vld [vmem:[#allocation2 + $0xd0] sm:$0xff]  }
 0x2dd   :  { %v13368_v31 = vld [vmem:[#allocation2 + $0x144] sm:$0xff]   ;;  %v13414_v26 = vld [vmem:[#allocation2 + $0xb0] sm:$0xff]   ;;  %v13415_v51 = vld [vmem:[#allocation2 + $0xd8] sm:$0xff]  }
 0x2de   :  { %11467 = vst [vmem:[#allocation2 + $0x158] sm:$0xff] %v11442_v24   ;;  %12798 = vmatprep.mubr.bf16.mxu0 %v13368_v31  ;;  %v13410_v32 = vld [vmem:[#allocation2 + $0xc8] sm:$0xff]   ;;  %v15169_v57 = vpop.f32.mrf.mxu1  ;;  %v13416_v15 = vld [vmem:[#allocation2 + $0xb8] sm:$0xff]   ;;  %v13417_v59 = vld [vmem:[#allocation2 + $0xe0] sm:$0xff]  }
 0x2df   :  { %v13412_v33 = vld [vmem:[#allocation2 + $0xa8] sm:$0xff]   ;;  %v13419_v3 = vld [vmem:[#allocation2 + $0xf0] sm:$0xff]  }
 0x2e0   :  { %v15171_v27 = vpop.f32.mrf.mxu1 }
 0x2e1   :  { %v13373_v4 = vld [vmem:[#allocation2 + $0x14c] sm:$0xff]  }
 0x2e2   :  { %12503 = vmatmul.mubr.bf16.vlgmr.msra.gmra.mxu1 %v13372_v34  ;;  %v15173_v24 = vpop.f32.mrf.mxu1  ;;  %v13421_v34 = vld [vmem:[#allocation2 + $0xd0] sm:$0xff]  }
 0x2e3   :  { %12567 = vmatpush3.bf16.msra.mxu1 %v13778_v41  ;;  %12799 = vmatmul.mubr.bf16.gmra.mxu0 %v13373_v4  ;;  %v13423_v4 = vld [vmem:[#allocation2 + $0xd8] sm:$0xff]   ;;  %v13424_v41 = vld [vmem:[#allocation2 + $0x100] sm:$0xff]  }
 0x2e4   :  { %12506 = vmatprep.mubr.bf16.mxu1 %v13377_v29  ;;  %12568 = vmatprep.subr.bf16.mxu1 %v13384_v48  ;;  %v15175_v31 = vpop.f32.mrf.mxu1  ;;  %v13422_v29 = vld [vmem:[#allocation2 + $0xf8] sm:$0xff]  }
 0x2e5   :  { %v13375_v47 = vld [vmem:[#allocation2 + $0x154] sm:$0xff]   ;;  %v13379_v54 = vld [vmem:[#allocation2 + $0x15c] sm:$0xff]  }
 0x2e6   :  { %12802 = vmatprep.mubr.bf16.mxu0 %v13375_v47 }
 0x2e7   :  { %12569 = vmatpush3.bf16.msra.mxu1 %v13384_v48 }
 0x2e8   :  { %12570 = vmatprep.subr.bf16.mxu1 %v13393_v25 }
 0x2ea   :  { %12507 = vmatmul.mubr.bf16.gmra.mxu1 %v13378_v21 }
 0x2eb   :  { %12803 = vmatmul.mubr.bf16.gmra.mxu0 %v13379_v54  ;;  %12510 = vmatprep.mubr.bf16.mxu1 %v13381_v61 }
 0x2ec   :  { %12902 = vmatprep.mubr.bf16.mxu0 %v13382_v19  ;;  %12571 = vmatpush3.bf16.msra.mxu1 %v13393_v25 }
 0x2ed   :  { %12572 = vmatprep.subr.bf16.mxu1 %v13402_v5 }
 0x2f0   :  { %12573 = vmatpush3.bf16.msra.mxu1 %v13402_v5  ;;  %v13425_v5 = vld [vmem:[#allocation2 + $0xe0] sm:$0xff]  }
 0x2f1   :  { %12574 = vmatprep.subr.bf16.mxu1 %v13411_v46 }
 0x2f2   :  { %12511 = vmatmul.mubr.bf16.gmra.mxu1 %v13385_v17 }
 0x2f3   :  { %12903 = vmatmul.mubr.bf16.vlgmr.msra.gmra.mxu0 %v13386_v18  ;;  %12514 = vmatprep.mubr.bf16.mxu1 %v13387_v8  ;;  %v13426_v8 = vld [vmem:[#allocation2 + $0x108] sm:$0xff]  }
 0x2f4   :  { %12906 = vmatprep.mubr.bf16.mxu0 %v13388_v42  ;;  %12575 = vmatpush3.bf16.msra.mxu1 %v13411_v46  ;;  %v13427_v46 = vld [vmem:[#allocation2 + $0xf0] sm:$0xff]   ;;  %v13428_v42 = vld [vmem:[#allocation2 + $0x118] sm:$0xff]  }
 0x2f5   :  { %12576 = vmatprep.subr.bf16.mxu1 %v13420_v39  ;;  %13047 = vmatpush3.bf16.msra.mxu0 %v13441_v16  ;;  %v13418_v16 = vld [vmem:[#allocation2 + $0xc8] sm:$0xff]  }
 0x2f6   :  { %13048 = vmatprep.subr.bf16.mxu0 %v13444_v52 }
 0x2f8   :  { %12577 = vmatpush3.bf16.msra.mxu1 %v13420_v39 }
 0x2f9   :  { %12578 = vmatprep.subr.bf16.mxu1 %v13429_v55  ;;  %13049 = vmatpush3.bf16.msra.mxu0 %v13444_v52 }
 0x2fa   :  { %12515 = vmatmul.mubr.bf16.gmra.mxu1 %v13389_v62  ;;  %13050 = vmatprep.subr.bf16.mxu0 %v13447_v63 }
 0x2fb   :  { %12907 = vmatmul.mubr.bf16.gmra.mxu0 %v13390_v58  ;;  %12518 = vmatprep.mubr.bf16.mxu1 %v13391_v9  ;;  %v13430_v9 = vld [vmem:[#allocation2 + $0xf8] sm:$0xff]  }
 0x2fc   :  { %12910 = vmatprep.mubr.bf16.mxu0 %v13392_v37  ;;  %12579 = vmatpush3.bf16.msra.mxu1 %v13429_v55 }
 0x2fd   :  { %12580 = vmatprep.subr.bf16.mxu1 %v13438_v10  ;;  %13051 = vmatpush3.bf16.msra.mxu0 %v13447_v63 }
 0x2fe   :  { %13052 = vmatprep.subr.bf16.mxu0 %v13448_v13 }
 0x300   :  { %12581 = vmatpush3.bf16.msra.mxu1 %v13438_v10  ;;  %v13431_v10 = vld [vmem:[#allocation2 + $0x120] sm:$0xff]  }
 0x301   :  { %13053 = vmatpush3.bf16.msra.mxu0 %v13448_v13  ;;  %12646 = vmatprep.subr.bf16.mxu1 %v15146_v28  ;;  %v13432_v13 = vld [vmem:[#allocation2 + $0x100] sm:$0xff]  }
 0x302   :  { %12519 = vmatmul.mubr.bf16.gmra.mxu1 %v13394_v23  ;;  %13054 = vmatprep.subr.bf16.mxu0 %v13454_v7  ;;  %v13433_v23 = vld [vmem:[#allocation2 + $0x128] sm:$0xff]  }
 0x303   :  { %12911 = vmatmul.mubr.bf16.gmra.mxu0 %v13395_v56  ;;  %12522 = vmatprep.mubr.bf16.mxu1 %v13396_v6 }
 0x304   :  { %12914 = vmatprep.mubr.bf16.mxu0 %v13397_v30 }
 0x305   :  { %13055 = vmatpush3.bf16.msra.mxu0 %v13454_v7 }
 0x306   :  { %13056 = vmatprep.subr.bf16.mxu0 %v13455_v11 }
 0x309   :  { %13057 = vmatpush3.bf16.msra.mxu0 %v13455_v11 }
 0x30a   :  { %12523 = vmatmul.mubr.bf16.gmra.mxu1 %v13398_v1  ;;  %13058 = vmatprep.subr.bf16.mxu0 %v13460_v43 }
 0x30b   :  { %12915 = vmatmul.mubr.bf16.gmra.mxu0 %v13399_v35  ;;  %12526 = vmatprep.mubr.bf16.mxu1 %v13400_v12  ;;  %v13436_v35 = vld [vmem:[#allocation2 + $0x118] sm:$0xff]  }
 0x30c   :  { %12918 = vmatprep.mubr.bf16.mxu0 %v13401_v50 }
 0x30d   :  { %13059 = vmatpush3.bf16.msra.mxu0 %v13460_v43  ;;  %v13434_v43 = vld [vmem:[#allocation2 + $0x108] sm:$0xff]  }
 0x30e   :  { %13060 = vmatprep.subr.bf16.mxu0 %v13463_v44 }
 0x311   :  { %13061 = vmatpush3.bf16.msra.mxu0 %v13463_v44  ;;  %v13435_v44 = vld [vmem:[#allocation2 + $0x130] sm:$0xff]  }
 0x312   :  { %12527 = vmatmul.mubr.bf16.gmra.mxu1 %v13403_v45 }
 0x313   :  { %12919 = vmatmul.mubr.bf16.gmra.mxu0 %v13404_v2  ;;  %12530 = vmatprep.mubr.bf16.mxu1 %v13405_v36  ;;  %v13437_v2 = vld [vmem:[#allocation2 + $0x140] sm:$0xff]  }
 0x314   :  { %12922 = vmatprep.mubr.bf16.mxu0 %v13406_v38 }
 0x31a   :  { %12531 = vmatmul.mubr.bf16.gmra.mxu1 %v13407_v14 }
 0x31b   :  { %12923 = vmatmul.mubr.bf16.gmra.mxu0 %v13408_v40  ;;  %12534 = vmatprep.mubr.bf16.mxu1 %v13409_v0 }
 0x31c   :  { %12926 = vmatprep.mubr.bf16.mxu0 %v13410_v32 }
 0x322   :  { %12535 = vmatmul.mubr.bf16.gmra.mxu1 %v13412_v33  ;;  %v13439_v33 = vld [vmem:[#allocation2 + $0x120] sm:$0xff]  }
 0x323   :  { %12927 = vmatmul.mubr.bf16.gmra.mxu0 %v13413_v22  ;;  %12538 = vmatprep.mubr.bf16.mxu1 %v13414_v26  ;;  %v13440_v26 = vld [vmem:[#allocation2 + $0x148] sm:$0xff]  }
 0x324   :  { %12930 = vmatprep.mubr.bf16.mxu0 %v13415_v51  ;;  %v13442_v51 = vld [vmem:[#allocation2 + $0x128] sm:$0xff]  }
 0x32a   :  { %12539 = vmatmul.mubr.bf16.gmra.mxu1 %v13416_v15 }
 0x32b   :  { %12931 = vmatmul.mubr.bf16.gmra.mxu0 %v13417_v59  ;;  %12542 = vmatprep.mubr.bf16.mxu1 %v13418_v16  ;;  %v13443_v16 = vld [vmem:[#allocation2 + $0x150] sm:$0xff]  }
 0x32c   :  { %12934 = vmatprep.mubr.bf16.mxu0 %v13419_v3 }
 0x32f   :  { %v15177_v48 = vpop.f32.mrf.mxu1 }
 0x330   :  { %v15179_v25 = vpop.f32.mrf.mxu0 }
 0x331   :  { %17539 = vst [vmem:[#allocation4_spill] sm:$0xff] %v15179_v25  ;;  %v15181_v47 = vpop.f32.mrf.mxu1 }
 0x332   :  { %12543 = vmatmul.mubr.bf16.gmra.mxu1 %v13421_v34  ;;  %v15183_v21 = vpop.f32.mrf.mxu0 }
 0x333   :  { %12935 = vmatmul.mubr.bf16.gmra.mxu0 %v13422_v29  ;;  %12546 = vmatprep.mubr.bf16.mxu1 %v13423_v4  ;;  %17540 = vst [vmem:[#allocation97_spill] sm:$0xff] %v15183_v21  ;;  %v15185_v61 = vpop.f32.mrf.mxu1  ;;  %v13445_v4 = vld [vmem:[#allocation2 + $0x130] sm:$0xff]   ;;  %v13480_v21 = vld [vmem:[#allocation2 + $0x80] sm:$0xff]  }
 0x334   :  { %12938 = vmatprep.mubr.bf16.mxu0 %v13424_v41  ;;  %v15187_v54 = vpop.f32.mrf.mxu0 }
 0x335   :  { %17541 = vst [vmem:[#allocation98_spill] sm:$0xff] %v15187_v54  ;;  %v15189_v19 = vpop.f32.mrf.mxu1 }
 0x336   :  { %v15191_v17 = vpop.f32.mrf.mxu0 }
 0x337   :  { %17542 = vst [vmem:[#allocation52_spill] sm:$0xff] %v15191_v17  ;;  %v15193_v18 = vpop.f32.mrf.mxu1  ;;  %v13478_v17 = vld [vmem:[#allocation2 + $0x70] sm:$0xff]  }
 0x338   :  { %v15195_v39 = vpop.f32.mrf.mxu0 }
 0x339   :  { %17543 = vst [vmem:[#allocation6_spill] sm:$0xff] %v15195_v39  ;;  %v15197_v52 = vpop.f32.mrf.mxu1 }
 0x33a   :  { %12547 = vmatmul.mubr.bf16.gmra.mxu1 %v13425_v5  ;;  %v15199_v55 = vpop.f32.mrf.mxu0  ;;  %v13449_v5 = vld [vmem:[#allocation2 + $0x8] sm:$0xff]  }
 0x33b   :  { %12939 = vmatmul.mubr.bf16.gmra.mxu0 %v13426_v8  ;;  %12550 = vmatprep.mubr.bf16.mxu1 %v13427_v46  ;;  %17544 = vst [vmem:[#allocation99_spill] sm:$0xff] %v15199_v55  ;;  %v15201_v62 = vpop.f32.mrf.mxu1  ;;  %v13451_v8 = vld [vmem:[#allocation2 + $0x168] sm:$0xff]  }
 0x33c   :  { %12942 = vmatprep.mubr.bf16.mxu0 %v13428_v42  ;;  %v15203_v63 = vpop.f32.mrf.mxu0 }
 0x33d   :  { %17545 = vst [vmem:[#allocation51_spill] sm:$0xff] %v15203_v63  ;;  %v15205_v58 = vpop.f32.mrf.mxu1 }
 0x33e   :  { %v15207_v37 = vpop.f32.mrf.mxu0 }
 0x33f   :  { %17546 = vst [vmem:[#allocation5_spill] sm:$0xff] %v15207_v37  ;;  %v15209_v7 = vpop.f32.mrf.mxu1 }
 0x340   :  { %v15211_v6 = vpop.f32.mrf.mxu0 }
 0x341   :  { %17547 = vst [vmem:[#allocation100_spill] sm:$0xff] %v15211_v6  ;;  %v15213_v56 = vpop.f32.mrf.mxu1 }
 0x342   :  { %12551 = vmatmul.mubr.bf16.gmra.mxu1 %v13430_v9  ;;  %v15215_v30 = vpop.f32.mrf.mxu0  ;;  %v13446_v9 = vld [vmem:[#allocation2 + $0x158] sm:$0xff]  }
 0x343   :  { %12943 = vmatmul.mubr.bf16.gmra.mxu0 %v13431_v10  ;;  %12554 = vmatprep.mubr.bf16.mxu1 %v13432_v13  ;;  %17548 = vst [vmem:[#allocation53_spill] sm:$0xff] %v15215_v30  ;;  %v15217_v11 = vpop.f32.mrf.mxu1 }
 0x344   :  { %12946 = vmatprep.mubr.bf16.mxu0 %v13433_v23  ;;  %v15219_v1 = vpop.f32.mrf.mxu0 }
 0x345   :  { %17549 = vst [vmem:[#allocation7_spill] sm:$0xff] %v15219_v1  ;;  %v15221_v12 = vpop.f32.mrf.mxu1  ;;  %v13472_v1 = vld [vmem:[#allocation2 + $0x80] sm:$0xff]  }
 0x346   :  { %v15223_v50 = vpop.f32.mrf.mxu0 }
 0x347   :  { %17550 = vst [vmem:[#allocation54_spill] sm:$0xff] %v15223_v50  ;;  %v15225_v45 = vpop.f32.mrf.mxu1 }
 0x348   :  { %v15227_v36 = vpop.f32.mrf.mxu0 }
 0x349   :  { %17551 = vst [vmem:[#allocation8_spill] sm:$0xff] %v15227_v36  ;;  %v15229_v38 = vpop.f32.mrf.mxu1 }
 0x34a   :  { %12555 = vmatmul.mubr.bf16.gmra.mxu1 %v13434_v43  ;;  %v15231_v14 = vpop.f32.mrf.mxu0 }
 0x34b   :  { %12947 = vmatmul.mubr.bf16.gmra.mxu0 %v13435_v44  ;;  %12558 = vmatprep.mubr.bf16.mxu1 %v13436_v35  ;;  %17552 = vst [vmem:[#allocation101_spill] sm:$0xff] %v15231_v14  ;;  %v15233_v0 = vpop.f32.mrf.mxu1  ;;  %v13452_v35 = vld [vmem:[#allocation2 + $0x10] sm:$0xff]  }
 0x34c   :  { %12950 = vmatprep.mubr.bf16.mxu0 %v13437_v2  ;;  %v15235_v40 = vpop.f32.mrf.mxu0  ;;  %v13453_v2 = vld [vmem:[#allocation2 + $0x170] sm:$0xff]  }
 0x34d   :  { %17553 = vst [vmem:[#allocation55_spill] sm:$0xff] %v15235_v40  ;;  %v15237_v32 = vpop.f32.mrf.mxu1  ;;  %v13468_v40 = vld [vmem:[#allocation2 + $0x68] sm:$0xff]  }
 0x34e   :  { %v15239_v22 = vpop.f32.mrf.mxu0 }
 0x34f   :  { %17554 = vst [vmem:[#allocation9_spill] sm:$0xff] %v15239_v22  ;;  %v15241_v15 = vpop.f32.mrf.mxu1 }
 0x350   :  { %v15243_v59 = vpop.f32.mrf.mxu0 }
 0x351   :  { %17555 = vst [vmem:[#allocation102_spill] sm:$0xff] %v15243_v59  ;;  %v15245_v3 = vpop.f32.mrf.mxu1 }
 0x352   :  { %12559 = vmatmul.mubr.bf16.gmra.mxu1 %v13439_v33  ;;  %17556 = vst [vmem:[#allocation56_spill] sm:$0xff] %v15245_v3  ;;  %v15247_v34 = vpop.f32.mrf.mxu0 }
 0x353   :  { %12951 = vmatmul.mubr.bf16.gmra.mxu0 %v13440_v26  ;;  %12562 = vmatprep.mubr.bf16.mxu1 %v13442_v51  ;;  %17557 = vst [vmem:[#allocation10_spill] sm:$0xff] %v15247_v34  ;;  %v15249_v29 = vpop.f32.mrf.mxu1  ;;  %v13456_v26 = vld [vmem:[#allocation2 + $0x18] sm:$0xff]  }
 0x354   :  { %12954 = vmatprep.mubr.bf16.mxu0 %v13443_v16  ;;  %17558 = vst [vmem:[#allocation103_spill] sm:$0xff] %v15249_v29  ;;  %v15251_v41 = vpop.f32.mrf.mxu0  ;;  %v13457_v16 = vld [vmem:[#allocation2 + $0x178] sm:$0xff]   ;;  %v13525_v29 = vld [vmem:[#allocation2 + $0x28] sm:$0xff]  }
 0x355   :  { %17559 = vst [vmem:[#allocation104_spill] sm:$0xff] %v15251_v41  ;;  %v15253_v46 = vpop.f32.mrf.mxu1 }
 0x356   :  { %17560 = vst [vmem:[#allocation57_spill] sm:$0xff] %v15253_v46  ;;  %v15255_v42 = vpop.f32.mrf.mxu0  ;;  %v13524_v46 = vld [vmem:[#allocation2 + $0x160] sm:$0xff]  }
 0x357   :  { %17561 = vst [vmem:[#allocation11_spill] sm:$0xff] %v15255_v42  ;;  %v15257_v10 = vpop.f32.mrf.mxu1 }
 0x358   :  { %17562 = vst [vmem:[#allocation58_spill] sm:$0xff] %v15257_v10  ;;  %v15259_v13 = vpop.f32.mrf.mxu0 }
 0x359   :  { %17563 = vst [vmem:[#allocation12_spill] sm:$0xff] %v15259_v13  ;;  %v15261_v23 = vpop.f32.mrf.mxu1  ;;  %v13458_v13 = vld [vmem:[#allocation2 + $0x20] sm:$0xff]  }
 0x35a   :  { %12563 = vmatmul.mubr.bf16.gmra.mxu1 %v13445_v4  ;;  %17564 = vst [vmem:[#allocation105_spill] sm:$0xff] %v15261_v23  ;;  %v15263_v43 = vpop.f32.mrf.mxu0 }
 0x35b   :  { %12955 = vmatmul.mubr.bf16.gmra.mxu0 %v13446_v9  ;;  %12582 = vmatprep.mubr.bf16.mxu1 %v13449_v5  ;;  %17565 = vst [vmem:[#allocation59_spill] sm:$0xff] %v15263_v43  ;;  %v15265_v44 = vpop.f32.mrf.mxu1  ;;  %v13464_v5 = vld [vmem:[%s17250_s3 + $0xf0] sm:$0xff]  }
 0x35c   :  { %12958 = vmatprep.mubr.bf16.mxu0 %v13451_v8  ;;  %17566 = vst [vmem:[#allocation13_spill] sm:$0xff] %v15265_v44  ;;  %v15267_v33 = vpop.f32.mrf.mxu0  ;;  %v13521_v44 = vld [vmem:[#allocation2 + $0x130] sm:$0xff]  }
 0x35d   :  { %17567 = vst [vmem:[#allocation106_spill] sm:$0xff] %v15267_v33  ;;  %v15269_v51 = vpop.f32.mrf.mxu1 }
 0x35e   :  { %17568 = vst [vmem:[#allocation60_spill] sm:$0xff] %v15269_v51  ;;  %v15271_v4 = vpop.f32.mrf.mxu0  ;;  %v13520_v51 = vld [vmem:[#allocation2 + $0x150] sm:$0xff]  }
 0x35f   :  { %17569 = vst [vmem:[#allocation14_spill] sm:$0xff] %v15271_v4  ;;  %v15276_v9 = vpop.f32.mrf.mxu1  ;;  %v13473_v4 = vld [vmem:[%s17250_s3 + $0xe8] sm:$0xff]  }
 0x360   :  { %17570 = vst [vmem:[#allocation107_spill] sm:$0xff] %v15276_v9  ;;  %v15279_v8 = vpop.f32.mrf.mxu0 }
 0x361   :  { %17571 = vst [vmem:[#allocation108_spill] sm:$0xff] %v15279_v8  ;;  %v15281_v42 = vpop.f32.mrf.mxu1 }
 0x362   :  { %12583 = vmatmul.mubr.bf16.vlgmr.msra.gmra.mxu1 %v13452_v35  ;;  %17572 = vst [vmem:[#allocation61_spill] sm:$0xff] %v15281_v42  ;;  %v15286_v33 = vpop.f32.mrf.mxu0 }
 0x363   :  { %12647 = vmatpush3.bf16.msra.mxu1 %v15146_v28  ;;  %12959 = vmatmul.mubr.bf16.gmra.mxu0 %v13453_v2  ;;  %17573 = vst [vmem:[#allocation15_spill] sm:$0xff] %v15286_v33  ;;  %v15288_v43 = vpop.f32.mrf.mxu1  ;;  %v13459_v28 = vld [vmem:[#allocation2 + $0x180] sm:$0xff]   ;;  %v13461_v2 = vld [vmem:[#allocation2 + $0x30] sm:$0xff]   ;;  %v13462_v33 = vld [vmem:[#allocation2 + $0x58] sm:$0xff]  }
 0x364   :  { %12586 = vmatprep.mubr.bf16.mxu1 %v13456_v26  ;;  %12962 = vmatprep.mubr.bf16.mxu0 %v13457_v16  ;;  %17574 = vst [vmem:[#allocation62_spill] sm:$0xff] %v15288_v43  ;;  %v15290_v35 = vpop.f32.mrf.mxu0  ;;  %v13482_v16 = vld [vmem:[%s17250_s3 + $0xe0] sm:$0xff]  }
 0x365   :  { %12648 = vmatprep.subr.bf16.mxu1 %v13464_v5  ;;  %17575 = vst [vmem:[#allocation16_spill] sm:$0xff] %v15290_v35  ;;  %v15292_v8 = vpop.f32.mrf.mxu1  ;;  %v13516_v43 = vld [vmem:[#allocation2 + $0x120] sm:$0xff]  }
 0x366   :  { %17576 = vst [vmem:[#allocation109_spill] sm:$0xff] %v15292_v8  ;;  %v15294_v26 = vpop.f32.mrf.mxu0  ;;  %v13515_v8 = vld [vmem:[#allocation2 + $0x138] sm:$0xff]  }
 0x367   :  { %12649 = vmatpush3.bf16.msra.mxu1 %v13464_v5  ;;  %17577 = vst [vmem:[#allocation63_spill] sm:$0xff] %v15294_v26  ;;  %v15299_v41 = vpop.f32.mrf.mxu1  ;;  %v13491_v26 = vld [vmem:[%s17250_s3 + $0xd8] sm:$0xff]  }
 0x368   :  { %12650 = vmatprep.subr.bf16.mxu1 %v13473_v4  ;;  %17578 = vst [vmem:[#allocation17_spill] sm:$0xff] %v15299_v41  ;;  %v15301_v34 = vpop.f32.mrf.mxu0 }
 0x369   :  { %17579 = vst [vmem:[#allocation110_spill] sm:$0xff] %v15301_v34  ;;  %v15303_v5 = vpop.f32.mrf.mxu1  ;;  %v13465_v34 = vld [vmem:[#allocation2 + $0x38] sm:$0xff]  }
 0x36a   :  { %12587 = vmatmul.mubr.bf16.gmra.mxu1 %v13458_v13  ;;  %17580 = vst [vmem:[#allocation64_spill] sm:$0xff] %v15303_v5  ;;  %v15305_v35 = vpop.f32.mrf.mxu0 }
 0x36b   :  { %12963 = vmatmul.mubr.bf16.gmra.mxu0 %v13459_v28  ;;  %12590 = vmatprep.mubr.bf16.mxu1 %v13461_v2  ;;  %17581 = vst [vmem:[#allocation18_spill] sm:$0xff] %v15305_v35  ;;  %v15310_v59 = vpop.f32.mrf.mxu1  ;;  %v13467_v2 = vld [vmem:[#allocation2 + $0x40] sm:$0xff]  }
 0x36c   :  { %13062 = vmatprep.mubr.bf16.mxu0 %v13462_v33  ;;  %12651 = vmatpush3.bf16.msra.mxu1 %v13473_v4  ;;  %17582 = vst [vmem:[#allocation111_spill] sm:$0xff] %v15310_v59  ;;  %v15312_v22 = vpop.f32.mrf.mxu0  ;;  %v13466_v33 = vld [vmem:[#allocation2 + $0x60] sm:$0xff]   ;;  %v13500_v4 = vld [vmem:[%s17250_s3 + $0xd0] sm:$0xff]   ;;  %v13512_v59 = vld [vmem:[#allocation2 + $0x108] sm:$0xff]  }
 0x36d   :  { %12652 = vmatprep.subr.bf16.mxu1 %v13482_v16  ;;  %17583 = vst [vmem:[#allocation112_spill] sm:$0xff] %v15312_v22  ;;  %v15314_v13 = vpop.f32.mrf.mxu1 }
 0x36e   :  { %17584 = vst [vmem:[#allocation65_spill] sm:$0xff] %v15314_v13  ;;  %v15316_v28 = vpop.f32.mrf.mxu0  ;;  %v13511_v13 = vld [vmem:[#allocation2 + $0x128] sm:$0xff]  }
 0x36f   :  { %17585 = vst [vmem:[#allocation19_spill] sm:$0xff] %v15316_v28  ;;  %v13509_v28 = vld [vmem:[%s17250_s3 + $0xc8] sm:$0xff]  }
 0x370   :  { %12653 = vmatpush3.bf16.msra.mxu1 %v13482_v16 }
 0x371   :  { %12654 = vmatprep.subr.bf16.mxu1 %v13491_v26 }
 0x372   :  { %v15321_v35 = vpop.f32.mrf.mxu1  ;;  %12591 = vmatmul.mubr.bf16.gmra.mxu1 %v13465_v34 }
 0x373   :  { %17586 = vst [vmem:[#allocation66_spill] sm:$0xff] %v15321_v35  ;;  %v15323_v14 = vpop.f32.mrf.mxu0  ;;  %13063 = vmatmul.mubr.bf16.vlgmr.msra.gmra.mxu0 %v13466_v33  ;;  %12594 = vmatprep.mubr.bf16.mxu1 %v13467_v2  ;;  %v13471_v2 = vld [vmem:[#allocation2 + $0x58] sm:$0xff]  }
 0x374   :  { %17587 = vst [vmem:[#allocation20_spill] sm:$0xff] %v15323_v14  ;;  %13066 = vmatprep.mubr.bf16.mxu0 %v13468_v40  ;;  %v15325_v22 = vpop.f32.mrf.mxu1  ;;  %12655 = vmatpush3.bf16.msra.mxu1 %v13491_v26  ;;  %v13469_v14 = vld [vmem:[#allocation2 + $0x48] sm:$0xff]   ;;  %v13470_v40 = vld [vmem:[#allocation2 + $0x70] sm:$0xff]   ;;  %v13518_v26 = vld [vmem:[%s17250_s3 + $0xc0] sm:$0xff]  }
 0x375   :  { %17588 = vst [vmem:[#allocation113_spill] sm:$0xff] %v15325_v22  ;;  %v15327_v16 = vpop.f32.mrf.mxu0  ;;  %12656 = vmatprep.subr.bf16.mxu1 %v13500_v4 }
 0x376   :  { %17589 = vst [vmem:[#allocation114_spill] sm:$0xff] %v15327_v16  ;;  %v15332_v36 = vpop.f32.mrf.mxu1 }
 0x377   :  { %17590 = vst [vmem:[#allocation68_spill] sm:$0xff] %v15332_v36  ;;  %v15334_v50 = vpop.f32.mrf.mxu0  ;;  %v13507_v36 = vld [vmem:[#allocation2 + $0xf8] sm:$0xff]  }
 0x378   :  { %17591 = vst [vmem:[#allocation22_spill] sm:$0xff] %v15334_v50  ;;  %v15336_v34 = vpop.f32.mrf.mxu1  ;;  %12657 = vmatpush3.bf16.msra.mxu1 %v13500_v4 }
 0x379   :  { %17592 = vst [vmem:[#allocation115_spill] sm:$0xff] %v15336_v34  ;;  %v15338_v33 = vpop.f32.mrf.mxu0  ;;  %12658 = vmatprep.subr.bf16.mxu1 %v13509_v28  ;;  %v13506_v34 = vld [vmem:[#allocation2 + $0x110] sm:$0xff]  }
 0x37a   :  { %17593 = vst [vmem:[#allocation67_spill] sm:$0xff] %v15338_v33  ;;  %v15343_v16 = vpop.f32.mrf.mxu1  ;;  %12595 = vmatmul.mubr.bf16.gmra.mxu1 %v13469_v14  ;;  %v15354_v33 = vld [vmem:[%s17250_s3 + $0x178] sm:$0xff]  }
 0x37b   :  { %17594 = vst [vmem:[#allocation21_spill] sm:$0xff] %v15343_v16  ;;  %v15345_v30 = vpop.f32.mrf.mxu0  ;;  %13067 = vmatmul.mubr.bf16.gmra.mxu0 %v13470_v40  ;;  %12598 = vmatprep.mubr.bf16.mxu1 %v13471_v2  ;;  %v13474_v40 = vld [vmem:[#allocation2 + $0x60] sm:$0xff]   ;;  %v13475_v2 = vld [vmem:[#allocation2 + $0x88] sm:$0xff]  }
 0x37c   :  { %17595 = vst [vmem:[#allocation116_spill] sm:$0xff] %v15345_v30  ;;  %13070 = vmatprep.mubr.bf16.mxu0 %v13472_v1  ;;  %v15347_v50 = vpop.f32.mrf.mxu1  ;;  %12659 = vmatpush3.bf16.msra.mxu1 %v13509_v28  ;;  %v13476_v28 = vld [vmem:[#allocation2 + $0x68] sm:$0xff]   ;;  %v13477_v30 = vld [vmem:[#allocation2 + $0x90] sm:$0xff]  }
 0x37d   :  { %17596 = vst [vmem:[#allocation69_spill] sm:$0xff] %v15347_v50  ;;  %v15349_v4 = vpop.f32.mrf.mxu0  ;;  %12660 = vmatprep.subr.bf16.mxu1 %v13518_v26 }
 0x37e   :  { %17597 = vst [vmem:[#allocation23_spill] sm:$0xff] %v15349_v4  ;;  %v15356_v6 = vpop.f32.mrf.mxu1 }
 0x37f   :  { %17598 = vst [vmem:[#allocation70_spill] sm:$0xff] %v15356_v6  ;;  %v15358_v14 = vpop.f32.mrf.mxu0  ;;  %v13503_v6 = vld [vmem:[#allocation2 + $0xe0] sm:$0xff]  }
 0x380   :  { %17599 = vst [vmem:[#allocation24_spill] sm:$0xff] %v15358_v14  ;;  %v15360_v37 = vpop.f32.mrf.mxu1  ;;  %12661 = vmatpush3.bf16.msra.mxu1 %v13518_v26 }
 0x381   :  { %17600 = vst [vmem:[#allocation117_spill] sm:$0xff] %v15360_v37  ;;  %v15362_v1 = vpop.f32.mrf.mxu0  ;;  %12806 = vmatprep.subr.bf16.mxu1 %v15354_v33  ;;  %v13502_v37 = vld [vmem:[#allocation2 + $0x100] sm:$0xff]  }
 0x382   :  { %17601 = vst [vmem:[#allocation71_spill] sm:$0xff] %v15362_v1  ;;  %v15365_v4 = vpop.f32.mrf.mxu1  ;;  %12599 = vmatmul.mubr.bf16.gmra.mxu1 %v13474_v40  ;;  %v13479_v40 = vld [vmem:[#allocation2 + $0x98] sm:$0xff]  }
 0x383   :  { %17602 = vst [vmem:[#allocation25_spill] sm:$0xff] %v15365_v4  ;;  %v15367_v63 = vpop.f32.mrf.mxu0  ;;  %13071 = vmatmul.mubr.bf16.gmra.mxu0 %v13475_v2  ;;  %12602 = vmatprep.mubr.bf16.mxu1 %v13476_v28  ;;  %v13481_v2 = vld [vmem:[#allocation2 + $0xa8] sm:$0xff]   ;;  %v13501_v4 = vld [vmem:[#allocation2 + $0xd8] sm:$0xff]  }
 0x384   :  { %17603 = vst [vmem:[#allocation118_spill] sm:$0xff] %v15367_v63  ;;  %13074 = vmatprep.mubr.bf16.mxu0 %v13477_v30  ;;  %v15369_v14 = vpop.f32.mrf.mxu1 }
 0x385   :  { %17604 = vst [vmem:[#allocation72_spill] sm:$0xff] %v15369_v14  ;;  %v15371_v55 = vpop.f32.mrf.mxu0 }
 0x386   :  { %17605 = vst [vmem:[#allocation26_spill] sm:$0xff] %v15371_v55  ;;  %v15373_v26 = vpop.f32.mrf.mxu1 }
 0x387   :  { %17606 = vst [vmem:[#allocation119_spill] sm:$0xff] %v15373_v26  ;;  %v15375_v1 = vpop.f32.mrf.mxu0 }
 0x388   :  { %17607 = vst [vmem:[#allocation120_spill] sm:$0xff] %v15375_v1  ;;  %v15377_v39 = vpop.f32.mrf.mxu1 }
 0x389   :  { %17608 = vst [vmem:[#allocation73_spill] sm:$0xff] %v15377_v39  ;;  %v15379_v54 = vpop.f32.mrf.mxu0  ;;  %v13483_v39 = vld [vmem:[#allocation2 + $0x88] sm:$0xff]  }
 0x38a   :  { %17609 = vst [vmem:[#allocation27_spill] sm:$0xff] %v15379_v54  ;;  %v15381_v25 = vpop.f32.mrf.mxu1  ;;  %12603 = vmatmul.mubr.bf16.gmra.mxu1 %v13478_v17  ;;  %v13484_v17 = vld [vmem:[#allocation2 + $0xb0] sm:$0xff]  }
 0x38b   :  { %17610 = vst [vmem:[#allocation74_spill] sm:$0xff] %v15381_v25  ;;  %v15383_v30 = vpop.f32.mrf.mxu0  ;;  %13075 = vmatmul.mubr.bf16.gmra.mxu0 %v13479_v40  ;;  %12606 = vmatprep.mubr.bf16.mxu1 %v13480_v21  ;;  %v13485_v25 = vld [vmem:[#allocation2 + $0x90] sm:$0xff]   ;;  %v13486_v21 = vld [vmem:[#allocation2 + $0xb8] sm:$0xff]  }
 0x38c   :  { %17611 = vst [vmem:[#allocation28_spill] sm:$0xff] %v15383_v30  ;;  %13078 = vmatprep.mubr.bf16.mxu0 %v13481_v2  ;;  %v15385_v28 = vpop.f32.mrf.mxu1 }
 0x38d   :  { %17612 = vst [vmem:[#allocation121_spill] sm:$0xff] %v15385_v28  ;;  %v15387_v55 = vpop.f32.mrf.mxu0 }
 0x38e   :  { %17613 = vst [vmem:[#allocation75_spill] sm:$0xff] %v15387_v55  ;;  %v15389_v1 = vpop.f32.mrf.mxu1 }
 0x38f   :  { %17614 = vst [vmem:[#allocation29_spill] sm:$0xff] %v15389_v1  ;;  %v15391_v63 = vpop.f32.mrf.mxu0 }
 0x390   :  { %17615 = vst [vmem:[#allocation122_spill] sm:$0xff] %v15391_v63  ;;  %v15393_v54 = vpop.f32.mrf.mxu1 }
 0x391   :  { %17616 = vst [vmem:[#allocation76_spill] sm:$0xff] %v15393_v54  ;;  %v15395_v26 = vpop.f32.mrf.mxu0  ;;  %v13487_v54 = vld [vmem:[#allocation2 + $0x98] sm:$0xff]  }
 0x392   :  { %17617 = vst [vmem:[#allocation30_spill] sm:$0xff] %v15395_v26  ;;  %v15397_v14 = vpop.f32.mrf.mxu1  ;;  %12607 = vmatmul.mubr.bf16.gmra.mxu1 %v13483_v39  ;;  %v13488_v39 = vld [vmem:[#allocation2 + $0xc0] sm:$0xff]  }
 0x393   :  { %17618 = vst [vmem:[#allocation123_spill] sm:$0xff] %v15397_v14  ;;  %v15399_v40 = vpop.f32.mrf.mxu0  ;;  %13079 = vmatmul.mubr.bf16.gmra.mxu0 %v13484_v17  ;;  %12610 = vmatprep.mubr.bf16.mxu1 %v13485_v25  ;;  %v13489_v14 = vld [vmem:[#allocation2 + $0xa8] sm:$0xff]   ;;  %v13490_v25 = vld [vmem:[#allocation2 + $0xd0] sm:$0xff]  }
 0x394   :  { %17619 = vst [vmem:[#allocation124_spill] sm:$0xff] %v15399_v40  ;;  %13082 = vmatprep.mubr.bf16.mxu0 %v13486_v21  ;;  %v15401_v2 = vpop.f32.mrf.mxu1 }
 0x395   :  { %17620 = vst [vmem:[#allocation77_spill] sm:$0xff] %v15401_v2  ;;  %v15403_v55 = vpop.f32.mrf.mxu0 }
 0x396   :  { %17621 = vst [vmem:[#allocation31_spill] sm:$0xff] %v15403_v55  ;;  %v15405_v63 = vpop.f32.mrf.mxu1 }
 0x397   :  { %17622 = vst [vmem:[#allocation78_spill] sm:$0xff] %v15405_v63  ;;  %v15407_v30 = vpop.f32.mrf.mxu0 }
 0x398   :  { %17623 = vst [vmem:[#allocation32_spill] sm:$0xff] %v15407_v30  ;;  %v15409_v26 = vpop.f32.mrf.mxu1 }
 0x399   :  { %17624 = vst [vmem:[#allocation125_spill] sm:$0xff] %v15409_v26  ;;  %v15411_v1 = vpop.f32.mrf.mxu0  ;;  %v13492_v26 = vld [vmem:[#allocation2 + $0xb0] sm:$0xff]  }
 0x39a   :  { %17625 = vst [vmem:[#allocation79_spill] sm:$0xff] %v15411_v1  ;;  %v15413_v28 = vpop.f32.mrf.mxu1  ;;  %12611 = vmatmul.mubr.bf16.gmra.mxu1 %v13487_v54  ;;  %v13493_v54 = vld [vmem:[#allocation2 + $0xd8] sm:$0xff]  }
 0x39b   :  { %17626 = vst [vmem:[#allocation33_spill] sm:$0xff] %v15413_v28  ;;  %v15415_v17 = vpop.f32.mrf.mxu0  ;;  %13083 = vmatmul.mubr.bf16.gmra.mxu0 %v13488_v39  ;;  %12614 = vmatprep.mubr.bf16.mxu1 %v13489_v14  ;;  %v13494_v28 = vld [vmem:[#allocation2 + $0xb8] sm:$0xff]   ;;  %v13495_v14 = vld [vmem:[#allocation2 + $0xe0] sm:$0xff]  }
 0x39c   :  { %17627 = vst [vmem:[#allocation126_spill] sm:$0xff] %v15415_v17  ;;  %13086 = vmatprep.mubr.bf16.mxu0 %v13490_v25  ;;  %v15417_v21 = vpop.f32.mrf.mxu1 }
 0x39d   :  { %17628 = vst [vmem:[#allocation80_spill] sm:$0xff] %v15417_v21  ;;  %v15419_v55 = vpop.f32.mrf.mxu0  ;;  %v13498_v21 = vld [vmem:[#allocation2 + $0xd0] sm:$0xff]  }
 0x39e   :  { %17629 = vst [vmem:[#allocation34_spill] sm:$0xff] %v15419_v55  ;;  %v15421_v30 = vpop.f32.mrf.mxu1 }
 0x39f   :  { %17630 = vst [vmem:[#allocation127_spill] sm:$0xff] %v15421_v30  ;;  %v15423_v40 = vpop.f32.mrf.mxu0  ;;  %v13497_v30 = vld [vmem:[#allocation2 + $0xe8] sm:$0xff]  }
 0x3a0   :  { %17631 = vst [vmem:[#allocation128_spill] sm:$0xff] %v15423_v40  ;;  %v15425_v1 = vpop.f32.mrf.mxu1 }
 0x3a1   :  { %17632 = vst [vmem:[#allocation81_spill] sm:$0xff] %v15425_v1  ;;  %v15427_v63 = vpop.f32.mrf.mxu0  ;;  %v13496_v1 = vld [vmem:[#allocation2 + $0xc0] sm:$0xff]  }
 0x3a2   :  { %17633 = vst [vmem:[#allocation35_spill] sm:$0xff] %v15427_v63  ;;  %v15429_v2 = vpop.f32.mrf.mxu1  ;;  %12615 = vmatmul.mubr.bf16.gmra.mxu1 %v13492_v26 }
 0x3a3   :  { %v15431_v39 = vpop.f32.mrf.mxu0  ;;  %13087 = vmatmul.mubr.bf16.gmra.mxu0 %v13493_v54  ;;  %12618 = vmatprep.mubr.bf16.mxu1 %v13494_v28 }
 0x3a4   :  { %17634 = vst [vmem:[#allocation82_spill] sm:$0xff] %v15431_v39  ;;  %13090 = vmatprep.mubr.bf16.mxu0 %v13495_v14  ;;  %v15433_v25 = vpop.f32.mrf.mxu1  ;;  %v13499_v39 = vld [vmem:[#allocation2 + $0xf8] sm:$0xff]  }
 0x3a5   :  { %v15435_v55 = vpop.f32.mrf.mxu0 }
 0x3a6   :  { %17635 = vst [vmem:[#allocation36_spill] sm:$0xff] %v15435_v55  ;;  %v15437_v40 = vpop.f32.mrf.mxu1 }
 0x3a7   :  { %v15439_v17 = vpop.f32.mrf.mxu0 }
 0x3a8   :  { %17636 = vst [vmem:[#allocation129_spill] sm:$0xff] %v15439_v17  ;;  %v15441_v63 = vpop.f32.mrf.mxu1 }
 0x3a9   :  { %v15445_v54 = vpop.f32.mrf.mxu0 }
 0x3aa   :  { %v15443_v26 = vpop.f32.mrf.mxu1  ;;  %12619 = vmatmul.mubr.bf16.gmra.mxu1 %v13496_v1  ;;  %17637 = vst [vmem:[#allocation130_spill] sm:$0xff] %v15445_v54  ;;  %v13504_v1 = vld [vmem:[#allocation2 + $0x108] sm:$0xff]  }
 0x3ab   :  { %13091 = vmatmul.mubr.bf16.gmra.mxu0 %v13497_v30  ;;  %12622 = vmatprep.mubr.bf16.mxu1 %v13498_v21  ;;  %v15451_v55 = vpop.f32.mrf.mxu0  ;;  %v13505_v54 = vld [vmem:[#allocation2 + $0xe8] sm:$0xff]  }
 0x3ac   :  { %13094 = vmatprep.mubr.bf16.mxu0 %v13499_v39  ;;  %v15447_v28 = vpop.f32.mrf.mxu1  ;;  %17638 = vst [vmem:[#allocation84_spill] sm:$0xff] %v15451_v55 }
 0x3ad   :  { %v15457_v16 = vpop.f32.mrf.mxu0 }
 0x3ae   :  { %v15449_v14 = vpop.f32.mrf.mxu1  ;;  %17639 = vst [vmem:[#allocation38_spill] sm:$0xff] %v15457_v16  ;;  %v13510_v16 = vld [vmem:[#allocation2 + $0x100] sm:$0xff]  }
 0x3af   :  { %v15463_v39 = vpop.f32.mrf.mxu0 }
 0x3b0   :  { %v15453_v17 = vpop.f32.mrf.mxu1  ;;  %17640 = vst [vmem:[#allocation131_spill] sm:$0xff] %v15463_v39 }
 0x3b1   :  { %v15469_v35 = vpop.f32.mrf.mxu0 }
 0x3b2   :  { %v15455_v50 = vpop.f32.mrf.mxu1  ;;  %12623 = vmatmul.mubr.bf16.gmra.mxu1 %v13501_v4  ;;  %v13508_v4 = vld [vmem:[#allocation2 + $0x120] sm:$0xff]   ;;  %17641 = vst [vmem:[#allocation83_spill] sm:$0xff] %v15469_v35  ;;  %v13514_v35 = vld [vmem:[#allocation2 + $0x110] sm:$0xff]  }
 0x3b3   :  { %13095 = vmatmul.mubr.bf16.gmra.mxu0 %v13502_v37  ;;  %12626 = vmatprep.mubr.bf16.mxu1 %v13503_v6 }
 0x3b4   :  { %13098 = vmatprep.mubr.bf16.mxu0 %v13504_v1  ;;  %v15459_v30 = vpop.f32.mrf.mxu1  ;;  %v15475_v1 = vpop.f32.mrf.mxu0 }
 0x3b5   :  { %17642 = vst [vmem:[#allocation37_spill] sm:$0xff] %v15475_v1 }
 0x3b6   :  { %v15461_v21 = vpop.f32.mrf.mxu1  ;;  %v15481_v41 = vpop.f32.mrf.mxu0 }
 0x3b7   :  { %17643 = vst [vmem:[#allocation132_spill] sm:$0xff] %v15481_v41  ;;  %v13519_v41 = vld [vmem:[#allocation2 + $0x128] sm:$0xff]  }
 0x3b8   :  { %v15465_v55 = vpop.f32.mrf.mxu1 }
 0x3ba   :  { %v15467_v22 = vpop.f32.mrf.mxu1  ;;  %12627 = vmatmul.mubr.bf16.gmra.mxu1 %v13505_v54  ;;  %v13513_v54 = vld [vmem:[#allocation2 + $0x130] sm:$0xff]  }
 0x3bb   :  { %13099 = vmatmul.mubr.bf16.gmra.mxu0 %v13506_v34  ;;  %12630 = vmatprep.mubr.bf16.mxu1 %v13507_v36 }
 0x3bc   :  { %13102 = vmatprep.mubr.bf16.mxu0 %v13508_v4  ;;  %v15471_v37 = vpop.f32.mrf.mxu1  ;;  %v15487_v4 = vpop.f32.mrf.mxu0 }
 0x3bd   :  { %17644 = vst [vmem:[#allocation85_spill] sm:$0xff] %v15487_v4 }
 0x3be   :  { %v15473_v6 = vpop.f32.mrf.mxu1  ;;  %v15493_v9 = vpop.f32.mrf.mxu0 }
 0x3bf   :  { %17645 = vst [vmem:[#allocation39_spill] sm:$0xff] %v15493_v9  ;;  %v13523_v9 = vld [vmem:[#allocation2 + $0x138] sm:$0xff]  }
 0x3c0   :  { %v15477_v39 = vpop.f32.mrf.mxu1 }
 0x3c2   :  { %v15479_v5 = vpop.f32.mrf.mxu1  ;;  %12631 = vmatmul.mubr.bf16.gmra.mxu1 %v13510_v16  ;;  %v13517_v16 = vld [vmem:[#allocation2 + $0x148] sm:$0xff]  }
 0x3c3   :  { %13103 = vmatmul.mubr.bf16.gmra.mxu0 %v13511_v13  ;;  %12634 = vmatprep.mubr.bf16.mxu1 %v13512_v59 }
 0x3c4   :  { %13106 = vmatprep.mubr.bf16.mxu0 %v13513_v54  ;;  %v15483_v36 = vpop.f32.mrf.mxu1  ;;  %v15499_v54 = vpop.f32.mrf.mxu0 }
 0x3c5   :  { %17646 = vst [vmem:[#allocation86_spill] sm:$0xff] %v15499_v54 }
 0x3c6   :  { %v15485_v34 = vpop.f32.mrf.mxu1  ;;  %v15505_v10 = vpop.f32.mrf.mxu0 }
 0x3c7   :  { %17647 = vst [vmem:[#allocation40_spill] sm:$0xff] %v15505_v10  ;;  %v13527_v10 = vld [vmem:[#allocation2 + $0x30] sm:$0xff]  }
 0x3c8   :  { %v15489_v1 = vpop.f32.mrf.mxu1 }
 0x3ca   :  { %v15491_v42 = vpop.f32.mrf.mxu1  ;;  %12635 = vmatmul.mubr.bf16.gmra.mxu1 %v13514_v35  ;;  %v13522_v35 = vld [vmem:[#allocation2 + $0x158] sm:$0xff]  }
 0x3cb   :  { %13107 = vmatmul.mubr.bf16.gmra.mxu0 %v13515_v8  ;;  %12638 = vmatprep.mubr.bf16.mxu1 %v13516_v43 }
 0x3cc   :  { %13110 = vmatprep.mubr.bf16.mxu0 %v13517_v16  ;;  %v15495_v59 = vpop.f32.mrf.mxu1  ;;  %v15511_v16 = vpop.f32.mrf.mxu0 }
 0x3cd   :  { %17649 = vst [vmem:[#allocation87_spill] sm:$0xff] %v15511_v16  ;;  %v13531_v16 = vld [vmem:[%s17250_s3 + $0x170] sm:$0xff]  }
 0x3ce   :  { %v15497_v13 = vpop.f32.mrf.mxu1 }
 0x3d0   :  { %v15501_v4 = vpop.f32.mrf.mxu1 }
 0x3d2   :  { %v15503_v23 = vpop.f32.mrf.mxu1  ;;  %12639 = vmatmul.mubr.bf16.gmra.mxu1 %v13519_v41  ;;  %v15517_v41 = vpop.f32.mrf.mxu0 }
 0x3d3   :  { %13111 = vmatmul.mubr.bf16.gmra.mxu0 %v13520_v51  ;;  %12642 = vmatprep.mubr.bf16.mxu1 %v13521_v44  ;;  %17651 = vst [vmem:[#allocation134_spill] sm:$0xff] %v15517_v41 }
 0x3d4   :  { %13114 = vmatprep.mubr.bf16.mxu0 %v13522_v35  ;;  %v15507_v43 = vpop.f32.mrf.mxu1 }
 0x3d6   :  { %v15509_v8 = vpop.f32.mrf.mxu1 }
 0x3d7   :  { %17648 = vst [vmem:[#allocation133_spill] sm:$0xff] %v15509_v8 }
 0x3d8   :  { %v15513_v54 = vpop.f32.mrf.mxu1 }
 0x3d9   :  { %17650 = vst [vmem:[#allocation41_spill] sm:$0xff] %v15513_v54  ;;  %v13528_v54 = vld [vmem:[#allocation2 + $0x38] sm:$0xff]  }
 0x3da   :  { %v15515_v3 = vpop.f32.mrf.mxu1  ;;  %12643 = vmatmul.mubr.bf16.gmra.mxu1 %v13523_v9 }
 0x3db   :  { %13115 = vmatmul.mubr.bf16.gmra.mxu0 %v13524_v46  ;;  %12662 = vmatprep.mubr.bf16.mxu1 %v13525_v29  ;;  %v13536_v29 = vld [vmem:[%s17250_s3 + $0x168] sm:$0xff]  }
 0x3dc   :  { %v15519_v44 = vpop.f32.mrf.mxu1 }
 0x3dd   :  { %17652 = vst [vmem:[#allocation88_spill] sm:$0xff] %v15519_v44  ;;  %v13540_v44 = vld [vmem:[#allocation2 + $0xa0] sm:$0xff]  }
 0x3de   :  { %v15521_v51 = vpop.f32.mrf.mxu1 }
 0x3df   :  { %17653 = vst [vmem:[#allocation42_spill] sm:$0xff] %v15521_v51  ;;  %v13539_v51 = vld [vmem:[#allocation2 + $0x90] sm:$0xff]  }
 0x3e0   :  { %v15523_v35 = vpop.f32.mrf.mxu1 }
 0x3e1   :  { %17654 = vst [vmem:[#allocation135_spill] sm:$0xff] %v15523_v35  ;;  %v13529_v35 = vld [vmem:[#allocation2 + $0x40] sm:$0xff]  }
 0x3e2   :  { %v15528_v8 = vpop.f32.mrf.mxu1  ;;  %12663 = vmatmul.mubr.bf16.vlgmr.msra.gmra.mxu1 %v13527_v10  ;;  %v13541_v10 = vld [vmem:[%s17250_s3 + $0x160] sm:$0xff]  }
 0x3e3   :  { %17655 = vst [vmem:[#allocation136_spill] sm:$0xff] %v15528_v8  ;;  %12807 = vmatpush3.bf16.msra.mxu1 %v15354_v33  ;;  %12666 = vmatprep.mubr.bf16.mxu1 %v13528_v54  ;;  %v13530_v33 = vld [vmem:[#allocation2 + $0x50] sm:$0xff]   ;;  %v13532_v8 = vld [vmem:[#allocation2 + $0x58] sm:$0xff]  }
 0x3e4   :  { %v15531_v46 = vpop.f32.mrf.mxu1  ;;  %12808 = vmatprep.subr.bf16.mxu1 %v13531_v16 }
 0x3e5   :  { %17656 = vst [vmem:[#allocation89_spill] sm:$0xff] %v15531_v46 }
 0x3e6   :  { %v15536_v9 = vpop.f32.mrf.mxu1 }
 0x3e7   :  { %17657 = vst [vmem:[#allocation43_spill] sm:$0xff] %v15536_v9  ;;  %12809 = vmatpush3.bf16.msra.mxu1 %v13531_v16  ;;  %v13546_v16 = vld [vmem:[%s17250_s3 + $0x158] sm:$0xff]  }
 0x3e8   :  { %v15538_v41 = vpop.f32.mrf.mxu1  ;;  %12810 = vmatprep.subr.bf16.mxu1 %v13536_v29 }
 0x3e9   :  { %17658 = vst [vmem:[#allocation90_spill] sm:$0xff] %v15538_v41 }
 0x3ea   :  { %v15543_v54 = vpop.f32.mrf.mxu1  ;;  %12667 = vmatmul.mubr.bf16.gmra.mxu1 %v13529_v35  ;;  %v13551_v35 = vld [vmem:[%s17250_s3 + $0x150] sm:$0xff]  }
 0x3eb   :  { %17659 = vst [vmem:[#allocation44_spill] sm:$0xff] %v15543_v54  ;;  %12670 = vmatprep.mubr.bf16.mxu1 %v13530_v33  ;;  %12811 = vmatpush3.bf16.msra.mxu1 %v13536_v29  ;;  %v13533_v33 = vld [vmem:[#allocation2 + $0x60] sm:$0xff]   ;;  %v13534_v54 = vld [vmem:[#allocation2 + $0x68] sm:$0xff]  }
 0x3ec   :  { %v15545_v46 = vpop.f32.mrf.mxu1  ;;  %12812 = vmatprep.subr.bf16.mxu1 %v13541_v10 }
 0x3ed   :  { %17660 = vst [vmem:[#allocation137_spill] sm:$0xff] %v15545_v46 }
 0x3ee   :  { %v15550_v41 = vpop.f32.mrf.mxu1 }
 0x3ef   :  { %17661 = vst [vmem:[#allocation91_spill] sm:$0xff] %v15550_v41  ;;  %12813 = vmatpush3.bf16.msra.mxu1 %v13541_v10  ;;  %v13556_v10 = vld [vmem:[%s17250_s3 + $0x148] sm:$0xff]  }
 0x3f0   :  { %v15552_v9 = vpop.f32.mrf.mxu1  ;;  %12814 = vmatprep.subr.bf16.mxu1 %v13546_v16 }
 0x3f1   :  { %17662 = vst [vmem:[#allocation45_spill] sm:$0xff] %v15552_v9 }
 0x3f2   :  { %v15557_v29 = vpop.f32.mrf.mxu1  ;;  %12671 = vmatmul.mubr.bf16.gmra.mxu1 %v13532_v8  ;;  %v13561_v8 = vld [vmem:[%s17250_s3 + $0x140] sm:$0xff]  }
 0x3f3   :  { %17663 = vst [vmem:[#allocation138_spill] sm:$0xff] %v15557_v29  ;;  %12674 = vmatprep.mubr.bf16.mxu1 %v13533_v33  ;;  %12815 = vmatpush3.bf16.msra.mxu1 %v13546_v16  ;;  %v13535_v33 = vld [vmem:[#allocation2 + $0x78] sm:$0xff]   ;;  %v13537_v29 = vld [vmem:[#allocation2 + $0x80] sm:$0xff]  }
 0x3f4   :  { %v15559_v46 = vpop.f32.mrf.mxu1  ;;  %12816 = vmatprep.subr.bf16.mxu1 %v13551_v35 }
 0x3f5   :  { %17664 = vst [vmem:[#allocation92_spill] sm:$0xff] %v15559_v46 }
 0x3f6   :  { %v15564_v9 = vpop.f32.mrf.mxu1 }
 0x3f7   :  { %17665 = vst [vmem:[#allocation46_spill] sm:$0xff] %v15564_v9  ;;  %12817 = vmatpush3.bf16.msra.mxu1 %v13551_v35  ;;  %v15578_v35 = vld [vmem:[%s17250_s3 + $0x1f8] sm:$0xff]  }
 0x3f8   :  { %v15566_v41 = vpop.f32.mrf.mxu1  ;;  %12818 = vmatprep.subr.bf16.mxu1 %v13556_v10  ;;  %17669 = vst [vmem:[#allocation47_spill] sm:$0xff] %v15578_v35 }
 0x3f9   :  { %17666 = vst [vmem:[#allocation139_spill] sm:$0xff] %v15566_v41 }
 0x3fa   :  { %v15571_v16 = vpop.f32.mrf.mxu1  ;;  %12675 = vmatmul.mubr.bf16.gmra.mxu1 %v13534_v54 }
 0x3fb   :  { %17667 = vst [vmem:[#allocation140_spill] sm:$0xff] %v15571_v16  ;;  %12678 = vmatprep.mubr.bf16.mxu1 %v13535_v33  ;;  %12819 = vmatpush3.bf16.msra.mxu1 %v13556_v10  ;;  %v13538_v16 = vld [vmem:[#allocation2 + $0x88] sm:$0xff]  }
 0x3fc   :  { %v15573_v46 = vpop.f32.mrf.mxu1  ;;  %12820 = vmatprep.subr.bf16.mxu1 %v13561_v8 }
 0x3fd   :  { %17668 = vst [vmem:[#allocation93_spill] sm:$0xff] %v15573_v46 }
 0x3fe   :  { %v15580_v41 = vpop.f32.mrf.mxu1 }
 0x3ff   :  { %17670 = vst [vmem:[#allocation94_spill] sm:$0xff] %v15580_v41  ;;  %12821 = vmatpush3.bf16.msra.mxu1 %v13561_v8 }
 0x400   :  { %v15582_v9 = vpop.f32.mrf.mxu1  ;;  %12966 = vmatprep.subr.bf16.mxu1 %v15578_v35 }
 0x401   :  { %17671 = vst [vmem:[#allocation48_spill] sm:$0xff] %v15582_v9 }
 0x402   :  { %v15585_v54 = vpop.f32.mrf.mxu1  ;;  %12679 = vmatmul.mubr.bf16.gmra.mxu1 %v13537_v29  ;;  %v13542_v29 = vld [vmem:[#allocation2 + $0xa8] sm:$0xff]  }
 0x403   :  { %17672 = vst [vmem:[#allocation141_spill] sm:$0xff] %v15585_v54  ;;  %12682 = vmatprep.mubr.bf16.mxu1 %v13538_v16  ;;  %v13543_v16 = vld [vmem:[#allocation2 + $0xb0] sm:$0xff]  }
 0x404   :  { %v15587_v10 = vpop.f32.mrf.mxu1 }
 0x405   :  { %17673 = vst [vmem:[#allocation95_spill] sm:$0xff] %v15587_v10 }
 0x406   :  { %v15589_v33 = vpop.f32.mrf.mxu1 }
 0x407   :  { %17674 = vst [vmem:[#allocation49_spill] sm:$0xff] %v15589_v33 }
 0x408   :  { %v15591_v46 = vpop.f32.mrf.mxu1 }
 0x409   :  { %17675 = vst [vmem:[#allocation142_spill] sm:$0xff] %v15591_v46 }
 0x40a   :  { %v15593_v41 = vpop.f32.mrf.mxu1  ;;  %12683 = vmatmul.mubr.bf16.gmra.mxu1 %v13539_v51  ;;  %v13544_v51 = vld [vmem:[#allocation2 + $0xb8] sm:$0xff]  }
 0x40b   :  { %17676 = vst [vmem:[#allocation96_spill] sm:$0xff] %v15593_v41  ;;  %12686 = vmatprep.mubr.bf16.mxu1 %v13540_v44  ;;  %v13545_v44 = vld [vmem:[#allocation2 + $0xc8] sm:$0xff]  }
 0x40c   :  { %v15595_v8 = vpop.f32.mrf.mxu1 }
 0x40d   :  { %17677 = vst [vmem:[#allocation50_spill] sm:$0xff] %v15595_v8 }
 0x40e   :  { %v15597_v9 = vpop.f32.mrf.mxu1 }
 0x40f   :  { %17678 = vst [vmem:[#allocation143_spill] sm:$0xff] %v15597_v9 }
 0x410   :  { %v15599_v35 = vpop.f32.mrf.mxu1 }
 0x411   :  { %17679 = vst [vmem:[#allocation144_spill] sm:$0xff] %v15599_v35 }
 0x412   :  { %v15601_v54 = vpop.f32.mrf.mxu1  ;;  %12687 = vmatmul.mubr.bf16.gmra.mxu1 %v13542_v29  ;;  %v13547_v29 = vld [vmem:[#allocation2 + $0xd0] sm:$0xff]  }
 0x413   :  { %17680 = vst [vmem:[#allocation145_spill] sm:$0xff] %v15601_v54  ;;  %12690 = vmatprep.mubr.bf16.mxu1 %v13543_v16  ;;  %v3864_v16 = vadd.f32 %v15429_v2, %v15161_v20 }
 0x414   :  { %v15603_v33 = vpop.f32.mrf.mxu1 }
 0x415   :  { %17681 = vst [vmem:[#allocation146_spill] sm:$0xff] %v15603_v33  ;;  %v13548_v33 = vld [vmem:[#allocation2 + $0xd8] sm:$0xff]  }
 0x416   :  { %v15605_v46 = vpop.f32.mrf.mxu1 }
 0x417   :  { %17682 = vst [vmem:[#allocation147_spill] sm:$0xff] %v15605_v46 }
 0x418   :  { %v15607_v10 = vpop.f32.mrf.mxu1 }
 0x419   :  { %17683 = vst [vmem:[#allocation148_spill] sm:$0xff] %v15607_v10  ;;  %v3856_v10 = vadd.f32 %v15433_v25, %v15163_v53  ;;  %v3880_v53 = vadd.f32 %v15443_v26, %v15169_v57  ;;  %v3875_v57 = vadd.f32 %v15453_v17, %v15175_v31  ;;  %v3899_v31 = vadd.f32 %v15461_v21, %v15185_v61 }
 0x41a   :  { %v15609_v41 = vpop.f32.mrf.mxu1  ;;  %12691 = vmatmul.mubr.bf16.gmra.mxu1 %v13544_v51  ;;  %v3904_v61 = vadd.f32 %v15471_v37, %v15197_v52  ;;  %v3928_v52 = vadd.f32 %v15479_v5, %v15209_v7  ;;  %v3923_v5 = vadd.f32 %v15489_v1, %v15221_v12  ;;  %v3947_v1 = vadd.f32 %v15497_v13, %v15233_v0  ;;  %v17691_v13 = vld [vmem:[#allocation56_spill] sm:$0xff] }
 0x41b   :  { %12694 = vmatprep.mubr.bf16.mxu1 %v13545_v44  ;;  %v3867_v44 = vadd.f32 %v15437_v40, %v15165_v60  ;;  %v3872_v60 = vadd.f32 %v15447_v28, %v15171_v27  ;;  %v3896_v27 = vadd.f32 %v15455_v50, %v15177_v48  ;;  %v3891_v48 = vadd.f32 %v15465_v55, %v15189_v19 }
 0x41c   :  { %v15611_v9 = vpop.f32.mrf.mxu1  ;;  %v3915_v19 = vadd.f32 %v15473_v6, %v15201_v62  ;;  %v3920_v62 = vadd.f32 %v15483_v36, %v15213_v56  ;;  %v3944_v56 = vadd.f32 %v15491_v42, %v15225_v45 }
 0x41d   :  { %17684 = vst [vmem:[#allocation149_spill] sm:$0xff] %v15611_v9  ;;  %v3859_v9 = vadd.f32 %v15441_v63, %v15167_v49  ;;  %v3883_v49 = vadd.f32 %v15449_v14, %v15173_v24  ;;  %v3888_v24 = vadd.f32 %v15459_v30, %v15181_v47  ;;  %v3912_v47 = vadd.f32 %v15467_v22, %v15193_v18 }
 0x41e   :  { %v15613_v35 = vpop.f32.mrf.mxu1  ;;  %v3907_v18 = vadd.f32 %v15477_v39, %v15205_v58  ;;  %v3931_v58 = vadd.f32 %v15485_v34, %v15217_v11  ;;  %v3936_v34 = vadd.f32 %v15495_v59, %v15229_v38  ;;  %v3960_v38 = vadd.f32 %v15503_v23, %v15241_v15 }
 0x41f   :  { %17685 = vst [vmem:[#allocation150_spill] sm:$0xff] %v15613_v35 }
 0x420   :  { %v15615_v8 = vpop.f32.mrf.mxu1 }
 0x421   :  { %17686 = vst [vmem:[#allocation151_spill] sm:$0xff] %v15615_v8 }
 0x422   :  { %v12584_v46 = vpop.f32.mrf.mxu1  ;;  %12695 = vmatmul.mubr.bf16.gmra.mxu1 %v13547_v29  ;;  %v13549_v29 = vld [vmem:[#allocation2 + $0xe0] sm:$0xff]  }
 0x423   :  { %v15621_v54 = vadd.f32 %v12584_v46, %v3864_v16  ;;  %12698 = vmatprep.mubr.bf16.mxu1 %v13548_v33  ;;  %v13550_v46 = vld [vmem:[#allocation2 + $0xf0] sm:$0xff]   ;;  %v13552_v16 = vld [vmem:[#allocation2 + $0xf8] sm:$0xff]  }
 0x424   :  { %v4466_v51 = vpop.f32.mrf.mxu1 }
 0x425   :  { %v15625_v35 = vadd.f32 %v4466_v51, %v3856_v10  ;;  %v13553_v51 = vld [vmem:[#allocation2 + $0x100] sm:$0xff]  }
 0x426   :  { %v12585_v8 = vpop.f32.mrf.mxu1 }
 0x427   :  { %v15629_v20 = vadd.f32 %v12585_v8, %v3867_v44 }
 0x428   :  { %v4469_v2 = vpop.f32.mrf.mxu1 }
 0x429   :  { %v15633_v25 = vadd.f32 %v4469_v2, %v3859_v9 }
 0x42a   :  { %v12588_v33 = vpop.f32.mrf.mxu1  ;;  %12699 = vmatmul.mubr.bf16.gmra.mxu1 %v13549_v29 }
 0x42b   :  { %v15637_v40 = vadd.f32 %v12588_v33, %v3880_v53  ;;  %12702 = vmatprep.mubr.bf16.mxu1 %v13550_v46  ;;  %v13554_v46 = vld [vmem:[#allocation2 + $0x108] sm:$0xff]   ;;  %v13555_v33 = vld [vmem:[#allocation2 + $0x118] sm:$0xff]  }
 0x42c   :  { %v4482_v10 = vpop.f32.mrf.mxu1 }
 0x42d   :  { %v15641_v63 = vadd.f32 %v4482_v10, %v3872_v60 }
 0x42e   :  { %v12589_v8 = vpop.f32.mrf.mxu1 }
 0x42f   :  { %v15645_v26 = vadd.f32 %v12589_v8, %v3883_v49 }
 0x430   :  { %v4485_v9 = vpop.f32.mrf.mxu1 }
 0x431   :  { %v15649_v28 = vadd.f32 %v4485_v9, %v3875_v57  ;;  %v13557_v57 = vld [vmem:[#allocation2 + $0x120] sm:$0xff]   ;;  %v13558_v9 = vld [vmem:[#allocation2 + $0x128] sm:$0xff]  }
 0x432   :  { %v12592_v44 = vpop.f32.mrf.mxu1  ;;  %12703 = vmatmul.mubr.bf16.gmra.mxu1 %v13552_v16 }
 0x433   :  { %v15653_v14 = vadd.f32 %v12592_v44, %v3896_v27  ;;  %12706 = vmatprep.mubr.bf16.mxu1 %v13553_v51  ;;  %v15691_v51 = vpop.f32.mrf.mxu0 }
 0x434   :  { %v4498_v2 = vpop.f32.mrf.mxu1  ;;  %17687 = vst [vmem:[#allocation152_spill] sm:$0xff] %v15691_v51 }
 0x435   :  { %v15657_v17 = vadd.f32 %v4498_v2, %v3888_v24  ;;  %v13559_v2 = vld [vmem:[#allocation2 + $0x130] sm:$0xff]  }
 0x436   :  { %v12593_v29 = vpop.f32.mrf.mxu1 }
 0x437   :  { %v15661_v50 = vadd.f32 %v12593_v29, %v3899_v31  ;;  %v13560_v31 = vld [vmem:[#allocation2 + $0x140] sm:$0xff]   ;;  %v15701_v29 = vpop.f32.mrf.mxu0 }
 0x438   :  { %v4501_v53 = vpop.f32.mrf.mxu1  ;;  %17688 = vst [vmem:[#allocation153_spill] sm:$0xff] %v15701_v29  ;;  %v17745_v29 = vld [vmem:[#allocation94_spill] sm:$0xff] }
 0x439   :  { %v15665_v30 = vadd.f32 %v4501_v53, %v3891_v48  ;;  %v15711_v45 = vpop.f32.mrf.mxu0 }
 0x43a   :  { %v12596_v60 = vpop.f32.mrf.mxu1  ;;  %12707 = vmatmul.mubr.bf16.gmra.mxu1 %v13554_v46  ;;  %17689 = vst [vmem:[#allocation154_spill] sm:$0xff] %v15711_v45  ;;  %v3939_v46 = vadd.f32 %v15501_v4, %v15237_v32  ;;  %v17692_v4 = vld [vmem:[#allocation103_spill] sm:$0xff]  ;;  %v17744_v45 = vld [vmem:[#allocation70_spill] sm:$0xff] }
 0x43b   :  { %v15669_v21 = vadd.f32 %v12596_v60, %v3912_v47  ;;  %12710 = vmatprep.mubr.bf16.mxu1 %v13555_v33  ;;  %v13562_v60 = vld [vmem:[#allocation2 + $0x148] sm:$0xff]   ;;  %v4043_v51 = vadd.f32 %v17745_v29, %v17744_v45 }
 0x43c   :  { %v4514_v10 = vpop.f32.mrf.mxu1 }
 0x43d   :  { %v15673_v55 = vadd.f32 %v4514_v10, %v3904_v61  ;;  %v13563_v61 = vld [vmem:[#allocation2 + $0x150] sm:$0xff]   ;;  %v15721_v10 = vpop.f32.mrf.mxu0 }
 0x43e   :  { %v12597_v49 = vpop.f32.mrf.mxu1  ;;  %17690 = vst [vmem:[#allocation155_spill] sm:$0xff] %v15721_v10 }
 0x43f   :  { %v15677_v22 = vadd.f32 %v12597_v49, %v3915_v19  ;;  %v3952_v19 = vadd.f32 %v15507_v43, %v17691_v13  ;;  %v15731_v15 = vpop.f32.mrf.mxu0  ;;  %v17697_v43 = vld [vmem:[#allocation58_spill] sm:$0xff] }
 0x440   :  { %v4517_v8 = vpop.f32.mrf.mxu1  ;;  %17694 = vst [vmem:[#allocation56_spill] sm:$0xff] %v15731_v15  ;;  %v17737_v15 = vld [vmem:[#allocation21_spill] sm:$0xff] }
 0x441   :  { %v15681_v37 = vadd.f32 %v4517_v8, %v3907_v18  ;;  %v17693_v18 = vld [vmem:[#allocation133_spill] sm:$0xff] }
 0x442   :  { %v12600_v16 = vpop.f32.mrf.mxu1  ;;  %12711 = vmatmul.mubr.bf16.gmra.mxu1 %v13557_v57  ;;  %v3963_v8 = vadd.f32 %v17693_v18, %v17692_v4  ;;  %v13567_v4 = vld [vmem:[#allocation2 + $0x38] sm:$0xff]   ;;  %v13571_v18 = vld [vmem:[%s17250_s3 + $0x1f0] sm:$0xff]  }
 0x443   :  { %v15685_v6 = vadd.f32 %v12600_v16, %v3928_v52  ;;  %12714 = vmatprep.mubr.bf16.mxu1 %v13558_v9  ;;  %v17695_v52 = vld [vmem:[#allocation57_spill] sm:$0xff] }
 0x444   :  { %v4530_v27 = vpop.f32.mrf.mxu1  ;;  %v17696_v9 = vld [vmem:[#allocation41_spill] sm:$0xff] }
 0x445   :  { %v15689_v39 = vadd.f32 %v4530_v27, %v3920_v62  ;;  %v3955_v16 = vadd.f32 %v17696_v9, %v17695_v52 }
 0x446   :  { %v12601_v7 = vpop.f32.mrf.mxu1 }
 0x447   :  { %v15695_v44 = vadd.f32 %v12601_v7, %v3931_v58  ;;  %v13564_v58 = vld [vmem:[#allocation2 + $0x158] sm:$0xff]   ;;  %v3976_v7 = vadd.f32 %v15515_v3, %v17697_v43 }
 0x448   :  { %v4533_v24 = vpop.f32.mrf.mxu1  ;;  %v17709_v43 = vld [vmem:[#allocation61_spill] sm:$0xff] }
 0x449   :  { %v15699_v36 = vadd.f32 %v4533_v24, %v3923_v5  ;;  %v13565_v24 = vld [vmem:[#allocation2 + $0x30] sm:$0xff]  }
 0x44a   :  { %v12604_v11 = vpop.f32.mrf.mxu1  ;;  %12715 = vmatmul.mubr.bf16.gmra.mxu1 %v13559_v2  ;;  %v15741_v2 = vpop.f32.mrf.mxu0 }
 0x44b   :  { %v15705_v48 = vadd.f32 %v12604_v11, %v3944_v56  ;;  %12718 = vmatprep.mubr.bf16.mxu1 %v13560_v31  ;;  %17698 = vst [vmem:[#allocation103_spill] sm:$0xff] %v15741_v2  ;;  %v17699_v31 = vld [vmem:[#allocation105_spill] sm:$0xff]  ;;  %v17700_v11 = vld [vmem:[#allocation88_spill] sm:$0xff]  ;;  %v17735_v2 = vld [vmem:[#allocation115_spill] sm:$0xff] }
 0x44c   :  { %v4546_v12 = vpop.f32.mrf.mxu1  ;;  %v15751_v3 = vpop.f32.mrf.mxu0 }
 0x44d   :  { %v15709_v53 = vadd.f32 %v4546_v12, %v3936_v34  ;;  %v3968_v34 = vadd.f32 %v17700_v11, %v17699_v31  ;;  %17703 = vst [vmem:[#allocation133_spill] sm:$0xff] %v15751_v3  ;;  %v17711_v31 = vld [vmem:[#allocation47_spill] sm:$0xff] }
 0x44e   :  { %v12605_v42 = vpop.f32.mrf.mxu1 }
 0x44f   :  { %v15715_v47 = vadd.f32 %v12605_v42, %v3947_v1  ;;  %v17701_v42 = vld [vmem:[#allocation13_spill] sm:$0xff] }
 0x450   :  { %v4549_v33 = vpop.f32.mrf.mxu1 }
 0x451   :  { %v15719_v59 = vadd.f32 %v4549_v33, %v3939_v46  ;;  %v17702_v46 = vld [vmem:[#allocation42_spill] sm:$0xff] }
 0x452   :  { %v12608_v0 = vpop.f32.mrf.mxu1  ;;  %12719 = vmatmul.mubr.bf16.gmra.mxu1 %v13562_v60  ;;  %v3979_v33 = vadd.f32 %v17702_v46, %v17701_v42  ;;  %v17713_v42 = vld [vmem:[#allocation43_spill] sm:$0xff] }
 0x453   :  { %v15725_v49 = vadd.f32 %v12608_v0, %v3960_v38  ;;  %12722 = vmatprep.mubr.bf16.mxu1 %v13563_v61  ;;  %v17704_v61 = vld [vmem:[#allocation60_spill] sm:$0xff]  ;;  %v17705_v0 = vld [vmem:[#allocation135_spill] sm:$0xff] }
 0x454   :  { %v4562_v32 = vpop.f32.mrf.mxu1  ;;  %v3971_v13 = vadd.f32 %v17705_v0, %v17704_v61  ;;  %v17715_v0 = vld [vmem:[#allocation109_spill] sm:$0xff] }
 0x455   :  { %v15729_v57 = vadd.f32 %v4562_v32, %v3952_v19 }
 0x456   :  { %v12609_v23 = vpop.f32.mrf.mxu1 }
 0x457   :  { %v15735_v62 = vadd.f32 %v12609_v23, %v3963_v8  ;;  %v17706_v8 = vld [vmem:[#allocation107_spill] sm:$0xff]  ;;  %v17707_v23 = vld [vmem:[#allocation136_spill] sm:$0xff] }
 0x458   :  { %v4565_v27 = vpop.f32.mrf.mxu1  ;;  %v3992_v52 = vadd.f32 %v17707_v23, %v17706_v8  ;;  %v13569_v23 = vld [vmem:[#allocation2 + $0x48] sm:$0xff]  }
 0x459   :  { %v15739_v5 = vadd.f32 %v4565_v27, %v3955_v16  ;;  %v13568_v16 = vld [vmem:[#allocation2 + $0x40] sm:$0xff]   ;;  %v15764_v27 = vpop.f32.mrf.mxu0 }
 0x45a   :  { %v12612_v56 = vpop.f32.mrf.mxu1  ;;  %12723 = vmatmul.mubr.bf16.gmra.mxu1 %v13564_v58  ;;  %17708 = vst [vmem:[#allocation57_spill] sm:$0xff] %v15764_v27 }
 0x45b   :  { %v15745_v12 = vadd.f32 %v12612_v56, %v3976_v7  ;;  %12822 = vmatprep.mubr.bf16.mxu1 %v13565_v24  ;;  %v17710_v7 = vld [vmem:[#allocation89_spill] sm:$0xff] }
 0x45c   :  { %v4578_v1 = vpop.f32.mrf.mxu1  ;;  %v3984_v24 = vadd.f32 %v17710_v7, %v17709_v43 }
 0x45d   :  { %v15749_v60 = vadd.f32 %v4578_v1, %v3968_v34  ;;  %v13576_v34 = vld [vmem:[%s17250_s3 + $0x1e8] sm:$0xff]   ;;  %v17712_v1 = vld [vmem:[#allocation62_spill] sm:$0xff] }
 0x45e   :  { %v12613_v38 = vpop.f32.mrf.mxu1  ;;  %v3995_v46 = vadd.f32 %v17713_v42, %v17712_v1  ;;  %v17720_v1 = vld [vmem:[#allocation64_spill] sm:$0xff]  ;;  %v17721_v42 = vld [vmem:[#allocation137_spill] sm:$0xff] }
 0x45f   :  { %v15755_v19 = vadd.f32 %v12613_v38, %v3979_v33  ;;  %v15778_v38 = vpop.f32.mrf.mxu0 }
 0x460   :  { %v4581_v32 = vpop.f32.mrf.mxu1  ;;  %17714 = vst [vmem:[#allocation41_spill] sm:$0xff] %v15778_v38  ;;  %v17727_v38 = vld [vmem:[#allocation66_spill] sm:$0xff] }
 0x461   :  { %v15762_v9 = vadd.f32 %v4581_v32, %v3971_v13  ;;  %v17716_v13 = vld [vmem:[#allocation90_spill] sm:$0xff] }
 0x462   :  { %v12616_v58 = vpop.f32.mrf.mxu1  ;;  %12823 = vmatmul.mubr.bf16.vlgmr.msra.gmra.mxu1 %v13567_v4  ;;  %v3987_v32 = vadd.f32 %v17716_v13, %v17715_v0  ;;  %v13586_v0 = vld [vmem:[%s17250_s3 + $0x1d8] sm:$0xff]   ;;  %v17722_v13 = vld [vmem:[#allocation111_spill] sm:$0xff] }
 0x463   :  { %v15768_v56 = vadd.f32 %v12616_v58, %v3992_v52  ;;  %12967 = vmatpush3.bf16.msra.mxu1 %v17711_v31  ;;  %12826 = vmatprep.mubr.bf16.mxu1 %v13568_v16  ;;  %v13581_v52 = vld [vmem:[%s17250_s3 + $0x1e0] sm:$0xff]   ;;  %v17717_v16 = vld [vmem:[#allocation17_spill] sm:$0xff]  ;;  %v17718_v58 = vld [vmem:[#allocation44_spill] sm:$0xff]  ;;  %v15791_v31 = vpop.f32.mrf.mxu0 }
 0x464   :  { %v4594_v11 = vpop.f32.mrf.mxu1  ;;  %12968 = vmatprep.subr.bf16.mxu1 %v13571_v18  ;;  %v4008_v43 = vadd.f32 %v17718_v58, %v17717_v16  ;;  %17719 = vst [vmem:[#allocation58_spill] sm:$0xff] %v15791_v31  ;;  %v17725_v31 = vld [vmem:[#allocation65_spill] sm:$0xff] }
 0x465   :  { %v15776_v33 = vadd.f32 %v4594_v11, %v3984_v24  ;;  %v13570_v24 = vld [vmem:[#allocation2 + $0x58] sm:$0xff]   ;;  %v15804_v58 = vpop.f32.mrf.mxu0 }
 0x466   :  { %v12617_v61 = vpop.f32.mrf.mxu1  ;;  %17724 = vst [vmem:[#allocation105_spill] sm:$0xff] %v15804_v58 }
 0x467   :  { %v15782_v4 = vadd.f32 %v12617_v61, %v3995_v46  ;;  %12969 = vmatpush3.bf16.msra.mxu1 %v13571_v18  ;;  %v4000_v18 = vadd.f32 %v17721_v42, %v17720_v1  ;;  %v17726_v1 = vld [vmem:[#allocation45_spill] sm:$0xff]  ;;  %v13591_v42 = vld [vmem:[%s17250_s3 + $0x1d0] sm:$0xff]   ;;  %v15817_v58 = vpop.f32.mrf.mxu0 }
 0x468   :  { %v4597_v8 = vpop.f32.mrf.mxu1  ;;  %12970 = vmatprep.subr.bf16.mxu1 %v13576_v34  ;;  %17729 = vst [vmem:[#allocation88_spill] sm:$0xff] %v15817_v58 }
 0x469   :  { %v15789_v7 = vadd.f32 %v4597_v8, %v3987_v32  ;;  %v17723_v32 = vld [vmem:[#allocation91_spill] sm:$0xff]  ;;  %v15830_v58 = vpop.f32.mrf.mxu0 }
 0x46a   :  { %v12620_v11 = vpop.f32.mrf.mxu1  ;;  %12827 = vmatmul.mubr.bf16.gmra.mxu1 %v13569_v23  ;;  %v4011_v8 = vadd.f32 %v17723_v32, %v17722_v13  ;;  %v17728_v13 = vld [vmem:[#allocation138_spill] sm:$0xff]  ;;  %v13573_v32 = vld [vmem:[#allocation2 + $0x68] sm:$0xff]   ;;  %17734 = vst [vmem:[#allocation13_spill] sm:$0xff] %v15830_v58 }
 0x46b   :  { %v15795_v46 = vadd.f32 %v12620_v11, %v4008_v43  ;;  %12830 = vmatprep.mubr.bf16.mxu1 %v13570_v24  ;;  %12971 = vmatpush3.bf16.msra.mxu1 %v13576_v34  ;;  %v4003_v43 = vadd.f32 %v17726_v1, %v17725_v31  ;;  %v13572_v24 = vld [vmem:[#allocation2 + $0x60] sm:$0xff]   ;;  %v17730_v31 = vld [vmem:[#allocation113_spill] sm:$0xff]  ;;  %v15843_v58 = vpop.f32.mrf.mxu0 }
 0x46c   :  { %v4610_v61 = vpop.f32.mrf.mxu1  ;;  %12972 = vmatprep.subr.bf16.mxu1 %v13581_v52  ;;  %17740 = vst [vmem:[#allocation60_spill] sm:$0xff] %v15843_v58  ;;  %v17749_v58 = vld [vmem:[#allocation48_spill] sm:$0xff] }
 0x46d   :  { %v15802_v16 = vadd.f32 %v4610_v61, %v4000_v18  ;;  %v4024_v18 = vadd.f32 %v17728_v13, %v17727_v38  ;;  %v13596_v38 = vld [vmem:[%s17250_s3 + $0x1c8] sm:$0xff]  }
 0x46e   :  { %v12621_v23 = vpop.f32.mrf.mxu1 }
 0x46f   :  { %v15808_v11 = vadd.f32 %v12621_v23, %v4011_v8  ;;  %12973 = vmatpush3.bf16.msra.mxu1 %v13581_v52  ;;  %v17731_v8 = vld [vmem:[#allocation92_spill] sm:$0xff] }
 0x470   :  { %v4613_v34 = vpop.f32.mrf.mxu1  ;;  %12974 = vmatprep.subr.bf16.mxu1 %v13586_v0  ;;  %v4016_v52 = vadd.f32 %v17731_v8, %v17730_v31  ;;  %v17736_v31 = vld [vmem:[#allocation139_spill] sm:$0xff]  ;;  %v13601_v8 = vld [vmem:[%s17250_s3 + $0x1c0] sm:$0xff]  }
 0x471   :  { %v15815_v61 = vadd.f32 %v4613_v34, %v4003_v43  ;;  %v17732_v43 = vld [vmem:[#allocation68_spill] sm:$0xff]  ;;  %v17733_v34 = vld [vmem:[#allocation46_spill] sm:$0xff] }
 0x472   :  { %v12624_v27 = vpop.f32.mrf.mxu1  ;;  %12831 = vmatmul.mubr.bf16.gmra.mxu1 %v13572_v24  ;;  %v4027_v13 = vadd.f32 %v17733_v34, %v17732_v43  ;;  %v17738_v43 = vld [vmem:[#allocation140_spill] sm:$0xff]  ;;  %v13575_v34 = vld [vmem:[#allocation2 + $0x80] sm:$0xff]  }
 0x473   :  { %v15821_v23 = vadd.f32 %v12624_v27, %v4024_v18  ;;  %12834 = vmatprep.mubr.bf16.mxu1 %v13573_v32  ;;  %12975 = vmatpush3.bf16.msra.mxu1 %v13586_v0  ;;  %v4019_v27 = vadd.f32 %v17736_v31, %v17735_v2  ;;  %v13574_v32 = vld [vmem:[#allocation2 + $0x70] sm:$0xff]   ;;  %v17741_v2 = vld [vmem:[#allocation69_spill] sm:$0xff] }
 0x474   :  { %v4626_v1 = vpop.f32.mrf.mxu1  ;;  %12976 = vmatprep.subr.bf16.mxu1 %v13591_v42 }
 0x475   :  { %v15828_v3 = vadd.f32 %v4626_v1, %v4016_v52  ;;  %v4040_v52 = vadd.f32 %v17738_v43, %v17737_v15  ;;  %v17748_v43 = vld [vmem:[#allocation117_spill] sm:$0xff] }
 0x476   :  { %v12625_v24 = vpop.f32.mrf.mxu1 }
 0x477   :  { %v15834_v18 = vadd.f32 %v12625_v24, %v4027_v13  ;;  %12977 = vmatpush3.bf16.msra.mxu1 %v13591_v42  ;;  %v17742_v13 = vld [vmem:[#allocation93_spill] sm:$0xff] }
 0x478   :  { %v4629_v0 = vpop.f32.mrf.mxu1  ;;  %12978 = vmatprep.subr.bf16.mxu1 %v13596_v38  ;;  %v4032_v42 = vadd.f32 %v17742_v13, %v17741_v2 }
 0x479   :  { %v15841_v1 = vadd.f32 %v4629_v0, %v4019_v27  ;;  %v15853_v27 = vpop.f32.mrf.mxu0 }
 0x47a   :  { %v12628_v10 = vpop.f32.mrf.mxu1  ;;  %12835 = vmatmul.mubr.bf16.gmra.mxu1 %v13574_v32  ;;  %17747 = vst [vmem:[#allocation136_spill] sm:$0xff] %v15853_v27  ;;  %v4035_v32 = vadd.f32 %v17749_v58, %v17748_v43  ;;  %v17758_v58 = vld [vmem:[#allocation119_spill] sm:$0xff] }
 0x47b   :  { %17739 = vst [vmem:[#allocation42_spill] sm:$0xff] %v15841_v1  ;;  %v15847_v24 = vadd.f32 %v12628_v10, %v4040_v52  ;;  %12838 = vmatprep.mubr.bf16.mxu1 %v13575_v34  ;;  %12979 = vmatpush3.bf16.msra.mxu1 %v13596_v38  ;;  %v13577_v52 = vld [vmem:[#allocation2 + $0x88] sm:$0xff]   ;;  %v17751_v34 = vld [vmem:[#allocation25_spill] sm:$0xff]  ;;  %v15863_v29 = vpop.f32.mrf.mxu0 }
 0x47c   :  { %v4642_v31 = vpop.f32.mrf.mxu1  ;;  %12980 = vmatprep.subr.bf16.mxu1 %v13601_v8  ;;  %v17752_v38 = vld [vmem:[#allocation141_spill] sm:$0xff]  ;;  %17754 = vst [vmem:[#allocation47_spill] sm:$0xff] %v15863_v29 }
 0x47d   :  { %17743 = vst [vmem:[#allocation135_spill] sm:$0xff] %v15847_v24  ;;  %v15851_v15 = vadd.f32 %v4642_v31, %v4032_v42  ;;  %v4056_v2 = vadd.f32 %v17752_v38, %v17751_v34  ;;  %v13578_v24 = vld [vmem:[#allocation2 + $0x90] sm:$0xff]   ;;  %v17756_v31 = vld [vmem:[#allocation95_spill] sm:$0xff]  ;;  %v15873_v34 = vpop.f32.mrf.mxu0  ;;  %v17763_v38 = vld [vmem:[#allocation142_spill] sm:$0xff] }
 0x47e   :  { %v12629_v0 = vpop.f32.mrf.mxu1  ;;  %v17755_v42 = vld [vmem:[#allocation72_spill] sm:$0xff]  ;;  %17761 = vst [vmem:[#allocation109_spill] sm:$0xff] %v15873_v34 }
 0x47f   :  { %17746 = vst [vmem:[#allocation107_spill] sm:$0xff] %v15851_v15  ;;  %v15857_v1 = vadd.f32 %v12629_v0, %v4043_v51  ;;  %12981 = vmatpush3.bf16.msra.mxu1 %v13601_v8  ;;  %v4048_v27 = vadd.f32 %v17756_v31, %v17755_v42  ;;  %v17759_v8 = vld [vmem:[#allocation49_spill] sm:$0xff]  ;;  %v17765_v42 = vld [vmem:[#allocation74_spill] sm:$0xff]  ;;  %v13580_v31 = vld [vmem:[#allocation2 + $0xa8] sm:$0xff]  }
 0x480   :  { %v4645_v10 = vpop.f32.mrf.mxu1  ;;  %v4059_v0 = vadd.f32 %v17759_v8, %v17758_v58  ;;  %v17770_v58 = vld [vmem:[#allocation50_spill] sm:$0xff] }
 0x481   :  { %17750 = vst [vmem:[#allocation61_spill] sm:$0xff] %v15857_v1  ;;  %v15861_v13 = vadd.f32 %v4645_v10, %v4035_v32  ;;  %v17762_v10 = vld [vmem:[#allocation73_spill] sm:$0xff] }
 0x482   :  { %v12632_v45 = vpop.f32.mrf.mxu1  ;;  %12839 = vmatmul.mubr.bf16.gmra.mxu1 %v13577_v52  ;;  %v4051_v29 = vadd.f32 %v17763_v38, %v17762_v10  ;;  %v13579_v1 = vld [vmem:[#allocation2 + $0x98] sm:$0xff]   ;;  %v17773_v10 = vld [vmem:[#allocation143_spill] sm:$0xff] }
 0x483   :  { %17753 = vst [vmem:[#allocation89_spill] sm:$0xff] %v15861_v13  ;;  %v15867_v15 = vadd.f32 %v12632_v45, %v4056_v2  ;;  %12842 = vmatprep.mubr.bf16.mxu1 %v13578_v24  ;;  %v17766_v2 = vld [vmem:[#allocation96_spill] sm:$0xff] }
 0x484   :  { %v4658_v51 = vpop.f32.mrf.mxu1  ;;  %v4072_v45 = vadd.f32 %v17766_v2, %v17765_v42  ;;  %v17777_v2 = vld [vmem:[#allocation144_spill] sm:$0xff] }
 0x485   :  { %17757 = vst [vmem:[#allocation62_spill] sm:$0xff] %v15867_v15  ;;  %v15871_v43 = vadd.f32 %v4658_v51, %v4048_v27  ;;  %v15883_v15 = vpop.f32.mrf.mxu0  ;;  %v17769_v51 = vld [vmem:[#allocation121_spill] sm:$0xff] }
 0x486   :  { %v12633_v32 = vpop.f32.mrf.mxu1  ;;  %17768 = vst [vmem:[#allocation44_spill] sm:$0xff] %v15883_v15  ;;  %v4064_v8 = vadd.f32 %v17770_v58, %v17769_v51  ;;  %v17779_v51 = vld [vmem:[#allocation123_spill] sm:$0xff]  ;;  %v13583_v58 = vld [vmem:[#allocation2 + $0xb8] sm:$0xff]  }
 0x487   :  { %17760 = vst [vmem:[#allocation43_spill] sm:$0xff] %v15871_v43  ;;  %v15877_v13 = vadd.f32 %v12633_v32, %v4059_v0  ;;  %v17772_v32 = vld [vmem:[#allocation29_spill] sm:$0xff]  ;;  %v15893_v42 = vpop.f32.mrf.mxu0  ;;  %v13582_v43 = vld [vmem:[#allocation2 + $0xb0] sm:$0xff]  }
 0x488   :  { %v4661_v52 = vpop.f32.mrf.mxu1  ;;  %v4075_v38 = vadd.f32 %v17773_v10, %v17772_v32  ;;  %17775 = vst [vmem:[#allocation111_spill] sm:$0xff] %v15893_v42  ;;  %v17784_v32 = vld [vmem:[#allocation146_spill] sm:$0xff] }
 0x489   :  { %17764 = vst [vmem:[#allocation90_spill] sm:$0xff] %v15877_v13  ;;  %v15881_v24 = vadd.f32 %v4661_v52, %v4051_v29  ;;  %v17776_v52 = vld [vmem:[#allocation76_spill] sm:$0xff] }
 0x48a   :  { %v12636_v27 = vpop.f32.mrf.mxu1  ;;  %12843 = vmatmul.mubr.bf16.gmra.mxu1 %v13579_v1  ;;  %v4067_v15 = vadd.f32 %v17777_v2, %v17776_v52  ;;  %v17786_v52 = vld [vmem:[#allocation147_spill] sm:$0xff] }
 0x48b   :  { %17767 = vst [vmem:[#allocation17_spill] sm:$0xff] %v15881_v24  ;;  %v15887_v34 = vadd.f32 %v12636_v27, %v4072_v45  ;;  %12846 = vmatprep.mubr.bf16.mxu1 %v13580_v31  ;;  %v17780_v45 = vld [vmem:[#allocation145_spill] sm:$0xff] }
 0x48c   :  { %v4674_v0 = vpop.f32.mrf.mxu1  ;;  %v4088_v27 = vadd.f32 %v17780_v45, %v17779_v51  ;;  %v17790_v45 = vld [vmem:[#allocation148_spill] sm:$0xff] }
 0x48d   :  { %17771 = vst [vmem:[#allocation64_spill] sm:$0xff] %v15887_v34  ;;  %v15891_v13 = vadd.f32 %v4674_v0, %v4064_v8  ;;  %v15903_v34 = vpop.f32.mrf.mxu0  ;;  %v17783_v0 = vld [vmem:[#allocation77_spill] sm:$0xff] }
 0x48e   :  { %v12637_v29 = vpop.f32.mrf.mxu1  ;;  %17782 = vst [vmem:[#allocation45_spill] sm:$0xff] %v15903_v34  ;;  %v4080_v10 = vadd.f32 %v17784_v32, %v17783_v0  ;;  %v17792_v0 = vld [vmem:[#allocation33_spill] sm:$0xff] }
 0x48f   :  { %17774 = vst [vmem:[#allocation137_spill] sm:$0xff] %v15891_v13  ;;  %v15897_v24 = vadd.f32 %v12637_v29, %v4075_v38  ;;  %v17785_v29 = vld [vmem:[#allocation78_spill] sm:$0xff]  ;;  %v15913_v51 = vpop.f32.mrf.mxu0 }
 0x490   :  { %v4677_v1 = vpop.f32.mrf.mxu1  ;;  %v4091_v2 = vadd.f32 %v17786_v52, %v17785_v29  ;;  %17788 = vst [vmem:[#allocation138_spill] sm:$0xff] %v15913_v51  ;;  %v13584_v13 = vld [vmem:[#allocation2 + $0xc0] sm:$0xff]   ;;  %v17796_v29 = vld [vmem:[#allocation149_spill] sm:$0xff] }
 0x491   :  { %17778 = vst [vmem:[#allocation91_spill] sm:$0xff] %v15897_v24  ;;  %v15901_v31 = vadd.f32 %v4677_v1, %v4067_v15  ;;  %v17789_v1 = vld [vmem:[#allocation125_spill] sm:$0xff]  ;;  %v15923_v32 = vpop.f32.mrf.mxu0 }
 0x492   :  { %v12640_v8 = vpop.f32.mrf.mxu1  ;;  %12847 = vmatmul.mubr.bf16.gmra.mxu1 %v13582_v43  ;;  %v4083_v34 = vadd.f32 %v17790_v45, %v17789_v1  ;;  %17794 = vst [vmem:[#allocation68_spill] sm:$0xff] %v15923_v32  ;;  %v17798_v1 = vld [vmem:[#allocation150_spill] sm:$0xff] }
 0x493   :  { %17781 = vst [vmem:[#allocation65_spill] sm:$0xff] %v15901_v31  ;;  %v15907_v42 = vadd.f32 %v12640_v8, %v4088_v27  ;;  %12850 = vmatprep.mubr.bf16.mxu1 %v13583_v58  ;;  %v4104_v27 = vadd.f32 %v15609_v41, %v17792_v0  ;;  %v13585_v8 = vld [vmem:[#allocation2 + $0xd0] sm:$0xff]   ;;  %v15933_v41 = vpop.f32.mrf.mxu0  ;;  %v17801_v0 = vld [vmem:[#allocation151_spill] sm:$0xff] }
 0x494   :  { %v4690_v38 = vpop.f32.mrf.mxu1  ;;  %17799 = vst [vmem:[#allocation46_spill] sm:$0xff] %v15933_v41  ;;  %v17836_v41 = vld [vmem:[#allocation89_spill] sm:$0xff] }
 0x495   :  { %v15911_v24 = vadd.f32 %v4690_v38, %v4080_v10  ;;  %v17795_v38 = vld [vmem:[#allocation80_spill] sm:$0xff] }
 0x496   :  { %v12641_v15 = vpop.f32.mrf.mxu1  ;;  %v4096_v52 = vadd.f32 %v17796_v29, %v17795_v38 }
 0x497   :  { %17787 = vst [vmem:[#allocation66_spill] sm:$0xff] %v15911_v24  ;;  %v15917_v31 = vadd.f32 %v12641_v15, %v4091_v2  ;;  %v17797_v15 = vld [vmem:[#allocation127_spill] sm:$0xff]  ;;  %v13587_v24 = vld [vmem:[#allocation2 + $0xd8] sm:$0xff]  }
 0x498   :  { %v4693_v43 = vpop.f32.mrf.mxu1  ;;  %v4107_v45 = vadd.f32 %v17798_v1, %v17797_v15 }
 0x499   :  { %17791 = vst [vmem:[#allocation113_spill] sm:$0xff] %v15917_v31  ;;  %v15921_v58 = vadd.f32 %v4693_v43, %v4083_v34  ;;  %v17800_v43 = vld [vmem:[#allocation81_spill] sm:$0xff] }
 0x49a   :  { %v12644_v10 = vpop.f32.mrf.mxu1  ;;  %12851 = vmatmul.mubr.bf16.gmra.mxu1 %v13584_v13  ;;  %v4099_v32 = vadd.f32 %v17801_v0, %v17800_v43 }
 0x49b   :  { %17793 = vst [vmem:[#allocation92_spill] sm:$0xff] %v15921_v58  ;;  %v15927_v51 = vadd.f32 %v12644_v10, %v4104_v27  ;;  %12854 = vmatprep.mubr.bf16.mxu1 %v13585_v8  ;;  %v13588_v27 = vld [vmem:[#allocation2 + $0xe0] sm:$0xff]   ;;  %v15941_v8 = vpop.f32.mrf.mxu0 }
 0x49c   :  { %v4706_v2 = vpop.f32.mrf.mxu1  ;;  %17802 = vst [vmem:[#allocation115_spill] sm:$0xff] %v15941_v8  ;;  %v13614_v8 = vld [vmem:[#allocation2 + $0xac] sm:$0xff]  }
 0x49d   :  { %v15931_v31 = vadd.f32 %v4706_v2, %v4096_v52  ;;  %v15949_v15 = vpop.f32.mrf.mxu0 }
 0x49e   :  { %v12645_v34 = vpop.f32.mrf.mxu1  ;;  %17803 = vst [vmem:[#allocation139_spill] sm:$0xff] %v15949_v15 }
 0x49f   :  { %v15937_v58 = vadd.f32 %v12645_v34, %v4107_v45  ;;  %v13589_v34 = vld [vmem:[#allocation2 + $0xe8] sm:$0xff]   ;;  %v15957_v0 = vpop.f32.mrf.mxu0 }
 0x4a0   :  { %v4709_v13 = vpop.f32.mrf.mxu1  ;;  %17804 = vst [vmem:[#allocation21_spill] sm:$0xff] %v15957_v0 }
 0x4a1   :  { %v15939_v38 = vadd.f32 %v4709_v13, %v4099_v32 }
 0x4a2   :  { %v12664_v10 = vpop.f32.mrf.mxu1  ;;  %12855 = vmatmul.mubr.bf16.gmra.mxu1 %v13587_v24  ;;  %v13590_v24 = vld [vmem:[#allocation2 + $0xf8] sm:$0xff]  }
 0x4a3   :  { %v15944_v29 = vadd.f32 %v12664_v10, %v15621_v54  ;;  %12858 = vmatprep.mubr.bf16.mxu1 %v13588_v27 }
 0x4a4   :  { %v5140_v52 = vpop.f32.mrf.mxu1 }
 0x4a5   :  { %v15947_v2 = vadd.f32 %v5140_v52, %v15625_v35 }
 0x4a6   :  { %v12665_v1 = vpop.f32.mrf.mxu1 }
 0x4a7   :  { %v15952_v45 = vadd.f32 %v12665_v1, %v15629_v20  ;;  %v15965_v20 = vpop.f32.mrf.mxu0  ;;  %v13592_v1 = vld [vmem:[#allocation2 + $0x100] sm:$0xff]  }
 0x4a8   :  { %v5143_v32 = vpop.f32.mrf.mxu1  ;;  %17805 = vst [vmem:[#allocation140_spill] sm:$0xff] %v15965_v20 }
 0x4a9   :  { %v15955_v43 = vadd.f32 %v5143_v32, %v15633_v25  ;;  %v15973_v0 = vpop.f32.mrf.mxu0 }
 0x4aa   :  { %v12668_v54 = vpop.f32.mrf.mxu1  ;;  %12859 = vmatmul.mubr.bf16.gmra.mxu1 %v13589_v34  ;;  %v13593_v34 = vld [vmem:[#allocation2 + $0x108] sm:$0xff]   ;;  %17806 = vst [vmem:[#allocation69_spill] sm:$0xff] %v15973_v0 }
 0x4ab   :  { %v15960_v13 = vadd.f32 %v12668_v54, %v15637_v40  ;;  %12862 = vmatprep.mubr.bf16.mxu1 %v13590_v24 }
 0x4ac   :  { %v5156_v35 = vpop.f32.mrf.mxu1 }
 0x4ad   :  { %v15963_v27 = vadd.f32 %v5156_v35, %v15641_v63 }
 0x4ae   :  { %v12669_v10 = vpop.f32.mrf.mxu1 }
 0x4af   :  { %v15968_v52 = vadd.f32 %v12669_v10, %v15645_v26  ;;  %v15981_v26 = vpop.f32.mrf.mxu0 }
 0x4b0   :  { %v5159_v25 = vpop.f32.mrf.mxu1  ;;  %17807 = vst [vmem:[#allocation93_spill] sm:$0xff] %v15981_v26 }
 0x4b1   :  { %v15971_v32 = vadd.f32 %v5159_v25, %v15649_v28  ;;  %v13594_v25 = vld [vmem:[#allocation2 + $0x110] sm:$0xff]   ;;  %v15989_v20 = vpop.f32.mrf.mxu0 }
 0x4b2   :  { %v12672_v40 = vpop.f32.mrf.mxu1  ;;  %12863 = vmatmul.mubr.bf16.gmra.mxu1 %v13592_v1  ;;  %v13595_v1 = vld [vmem:[#allocation2 + $0x120] sm:$0xff]   ;;  %17808 = vst [vmem:[#allocation70_spill] sm:$0xff] %v15989_v20 }
 0x4b3   :  { %v15976_v24 = vadd.f32 %v12672_v40, %v15653_v14  ;;  %12866 = vmatprep.mubr.bf16.mxu1 %v13593_v34 }
 0x4b4   :  { %v5172_v63 = vpop.f32.mrf.mxu1 }
 0x4b5   :  { %v15979_v54 = vadd.f32 %v5172_v63, %v15657_v17 }
 0x4b6   :  { %v12673_v35 = vpop.f32.mrf.mxu1 }
 0x4b7   :  { %v15984_v10 = vadd.f32 %v12673_v35, %v15661_v50  ;;  %v15997_v50 = vpop.f32.mrf.mxu0 }
 0x4b8   :  { %v5175_v28 = vpop.f32.mrf.mxu1  ;;  %17809 = vst [vmem:[#allocation94_spill] sm:$0xff] %v15997_v50 }
 0x4b9   :  { %v15987_v0 = vadd.f32 %v5175_v28, %v15665_v30  ;;  %v13597_v28 = vld [vmem:[#allocation2 + $0x128] sm:$0xff]   ;;  %v16005_v15 = vpop.f32.mrf.mxu0 }
 0x4ba   :  { %v12676_v14 = vpop.f32.mrf.mxu1  ;;  %12867 = vmatmul.mubr.bf16.gmra.mxu1 %v13594_v25  ;;  %v13598_v25 = vld [vmem:[#allocation2 + $0x130] sm:$0xff]   ;;  %17810 = vst [vmem:[#allocation117_spill] sm:$0xff] %v16005_v15 }
 0x4bb   :  { %v15992_v34 = vadd.f32 %v12676_v14, %v15669_v21  ;;  %12870 = vmatprep.mubr.bf16.mxu1 %v13595_v1  ;;  %v13602_v15 = vld [vmem:[#allocation2 + $0x150] sm:$0xff]  }
 0x4bc   :  { %v5188_v17 = vpop.f32.mrf.mxu1 }
 0x4bd   :  { %v15995_v40 = vadd.f32 %v5188_v17, %v15673_v55 }
 0x4be   :  { %v12677_v63 = vpop.f32.mrf.mxu1 }
 0x4bf   :  { %v16000_v35 = vadd.f32 %v12677_v63, %v15677_v22  ;;  %v16013_v22 = vpop.f32.mrf.mxu0 }
 0x4c0   :  { %v5191_v30 = vpop.f32.mrf.mxu1  ;;  %17811 = vst [vmem:[#allocation48_spill] sm:$0xff] %v16013_v22 }
 0x4c1   :  { %v16003_v26 = vadd.f32 %v5191_v30, %v15681_v37  ;;  %v13599_v37 = vld [vmem:[#allocation2 + $0x138] sm:$0xff]  }
 0x4c2   :  { %v12680_v21 = vpop.f32.mrf.mxu1  ;;  %12871 = vmatmul.mubr.bf16.gmra.mxu1 %v13597_v28  ;;  %v13632_v28 = vld [vmem:[%s17252_s5 + $0x78] sm:$0xff]  }
 0x4c3   :  { %v16008_v1 = vadd.f32 %v12680_v21, %v15685_v6  ;;  %12874 = vmatprep.mubr.bf16.mxu1 %v13598_v25  ;;  %v13600_v25 = vld [vmem:[#allocation2 + $0x148] sm:$0xff]   ;;  %v16024_v21 = vpop.f32.mrf.mxu0  ;;  %11959 = vmatprep.subr.bf16.mxu1 %v13632_v28 }
 0x4c4   :  { %v5204_v55 = vpop.f32.mrf.mxu1  ;;  %17813 = vst [vmem:[#allocation141_spill] sm:$0xff] %v16024_v21 }
 0x4c5   :  { %v16011_v14 = vadd.f32 %v5204_v55, %v15689_v39  ;;  %v16032_v50 = vpop.f32.mrf.mxu0 }
 0x4c6   :  { %v12681_v17 = vpop.f32.mrf.mxu1  ;;  %17814 = vst [vmem:[#allocation72_spill] sm:$0xff] %v16032_v50 }
 0x4c7   :  { %v16016_v63 = vadd.f32 %v12681_v17, %v15695_v44  ;;  %v16040_v28 = vpop.f32.mrf.mxu0 }
 0x4c8   :  { %v5207_v30 = vpop.f32.mrf.mxu1  ;;  %17816 = vst [vmem:[#allocation119_spill] sm:$0xff] %v16040_v28  ;;  %v13604_v28 = vld [vmem:[#allocation2 + $0x160] sm:$0xff]  }
 0x4c9   :  { %v16022_v6 = vadd.f32 %v5207_v30, %v15699_v36 }
 0x4ca   :  { %v12684_v39 = vpop.f32.mrf.mxu1  ;;  %12875 = vmatmul.mubr.bf16.gmra.mxu1 %v13599_v37  ;;  %v13603_v37 = vld [vmem:[#allocation2 + $0x158] sm:$0xff]  }
 0x4cb   :  { %17812 = vst [vmem:[#allocation25_spill] sm:$0xff] %v16022_v6  ;;  %v16027_v55 = vadd.f32 %v12684_v39, %v15705_v48  ;;  %12878 = vmatprep.mubr.bf16.mxu1 %v13600_v25 }
 0x4cc   :  { %v5220_v44 = vpop.f32.mrf.mxu1 }
 0x4cd   :  { %v16030_v17 = vadd.f32 %v5220_v44, %v15709_v53  ;;  %v13637_v53 = vld [vmem:[#allocation2 + $0x170] sm:$0xff]  }
 0x4ce   :  { %v12685_v22 = vpop.f32.mrf.mxu1  ;;  %13118 = vmatprep.mubr.bf16.mxu0 %v13637_v53  ;;  %v13643_v53 = vld [vmem:[#allocation2 + $0x180] sm:$0xff]  }
 0x4cf   :  { %v16035_v36 = vadd.f32 %v12685_v22, %v15715_v47  ;;  %v13638_v47 = vld [vmem:[#allocation2 + $0x178] sm:$0xff]   ;;  %v16048_v22 = vpop.f32.mrf.mxu0 }
 0x4d0   :  { %v5223_v30 = vpop.f32.mrf.mxu1  ;;  %17817 = vst [vmem:[#allocation49_spill] sm:$0xff] %v16048_v22  ;;  %13119 = vmatmul.mubr.bf16.gmra.mxu0 %v13638_v47  ;;  %v13633_v47 = vld [vmem:[%s17252_s5 + $0x38] sm:$0xff]  }
 0x4d1   :  { %v16038_v21 = vadd.f32 %v5223_v30, %v15719_v59  ;;  %13122 = vmatprep.mubr.bf16.mxu0 %v13643_v53  ;;  %v13640_v53 = vld [vmem:[%s17252_s5 + $0x30] sm:$0xff]  }
 0x4d2   :  { %v12688_v48 = vpop.f32.mrf.mxu1  ;;  %12879 = vmatmul.mubr.bf16.gmra.mxu1 %v13602_v15 }
 0x4d3   :  { %17815 = vst [vmem:[#allocation95_spill] sm:$0xff] %v16038_v21  ;;  %v16043_v25 = vadd.f32 %v12688_v48, %v15725_v49  ;;  %12882 = vmatprep.mubr.bf16.mxu1 %v13603_v37  ;;  %v13605_v37 = vld [vmem:[#allocation2 + $0x54] sm:$0xff]   ;;  %v16056_v48 = vpop.f32.mrf.mxu0 }
 0x4d4   :  { %v5236_v39 = vpop.f32.mrf.mxu1  ;;  %17819 = vst [vmem:[#allocation142_spill] sm:$0xff] %v16056_v48  ;;  %v13606_v48 = vld [vmem:[#allocation2 + $0x5c] sm:$0xff]  }
 0x4d5   :  { %v16046_v44 = vadd.f32 %v5236_v39, %v15729_v57 }
 0x4d6   :  { %v12689_v59 = vpop.f32.mrf.mxu1 }
 0x4d7   :  { %v16051_v30 = vadd.f32 %v12689_v59, %v15735_v62  ;;  %v16067_v59 = vpop.f32.mrf.mxu0 }
 0x4d8   :  { %v5239_v15 = vpop.f32.mrf.mxu1  ;;  %17820 = vst [vmem:[#allocation74_spill] sm:$0xff] %v16067_v59 }
 0x4d9   :  { %v16054_v49 = vadd.f32 %v5239_v15, %v15739_v5  ;;  %v13644_v5 = vld [vmem:[#allocation2 + $0x188] sm:$0xff]  }
 0x4da   :  { %v12692_v50 = vpop.f32.mrf.mxu1  ;;  %12883 = vmatmul.mubr.bf16.gmra.mxu1 %v13604_v28  ;;  %v13607_v28 = vld [vmem:[#allocation2 + $0x64] sm:$0xff]   ;;  %13123 = vmatmul.mubr.bf16.gmra.mxu0 %v13644_v5 }
 0x4db   :  { %17818 = vst [vmem:[#allocation73_spill] sm:$0xff] %v16054_v49  ;;  %v16059_v57 = vadd.f32 %v12692_v50, %v15745_v12  ;;  %12982 = vmatprep.mubr.bf16.mxu1 %v13605_v37  ;;  %v13639_v12 = vld [vmem:[%s17252_s5 + $0x70] sm:$0xff]   ;;  %v17843_v49 = vld [vmem:[#allocation90_spill] sm:$0xff] }
 0x4dc   :  { %v5252_v39 = vpop.f32.mrf.mxu1 }
 0x4dd   :  { %v16062_v62 = vadd.f32 %v5252_v39, %v15749_v60  ;;  %v16081_v39 = vpop.f32.mrf.mxu0 }
 0x4de   :  { %v12693_v15 = vpop.f32.mrf.mxu1  ;;  %17822 = vst [vmem:[#allocation121_spill] sm:$0xff] %v16081_v39  ;;  %v13609_v39 = vld [vmem:[#allocation2 + $0x7c] sm:$0xff]  }
 0x4df   :  { %v16073_v50 = vadd.f32 %v12693_v15, %v15755_v19 }
 0x4e0   :  { %v5255_v60 = vpop.f32.mrf.mxu1 }
 0x4e1   :  { %v16076_v37 = vadd.f32 %v5255_v60, %v15762_v9  ;;  %v16089_v9 = vpop.f32.mrf.mxu0  ;;  %v13608_v60 = vld [vmem:[#allocation2 + $0x6c] sm:$0xff]  }
 0x4e2   :  { %v12696_v59 = vpop.f32.mrf.mxu1  ;;  %12983 = vmatmul.mubr.bf16.vlgmr.msra.gmra.mxu1 %v13606_v48  ;;  %17823 = vst [vmem:[#allocation50_spill] sm:$0xff] %v16089_v9  ;;  %v13646_v48 = vld [vmem:[%s17252_s5 + $0x28] sm:$0xff]  }
 0x4e3   :  { %17821 = vst [vmem:[#allocation96_spill] sm:$0xff] %v16076_v37  ;;  %v16084_v22 = vadd.f32 %v12696_v59, %v15768_v56  ;;  %12986 = vmatprep.mubr.bf16.mxu1 %v13607_v28  ;;  %11960 = vmatpush3.bf16.msra.mxu1 %v13633_v47  ;;  %v13645_v56 = vld [vmem:[%s17252_s5 + $0x68] sm:$0xff]   ;;  %v16103_v59 = vpop.f32.mrf.mxu0 }
 0x4e4   :  { %v5268_v19 = vpop.f32.mrf.mxu1  ;;  %11961 = vmatprep.subr.bf16.mxu1 %v13639_v12  ;;  %17825 = vst [vmem:[#allocation143_spill] sm:$0xff] %v16103_v59  ;;  %v13610_v9 = vld [vmem:[#allocation2 + $0x84] sm:$0xff]  }
 0x4e5   :  { %v16087_v5 = vadd.f32 %v5268_v19, %v15776_v33  ;;  %v16111_v19 = vpop.f32.mrf.mxu0 }
 0x4e6   :  { %v12697_v15 = vpop.f32.mrf.mxu1  ;;  %17826 = vst [vmem:[#allocation76_spill] sm:$0xff] %v16111_v19 }
 0x4e7   :  { %v16092_v20 = vadd.f32 %v12697_v15, %v15782_v4  ;;  %11962 = vmatpush3.bf16.msra.mxu1 %v13640_v53 }
 0x4e8   :  { %v5271_v47 = vpop.f32.mrf.mxu1  ;;  %11963 = vmatprep.subr.bf16.mxu1 %v13645_v56  ;;  %v13611_v56 = vld [vmem:[#allocation2 + $0x8c] sm:$0xff]  }
 0x4e9   :  { %v16101_v33 = vadd.f32 %v5271_v47, %v15789_v7 }
 0x4ea   :  { %v12700_v12 = vpop.f32.mrf.mxu1  ;;  %12987 = vmatmul.mubr.bf16.gmra.mxu1 %v13608_v60 }
 0x4eb   :  { %17824 = vst [vmem:[#allocation29_spill] sm:$0xff] %v16101_v33  ;;  %v16106_v4 = vadd.f32 %v12700_v12, %v15795_v46  ;;  %12990 = vmatprep.mubr.bf16.mxu1 %v13609_v39  ;;  %11964 = vmatpush3.bf16.msra.mxu1 %v13646_v48  ;;  %v16119_v46 = vpop.f32.mrf.mxu0 }
 0x4ec   :  { %v5284_v28 = vpop.f32.mrf.mxu1  ;;  %17828 = vst [vmem:[#allocation123_spill] sm:$0xff] %v16119_v46  ;;  %v17833_v46 = vld [vmem:[#allocation107_spill] sm:$0xff] }
 0x4ed   :  { %v16109_v53 = vadd.f32 %v5284_v28, %v15802_v16  ;;  %v16127_v28 = vpop.f32.mrf.mxu0 }
 0x4ee   :  { %v12701_v15 = vpop.f32.mrf.mxu1  ;;  %17829 = vst [vmem:[#allocation145_spill] sm:$0xff] %v16127_v28 }
 0x4ef   :  { %v16114_v7 = vadd.f32 %v12701_v15, %v15808_v11  ;;  %v13612_v15 = vld [vmem:[#allocation2 + $0x94] sm:$0xff]  }
 0x4f0   :  { %v5287_v47 = vpop.f32.mrf.mxu1 }
 0x4f1   :  { %v16117_v60 = vadd.f32 %v5287_v47, %v15815_v61  ;;  %v13613_v61 = vld [vmem:[#allocation2 + $0xa4] sm:$0xff]  }
 0x4f2   :  { %v12704_v39 = vpop.f32.mrf.mxu1  ;;  %12991 = vmatmul.mubr.bf16.gmra.mxu1 %v13610_v9  ;;  %v13647_v9 = vld [vmem:[%s17252_s5 + $0x60] sm:$0xff]  }
 0x4f3   :  { %17827 = vst [vmem:[#allocation144_spill] sm:$0xff] %v16117_v60  ;;  %v16122_v48 = vadd.f32 %v12704_v39, %v15821_v23  ;;  %12994 = vmatprep.mubr.bf16.mxu1 %v13611_v56  ;;  %v13648_v23 = vld [vmem:[%s17252_s5 + $0x20] sm:$0xff]   ;;  %11965 = vmatprep.subr.bf16.mxu1 %v13647_v9  ;;  %v16141_v39 = vpop.f32.mrf.mxu0  ;;  %v13615_v9 = vld [vmem:[#allocation2 + $0xb4] sm:$0xff]  }
 0x4f4   :  { %v5300_v16 = vpop.f32.mrf.mxu1  ;;  %v17830_v47 = vld [vmem:[#allocation42_spill] sm:$0xff]  ;;  %17831 = vst [vmem:[#allocation77_spill] sm:$0xff] %v16141_v39  ;;  %11966 = vmatpush3.bf16.msra.mxu1 %v13648_v23 }
 0x4f5   :  { %v16125_v12 = vadd.f32 %v5300_v16, %v15828_v3  ;;  %v16149_v33 = vpop.f32.mrf.mxu0  ;;  %v17838_v23 = vld [vmem:[#allocation62_spill] sm:$0xff] }
 0x4f6   :  { %v12705_v11 = vpop.f32.mrf.mxu1  ;;  %17834 = vst [vmem:[#allocation146_spill] sm:$0xff] %v16149_v33 }
 0x4f7   :  { %v16130_v19 = vadd.f32 %v12705_v11, %v15834_v18  ;;  %v17832_v18 = vld [vmem:[#allocation135_spill] sm:$0xff] }
 0x4f8   :  { %v5303_v56 = vpop.f32.mrf.mxu1 }
 0x4f9   :  { %v16139_v3 = vadd.f32 %v5303_v56, %v17830_v47  ;;  %v17835_v56 = vld [vmem:[#allocation61_spill] sm:$0xff] }
 0x4fa   :  { %v12708_v16 = vpop.f32.mrf.mxu1  ;;  %12995 = vmatmul.mubr.bf16.gmra.mxu1 %v13612_v15 }
 0x4fb   :  { %v16144_v11 = vadd.f32 %v12708_v16, %v17832_v18  ;;  %12998 = vmatprep.mubr.bf16.mxu1 %v13613_v61  ;;  %v16157_v16 = vpop.f32.mrf.mxu0 }
 0x4fc   :  { %v5316_v28 = vpop.f32.mrf.mxu1  ;;  %17837 = vst [vmem:[#allocation78_spill] sm:$0xff] %v16157_v16  ;;  %v17849_v16 = vld [vmem:[#allocation137_spill] sm:$0xff] }
 0x4fd   :  { %v16147_v59 = vadd.f32 %v5316_v28, %v17833_v46  ;;  %v17840_v28 = vld [vmem:[#allocation43_spill] sm:$0xff]  ;;  %v16165_v37 = vpop.f32.mrf.mxu0 }
 0x4fe   :  { %v12709_v60 = vpop.f32.mrf.mxu1  ;;  %17842 = vst [vmem:[#allocation148_spill] sm:$0xff] %v16165_v37 }
 0x4ff   :  { %v16152_v47 = vadd.f32 %v12709_v60, %v17835_v56  ;;  %v13616_v56 = vld [vmem:[#allocation2 + $0xbc] sm:$0xff]  }
 0x500   :  { %v5319_v39 = vpop.f32.mrf.mxu1 }
 0x501   :  { %v16155_v15 = vadd.f32 %v5319_v39, %v17836_v41  ;;  %v13617_v41 = vld [vmem:[#allocation2 + $0xcc] sm:$0xff]   ;;  %v13650_v39 = vld [vmem:[%s17252_s5 + $0x18] sm:$0xff]  }
 0x502   :  { %v12712_v61 = vpop.f32.mrf.mxu1  ;;  %12999 = vmatmul.mubr.bf16.gmra.mxu1 %v13614_v8  ;;  %v13649_v8 = vld [vmem:[%s17252_s5 + $0x58] sm:$0xff]  }
 0x503   :  { %v16160_v18 = vadd.f32 %v12712_v61, %v17838_v23  ;;  %13002 = vmatprep.mubr.bf16.mxu1 %v13615_v9  ;;  %v17845_v61 = vld [vmem:[#allocation17_spill] sm:$0xff]  ;;  %11967 = vmatprep.subr.bf16.mxu1 %v13649_v8 }
 0x504   :  { %v5332_v46 = vpop.f32.mrf.mxu1  ;;  %11968 = vmatpush3.bf16.msra.mxu1 %v13650_v39  ;;  %v13619_v8 = vld [vmem:[#allocation2 + $0xdc] sm:$0xff]  }
 0x505   :  { %17839 = vst [vmem:[#allocation147_spill] sm:$0xff] %v16160_v18  ;;  %v16163_v33 = vadd.f32 %v5332_v46, %v17840_v28  ;;  %v16179_v46 = vpop.f32.mrf.mxu0  ;;  %v13618_v18 = vld [vmem:[#allocation2 + $0xd4] sm:$0xff]  }
 0x506   :  { %v12713_v60 = vpop.f32.mrf.mxu1  ;;  %17847 = vst [vmem:[#allocation149_spill] sm:$0xff] %v16179_v46 }
 0x507   :  { %17841 = vst [vmem:[#allocation125_spill] sm:$0xff] %v16163_v33  ;;  %v16168_v6 = vadd.f32 %v12713_v60, %v17843_v49  ;;  %v17848_v49 = vld [vmem:[#allocation64_spill] sm:$0xff] }
 0x508   :  { %v5335_v9 = vpop.f32.mrf.mxu1 }
 0x509   :  { %17844 = vst [vmem:[#allocation33_spill] sm:$0xff] %v16168_v6  ;;  %v16177_v23 = vadd.f32 %v5335_v9, %v17845_v61  ;;  %v16187_v6 = vpop.f32.mrf.mxu0  ;;  %v17852_v9 = vld [vmem:[#allocation91_spill] sm:$0xff] }
 0x50a   :  { %v12716_v28 = vpop.f32.mrf.mxu1  ;;  %13003 = vmatmul.mubr.bf16.gmra.mxu1 %v13616_v56  ;;  %17851 = vst [vmem:[#allocation150_spill] sm:$0xff] %v16187_v6 }
 0x50b   :  { %17846 = vst [vmem:[#allocation80_spill] sm:$0xff] %v16177_v23  ;;  %v16182_v60 = vadd.f32 %v12716_v28, %v17848_v49  ;;  %13006 = vmatprep.mubr.bf16.mxu1 %v13617_v41  ;;  %v17854_v23 = vld [vmem:[#allocation65_spill] sm:$0xff]  ;;  %v16195_v28 = vpop.f32.mrf.mxu0 }
 0x50c   :  { %v5348_v37 = vpop.f32.mrf.mxu1  ;;  %17855 = vst [vmem:[#allocation151_spill] sm:$0xff] %v16195_v28 }
 0x50d   :  { %v16185_v21 = vadd.f32 %v5348_v37, %v17849_v16  ;;  %v17856_v16 = vld [vmem:[#allocation66_spill] sm:$0xff]  ;;  %v16203_v6 = vpop.f32.mrf.mxu0 }
 0x50e   :  { %v12717_v33 = vpop.f32.mrf.mxu1  ;;  %17858 = vst [vmem:[#allocation135_spill] sm:$0xff] %v16203_v6 }
 0x50f   :  { %17850 = vst [vmem:[#allocation127_spill] sm:$0xff] %v16185_v21  ;;  %v16190_v61 = vadd.f32 %v12717_v33, %v17852_v9  ;;  %v13620_v9 = vld [vmem:[#allocation2 + $0xe4] sm:$0xff]  }
 0x510   :  { %v5351_v46 = vpop.f32.mrf.mxu1 }
 0x511   :  { %17853 = vst [vmem:[#allocation81_spill] sm:$0xff] %v16190_v61  ;;  %v16193_v56 = vadd.f32 %v5351_v46, %v17854_v23  ;;  %v17859_v61 = vld [vmem:[#allocation113_spill] sm:$0xff] }
 0x512   :  { %v12720_v41 = vpop.f32.mrf.mxu1  ;;  %13007 = vmatmul.mubr.bf16.gmra.mxu1 %v13618_v18  ;;  %v13621_v23 = vld [vmem:[#allocation2 + $0xf4] sm:$0xff]  }
 0x513   :  { %v16198_v39 = vadd.f32 %v12720_v41, %v15907_v42  ;;  %13010 = vmatprep.mubr.bf16.mxu1 %v13619_v8  ;;  %v13651_v18 = vld [vmem:[%s17252_s5 + $0x50] sm:$0xff]  }
 0x514   :  { %v5364_v37 = vpop.f32.mrf.mxu1  ;;  %v13652_v42 = vld [vmem:[%s17252_s5 + $0x10] sm:$0xff]   ;;  %11969 = vmatprep.subr.bf16.mxu1 %v13651_v18  ;;  %v13623_v18 = vld [vmem:[#allocation2 + $0x104] sm:$0xff]  }
 0x515   :  { %v16201_v49 = vadd.f32 %v5364_v37, %v17856_v16  ;;  %v17861_v8 = vld [vmem:[#allocation92_spill] sm:$0xff]  ;;  %v16217_v37 = vpop.f32.mrf.mxu0  ;;  %11970 = vmatpush3.bf16.msra.mxu1 %v13652_v42 }
 0x516   :  { %v12721_v33 = vpop.f32.mrf.mxu1  ;;  %17862 = vst [vmem:[#allocation61_spill] sm:$0xff] %v16217_v37  ;;  %v17868_v37 = vld [vmem:[#allocation98_spill] sm:$0xff] }
 0x517   :  { %17857 = vst [vmem:[#allocation42_spill] sm:$0xff] %v16201_v49  ;;  %v16206_v21 = vadd.f32 %v12721_v33, %v17859_v61  ;;  %v16225_v28 = vpop.f32.mrf.mxu0  ;;  %v13622_v49 = vld [vmem:[#allocation2 + $0xfc] sm:$0xff]  }
 0x518   :  { %v5367_v46 = vpop.f32.mrf.mxu1  ;;  %17863 = vst [vmem:[#allocation89_spill] sm:$0xff] %v16225_v28 }
 0x519   :  { %17860 = vst [vmem:[#allocation107_spill] sm:$0xff] %v16206_v21  ;;  %v16215_v41 = vadd.f32 %v5367_v46, %v17861_v8  ;;  %v16235_v42 = vpop.f32.mrf.mxu0 }
 0x51a   :  { %v12724_v16 = vpop.f32.mrf.mxu1  ;;  %13011 = vmatmul.mubr.bf16.gmra.mxu1 %v13620_v9  ;;  %17866 = vst [vmem:[#allocation43_spill] sm:$0xff] %v16235_v42 }
 0x51b   :  { %v16220_v61 = vadd.f32 %v12724_v16, %v15927_v51  ;;  %13014 = vmatprep.mubr.bf16.mxu1 %v13621_v23  ;;  %v17865_v51 = vld [vmem:[#allocation4_spill] sm:$0xff] }
 0x51c   :  { %v5380_v33 = vpop.f32.mrf.mxu1  ;;  %v6071_v23 = vadd.f32 %v17865_v51, %v15944_v29  ;;  %v17870_v51 = vld [vmem:[#allocation52_spill] sm:$0xff] }
 0x51d   :  { %v16223_v6 = vadd.f32 %v5380_v33, %v15931_v31  ;;  %v17867_v33 = vld [vmem:[#allocation97_spill] sm:$0xff] }
 0x51e   :  { %v12725_v21 = vpop.f32.mrf.mxu1  ;;  %v6069_v28 = vadd.f32 %v17867_v33, %v15947_v2  ;;  %v17871_v2 = vld [vmem:[#allocation6_spill] sm:$0xff] }
 0x51f   :  { %v16228_v46 = vadd.f32 %v12725_v21, %v15937_v58  ;;  %v6075_v33 = vadd.f32 %v17871_v2, %v15960_v13 }
 0x520   :  { %v5383_v8 = vpop.f32.mrf.mxu1 }
 0x521   :  { %v16231_v9 = vadd.f32 %v5383_v8, %v15939_v38  ;;  %v6072_v38 = vadd.f32 %v17868_v37, %v15952_v45  ;;  %v16245_v8 = vpop.f32.mrf.mxu0  ;;  %v13653_v45 = vld [vmem:[%s17252_s5 + $0x48] sm:$0xff]  }
 0x522   :  { %v12824_v16 = vpop.f32.mrf.mxu1  ;;  %13015 = vmatmul.mubr.bf16.gmra.mxu1 %v13622_v49  ;;  %17869 = vst [vmem:[#allocation90_spill] sm:$0xff] %v16245_v8  ;;  %v6070_v49 = vadd.f32 %v17870_v51, %v15955_v43  ;;  %v13654_v37 = vld [vmem:[%s17252_s5 + $0x8] sm:$0xff]   ;;  %11971 = vmatprep.subr.bf16.mxu1 %v13653_v45 }
 0x523   :  { %17864 = vst [vmem:[#allocation62_spill] sm:$0xff] %v16231_v9  ;;  %v16237_v31 = vadd.f32 %v12824_v16, %v6071_v23  ;;  %13018 = vmatprep.mubr.bf16.mxu1 %v13623_v18  ;;  %v13624_v16 = vld [vmem:[#allocation2 + $0x10c] sm:$0xff]   ;;  %11972 = vmatpush3.bf16.msra.mxu1 %v13654_v37 }
 0x524   :  { %v6489_v58 = vpop.f32.mrf.mxu1  ;;  %v13627_v37 = vld [vmem:[#allocation2 + $0x12c] sm:$0xff]  }
 0x525   :  { %v16241_v21 = vadd.f32 %v6489_v58, %v6069_v28  ;;  %v13625_v28 = vld [vmem:[#allocation2 + $0x11c] sm:$0xff]  }
 0x526   :  { %v12825_v9 = vpop.f32.mrf.mxu1 }
 0x527   :  { %v16247_v29 = vadd.f32 %v12825_v9, %v6072_v38  ;;  %v16261_v9 = vpop.f32.mrf.mxu0  ;;  %v17874_v38 = vld [vmem:[#allocation99_spill] sm:$0xff] }
 0x528   :  { %v6492_v23 = vpop.f32.mrf.mxu1  ;;  %17872 = vst [vmem:[#allocation17_spill] sm:$0xff] %v16261_v9  ;;  %v6073_v51 = vadd.f32 %v17874_v38, %v15963_v27  ;;  %v17878_v27 = vld [vmem:[#allocation100_spill] sm:$0xff] }
 0x529   :  { %v16251_v18 = vadd.f32 %v6492_v23, %v6070_v49  ;;  %v17875_v23 = vld [vmem:[#allocation51_spill] sm:$0xff]  ;;  %v16271_v42 = vpop.f32.mrf.mxu0  ;;  %v6079_v45 = vadd.f32 %v17878_v27, %v15976_v24  ;;  %v17882_v27 = vld [vmem:[#allocation54_spill] sm:$0xff] }
 0x52a   :  { %v12828_v58 = vpop.f32.mrf.mxu1  ;;  %13019 = vmatmul.mubr.bf16.gmra.mxu1 %v13624_v16  ;;  %v6076_v2 = vadd.f32 %v17875_v23, %v15968_v52  ;;  %v17876_v16 = vld [vmem:[#allocation5_spill] sm:$0xff] }
 0x52b   :  { %v16263_v43 = vadd.f32 %v12828_v58, %v6075_v33  ;;  %13022 = vmatprep.mubr.bf16.mxu1 %v13625_v28  ;;  %v6074_v33 = vadd.f32 %v17876_v16, %v15971_v32  ;;  %v13626_v58 = vld [vmem:[#allocation2 + $0x124] sm:$0xff]   ;;  %v16281_v38 = vpop.f32.mrf.mxu0 }
 0x52c   :  { %v6505_v13 = vpop.f32.mrf.mxu1 }
 0x52d   :  { %17873 = vst [vmem:[#allocation64_spill] sm:$0xff] %v16263_v43  ;;  %v16267_v49 = vadd.f32 %v6505_v13, %v6073_v51 }
 0x52e   :  { %v12829_v8 = vpop.f32.mrf.mxu1 }
 0x52f   :  { %v16273_v9 = vadd.f32 %v12829_v8, %v6076_v2  ;;  %v17879_v8 = vld [vmem:[#allocation53_spill] sm:$0xff]  ;;  %v17880_v2 = vld [vmem:[#allocation7_spill] sm:$0xff] }
 0x530   :  { %v6508_v28 = vpop.f32.mrf.mxu1  ;;  %v6077_v13 = vadd.f32 %v17879_v8, %v15979_v54  ;;  %v6080_v16 = vadd.f32 %v17880_v2, %v15984_v10  ;;  %v17883_v54 = vld [vmem:[#allocation8_spill] sm:$0xff]  ;;  %v17885_v2 = vld [vmem:[#allocation101_spill] sm:$0xff] }
 0x531   :  { %v16277_v43 = vadd.f32 %v6508_v28, %v6074_v33  ;;  %v16291_v33 = vpop.f32.mrf.mxu0  ;;  %v6083_v8 = vadd.f32 %v17883_v54, %v15992_v34  ;;  %v13655_v34 = vld [vmem:[%s17252_s5 + $0x40] sm:$0xff]  }
 0x532   :  { %v12832_v51 = vpop.f32.mrf.mxu1  ;;  %13023 = vmatmul.mubr.bf16.gmra.mxu1 %v13626_v58  ;;  %17881 = vst [vmem:[#allocation91_spill] sm:$0xff] %v16291_v33  ;;  %v6078_v58 = vadd.f32 %v17882_v27, %v15987_v0  ;;  %v17886_v27 = vld [vmem:[#allocation55_spill] sm:$0xff]  ;;  %11973 = vmatprep.subr.bf16.mxu1 %v13655_v34 }
 0x533   :  { %17877 = vst [vmem:[#allocation137_spill] sm:$0xff] %v16277_v43  ;;  %v16283_v52 = vadd.f32 %v12832_v51, %v6079_v45  ;;  %13026 = vmatprep.mubr.bf16.mxu1 %v13627_v37  ;;  %v13628_v51 = vld [vmem:[#allocation2 + $0x134] sm:$0xff]  }
 0x534   :  { %v6521_v23 = vpop.f32.mrf.mxu1 }
 0x535   :  { %v16287_v32 = vadd.f32 %v6521_v23, %v6077_v13  ;;  %v13629_v13 = vld [vmem:[#allocation2 + $0x144] sm:$0xff]   ;;  %v16301_v23 = vpop.f32.mrf.mxu0 }
 0x536   :  { %v12833_v24 = vpop.f32.mrf.mxu1  ;;  %17884 = vst [vmem:[#allocation65_spill] sm:$0xff] %v16301_v23 }
 0x537   :  { %v16293_v28 = vadd.f32 %v12833_v24, %v6080_v16  ;;  %v6081_v16 = vadd.f32 %v17885_v2, %v15995_v40  ;;  %v17888_v40 = vld [vmem:[#allocation9_spill] sm:$0xff]  ;;  %v13630_v2 = vld [vmem:[#allocation2 + $0x14c] sm:$0xff]  }
 0x538   :  { %v6524_v45 = vpop.f32.mrf.mxu1 }
 0x539   :  { %v16297_v37 = vadd.f32 %v6524_v45, %v6078_v58  ;;  %v6084_v58 = vadd.f32 %v17886_v27, %v16000_v35  ;;  %v13656_v45 = vld [vmem:[%s17252_s5] sm:$0xff]   ;;  %v13631_v27 = vld [vmem:[#allocation2 + $0x154] sm:$0xff]  }
 0x53a   :  { %v12836_v43 = vpop.f32.mrf.mxu1  ;;  %13027 = vmatmul.mubr.bf16.gmra.mxu1 %v13628_v51 }
 0x53b   :  { %v16303_v10 = vadd.f32 %v12836_v43, %v6083_v8  ;;  %13030 = vmatprep.mubr.bf16.mxu1 %v13629_v13  ;;  %v16317_v43 = vpop.f32.mrf.mxu0  ;;  %v6082_v8 = vadd.f32 %v17888_v40, %v16003_v26  ;;  %11974 = vmatpush3.bf16.msra.mxu1 %v13656_v45  ;;  %v17894_v45 = vld [vmem:[#allocation104_spill] sm:$0xff] }
 0x53c   :  { %v6537_v24 = vpop.f32.mrf.mxu1  ;;  %17887 = vst [vmem:[#allocation66_spill] sm:$0xff] %v16317_v43  ;;  %v6088_v40 = vadd.f32 %v17894_v45, %v16016_v63  ;;  %v17899_v63 = vld [vmem:[#allocation59_spill] sm:$0xff] }
 0x53d   :  { %v16307_v0 = vadd.f32 %v6537_v24, %v6081_v16  ;;  %v17889_v16 = vld [vmem:[#allocation102_spill] sm:$0xff]  ;;  %v16327_v23 = vpop.f32.mrf.mxu0 }
 0x53e   :  { %v12837_v51 = vpop.f32.mrf.mxu1  ;;  %v6087_v24 = vadd.f32 %v17889_v16, %v16008_v1  ;;  %17890 = vst [vmem:[#allocation113_spill] sm:$0xff] %v16327_v23  ;;  %v13635_v16 = vld [vmem:[#allocation2 + $0x16c] sm:$0xff]  }
 0x53f   :  { %v16319_v54 = vadd.f32 %v12837_v51, %v6084_v58  ;;  %v17892_v58 = vld [vmem:[#allocation10_spill] sm:$0xff] }
 0x540   :  { %v6540_v13 = vpop.f32.mrf.mxu1  ;;  %v6085_v26 = vadd.f32 %v17892_v58, %v16011_v14 }
 0x541   :  { %v16323_v35 = vadd.f32 %v6540_v13, %v6082_v8  ;;  %v16337_v8 = vpop.f32.mrf.mxu0 }
 0x542   :  { %v12840_v33 = vpop.f32.mrf.mxu1  ;;  %13031 = vmatmul.mubr.bf16.gmra.mxu1 %v13630_v2  ;;  %v17897_v2 = vld [vmem:[#allocation12_spill] sm:$0xff] }
 0x543   :  { %v16329_v43 = vadd.f32 %v12840_v33, %v6087_v24  ;;  %13034 = vmatprep.mubr.bf16.mxu1 %v13631_v27  ;;  %v13634_v33 = vld [vmem:[#allocation2 + $0x15c] sm:$0xff]   ;;  %v6091_v24 = vadd.f32 %v17897_v2, %v16027_v55  ;;  %v16345_v27 = vpop.f32.mrf.mxu0 }
 0x544   :  { %v6553_v34 = vpop.f32.mrf.mxu1  ;;  %v13657_v55 = vld [vmem:[%s17252_s5 + $0x278] sm:$0xff]  }
 0x545   :  { %17891 = vst [vmem:[#allocation92_spill] sm:$0xff] %v16329_v43  ;;  %v16333_v51 = vadd.f32 %v6553_v34, %v6085_v26  ;;  %v6089_v26 = vadd.f32 %v17899_v63, %v16030_v17  ;;  %v13659_v2 = vld [vmem:[%s17252_s5 + $0xf8] sm:$0xff]   ;;  %v16364_v17 = vpop.f32.mrf.mxu0  ;;  %12047 = vmatprep.subr.bf16.mxu0 %v13657_v55  ;;  %v17905_v55 = vld [vmem:[#allocation16_spill] sm:$0xff] }
 0x546   :  { %v12841_v1 = vpop.f32.mrf.mxu1  ;;  %v13641_v63 = vld [vmem:[#allocation2 + $0x17c] sm:$0xff]   ;;  %11981 = vmatprep.subr.bf16.mxu1 %v13659_v2  ;;  %v6096_v2 = vadd.f32 %v17905_v55, %v16051_v30  ;;  %v17910_v55 = vld [vmem:[#allocation112_spill] sm:$0xff] }
 0x547   :  { %17893 = vst [vmem:[#allocation4_spill] sm:$0xff] %v16333_v51  ;;  %v16339_v13 = vadd.f32 %v12841_v1, %v6088_v40  ;;  %v17900_v40 = vld [vmem:[#allocation106_spill] sm:$0xff]  ;;  %v17903_v51 = vld [vmem:[#allocation15_spill] sm:$0xff] }
 0x548   :  { %v16341_v23 = vpop.f32.mrf.mxu1  ;;  %v6092_v1 = vadd.f32 %v17900_v40, %v16035_v36  ;;  %v16372_v40 = vpop.f32.mrf.mxu0 }
 0x549   :  { %17895 = vst [vmem:[#allocation97_spill] sm:$0xff] %v16339_v13  ;;  %17896 = vst [vmem:[#allocation98_spill] sm:$0xff] %v16341_v23  ;;  %v6093_v23 = vadd.f32 %v17903_v51, %v16046_v44  ;;  %v13667_v44 = vld [vmem:[%s17252_s5 + $0x270] sm:$0xff]  }
 0x54a   :  { %v12844_v14 = vpop.f32.mrf.mxu1  ;;  %13035 = vmatmul.mubr.bf16.gmra.mxu1 %v13634_v33  ;;  %v13658_v33 = vld [vmem:[%s17252_s5 + $0x238] sm:$0xff]  }
 0x54b   :  { %v16347_v58 = vadd.f32 %v12844_v14, %v6091_v24  ;;  %13038 = vmatprep.mubr.bf16.mxu1 %v13635_v16  ;;  %v13636_v24 = vld [vmem:[#allocation2 + $0x174] sm:$0xff]   ;;  %12048 = vmatpush3.bf16.msra.mxu0 %v13658_v33  ;;  %v16382_v33 = vpop.f32.mrf.mxu0 }
 0x54c   :  { %v6569_v34 = vpop.f32.mrf.mxu1  ;;  %12049 = vmatprep.subr.bf16.mxu0 %v13667_v44 }
 0x54d   :  { %17898 = vst [vmem:[#allocation52_spill] sm:$0xff] %v16347_v58  ;;  %v16351_v45 = vadd.f32 %v6569_v34, %v6089_v26  ;;  %v17902_v26 = vld [vmem:[#allocation108_spill] sm:$0xff]  ;;  %v16396_v30 = vpop.f32.mrf.mxu0 }
 0x54e   :  { %v12845_v16 = vpop.f32.mrf.mxu1  ;;  %v6095_v34 = vadd.f32 %v17902_v26, %v16043_v25  ;;  %v13642_v25 = vld [vmem:[#allocation2 + $0x184] sm:$0xff]  }
 0x54f   :  { %v16366_v14 = vadd.f32 %v12845_v16, %v6092_v1 }
 0x550   :  { %v16368_v36 = vpop.f32.mrf.mxu1 }
 0x551   :  { %17901 = vst [vmem:[#allocation6_spill] sm:$0xff] %v16366_v14 }
 0x552   :  { %v12848_v58 = vpop.f32.mrf.mxu1  ;;  %13039 = vmatmul.mubr.bf16.gmra.mxu1 %v13636_v24 }
 0x553   :  { %v16374_v13 = vadd.f32 %v12848_v58, %v6095_v34  ;;  %13042 = vmatprep.mubr.bf16.mxu1 %v13641_v63  ;;  %v17908_v58 = vld [vmem:[#allocation110_spill] sm:$0xff] }
 0x554   :  { %v6585_v1 = vpop.f32.mrf.mxu1  ;;  %v6099_v24 = vadd.f32 %v17908_v58, %v16059_v57  ;;  %v16406_v58 = vpop.f32.mrf.mxu0 }
 0x555   :  { %v16378_v16 = vadd.f32 %v6585_v1, %v6093_v23  ;;  %v13668_v23 = vld [vmem:[%s17252_s5 + $0x230] sm:$0xff]  }
 0x556   :  { %v12849_v14 = vpop.f32.mrf.mxu1  ;;  %12050 = vmatpush3.bf16.msra.mxu0 %v13668_v23  ;;  %v17914_v23 = vld [vmem:[#allocation114_spill] sm:$0xff] }
 0x557   :  { %17904 = vst [vmem:[#allocation99_spill] sm:$0xff] %v16378_v16  ;;  %v16384_v26 = vadd.f32 %v12849_v14, %v6096_v2  ;;  %v17909_v14 = vld [vmem:[#allocation18_spill] sm:$0xff]  ;;  %v6100_v2 = vadd.f32 %v17910_v55, %v16073_v50 }
 0x558   :  { %v16386_v43 = vpop.f32.mrf.mxu1  ;;  %v6097_v34 = vadd.f32 %v17909_v14, %v16062_v62  ;;  %v6101_v14 = vadd.f32 %v17914_v23, %v16087_v5  ;;  %v17921_v23 = vld [vmem:[#allocation23_spill] sm:$0xff] }
 0x559   :  { %17906 = vst [vmem:[#allocation51_spill] sm:$0xff] %v16384_v26  ;;  %17907 = vst [vmem:[#allocation5_spill] sm:$0xff] %v16386_v43 }
 0x55a   :  { %v12852_v51 = vpop.f32.mrf.mxu1  ;;  %13043 = vmatmul.mubr.bf16.gmra.mxu1 %v13642_v25  ;;  %v17912_v25 = vld [vmem:[#allocation20_spill] sm:$0xff] }
 0x55b   :  { %v16398_v63 = vadd.f32 %v12852_v51, %v6099_v24  ;;  %v6103_v24 = vadd.f32 %v17912_v25, %v16084_v22  ;;  %v16414_v51 = vpop.f32.mrf.mxu0  ;;  %v17919_v25 = vld [vmem:[#allocation116_spill] sm:$0xff] }
 0x55c   :  { %v6601_v1 = vpop.f32.mrf.mxu1 }
 0x55d   :  { %v16402_v57 = vadd.f32 %v6601_v1, %v6097_v34  ;;  %v17916_v1 = vld [vmem:[#allocation22_spill] sm:$0xff]  ;;  %v16424_v55 = vpop.f32.mrf.mxu0 }
 0x55e   :  { %v12853_v26 = vpop.f32.mrf.mxu1 }
 0x55f   :  { %v16408_v16 = vadd.f32 %v12853_v26, %v6100_v2  ;;  %v6104_v26 = vadd.f32 %v17916_v1, %v16092_v20  ;;  %v17923_v1 = vld [vmem:[#allocation24_spill] sm:$0xff] }
 0x560   :  { %v16410_v43 = vpop.f32.mrf.mxu1 }
 0x561   :  { %17911 = vst [vmem:[#allocation100_spill] sm:$0xff] %v16408_v16 }
 0x562   :  { %v12856_v62 = vpop.f32.mrf.mxu1 }
 0x563   :  { %v16416_v44 = vadd.f32 %v12856_v62, %v6103_v24  ;;  %v6107_v24 = vadd.f32 %v17919_v25, %v16106_v4  ;;  %v16432_v62 = vpop.f32.mrf.mxu0 }
 0x564   :  { %v6617_v34 = vpop.f32.mrf.mxu1 }
 0x565   :  { %17913 = vst [vmem:[#allocation53_spill] sm:$0xff] %v16416_v44  ;;  %v16420_v50 = vadd.f32 %v6617_v34, %v6101_v14  ;;  %v6105_v14 = vadd.f32 %v17921_v23, %v16109_v53 }
 0x566   :  { %v12857_v2 = vpop.f32.mrf.mxu1 }
 0x567   :  { %17915 = vst [vmem:[#allocation7_spill] sm:$0xff] %v16420_v50  ;;  %v16426_v16 = vadd.f32 %v12857_v2, %v6104_v26  ;;  %v6108_v26 = vadd.f32 %v17923_v1, %v16114_v7  ;;  %v13677_v2 = vld [vmem:[%s17252_s5 + $0x268] sm:$0xff]   ;;  %v17928_v1 = vld [vmem:[#allocation26_spill] sm:$0xff] }
 0x568   :  { %v16428_v22 = vpop.f32.mrf.mxu1  ;;  %12051 = vmatprep.subr.bf16.mxu0 %v13677_v2 }
 0x569   :  { %17917 = vst [vmem:[#allocation54_spill] sm:$0xff] %v16426_v16  ;;  %17918 = vst [vmem:[#allocation8_spill] sm:$0xff] %v16428_v22  ;;  %v16445_v16 = vpop.f32.mrf.mxu0 }
 0x56a   :  { %v12860_v44 = vpop.f32.mrf.mxu1 }
 0x56b   :  { %v16434_v5 = vadd.f32 %v12860_v44, %v6107_v24  ;;  %v13678_v44 = vld [vmem:[%s17252_s5 + $0x228] sm:$0xff]   ;;  %v17926_v24 = vld [vmem:[#allocation118_spill] sm:$0xff]  ;;  %v16456_v23 = vpop.f32.mrf.mxu0 }
 0x56c   :  { %v6633_v34 = vpop.f32.mrf.mxu1  ;;  %12052 = vmatpush3.bf16.msra.mxu0 %v13678_v44  ;;  %v6111_v7 = vadd.f32 %v17926_v24, %v16122_v48  ;;  %v17932_v48 = vld [vmem:[#allocation27_spill] sm:$0xff] }
 0x56d   :  { %17920 = vst [vmem:[#allocation101_spill] sm:$0xff] %v16434_v5  ;;  %v16438_v20 = vadd.f32 %v6633_v34, %v6105_v14  ;;  %v6109_v5 = vadd.f32 %v17928_v1, %v16125_v12  ;;  %v6110_v24 = vadd.f32 %v17932_v48, %v16139_v3  ;;  %v17937_v3 = vld [vmem:[#allocation75_spill] sm:$0xff] }
 0x56e   :  { %v12861_v4 = vpop.f32.mrf.mxu1 }
 0x56f   :  { %17922 = vst [vmem:[#allocation55_spill] sm:$0xff] %v16438_v20  ;;  %v16450_v25 = vadd.f32 %v12861_v4, %v6108_v26  ;;  %v17930_v26 = vld [vmem:[#allocation120_spill] sm:$0xff]  ;;  %v16466_v4 = vpop.f32.mrf.mxu0 }
 0x570   :  { %v16452_v53 = vpop.f32.mrf.mxu1  ;;  %v6112_v2 = vadd.f32 %v17930_v26, %v16130_v19  ;;  %v13688_v19 = vld [vmem:[%s17252_s5 + $0x220] sm:$0xff]   ;;  %v17963_v20 = vld [vmem:[#allocation128_spill] sm:$0xff] }
 0x571   :  { %17924 = vst [vmem:[#allocation9_spill] sm:$0xff] %v16450_v25  ;;  %17925 = vst [vmem:[#allocation102_spill] sm:$0xff] %v16452_v53  ;;  %v16482_v1 = vpop.f32.mrf.mxu0 }
 0x572   :  { %v12864_v14 = vpop.f32.mrf.mxu1  ;;  %17935 = vst [vmem:[#allocation106_spill] sm:$0xff] %v16482_v1 }
 0x573   :  { %v16458_v34 = vadd.f32 %v12864_v14, %v6111_v7  ;;  %v13687_v7 = vld [vmem:[%s17252_s5 + $0x260] sm:$0xff]  }
 0x574   :  { %v6649_v50 = vpop.f32.mrf.mxu1  ;;  %12053 = vmatprep.subr.bf16.mxu0 %v13687_v7  ;;  %v13691_v7 = vld [vmem:[%s17252_s5 + $0x258] sm:$0xff]  }
 0x575   :  { %17927 = vst [vmem:[#allocation10_spill] sm:$0xff] %v16458_v34  ;;  %v16462_v22 = vadd.f32 %v6649_v50, %v6109_v5  ;;  %v17934_v50 = vld [vmem:[#allocation28_spill] sm:$0xff]  ;;  %12054 = vmatpush3.bf16.msra.mxu0 %v13688_v19 }
 0x576   :  { %v12865_v44 = vpop.f32.mrf.mxu1  ;;  %v6115_v5 = vadd.f32 %v17934_v50, %v16144_v11  ;;  %v16495_v50 = vpop.f32.mrf.mxu0  ;;  %12055 = vmatprep.subr.bf16.mxu0 %v13691_v7 }
 0x577   :  { %17929 = vst [vmem:[#allocation104_spill] sm:$0xff] %v16462_v22  ;;  %v16468_v25 = vadd.f32 %v12865_v44, %v6112_v2  ;;  %v6113_v44 = vadd.f32 %v17937_v3, %v16147_v59  ;;  %17940 = vst [vmem:[#allocation16_spill] sm:$0xff] %v16495_v50  ;;  %v17944_v3 = vld [vmem:[#allocation147_spill] sm:$0xff]  ;;  %v17998_v50 = vld [vmem:[#allocation153_spill] sm:$0xff] }
 0x578   :  { %v6652_v14 = vpop.f32.mrf.mxu1  ;;  %v17949_v22 = vld [vmem:[#allocation31_spill] sm:$0xff] }
 0x579   :  { %17931 = vst [vmem:[#allocation12_spill] sm:$0xff] %v16468_v25  ;;  %v16475_v12 = vadd.f32 %v6652_v14, %v6110_v24  ;;  %v17939_v14 = vld [vmem:[#allocation122_spill] sm:$0xff] }
 0x57a   :  { %v12868_v26 = vpop.f32.mrf.mxu1  ;;  %v6116_v11 = vadd.f32 %v17939_v14, %v16152_v47  ;;  %v16505_v47 = vpop.f32.mrf.mxu0 }
 0x57b   :  { %17933 = vst [vmem:[#allocation59_spill] sm:$0xff] %v16475_v12  ;;  %v16484_v2 = vadd.f32 %v12868_v26, %v6115_v5  ;;  %v17942_v5 = vld [vmem:[#allocation30_spill] sm:$0xff]  ;;  %17946 = vst [vmem:[#allocation112_spill] sm:$0xff] %v16505_v47  ;;  %v17997_v47 = vld [vmem:[#allocation85_spill] sm:$0xff] }
 0x57c   :  { %v6665_v48 = vpop.f32.mrf.mxu1  ;;  %v6114_v26 = vadd.f32 %v17942_v5, %v16155_v15  ;;  %v17952_v15 = vld [vmem:[#allocation32_spill] sm:$0xff]  ;;  %v13692_v5 = vld [vmem:[%s17252_s5 + $0x218] sm:$0xff]  }
 0x57d   :  { %17936 = vst [vmem:[#allocation108_spill] sm:$0xff] %v16484_v2  ;;  %v16488_v24 = vadd.f32 %v6665_v48, %v6113_v44  ;;  %v17945_v44 = vld [vmem:[#allocation124_spill] sm:$0xff]  ;;  %v17948_v2 = vld [vmem:[#allocation125_spill] sm:$0xff]  ;;  %12056 = vmatpush3.bf16.msra.mxu0 %v13692_v5  ;;  %v17959_v5 = vld [vmem:[#allocation127_spill] sm:$0xff] }
 0x57e   :  { %v12869_v12 = vpop.f32.mrf.mxu1  ;;  %v6119_v48 = vadd.f32 %v17945_v44, %v17944_v3  ;;  %v6117_v34 = vadd.f32 %v17949_v22, %v17948_v2  ;;  %v13695_v3 = vld [vmem:[%s17252_s5 + $0x250] sm:$0xff]   ;;  %v17955_v2 = vld [vmem:[#allocation79_spill] sm:$0xff] }
 0x57f   :  { %17938 = vst [vmem:[#allocation15_spill] sm:$0xff] %v16488_v24  ;;  %v16497_v25 = vadd.f32 %v12869_v12, %v6116_v11  ;;  %v17954_v22 = vld [vmem:[#allocation80_spill] sm:$0xff]  ;;  %12057 = vmatprep.subr.bf16.mxu0 %v13695_v3 }
 0x580   :  { %v6668_v59 = vpop.f32.mrf.mxu1 }
 0x581   :  { %17941 = vst [vmem:[#allocation110_spill] sm:$0xff] %v16497_v25  ;;  %v16501_v19 = vadd.f32 %v6668_v59, %v6114_v26  ;;  %v17951_v25 = vld [vmem:[#allocation33_spill] sm:$0xff]  ;;  %v16518_v26 = vpop.f32.mrf.mxu0 }
 0x582   :  { %v12872_v14 = vpop.f32.mrf.mxu1  ;;  %v6120_v7 = vadd.f32 %v17952_v15, %v17951_v25  ;;  %v13696_v25 = vld [vmem:[%s17252_s5 + $0x210] sm:$0xff]   ;;  %v17957_v15 = vld [vmem:[#allocation126_spill] sm:$0xff] }
 0x583   :  { %17943 = vst [vmem:[#allocation18_spill] sm:$0xff] %v16501_v19  ;;  %v16507_v24 = vadd.f32 %v12872_v14, %v6119_v48  ;;  %v13699_v14 = vld [vmem:[%s17252_s5 + $0x248] sm:$0xff]   ;;  %12058 = vmatpush3.bf16.msra.mxu0 %v13696_v25  ;;  %v17962_v19 = vld [vmem:[#allocation81_spill] sm:$0xff] }
 0x584   :  { %v6681_v12 = vpop.f32.mrf.mxu1  ;;  %12059 = vmatprep.subr.bf16.mxu0 %v13699_v14  ;;  %v17965_v25 = vld [vmem:[#allocation35_spill] sm:$0xff] }
 0x585   :  { %17947 = vst [vmem:[#allocation20_spill] sm:$0xff] %v16507_v24  ;;  %v16511_v11 = vadd.f32 %v6681_v12, %v6117_v34  ;;  %v6118_v34 = vadd.f32 %v17955_v2, %v17954_v22  ;;  %v17960_v2 = vld [vmem:[#allocation34_spill] sm:$0xff] }
 0x586   :  { %v12873_v59 = vpop.f32.mrf.mxu1 }
 0x587   :  { %17950 = vst [vmem:[#allocation114_spill] sm:$0xff] %v16511_v11  ;;  %v16523_v44 = vadd.f32 %v12873_v59, %v6120_v7  ;;  %v6123_v7 = vadd.f32 %v17957_v15, %v16182_v60  ;;  %v16537_v59 = vpop.f32.mrf.mxu0  ;;  %v6121_v11 = vadd.f32 %v17960_v2, %v17959_v5  ;;  %v13700_v60 = vld [vmem:[%s17252_s5 + $0x208] sm:$0xff]   ;;  %v17967_v5 = vld [vmem:[#allocation82_spill] sm:$0xff] }
 0x588   :  { %v6684_v48 = vpop.f32.mrf.mxu1  ;;  %12060 = vmatpush3.bf16.msra.mxu0 %v13700_v60  ;;  %v6127_v2 = vadd.f32 %v17967_v5, %v16198_v39  ;;  %v17969_v60 = vld [vmem:[#allocation42_spill] sm:$0xff] }
 0x589   :  { %17953 = vst [vmem:[#allocation22_spill] sm:$0xff] %v16523_v44  ;;  %v16533_v12 = vadd.f32 %v6684_v48, %v6118_v34  ;;  %v6124_v34 = vadd.f32 %v17963_v20, %v17962_v19  ;;  %v16550_v48 = vpop.f32.mrf.mxu0  ;;  %v13704_v20 = vld [vmem:[%s17252_s5 + $0x200] sm:$0xff]  }
 0x58a   :  { %v12876_v44 = vpop.f32.mrf.mxu1  ;;  %v17976_v5 = vld [vmem:[#allocation130_spill] sm:$0xff] }
 0x58b   :  { %17956 = vst [vmem:[#allocation116_spill] sm:$0xff] %v16533_v12  ;;  %v16539_v22 = vadd.f32 %v12876_v44, %v6123_v7  ;;  %v13703_v44 = vld [vmem:[%s17252_s5 + $0x240] sm:$0xff]   ;;  %v17972_v12 = vld [vmem:[#allocation107_spill] sm:$0xff] }
 0x58c   :  { %v6697_v24 = vpop.f32.mrf.mxu1  ;;  %12061 = vmatprep.subr.bf16.mxu0 %v13703_v44 }
 0x58d   :  { %17958 = vst [vmem:[#allocation23_spill] sm:$0xff] %v16539_v22  ;;  %v16543_v3 = vadd.f32 %v6697_v24, %v6121_v11  ;;  %v6122_v24 = vadd.f32 %v17965_v25, %v16193_v56  ;;  %v13707_v11 = vld [vmem:[%s17252_s5 + $0x378] sm:$0xff]   ;;  %v17970_v25 = vld [vmem:[#allocation36_spill] sm:$0xff]  ;;  %12062 = vmatpush3.bf16.msra.mxu0 %v13704_v20 }
 0x58e   :  { %v12877_v15 = vpop.f32.mrf.mxu1  ;;  %12091 = vmatprep.subr.bf16.mxu0 %v13707_v11  ;;  %v17978_v20 = vld [vmem:[#allocation84_spill] sm:$0xff] }
 0x58f   :  { %17961 = vst [vmem:[#allocation24_spill] sm:$0xff] %v16543_v3  ;;  %v16555_v7 = vadd.f32 %v12877_v15, %v6124_v34  ;;  %v16569_v34 = vpop.f32.mrf.mxu0  ;;  %v17973_v3 = vld [vmem:[#allocation129_spill] sm:$0xff] }
 0x590   :  { %v6700_v19 = vpop.f32.mrf.mxu1 }
 0x591   :  { %17964 = vst [vmem:[#allocation118_spill] sm:$0xff] %v16555_v7  ;;  %v16565_v14 = vadd.f32 %v6700_v19, %v6122_v24  ;;  %v6125_v7 = vadd.f32 %v17970_v25, %v17969_v60  ;;  %v6128_v24 = vadd.f32 %v17973_v3, %v17972_v12  ;;  %v16579_v19 = vpop.f32.mrf.mxu0  ;;  %v6131_v60 = vadd.f32 %v17978_v20, %v16220_v61  ;;  %v17981_v12 = vld [vmem:[#allocation38_spill] sm:$0xff]  ;;  %v17987_v20 = vld [vmem:[#allocation83_spill] sm:$0xff] }
 0x592   :  { %v12880_v15 = vpop.f32.mrf.mxu1  ;;  %17974 = vst [vmem:[#allocation28_spill] sm:$0xff] %v16579_v19  ;;  %v6129_v3 = vadd.f32 %v17981_v12, %v16223_v6  ;;  %v17986_v61 = vld [vmem:[#allocation62_spill] sm:$0xff] }
 0x593   :  { %17966 = vst [vmem:[#allocation26_spill] sm:$0xff] %v16565_v14  ;;  %v16571_v56 = vadd.f32 %v12880_v15, %v6127_v2  ;;  %v6126_v2 = vadd.f32 %v17976_v5, %v16215_v41  ;;  %v16589_v11 = vpop.f32.mrf.mxu0 }
 0x594   :  { %v6713_v22 = vpop.f32.mrf.mxu1  ;;  %17979 = vst [vmem:[#allocation30_spill] sm:$0xff] %v16589_v11  ;;  %v7427_v11 = vadd.f32 %v17998_v50, %v16287_v32 }
 0x595   :  { %17968 = vst [vmem:[#allocation120_spill] sm:$0xff] %v16571_v56  ;;  %v16575_v44 = vadd.f32 %v6713_v22, %v6125_v7  ;;  %v16599_v5 = vpop.f32.mrf.mxu0 }
 0x596   :  { %v12881_v14 = vpop.f32.mrf.mxu1  ;;  %17984 = vst [vmem:[#allocation125_spill] sm:$0xff] %v16599_v5  ;;  %v7422_v5 = vadd.f32 %v17997_v47, %v16247_v29  ;;  %v18002_v29 = vld [vmem:[#allocation17_spill] sm:$0xff] }
 0x597   :  { %17971 = vst [vmem:[#allocation27_spill] sm:$0xff] %v16575_v44  ;;  %v16581_v39 = vadd.f32 %v12881_v14, %v6128_v24  ;;  %v17983_v24 = vld [vmem:[#allocation131_spill] sm:$0xff]  ;;  %v17995_v44 = vld [vmem:[#allocation152_spill] sm:$0xff] }
 0x598   :  { %v6716_v15 = vpop.f32.mrf.mxu1  ;;  %v6132_v41 = vadd.f32 %v17983_v24, %v16228_v46 }
 0x599   :  { %17975 = vst [vmem:[#allocation75_spill] sm:$0xff] %v16581_v39  ;;  %v16585_v56 = vadd.f32 %v6716_v15, %v6126_v2 }
 0x59a   :  { %v12884_v22 = vpop.f32.mrf.mxu1 }
 0x59b   :  { %17977 = vst [vmem:[#allocation122_spill] sm:$0xff] %v16585_v56  ;;  %v16591_v7 = vadd.f32 %v12884_v22, %v6131_v60  ;;  %v6130_v56 = vadd.f32 %v17987_v20, %v17986_v61  ;;  %v16607_v22 = vpop.f32.mrf.mxu0  ;;  %v17993_v61 = vld [vmem:[#allocation37_spill] sm:$0xff] }
 0x59c   :  { %v6729_v25 = vpop.f32.mrf.mxu1  ;;  %17989 = vst [vmem:[#allocation32_spill] sm:$0xff] %v16607_v22  ;;  %v7421_v20 = vadd.f32 %v17993_v61, %v16237_v31  ;;  %v17999_v31 = vld [vmem:[#allocation39_spill] sm:$0xff] }
 0x59d   :  { %17980 = vst [vmem:[#allocation147_spill] sm:$0xff] %v16591_v7  ;;  %v16595_v14 = vadd.f32 %v6729_v25, %v6129_v3  ;;  %v16609_v3 = vpop.f32.mrf.mxu0  ;;  %v7420_v61 = vadd.f32 %v17999_v31, %v16251_v18  ;;  %v18005_v18 = vld [vmem:[#allocation155_spill] sm:$0xff] }
 0x59e   :  { %v12885_v2 = vpop.f32.mrf.mxu1  ;;  %17990 = vst [vmem:[#allocation80_spill] sm:$0xff] %v16609_v3  ;;  %v7429_v3 = vadd.f32 %v17995_v44, %v16283_v52  ;;  %v7428_v31 = vadd.f32 %v18005_v18, %v16297_v37 }
 0x59f   :  { %17982 = vst [vmem:[#allocation124_spill] sm:$0xff] %v16595_v14  ;;  %v16601_v15 = vadd.f32 %v12885_v2, %v6132_v41  ;;  %v16611_v46 = vpop.f32.mrf.mxu0 }
 0x5a0   :  { %v6732_v39 = vpop.f32.mrf.mxu1  ;;  %17991 = vst [vmem:[#allocation79_spill] sm:$0xff] %v16611_v46 }
 0x5a1   :  { %17985 = vst [vmem:[#allocation31_spill] sm:$0xff] %v16601_v15  ;;  %v16605_v60 = vadd.f32 %v6732_v39, %v6130_v56  ;;  %v16613_v41 = vpop.f32.mrf.mxu0  ;;  %v17994_v56 = vld [vmem:[#allocation132_spill] sm:$0xff] }
 0x5a2   :  { %v12984_v6 = vpop.f32.mrf.mxu1  ;;  %17992 = vst [vmem:[#allocation126_spill] sm:$0xff] %v16613_v41  ;;  %v7419_v39 = vadd.f32 %v17994_v56, %v16241_v21  ;;  %v18001_v56 = vld [vmem:[#allocation90_spill] sm:$0xff] }
 0x5a3   :  { %17988 = vst [vmem:[#allocation33_spill] sm:$0xff] %v16605_v60  ;;  %v8096_v15 = vadd.f32 %v12984_v6, %v7421_v20  ;;  %v16621_v53 = vpop.f32.mrf.mxu0  ;;  %v18000_v6 = vld [vmem:[#allocation154_spill] sm:$0xff] }
 0x5a4   :  { %v7839_v12 = vpop.f32.mrf.mxu1  ;;  %17996 = vst [vmem:[#allocation127_spill] sm:$0xff] %v16621_v53  ;;  %v7430_v20 = vadd.f32 %v18000_v6, %v16293_v28 }
 0x5a5   :  { %v8094_v22 = vadd.f32 %v7839_v12, %v7419_v39  ;;  %v8771_v52 = vadd.f32 %v18001_v56, %v8096_v15  ;;  %v16633_v53 = vpop.f32.mrf.mxu0 }
 0x5a6   :  { %v12985_v25 = vpop.f32.mrf.mxu1 }
 0x5a7   :  { %v8097_v44 = vadd.f32 %v12985_v25, %v7422_v5  ;;  %v8769_v47 = vadd.f32 %v18002_v29, %v8094_v22  ;;  %v16647_v37 = vpop.f32.mrf.mxu0 }
 0x5a8   :  { %v7842_v14 = vpop.f32.mrf.mxu1 }
 0x5a9   :  { %v8095_v1 = vadd.f32 %v7842_v14, %v7420_v61 }
 0x5aa   :  { %v12988_v24 = vpop.f32.mrf.mxu1 }
 0x5ac   :  { %v7855_v7 = vpop.f32.mrf.mxu1 }
 0x5ae   :  { %v12989_v2 = vpop.f32.mrf.mxu1 }
 0x5b0   :  { %v7858_v60 = vpop.f32.mrf.mxu1 }
 0x5b2   :  { %v12992_v46 = vpop.f32.mrf.mxu1 }
 0x5b3   :  { %v8104_v41 = vadd.f32 %v12992_v46, %v7429_v3  ;;  %v18003_v3 = vld [vmem:[#allocation64_spill] sm:$0xff]  ;;  %v18004_v46 = vld [vmem:[#allocation86_spill] sm:$0xff] }
 0x5b4   :  { %v7871_v21 = vpop.f32.mrf.mxu1  ;;  %v7425_v32 = vadd.f32 %v18004_v46, %v18003_v3  ;;  %v18012_v3 = vld [vmem:[#allocation134_spill] sm:$0xff] }
 0x5b5   :  { %v8779_v12 = vadd.f32 %v16337_v8, %v8104_v41  ;;  %v8102_v39 = vadd.f32 %v7871_v21, %v7427_v11  ;;  %v18006_v8 = vld [vmem:[#allocation40_spill] sm:$0xff]  ;;  %v8772_v21 = vadd.f32 %v16271_v42, %v8097_v44  ;;  %v18010_v44 = vld [vmem:[#allocation91_spill] sm:$0xff] }
 0x5b6   :  { %v12993_v50 = vpop.f32.mrf.mxu1  ;;  %v8100_v5 = vadd.f32 %v12988_v24, %v7425_v32  ;;  %v7423_v11 = vadd.f32 %v18006_v8, %v16267_v49  ;;  %v18007_v41 = vld [vmem:[#allocation56_spill] sm:$0xff]  ;;  %v18013_v32 = vld [vmem:[#allocation133_spill] sm:$0xff] }
 0x5b7   :  { %v8835_v19 = vmax.f32 %v8771_v52, %v8779_v12  ;;  %v8777_v28 = vadd.f32 %v16345_v27, %v8102_v39  ;;  %v8105_v15 = vadd.f32 %v12993_v50, %v7430_v20  ;;  %v7433_v22 = vadd.f32 %v18007_v41, %v16303_v10  ;;  %v18008_v27 = vld [vmem:[#allocation87_spill] sm:$0xff]  ;;  %v18016_v41 = vld [vmem:[#allocation66_spill] sm:$0xff] }
 0x5b8   :  { %v7874_v25 = vpop.f32.mrf.mxu1  ;;  %v8098_v14 = vadd.f32 %v7855_v7, %v7423_v11  ;;  %v7426_v61 = vadd.f32 %v18008_v27, %v16273_v9  ;;  %v18009_v20 = vld [vmem:[#allocation103_spill] sm:$0xff]  ;;  %v8770_v52 = vadd.f32 %v16281_v38, %v8095_v1  ;;  %v8775_v39 = vadd.f32 %v18010_v44, %v8100_v5  ;;  %v16663_v38 = vld [vmem:[%s17253_s4] ss:$0 sm:$0xff]  ;;  %v16666_v1 = vpop.f32.mrf.mxu0  ;;  %v18015_v5 = vld [vmem:[#allocation57_spill] sm:$0xff] }
 0x5b9   :  { %v8833_v6 = vmax.f32 %v8769_v47, %v8777_v28  ;;  %v8780_v56 = vadd.f32 %v16364_v17, %v8105_v15  ;;  %v8103_v29 = vadd.f32 %v7874_v25, %v7428_v31  ;;  %v7431_v49 = vadd.f32 %v18009_v20, %v16307_v0  ;;  %v18011_v47 = vld [vmem:[#allocation137_spill] sm:$0xff] }
 0x5ba   :  { %v12996_v24 = vpop.f32.mrf.mxu1  ;;  %v8101_v17 = vadd.f32 %v12989_v2, %v7426_v61  ;;  %v7424_v46 = vadd.f32 %v18012_v3, %v18011_v47  ;;  %v7434_v9 = vadd.f32 %v18013_v32, %v16319_v54  ;;  %v18014_v2 = vld [vmem:[#allocation65_spill] sm:$0xff]  ;;  %v7432_v8 = vadd.f32 %v18015_v5, %v16323_v35  ;;  %v16676_v27 = vpop.f32.mrf.mxu0  ;;  %v18018_v32 = vld [vmem:[#allocation95_spill] sm:$0xff] }
 0x5bb   :  { %v8836_v12 = vmax.f32 %v8772_v21, %v8780_v56  ;;  %v8778_v10 = vadd.f32 %v16372_v40, %v8103_v29  ;;  %v8108_v42 = vadd.f32 %v12996_v24, %v7433_v22  ;;  %v8773_v31 = vadd.f32 %v18014_v2, %v8098_v14 }
 0x5bc   :  { %v7887_v7 = vpop.f32.mrf.mxu1  ;;  %v8099_v28 = vadd.f32 %v7858_v60, %v7424_v46  ;;  %v8776_v22 = vadd.f32 %v18016_v41, %v8101_v17  ;;  %v16686_v17 = vpop.f32.mrf.mxu0  ;;  %v18022_v41 = vld [vmem:[#allocation11_spill] sm:$0xff] }
 0x5bd   :  { %v8866_v50 = vmax.f32 %v8835_v19, %v8836_v12  ;;  %v8834_v18 = vmax.f32 %v8770_v52, %v8778_v10  ;;  %v8783_v0 = vadd.f32 %v16382_v33, %v8108_v42  ;;  %v8106_v40 = vadd.f32 %v7887_v7, %v7431_v49  ;;  %v13660_v10 = vld [vmem:[%s17252_s5 + $0xb8] sm:$0xff]   ;;  %v13662_v7 = vld [vmem:[%s17252_s5 + $0xb0] sm:$0xff]  }
 0x5be   :  { %v12997_v15 = vpop.f32.mrf.mxu1 }
 0x5bf   :  { %v8865_v54 = vmax.f32 %v8833_v6, %v8834_v18  ;;  %v8839_v19 = vmax.f32 %v8775_v39, %v8783_v0  ;;  %v8781_v11 = vadd.f32 %v16396_v30, %v8106_v40  ;;  %v8109_v25 = vadd.f32 %v12997_v15, %v7434_v9  ;;  %v18017_v6 = vld [vmem:[#allocation113_spill] sm:$0xff]  ;;  %v13661_v39 = vld [vmem:[%s17252_s5 + $0xf0] sm:$0xff]   ;;  %v18019_v9 = vld [vmem:[#allocation14_spill] sm:$0xff]  ;;  %v16699_v40 = vpop.f32.mrf.mxu0 }
 0x5c0   :  { %v7890_v21 = vpop.f32.mrf.mxu1  ;;  %v8889_v33 = vadd.f32 %v16663_v38, %v8866_v50  ;;  %v8774_v24 = vadd.f32 %v18017_v6, %v8099_v28  ;;  %v6090_v50 = vadd.f32 %v18019_v9, %v18018_v32  ;;  %v13663_v0 = vld [vmem:[%s17252_s5 + $0xe8] sm:$0xff]   ;;  %v18020_v28 = vld [vmem:[#allocation60_spill] sm:$0xff]  ;;  %v18027_v6 = vld [vmem:[#allocation73_spill] sm:$0xff] }
 0x5c1   :  { %v8888_v56 = vadd.f32 %v16663_v38, %v8865_v54  ;;  %v8837_v29 = vmax.f32 %v8773_v31, %v8781_v11  ;;  %v8784_v14 = vadd.f32 %v16406_v58, %v8109_v25  ;;  %v8107_v60 = vadd.f32 %v7890_v21, %v7432_v8  ;;  %v13664_v54 = vld [vmem:[%s17252_s5 + $0xa8] sm:$0xff]   ;;  %v13665_v11 = vld [vmem:[%s17252_s5 + $0xe0] sm:$0xff]   ;;  %v16712_v25 = vpop.f32.mrf.mxu0  ;;  %v18023_v21 = vld [vmem:[#allocation92_spill] sm:$0xff] }
 0x5c2   :  { %v13000_v61 = vpop.f32.mrf.mxu1  ;;  %v8905_v35 = vmax.f32 %v8889_v33, 0.0  ;;  %v6765_v31 = vadd.f32 %v16368_v36, %v6090_v50  ;;  %v7439_v15 = vadd.f32 %v18020_v28, %v16351_v45  ;;  %v18021_v36 = vld [vmem:[#allocation25_spill] sm:$0xff] }
 0x5c3   :  { %v8904_v20 = vmax.f32 %v8888_v56, 0.0  ;;  %v8840_v30 = vmax.f32 %v8776_v22, %v8784_v14  ;;  %v8782_v49 = vadd.f32 %v16414_v51, %v8107_v60  ;;  %v6086_v45 = vadd.f32 %v18022_v41, %v18021_v36  ;;  %v18024_v33 = vld [vmem:[#allocation41_spill] sm:$0xff]  ;;  %v18026_v60 = vld [vmem:[#allocation98_spill] sm:$0xff]  ;;  %v16736_v32 = vpop.f32.mrf.mxu0  ;;  %v18037_v36 = vld [vmem:[#allocation88_spill] sm:$0xff] }
 0x5c4   :  { %v7903_v52 = vpop.f32.mrf.mxu1  ;;  %v8953_v12 = vpack.c.bf16 %v8905_v35, %v8905_v35  ;;  %v7437_v56 = vadd.f32 %v18024_v33, %v18023_v21  ;;  %v18032_v9 = vld [vmem:[#allocation5_spill] sm:$0xff]  ;;  %v18038_v41 = vld [vmem:[#allocation51_spill] sm:$0xff] }
 0x5c5   :  { %v8952_v42 = vpack.c.bf16 %v8904_v20, %v8904_v20  ;;  %v8868_v44 = vmax.f32 %v8839_v19, %v8840_v30  ;;  %v8838_v58 = vmax.f32 %v8774_v24, %v8782_v49  ;;  %v6761_v35 = vadd.f32 %v18026_v60, %v6086_v45  ;;  %v18028_v24 = vld [vmem:[#allocation63_spill] sm:$0xff]  ;;  %v18029_v30 = vld [vmem:[#allocation4_spill] sm:$0xff]  ;;  %v18030_v49 = vld [vmem:[#allocation58_spill] sm:$0xff] }
 0x5c6   :  { %10031 = vmatprep.mubr.bf16.mxu1 %v8953_v12  ;;  %v13001_v47 = vpop.f32.mrf.mxu1  ;;  %v6094_v20 = vadd.f32 %v18028_v24, %v18027_v6  ;;  %v7435_v12 = vadd.f32 %v18030_v49, %v18029_v30  ;;  %v18034_v28 = vld [vmem:[#allocation105_spill] sm:$0xff]  ;;  %v18039_v45 = vld [vmem:[#allocation111_spill] sm:$0xff]  ;;  %v13671_v60 = vld [vmem:[%s17252_s5 + $0xd0] sm:$0xff]  }
 0x5c7   :  { %v16688_v3 = vmax.f32 %v8837_v29, %v8838_v58  ;;  %10032 = vmatmul.mubr.bf16.vlgmr.msra.gmra.mxu1 %v8952_v42  ;;  %v8891_v51 = vadd.f32 %v16663_v38, %v8868_v44  ;;  %v18025_v29 = vld [vmem:[#allocation47_spill] sm:$0xff]  ;;  %v13666_v42 = vld [vmem:[%s17252_s5 + $0xa0] sm:$0xff]   ;;  %v8112_v44 = vadd.f32 %v13000_v61, %v7437_v56  ;;  %v7446_v21 = vadd.f32 %v18039_v45, %v18038_v41  ;;  %v13670_v33 = vld [vmem:[%s17252_s5 + $0x98] sm:$0xff]  }
 0x5c8   :  { %11982 = vmatpush3.bf16.msra.mxu1 %v13660_v10  ;;  %v7906_v46 = vpop.f32.mrf.mxu1  ;;  %v7440_v14 = vadd.f32 %v18025_v29, %v6765_v31  ;;  %v6769_v50 = vadd.f32 %v18032_v9, %v6094_v20  ;;  %v18033_v31 = vld [vmem:[#allocation97_spill] sm:$0xff]  ;;  %v18040_v24 = vld [vmem:[#allocation52_spill] sm:$0xff] }
 0x5c9   :  { %11983 = vmatprep.subr.bf16.mxu1 %v13661_v39  ;;  %v8907_v18 = vmax.f32 %v8891_v51, 0.0  ;;  %v18031_v39 = vld [vmem:[#allocation109_spill] sm:$0xff]  ;;  %v8890_v41 = vadd.f32 %v16663_v38, %v16688_v3 }
 0x5ca   :  { %v13004_v2 = vpop.f32.mrf.mxu1  ;;  %v7445_v51 = vadd.f32 %v18031_v39, %v16374_v13  ;;  %v7436_v13 = vadd.f32 %v18037_v36, %v6761_v35  ;;  %v16754_v35 = vpop.f32.mrf.mxu0  ;;  %v18041_v20 = vld [vmem:[#allocation13_spill] sm:$0xff]  ;;  %v18044_v39 = vld [vmem:[#allocation19_spill] sm:$0xff] }
 0x5cb   :  { %v8955_v5 = vpack.c.bf16 %v8907_v18, %v8907_v18  ;;  %v8110_v18 = vadd.f32 %v7903_v52, %v7435_v12  ;;  %v8787_v52 = vadd.f32 %v16424_v55, %v8112_v44  ;;  %v7441_v30 = vadd.f32 %v18041_v20, %v18040_v24  ;;  %v18042_v12 = vld [vmem:[#allocation45_spill] sm:$0xff]  ;;  %v18043_v44 = vld [vmem:[#allocation96_spill] sm:$0xff]  ;;  %v18053_v20 = vld [vmem:[#allocation115_spill] sm:$0xff] }
 0x5cc   :  { %11984 = vmatpush3.bf16.msra.mxu1 %v13662_v7  ;;  %v7919_v8 = vpop.f32.mrf.mxu1  ;;  %v13669_v7 = vld [vmem:[%s17252_s5 + $0xd8] sm:$0xff]   ;;  %v8111_v55 = vadd.f32 %v7906_v46, %v7436_v13 }
 0x5cd   :  { %v16707_v19 = vadd.f32 %v7919_v8, %v7439_v15  ;;  %10071 = vmatprep.mubr.bf16.mxu1 %v8955_v5  ;;  %11985 = vmatprep.subr.bf16.mxu1 %v13663_v0  ;;  %v7438_v15 = vadd.f32 %v18034_v28, %v18033_v31  ;;  %v18035_v5 = vld [vmem:[#allocation99_spill] sm:$0xff]  ;;  %v18036_v8 = vld [vmem:[#allocation44_spill] sm:$0xff]  ;;  %v8785_v6 = vadd.f32 %v16432_v62, %v8110_v18  ;;  %v16773_v28 = vpop.f32.mrf.mxu0 }
 0x5ce   :  { %v16716_v22 = vpop.f32.mrf.mxu1  ;;  %v13672_v18 = vld [vmem:[%s17252_s5 + $0x90] sm:$0xff]   ;;  %v8786_v36 = vadd.f32 %v16456_v23, %v8111_v55 }
 0x5cf   :  { %v8113_v56 = vadd.f32 %v13001_v47, %v7438_v15  ;;  %v16795_v3 = vpop.f32.mrf.mxu0 }
 0x5d0   :  { %11986 = vmatpush3.bf16.msra.mxu1 %v13664_v54  ;;  %v7922_v10 = vpop.f32.mrf.mxu1  ;;  %v7443_v54 = vadd.f32 %v18036_v8, %v18035_v5 }
 0x5d1   :  { %v16729_v58 = vadd.f32 %v7922_v10, %v7440_v14  ;;  %11987 = vmatprep.subr.bf16.mxu1 %v13665_v11  ;;  %v7444_v10 = vadd.f32 %v18042_v12, %v6769_v50  ;;  %v8788_v50 = vadd.f32 %v16445_v16, %v8113_v56 }
 0x5d2   :  { %v13008_v0 = vpop.f32.mrf.mxu1 }
 0x5d3   :  { %v8120_v61 = vadd.f32 %v13008_v0, %v7445_v51  ;;  %v6098_v51 = vadd.f32 %v18044_v39, %v18043_v44  ;;  %v18045_v0 = vld [vmem:[#allocation138_spill] sm:$0xff] }
 0x5d4   :  { %11988 = vmatpush3.bf16.msra.mxu1 %v13666_v42  ;;  %v7935_v11 = vpop.f32.mrf.mxu1  ;;  %v7449_v62 = vadd.f32 %v18045_v0, %v16398_v63  ;;  %v18046_v63 = vld [vmem:[#allocation6_spill] sm:$0xff] }
 0x5d5   :  { %v8795_v29 = vadd.f32 %v16518_v26, %v8120_v61  ;;  %v8118_v14 = vadd.f32 %v7935_v11, %v7443_v54  ;;  %11989 = vmatprep.subr.bf16.mxu1 %v13669_v7  ;;  %v8116_v7 = vadd.f32 %v13004_v2, %v7441_v30  ;;  %v13673_v2 = vld [vmem:[%s17252_s5 + $0xc8] sm:$0xff]   ;;  %v6773_v15 = vadd.f32 %v16410_v43, %v6098_v51  ;;  %v18047_v61 = vld [vmem:[#allocation136_spill] sm:$0xff]  ;;  %v13676_v44 = vld [vmem:[%s17252_s5 + $0x80] sm:$0xff]  }
 0x5d6   :  { %v13009_v49 = vpop.f32.mrf.mxu1  ;;  %v7442_v5 = vadd.f32 %v18047_v61, %v18046_v63  ;;  %v18048_v54 = vld [vmem:[#allocation68_spill] sm:$0xff] }
 0x5d7   :  { %v8843_v47 = vmax.f32 %v8787_v52, %v8795_v29  ;;  %v8793_v26 = vadd.f32 %v16537_v59, %v8118_v14  ;;  %v8121_v42 = vadd.f32 %v13009_v49, %v7446_v21  ;;  %v7447_v16 = vadd.f32 %v18048_v54, %v16402_v57  ;;  %v18050_v52 = vld [vmem:[#allocation46_spill] sm:$0xff]  ;;  %v13674_v57 = vld [vmem:[%s17252_s5 + $0x88] sm:$0xff]   ;;  %v18055_v51 = vld [vmem:[#allocation16_spill] sm:$0xff] }
 0x5d8   :  { %11990 = vmatpush3.bf16.msra.mxu1 %v13670_v33  ;;  %v7938_v9 = vpop.f32.mrf.mxu1  ;;  %v8791_v45 = vadd.f32 %v16466_v4, %v8116_v7  ;;  %v8117_v43 = vadd.f32 %v16716_v22, %v7442_v5  ;;  %v18049_v33 = vld [vmem:[#allocation100_spill] sm:$0xff]  ;;  %v13675_v4 = vld [vmem:[%s17252_s5 + $0xc0] sm:$0xff]   ;;  %v7448_v30 = vadd.f32 %v18053_v20, %v6773_v15 }
 0x5d9   :  { %v8841_v46 = vmax.f32 %v8785_v6, %v8793_v26  ;;  %v8796_v31 = vadd.f32 %v16550_v48, %v8121_v42  ;;  %v8119_v59 = vadd.f32 %v7938_v9, %v7444_v10  ;;  %11991 = vmatprep.subr.bf16.mxu1 %v13671_v60  ;;  %v7450_v56 = vadd.f32 %v18050_v52, %v18049_v33  ;;  %v18052_v22 = vld [vmem:[#allocation106_spill] sm:$0xff]  ;;  %v18056_v9 = vld [vmem:[#allocation125_spill] sm:$0xff]  ;;  %v18058_v63 = vld [vmem:[#allocation32_spill] sm:$0xff] }
 0x5da   :  { %v13012_v8 = vpop.f32.mrf.mxu1  ;;  %v8789_v6 = vadd.f32 %v18052_v22, %v16707_v19  ;;  %v18054_v10 = vld [vmem:[#allocation30_spill] sm:$0xff]  ;;  %v8906_v26 = vmax.f32 %v8890_v41, 0.0  ;;  %v8792_v19 = vadd.f32 %v18055_v51, %v8117_v43  ;;  %v13682_v43 = vld [vmem:[%s17252_s5 + $0x130] sm:$0xff]   ;;  %v18060_v33 = vld [vmem:[#allocation71_spill] sm:$0xff] }
 0x5db   :  { %v8844_v48 = vmax.f32 %v8788_v50, %v8796_v31  ;;  %v8794_v13 = vadd.f32 %v16569_v34, %v8119_v59  ;;  %v8124_v11 = vadd.f32 %v13012_v8, %v7449_v62  ;;  %v18051_v34 = vld [vmem:[#allocation28_spill] sm:$0xff]  ;;  %v16812_v50 = vpop.f32.mrf.mxu0  ;;  %v13680_v8 = vld [vmem:[%s17252_s5 + $0x138] sm:$0xff]   ;;  %v13685_v20 = vld [vmem:[%s17252_s5 + $0x160] sm:$0xff]  }
 0x5dc   :  { %11992 = vmatpush3.bf16.msra.mxu1 %v13672_v18  ;;  %v7951_v21 = vpop.f32.mrf.mxu1  ;;  %v13679_v18 = vld [vmem:[%s17252_s5 + $0x178] sm:$0xff]   ;;  %v18057_v59 = vld [vmem:[#allocation112_spill] sm:$0xff]  ;;  %v8954_v54 = vpack.c.bf16 %v8906_v26, %v8906_v26 }
 0x5dd   :  { %v8870_v23 = vmax.f32 %v8843_v47, %v8844_v48  ;;  %v8842_v29 = vmax.f32 %v8786_v36, %v8794_v13  ;;  %v8799_v14 = vadd.f32 %v18051_v34, %v8124_v11  ;;  %v8122_v60 = vadd.f32 %v7951_v21, %v7447_v16  ;;  %11993 = vmatprep.subr.bf16.mxu1 %v13673_v2  ;;  %v13681_v48 = vld [vmem:[%s17252_s5 + $0x170] sm:$0xff]   ;;  %v16825_v13 = vpop.f32.mrf.mxu0  ;;  %v18066_v26 = vld [vmem:[#allocation53_spill] sm:$0xff] }
 0x5de   :  { %v13013_v24 = vpop.f32.mrf.mxu1  ;;  %v8790_v2 = vadd.f32 %v18057_v59, %v16729_v58  ;;  %v18059_v21 = vld [vmem:[#allocation144_spill] sm:$0xff] }
 0x5df   :  { %v16800_v49 = vmax.f32 %v8841_v46, %v8842_v29  ;;  %v8847_v12 = vmax.f32 %v8791_v45, %v8799_v14  ;;  %v8797_v55 = vadd.f32 %v18054_v10, %v8122_v60  ;;  %v8125_v47 = vadd.f32 %v13013_v24, %v7450_v56  ;;  %v13683_v56 = vld [vmem:[%s17252_s5 + $0x168] sm:$0xff]   ;;  %v18061_v29 = vld [vmem:[#allocation102_spill] sm:$0xff] }
 0x5e0   :  { %11994 = vmatpush3.bf16.msra.mxu1 %v13674_v57  ;;  %v7954_v42 = vpop.f32.mrf.mxu1  ;;  %v8893_v39 = vadd.f32 %v16663_v38, %v8870_v23  ;;  %v6106_v52 = vadd.f32 %v18060_v33, %v18059_v21  ;;  %v16837_v57 = vpop.f32.mrf.mxu0  ;;  %v18062_v14 = vld [vmem:[#allocation55_spill] sm:$0xff]  ;;  %v18063_v60 = vld [vmem:[#allocation70_spill] sm:$0xff] }
 0x5e1   :  { %v8845_v7 = vmax.f32 %v8789_v6, %v8797_v55  ;;  %v8800_v0 = vadd.f32 %v18056_v9, %v8125_v47  ;;  %v8123_v62 = vadd.f32 %v7954_v42, %v7448_v30  ;;  %11995 = vmatprep.subr.bf16.mxu1 %v13675_v4  ;;  %v7455_v4 = vadd.f32 %v18063_v60, %v18062_v14  ;;  %v13684_v6 = vld [vmem:[%s17252_s5 + $0x128] sm:$0xff]   ;;  %v18079_v60 = vld [vmem:[#allocation12_spill] sm:$0xff] }
 0x5e2   :  { %v13016_v46 = vpop.f32.mrf.mxu1  ;;  %v8909_v31 = vmax.f32 %v8893_v39, 0.0  ;;  %v6781_v34 = vadd.f32 %v18061_v29, %v6106_v52  ;;  %v16850_v30 = vpop.f32.mrf.mxu0  ;;  %v18065_v10 = vld [vmem:[#allocation67_spill] sm:$0xff]  ;;  %v18068_v39 = vld [vmem:[#allocation117_spill] sm:$0xff]  ;;  %v18076_v52 = vld [vmem:[#allocation104_spill] sm:$0xff] }
 0x5e3   :  { %v8848_v15 = vmax.f32 %v8792_v19, %v8800_v0  ;;  %v8798_v61 = vadd.f32 %v18058_v63, %v8123_v62  ;;  %v18067_v42 = vld [vmem:[#allocation139_spill] sm:$0xff]  ;;  %v18069_v19 = vld [vmem:[#allocation8_spill] sm:$0xff]  ;;  %v18071_v0 = vld [vmem:[#allocation21_spill] sm:$0xff] }
 0x5e4   :  { %11996 = vmatpush3.bf16.msra.mxu1 %v13676_v44  ;;  %v7967_v5 = vpop.f32.mrf.mxu1  ;;  %v8957_v11 = vpack.c.bf16 %v8909_v31, %v8909_v31  ;;  %v7453_v44 = vadd.f32 %v18067_v42, %v18066_v26  ;;  %v7456_v51 = vadd.f32 %v18068_v39, %v6781_v34  ;;  %v18070_v9 = vld [vmem:[#allocation7_spill] sm:$0xff]  ;;  %v13686_v31 = vld [vmem:[%s17252_s5 + $0x120] sm:$0xff]   ;;  %v18073_v63 = vld [vmem:[#allocation48_spill] sm:$0xff] }
 0x5e5   :  { %v16820_v16 = vmax.f32 %v8847_v12, %v8848_v15  ;;  %v8846_v36 = vmax.f32 %v8790_v2, %v8798_v61  ;;  %12003 = vmatprep.subr.bf16.mxu1 %v13679_v18  ;;  %v18064_v12 = vld [vmem:[#allocation29_spill] sm:$0xff]  ;;  %v7451_v62 = vadd.f32 %v18071_v0, %v18070_v9  ;;  %v18072_v15 = vld [vmem:[#allocation10_spill] sm:$0xff]  ;;  %v13693_v26 = vld [vmem:[%s17252_s5 + $0x150] sm:$0xff]  }
 0x5e6   :  { %v13017_v58 = vpop.f32.mrf.mxu1  ;;  %v6102_v55 = vadd.f32 %v18065_v10, %v18064_v12  ;;  %v8128_v59 = vadd.f32 %v13016_v46, %v7453_v44  ;;  %v7461_v61 = vadd.f32 %v18073_v63, %v18072_v15  ;;  %v18077_v46 = vld [vmem:[#allocation141_spill] sm:$0xff]  ;;  %v18082_v44 = vld [vmem:[#allocation79_spill] sm:$0xff] }
 0x5e7   :  { %v16827_v41 = vmax.f32 %v8845_v7, %v8846_v36  ;;  %10072 = vmatmul.mubr.bf16.vlgmr.msra.gmra.mxu1 %v8954_v54  ;;  %v16870_v54 = vpop.f32.mrf.mxu0  ;;  %v8126_v36 = vadd.f32 %v7967_v5, %v7451_v62  ;;  %v18078_v29 = vld [vmem:[#allocation69_spill] sm:$0xff]  ;;  %v18081_v5 = vld [vmem:[#allocation80_spill] sm:$0xff]  ;;  %v18085_v0 = vld [vmem:[#allocation59_spill] sm:$0xff] }
 0x5e8   :  { %12004 = vmatpush3.bf16.msra.mxu1 %v13680_v8  ;;  %10111 = vmatprep.mubr.bf16.mxu1 %v8957_v11  ;;  %v7970_v45 = vpop.f32.mrf.mxu1  ;;  %v6777_v7 = vadd.f32 %v18069_v19, %v6102_v55  ;;  %v13689_v8 = vld [vmem:[%s17252_s5 + $0x158] sm:$0xff]   ;;  %v18074_v11 = vld [vmem:[#allocation54_spill] sm:$0xff]  ;;  %v18086_v62 = vld [vmem:[#allocation119_spill] sm:$0xff] }
 0x5e9   :  { %12005 = vmatprep.subr.bf16.mxu1 %v13681_v48  ;;  %v16887_v42 = vpop.f32.mrf.mxu0  ;;  %v8801_v39 = vadd.f32 %v18082_v44, %v8126_v36  ;;  %v18084_v19 = vld [vmem:[#allocation93_spill] sm:$0xff]  ;;  %v13694_v36 = vld [vmem:[%s17252_s5 + $0x110] sm:$0xff]   ;;  %v18096_v44 = vld [vmem:[#allocation74_spill] sm:$0xff] }
 0x5ea   :  { %v13020_v23 = vpop.f32.mrf.mxu1  ;;  %v7452_v34 = vadd.f32 %v18078_v29, %v6777_v7 }
 0x5ec   :  { %12006 = vmatpush3.bf16.msra.mxu1 %v13682_v43  ;;  %v7983_v22 = vpop.f32.mrf.mxu1  ;;  %v18075_v43 = vld [vmem:[#allocation140_spill] sm:$0xff] }
 0x5ed   :  { %v16845_v24 = vadd.f32 %v7983_v22, %v7455_v4  ;;  %12007 = vmatprep.subr.bf16.mxu1 %v13683_v56  ;;  %v7454_v21 = vadd.f32 %v18075_v43, %v18074_v11  ;;  %v7459_v56 = vadd.f32 %v18077_v46, %v18076_v52  ;;  %v18080_v4 = vld [vmem:[#allocation72_spill] sm:$0xff]  ;;  %v18089_v11 = vld [vmem:[#allocation126_spill] sm:$0xff]  ;;  %v18090_v52 = vld [vmem:[#allocation9_spill] sm:$0xff] }
 0x5ee   :  { %v13021_v47 = vpop.f32.mrf.mxu1  ;;  %v7462_v22 = vadd.f32 %v18080_v4, %v18079_v60  ;;  %v18091_v46 = vld [vmem:[#allocation94_spill] sm:$0xff]  ;;  %v18094_v4 = vld [vmem:[#allocation127_spill] sm:$0xff] }
 0x5ef   :  { %v8129_v12 = vadd.f32 %v13017_v58, %v7454_v21  ;;  %v8127_v58 = vadd.f32 %v7970_v45, %v7452_v34  ;;  %v18092_v34 = vld [vmem:[#allocation15_spill] sm:$0xff] }
 0x5f0   :  { %12008 = vmatpush3.bf16.msra.mxu1 %v13684_v6  ;;  %v7986_v18 = vpop.f32.mrf.mxu1  ;;  %v13690_v6 = vld [vmem:[%s17252_s5 + $0x118] sm:$0xff]  }
 0x5f1   :  { %v16863_v2 = vadd.f32 %v7986_v18, %v7456_v51  ;;  %12009 = vmatprep.subr.bf16.mxu1 %v13685_v20  ;;  %v8803_v20 = vadd.f32 %v18081_v5, %v8128_v59  ;;  %v18083_v51 = vld [vmem:[#allocation101_spill] sm:$0xff]  ;;  %v7460_v18 = vadd.f32 %v18086_v62, %v18085_v0  ;;  %v8804_v43 = vadd.f32 %v18089_v11, %v8129_v12  ;;  %v18097_v62 = vld [vmem:[#allocation18_spill] sm:$0xff] }
 0x5f2   :  { %v13024_v48 = vpop.f32.mrf.mxu1  ;;  %v7457_v7 = vadd.f32 %v18084_v19, %v18083_v51  ;;  %v13698_v51 = vld [vmem:[%s17252_s5 + $0x108] sm:$0xff]  }
 0x5f3   :  { %v8136_v33 = vadd.f32 %v13024_v48, %v7461_v61  ;;  %v18087_v61 = vld [vmem:[#allocation108_spill] sm:$0xff] }
 0x5f4   :  { %12010 = vmatpush3.bf16.msra.mxu1 %v13686_v31  ;;  %v7999_v14 = vpop.f32.mrf.mxu1  ;;  %v8132_v15 = vadd.f32 %v13020_v23, %v7457_v7  ;;  %v16905_v23 = vpop.f32.mrf.mxu0 }
 0x5f5   :  { %v8811_v10 = vadd.f32 %v16686_v17, %v8136_v33  ;;  %v8134_v55 = vadd.f32 %v7999_v14, %v7459_v56  ;;  %12011 = vmatprep.subr.bf16.mxu1 %v13689_v8  ;;  %v18088_v8 = vld [vmem:[#allocation49_spill] sm:$0xff]  ;;  %v7458_v56 = vadd.f32 %v18091_v46, %v18090_v52  ;;  %v18093_v14 = vld [vmem:[#allocation142_spill] sm:$0xff] }
 0x5f6   :  { %v13025_v9 = vpop.f32.mrf.mxu1  ;;  %v7465_v48 = vadd.f32 %v18088_v8, %v18087_v61  ;;  %v7463_v60 = vadd.f32 %v18093_v14, %v18092_v34  ;;  %v8807_v12 = vadd.f32 %v16633_v53, %v8132_v15  ;;  %v13701_v53 = vld [vmem:[%s17252_s5 + $0x140] sm:$0xff]  }
 0x5f7   :  { %v8851_v31 = vmax.f32 %v8803_v20, %v8811_v10  ;;  %v8809_v17 = vadd.f32 %v16699_v40, %v8134_v55  ;;  %v8137_v59 = vadd.f32 %v13025_v9, %v7462_v22  ;;  %v13697_v40 = vld [vmem:[%s17252_s5 + $0x148] sm:$0xff]   ;;  %v8802_v22 = vadd.f32 %v18094_v4, %v8127_v58 }
 0x5f8   :  { %12012 = vmatpush3.bf16.msra.mxu1 %v13690_v6  ;;  %v8002_v63 = vpop.f32.mrf.mxu1  ;;  %v8892_v20 = vadd.f32 %v16663_v38, %v16800_v49  ;;  %v8133_v10 = vadd.f32 %v13021_v47, %v7458_v56  ;;  %v16925_v49 = vpop.f32.mrf.mxu0  ;;  %v8805_v47 = vadd.f32 %v16647_v37, %v16845_v24  ;;  %v13702_v37 = vld [vmem:[%s17252_s5 + $0x100] sm:$0xff]  }
 0x5f9   :  { %v8849_v21 = vmax.f32 %v8801_v39, %v8809_v17  ;;  %v8812_v33 = vadd.f32 %v16712_v25, %v8137_v59  ;;  %v8135_v45 = vadd.f32 %v8002_v63, %v7460_v18  ;;  %12013 = vmatprep.subr.bf16.mxu1 %v13693_v26  ;;  %v18095_v26 = vld [vmem:[#allocation110_spill] sm:$0xff]  ;;  %v18098_v18 = vld [vmem:[#allocation121_spill] sm:$0xff] }
 0x5fa   :  { %v13028_v29 = vpop.f32.mrf.mxu1  ;;  %v7466_v39 = vadd.f32 %v18096_v44, %v18095_v26  ;;  %v7464_v58 = vadd.f32 %v18098_v18, %v18097_v62  ;;  %v8908_v63 = vmax.f32 %v8892_v20, 0.0  ;;  %v8808_v61 = vadd.f32 %v16666_v1, %v8133_v10  ;;  %v16944_v1 = vpop.f32.mrf.mxu0  ;;  %v13713_v26 = vld [vmem:[%s17252_s5 + $0x1e8] sm:$0xff]   ;;  %v13717_v62 = vld [vmem:[%s17252_s5 + $0x1e0] sm:$0xff]  }
 0x5fb   :  { %v8852_v6 = vmax.f32 %v8804_v43, %v8812_v33  ;;  %v8810_v25 = vadd.f32 %v16736_v32, %v8135_v45  ;;  %v8140_v5 = vadd.f32 %v13028_v29, %v7465_v48  ;;  %v8806_v45 = vadd.f32 %v16676_v27, %v16863_v2  ;;  %v13706_v29 = vld [vmem:[%s17252_s5 + $0x1b8] sm:$0xff]  }
 0x5fc   :  { %12014 = vmatpush3.bf16.msra.mxu1 %v13694_v36  ;;  %v8015_v55 = vpop.f32.mrf.mxu1  ;;  %v16952_v34 = vpop.f32.mrf.mxu0  ;;  %v8956_v14 = vpack.c.bf16 %v8908_v63, %v8908_v63  ;;  %v13708_v27 = vld [vmem:[%s17252_s5 + $0x338] sm:$0xff]  }
 0x5fd   :  { %v8874_v19 = vmax.f32 %v8851_v31, %v8852_v6  ;;  %v8850_v7 = vmax.f32 %v8802_v22, %v8810_v25  ;;  %v8815_v32 = vadd.f32 %v16754_v35, %v8140_v5  ;;  %v8138_v9 = vadd.f32 %v8015_v55, %v7463_v60  ;;  %12015 = vmatprep.subr.bf16.mxu1 %v13697_v40  ;;  %v13711_v25 = vld [vmem:[%s17252_s5 + $0x370] sm:$0xff]  }
 0x5fe   :  { %v13029_v0 = vpop.f32.mrf.mxu1  ;;  %v8895_v31 = vadd.f32 %v16663_v38, %v16820_v16  ;;  %v16972_v10 = vpop.f32.mrf.mxu0  ;;  %v13712_v55 = vld [vmem:[%s17252_s5 + $0x330] sm:$0xff]  }
 0x5ff   :  { %v8873_v17 = vmax.f32 %v8849_v21, %v8850_v7  ;;  %v8855_v35 = vmax.f32 %v8807_v12, %v8815_v32  ;;  %v8813_v59 = vadd.f32 %v16773_v28, %v8138_v9  ;;  %v8141_v15 = vadd.f32 %v13029_v0, %v7466_v39  ;;  %v13705_v28 = vld [vmem:[%s17252_s5 + $0x1f8] sm:$0xff]   ;;  %v13710_v12 = vld [vmem:[%s17252_s5 + $0x1b0] sm:$0xff]   ;;  %v13715_v39 = vld [vmem:[%s17252_s5 + $0x368] sm:$0xff]  }
 0x600   :  { %12016 = vmatpush3.bf16.msra.mxu1 %v13698_v51  ;;  %v8018_v8 = vpop.f32.mrf.mxu1  ;;  %v8897_v24 = vadd.f32 %v16663_v38, %v8874_v19  ;;  %v8911_v33 = vmax.f32 %v8895_v31, 0.0  ;;  %v18099_v51 = vld [vmem:[#allocation24_spill] sm:$0xff]  ;;  %v18100_v19 = vld [vmem:[#allocation77_spill] sm:$0xff]  ;;  %v13714_v9 = vld [vmem:[%s17252_s5 + $0x1a8] sm:$0xff]  }
 0x601   :  { %v8896_v48 = vadd.f32 %v16663_v38, %v8873_v17  ;;  %v8853_v36 = vmax.f32 %v8805_v47, %v8813_v59  ;;  %v8816_v16 = vadd.f32 %v16795_v3, %v8141_v15  ;;  %v8139_v11 = vadd.f32 %v8018_v8, %v7464_v58  ;;  %12017 = vmatprep.subr.bf16.mxu1 %v13701_v53  ;;  %v16988_v53 = vpop.f32.mrf.mxu0  ;;  %v13716_v0 = vld [vmem:[%s17252_s5 + $0x328] sm:$0xff]   ;;  %v13719_v58 = vld [vmem:[%s17252_s5 + $0x360] sm:$0xff]   ;;  %v18101_v31 = vld [vmem:[#allocation20_spill] sm:$0xff] }
 0x602   :  { %v13032_v43 = vpop.f32.mrf.mxu1  ;;  %v8913_v21 = vmax.f32 %v8897_v24, 0.0  ;;  %v8959_v6 = vpack.c.bf16 %v8911_v33, %v8911_v33  ;;  %v7471_v7 = vadd.f32 %v18100_v19, %v18099_v51  ;;  %v18102_v17 = vld [vmem:[#allocation50_spill] sm:$0xff]  ;;  %v18106_v8 = vld [vmem:[#allocation143_spill] sm:$0xff]  ;;  %v13722_v19 = vld [vmem:[%s17252_s5 + $0x198] sm:$0xff]  }
 0x603   :  { %v8912_v40 = vmax.f32 %v8896_v48, 0.0  ;;  %v8856_v52 = vmax.f32 %v8808_v61, %v8816_v16  ;;  %v8814_v46 = vadd.f32 %v16812_v50, %v8139_v11  ;;  %v13709_v50 = vld [vmem:[%s17252_s5 + $0x1f0] sm:$0xff]   ;;  %v18103_v59 = vld [vmem:[#allocation26_spill] sm:$0xff] }
 0x604   :  { %12018 = vmatpush3.bf16.msra.mxu1 %v13702_v37  ;;  %v8031_v3 = vpop.f32.mrf.mxu1  ;;  %v8961_v56 = vpack.c.bf16 %v8913_v21, %v8913_v21  ;;  %v18104_v15 = vld [vmem:[#allocation78_spill] sm:$0xff]  ;;  %v18108_v21 = vld [vmem:[#allocation148_spill] sm:$0xff] }
 0x605   :  { %v8960_v60 = vpack.c.bf16 %v8912_v40, %v8912_v40  ;;  %v16954_v4 = vmax.f32 %v8855_v35, %v8856_v52  ;;  %v8854_v22 = vmax.f32 %v8806_v45, %v8814_v46  ;;  %12025 = vmatprep.subr.bf16.mxu1 %v13705_v28  ;;  %v7469_v35 = vadd.f32 %v18102_v17, %v18101_v31  ;;  %v18105_v61 = vld [vmem:[#allocation114_spill] sm:$0xff]  ;;  %v18107_v28 = vld [vmem:[#allocation120_spill] sm:$0xff]  ;;  %v13721_v40 = vld [vmem:[%s17252_s5 + $0x1d8] sm:$0xff]  }
 0x606   :  { %10191 = vmatprep.mubr.bf16.mxu0 %v8961_v56  ;;  %v13033_v2 = vpop.f32.mrf.mxu1  ;;  %v7472_v63 = vadd.f32 %v18104_v15, %v18103_v59  ;;  %v7467_v37 = vadd.f32 %v18106_v8, %v18105_v61  ;;  %v13718_v48 = vld [vmem:[%s17252_s5 + $0x1a0] sm:$0xff]   ;;  %v7477_v33 = vadd.f32 %v18108_v21, %v18107_v28  ;;  %v18110_v56 = vld [vmem:[#allocation76_spill] sm:$0xff]  ;;  %v18117_v31 = vld [vmem:[#allocation23_spill] sm:$0xff] }
 0x607   :  { %v16965_v5 = vmax.f32 %v8853_v36, %v8854_v22  ;;  %10112 = vmatmul.mubr.bf16.vlgmr.msra.gmra.mxu1 %v8956_v14  ;;  %10192 = vmatmul.mubr.bf16.vlgmr.msra.gmra.mxu0 %v8960_v60  ;;  %v8741_v36 = vpop.f32.mrf.mxu0  ;;  %v8144_v16 = vadd.f32 %v13032_v43, %v7469_v35  ;;  %v13720_v45 = vld [vmem:[%s17252_s5 + $0x320] sm:$0xff]   ;;  %v13723_v14 = vld [vmem:[%s17252_s5 + $0x358] sm:$0xff]   ;;  %v18111_v22 = vld [vmem:[#allocation27_spill] sm:$0xff] }
 0x608   :  { %12026 = vmatpush3.bf16.msra.mxu1 %v13706_v29  ;;  %10151 = vmatprep.mubr.bf16.mxu1 %v8959_v6  ;;  %v16967_v20 = vpop.f32.mrf.mxu1  ;;  %v8142_v52 = vadd.f32 %v8031_v3, %v7467_v37  ;;  %v18109_v46 = vld [vmem:[#allocation22_spill] sm:$0xff]  ;;  %v18115_v3 = vld [vmem:[#allocation75_spill] sm:$0xff]  ;;  %v18118_v17 = vld [vmem:[#allocation145_spill] sm:$0xff] }
 0x609   :  { %12092 = vmatpush3.bf16.msra.mxu0 %v13708_v27  ;;  %12027 = vmatprep.subr.bf16.mxu1 %v13709_v50  ;;  %v7470_v29 = vadd.f32 %v18110_v56, %v18109_v46  ;;  %v18112_v27 = vld [vmem:[#allocation149_spill] sm:$0xff]  ;;  %v7473_v35 = vadd.f32 %v18118_v17, %v18117_v31  ;;  %v18120_v15 = vld [vmem:[#allocation151_spill] sm:$0xff]  ;;  %v13733_v17 = vld [vmem:[%s17252_s5 + $0x1c0] sm:$0xff]  }
 0x60a   :  { %v13036_v44 = vpop.f32.mrf.mxu1  ;;  %12093 = vmatprep.subr.bf16.mxu0 %v13711_v25  ;;  %v7475_v50 = vadd.f32 %v18112_v27, %v18111_v22  ;;  %v18113_v25 = vld [vmem:[#allocation116_spill] sm:$0xff]  ;;  %v18121_v28 = vld [vmem:[#allocation147_spill] sm:$0xff] }
 0x60b   :  { %v8145_v6 = vadd.f32 %v13033_v2, %v7470_v29  ;;  %v13724_v2 = vld [vmem:[%s17252_s5 + $0x318] sm:$0xff]   ;;  %v18122_v21 = vld [vmem:[#allocation135_spill] sm:$0xff] }
 0x60c   :  { %12028 = vmatpush3.bf16.msra.mxu1 %v13710_v12  ;;  %v8047_v32 = vpop.f32.mrf.mxu1  ;;  %v18114_v12 = vld [vmem:[#allocation123_spill] sm:$0xff] }
 0x60d   :  { %v16990_v47 = vadd.f32 %v8047_v32, %v7471_v7  ;;  %12094 = vmatpush3.bf16.msra.mxu0 %v13712_v55  ;;  %12029 = vmatprep.subr.bf16.mxu1 %v13713_v26  ;;  %v7468_v55 = vadd.f32 %v18114_v12, %v18113_v25  ;;  %v13124_v7 = vpop.f32.mrf.mxu0  ;;  %v8819_v32 = vadd.f32 %v16825_v13, %v8144_v16  ;;  %v18119_v13 = vld [vmem:[#allocation122_spill] sm:$0xff]  ;;  %v13729_v22 = vld [vmem:[%s17252_s5 + $0x1c8] sm:$0xff]  }
 0x60e   :  { %v16998_v18 = vpop.f32.mrf.mxu1  ;;  %12095 = vmatprep.subr.bf16.mxu0 %v13715_v39  ;;  %v18116_v39 = vld [vmem:[#allocation150_spill] sm:$0xff]  ;;  %v8894_v12 = vadd.f32 %v16663_v38, %v16827_v41  ;;  %v13732_v41 = vld [vmem:[%s17252_s5 + $0x308] sm:$0xff]  }
 0x60f   :  { %v7478_v51 = vadd.f32 %v18116_v39, %v18115_v3  ;;  %v8143_v61 = vadd.f32 %v16967_v20, %v7468_v55  ;;  %v18127_v39 = vld [vmem:[#allocation31_spill] sm:$0xff] }
 0x610   :  { %12030 = vmatpush3.bf16.msra.mxu1 %v13714_v9  ;;  %v8050_v24 = vpop.f32.mrf.mxu1 }
 0x611   :  { %v17012_v11 = vadd.f32 %v8050_v24, %v7472_v63  ;;  %12096 = vmatpush3.bf16.msra.mxu0 %v13716_v0  ;;  %12031 = vmatprep.subr.bf16.mxu1 %v13717_v62  ;;  %v13725_v62 = vld [vmem:[%s17252_s5 + $0x1d0] sm:$0xff]   ;;  %v8818_v27 = vadd.f32 %v16870_v54, %v8143_v61 }
 0x612   :  { %v13040_v43 = vpop.f32.mrf.mxu1  ;;  %12097 = vmatprep.subr.bf16.mxu0 %v13719_v58  ;;  %v8817_v58 = vadd.f32 %v16837_v57, %v8142_v52  ;;  %v13727_v63 = vld [vmem:[%s17252_s5 + $0x350] sm:$0xff]   ;;  %v8820_v57 = vadd.f32 %v16850_v30, %v8145_v6 }
 0x613   :  { %v8152_v60 = vadd.f32 %v13040_v43, %v7477_v33  ;;  %v7481_v33 = vadd.f32 %v18122_v21, %v18121_v28  ;;  %v13728_v30 = vld [vmem:[%s17252_s5 + $0x310] sm:$0xff]  }
 0x614   :  { %12032 = vmatpush3.bf16.msra.mxu1 %v13718_v48  ;;  %v8063_v26 = vpop.f32.mrf.mxu1  ;;  %v8148_v48 = vadd.f32 %v13036_v44, %v7473_v35  ;;  %v18124_v44 = vld [vmem:[#allocation146_spill] sm:$0xff]  ;;  %v18125_v43 = vld [vmem:[#allocation124_spill] sm:$0xff]  ;;  %v8899_v35 = vadd.f32 %v16663_v38, %v16954_v4 }
 0x615   :  { %v8150_v9 = vadd.f32 %v8063_v26, %v7475_v50  ;;  %v8827_v0 = vadd.f32 %v16952_v34, %v8152_v60  ;;  %12098 = vmatpush3.bf16.msra.mxu0 %v13720_v45  ;;  %12033 = vmatprep.subr.bf16.mxu1 %v13721_v40  ;;  %v7476_v34 = vadd.f32 %v18120_v15, %v18119_v13  ;;  %v13726_v45 = vld [vmem:[%s17252_s5 + $0x190] sm:$0xff]   ;;  %v8754_v40 = vpop.f32.mrf.mxu0  ;;  %v8910_v15 = vmax.f32 %v8894_v12, 0.0  ;;  %v13749_v12 = vld [vmem:[%s17252_s5 + $0x2c8] sm:$0xff]  }
 0x616   :  { %v13041_v59 = vpop.f32.mrf.mxu1  ;;  %12099 = vmatprep.subr.bf16.mxu0 %v13723_v14  ;;  %v18126_v14 = vld [vmem:[#allocation61_spill] sm:$0xff]  ;;  %v8823_v55 = vadd.f32 %v16887_v42, %v8148_v48  ;;  %v8821_v42 = vadd.f32 %v16905_v23, %v16990_v47  ;;  %v8915_v21 = vmax.f32 %v8899_v35, 0.0  ;;  %v13766_v35 = vld [vmem:[%s17252_s5 + $0x388] sm:$0xff]  }
 0x617   :  { %v8859_v8 = vmax.f32 %v8819_v32, %v8827_v0  ;;  %v8153_v37 = vadd.f32 %v13041_v59, %v7478_v51  ;;  %v8825_v24 = vadd.f32 %v16972_v10, %v8150_v9  ;;  %v18123_v10 = vld [vmem:[#allocation118_spill] sm:$0xff]  ;;  %v7479_v60 = vadd.f32 %v18126_v14, %v18125_v43  ;;  %v18128_v51 = vld [vmem:[#allocation89_spill] sm:$0xff]  ;;  %v13730_v32 = vld [vmem:[%s17252_s5 + $0x188] sm:$0xff]   ;;  %v13125_v54 = vpop.f32.mrf.mxu0 }
 0x618   :  { %12034 = vmatpush3.bf16.msra.mxu1 %v13722_v19  ;;  %v8066_v16 = vpop.f32.mrf.mxu1  ;;  %v7474_v56 = vadd.f32 %v18124_v44, %v18123_v10  ;;  %v7482_v19 = vadd.f32 %v18128_v51, %v18127_v39  ;;  %v13740_v43 = vld [vmem:[%s17252_s5 + $0x2b0] sm:$0xff]   ;;  %v13741_v14 = vld [vmem:[%s17252_s5 + $0x2e8] sm:$0xff]   ;;  %v13752_v51 = vld [vmem:[%s17252_s5 + $0x280] sm:$0xff]  }
 0x619   :  { %v8857_v52 = vmax.f32 %v8817_v58, %v8825_v24  ;;  %v8151_v46 = vadd.f32 %v8066_v16, %v7476_v34  ;;  %v8828_v20 = vadd.f32 %v16988_v53, %v8153_v37  ;;  %12100 = vmatpush3.bf16.msra.mxu0 %v13724_v2  ;;  %12035 = vmatprep.subr.bf16.mxu1 %v13725_v62  ;;  %v13731_v53 = vld [vmem:[%s17252_s5 + $0x348] sm:$0xff]   ;;  %v18129_v62 = vld [vmem:[#allocation33_spill] sm:$0xff]  ;;  %v8757_v61 = vpop.f32.mrf.mxu0  ;;  %v13736_v16 = vld [vmem:[%s17252_s5 + $0x300] sm:$0xff]  }
 0x61a   :  { %v13044_v29 = vpop.f32.mrf.mxu1  ;;  %12101 = vmatprep.subr.bf16.mxu0 %v13727_v63  ;;  %v8149_v26 = vadd.f32 %v16998_v18, %v7474_v56  ;;  %v18130_v58 = vld [vmem:[#allocation43_spill] sm:$0xff] }
 0x61b   :  { %v8860_v50 = vmax.f32 %v8820_v57, %v8828_v20  ;;  %v8156_v6 = vadd.f32 %v13044_v29, %v7481_v33  ;;  %v8826_v25 = vadd.f32 %v8741_v36, %v8151_v46  ;;  %v7480_v31 = vadd.f32 %v18130_v58, %v18129_v62  ;;  %v13739_v29 = vld [vmem:[%s17252_s5 + $0x2f0] sm:$0xff]   ;;  %v13761_v62 = vld [vmem:[%s17252_s5 + $0x3d8] sm:$0xff]  }
 0x61c   :  { %12036 = vmatpush3.bf16.msra.mxu1 %v13726_v45  ;;  %v8079_v3 = vpop.f32.mrf.mxu1  ;;  %v8824_v34 = vadd.f32 %v16925_v49, %v8149_v26  ;;  %v13737_v49 = vld [vmem:[%s17252_s5 + $0x2f8] sm:$0xff]   ;;  %v8822_v33 = vadd.f32 %v16944_v1, %v17012_v11  ;;  %v8958_v46 = vpack.c.bf16 %v8910_v15, %v8910_v15  ;;  %v8963_v1 = vpack.c.bf16 %v8915_v21, %v8915_v21  ;;  %v11186_v21 = vld [vmem:[%s17255_s6] ss:$0 sm:$0xff] }
 0x61d   :  { %v8878_v9 = vmax.f32 %v8859_v8, %v8860_v50  ;;  %v8858_v0 = vmax.f32 %v8818_v27, %v8826_v25  ;;  %v8154_v36 = vadd.f32 %v8079_v3, %v7479_v60  ;;  %v8831_v2 = vadd.f32 %v13124_v7, %v8156_v6  ;;  %12102 = vmatpush3.bf16.msra.mxu0 %v13728_v30  ;;  %v13735_v7 = vld [vmem:[%s17252_s5 + $0x340] sm:$0xff]   ;;  %v13738_v30 = vld [vmem:[%s17252_s5 + $0x2b8] sm:$0xff]   ;;  %v13742_v60 = vld [vmem:[%s17252_s5 + $0x2a8] sm:$0xff]  }
 0x61e   :  { %v13045_v18 = vpop.f32.mrf.mxu1  ;;  %12037 = vmatprep.subr.bf16.mxu1 %v13729_v22  ;;  %12103 = vmatprep.subr.bf16.mxu0 %v13731_v53  ;;  %v13734_v8 = vld [vmem:[%s17252_s5 + $0x180] sm:$0xff]   ;;  %v13745_v27 = vld [vmem:[%s17252_s5 + $0x2d8] sm:$0xff]   ;;  %v13747_v6 = vld [vmem:[%s17252_s5 + $0x2d0] sm:$0xff]   ;;  %v8898_v26 = vadd.f32 %v16663_v38, %v16965_v5 }
 0x61f   :  { %v8877_v59 = vmax.f32 %v8857_v52, %v8858_v0  ;;  %v8863_v13 = vmax.f32 %v8823_v55, %v8831_v2  ;;  %v8157_v23 = vadd.f32 %v13045_v18, %v7482_v19  ;;  %v8829_v47 = vadd.f32 %v8754_v40, %v8154_v36  ;;  %v13743_v22 = vld [vmem:[%s17252_s5 + $0x2e0] sm:$0xff]   ;;  %v13746_v50 = vld [vmem:[%s17252_s5 + $0x298] sm:$0xff]   ;;  %v13748_v25 = vld [vmem:[%s17252_s5 + $0x290] sm:$0xff]  }
 0x620   :  { %12038 = vmatpush3.bf16.msra.mxu1 %v13730_v32  ;;  %v8082_v63 = vpop.f32.mrf.mxu1  ;;  %v8901_v37 = vadd.f32 %v16663_v38, %v8878_v9  ;;  %v13744_v53 = vld [vmem:[%s17252_s5 + $0x2a0] sm:$0xff]   ;;  %v13750_v55 = vld [vmem:[%s17252_s5 + $0x288] sm:$0xff]   ;;  %v8914_v19 = vmax.f32 %v8898_v26, 0.0  ;;  %v13753_v32 = vld [vmem:[%s17252_s5 + $0x3f8] sm:$0xff]  }
 0x621   :  { %v8900_v24 = vadd.f32 %v16663_v38, %v8877_v59  ;;  %v8861_v57 = vmax.f32 %v8821_v42, %v8829_v47  ;;  %v8155_v4 = vadd.f32 %v8082_v63, %v7480_v31  ;;  %v8832_v48 = vadd.f32 %v13125_v54, %v8157_v23  ;;  %12104 = vmatpush3.bf16.msra.mxu0 %v13732_v41  ;;  %v13751_v3 = vld [vmem:[%s17252_s5 + $0x2c0] sm:$0xff]   ;;  %v13754_v5 = vld [vmem:[%s17252_s5 + $0x3b8] sm:$0xff]   ;;  %v13756_v36 = vld [vmem:[%s17252_s5 + $0x3b0] sm:$0xff]  }
 0x622   :  { %12039 = vmatprep.subr.bf16.mxu1 %v13733_v17  ;;  %12105 = vmatprep.subr.bf16.mxu0 %v13735_v7  ;;  %v8917_v28 = vmax.f32 %v8901_v37, 0.0  ;;  %v8962_v9 = vpack.c.bf16 %v8914_v19, %v8914_v19  ;;  %v13757_v2 = vld [vmem:[%s17252_s5 + $0x3e8] sm:$0xff]   ;;  %v13759_v42 = vld [vmem:[%s17252_s5 + $0x3e0] sm:$0xff]   ;;  %v13762_v58 = vld [vmem:[%s17252_s5 + $0x398] sm:$0xff]  }
 0x623   :  { %v8916_v45 = vmax.f32 %v8900_v24, 0.0  ;;  %v8864_v40 = vmax.f32 %v8824_v34, %v8832_v48  ;;  %v8830_v52 = vadd.f32 %v8757_v61, %v8155_v4  ;;  %v13758_v41 = vld [vmem:[%s17252_s5 + $0x3a8] sm:$0xff]   ;;  %v13760_v18 = vld [vmem:[%s17252_s5 + $0x3a0] sm:$0xff]   ;;  %v13763_v31 = vld [vmem:[%s17252_s5 + $0x3d0] sm:$0xff]  }
 0x624   :  { %12040 = vmatpush3.bf16.msra.mxu1 %v13734_v8  ;;  %v8965_v20 = vpack.c.bf16 %v8917_v28, %v8917_v28  ;;  %v13764_v17 = vld [vmem:[%s17252_s5 + $0x390] sm:$0xff]   ;;  %v13765_v7 = vld [vmem:[%s17252_s5 + $0x3c8] sm:$0xff]   ;;  %v13779_v59 = vld [vmem:[%s17253_s4] ss:$0 sm:$0xff] }
 0x625   :  { %v8964_v10 = vpack.c.bf16 %v8916_v45, %v8916_v45  ;;  %v8880_v44 = vmax.f32 %v8863_v13, %v8864_v40  ;;  %v8862_v56 = vmax.f32 %v8822_v33, %v8830_v52  ;;  %12106 = vmatpush3.bf16.msra.mxu0 %v13736_v16  ;;  %12069 = vmatprep.subr.bf16.mxu1 %v13737_v49  ;;  %v13767_v23 = vld [vmem:[%s17252_s5 + $0x3c0] sm:$0xff]   ;;  %v13769_v4 = vld [vmem:[%s17254_s7 + $0x38] sm:$0xff]   ;;  %v13770_v48 = vld [vmem:[%s17254_s7 + $0x30] sm:$0xff]  }
 0x626   :  { %10271 = vmatprep.mubr.bf16.mxu0 %v8965_v20  ;;  %v13768_v47 = vld [vmem:[%s17252_s5 + $0x380] sm:$0xff]   ;;  %v13771_v16 = vld [vmem:[%s17254_s7 + $0x28] sm:$0xff]   ;;  %v13773_v28 = vld [vmem:[%s17254_s7 + $0x18] sm:$0xff]  }
 0x627   :  { %v17119_v11 = vmax.f32 %v8861_v57, %v8862_v56  ;;  %10152 = vmatmul.mubr.bf16.vlgmr.msra.gmra.mxu1 %v8958_v46  ;;  %v8903_v39 = vadd.f32 %v16663_v38, %v8880_v44  ;;  %v13755_v38 = vld [vmem:[%s17252_s5 + $0x3f0] sm:$0xff]   ;;  %v13781_v57 = vmov 0.0   ;;  %v13772_v49 = vld [vmem:[%s17254_s7 + $0x20] sm:$0xff]   ;;  %v13775_v44 = vld [vmem:[%s17254_s7 + $0x8] sm:$0xff]  }
 0x628   :  { %12070 = vmatpush3.bf16.msra.mxu1 %v13738_v30  ;;  %10231 = vmatprep.mubr.bf16.mxu1 %v8963_v1  ;;  %v13774_v45 = vld [vmem:[%s17254_s7 + $0x10] sm:$0xff]   ;;  %v13776_v56 = vld [vmem:[%s17254_s7] sm:$0xff]  }
 0x629   :  { %10272 = vmatmul.mubr.bf16.vlgmr.msra.gmra.mxu0 %v8964_v10  ;;  %12071 = vmatprep.subr.bf16.mxu1 %v13739_v29  ;;  %v8919_v54 = vmax.f32 %v8903_v39, 0.0  ;;  %v8902_v13 = vadd.f32 %v13779_v59, %v17119_v11 }
 0x62a   :  { %13126 = vmatprep.subr.bf16.mxu0 %v13781_v57  ;;  %13142 = vmatprep.mubr.msk.bf16.mxu0 %vm13782_vm2, %v13781_v57 }
 0x62b   :  { %v8967_v0 = vpack.c.bf16 %v8919_v54, %v8919_v54  ;;  %v8918_v15 = vmax.f32 %v8902_v13, 0.0  ;;  %13127 = vmatpush3.bf16.msra.mxu0 %v13769_v4 }
 0x62c   :  { %12072 = vmatpush3.bf16.msra.mxu1 %v13740_v43  ;;  %13128 = vmatprep.subr.bf16.mxu0 %v13781_v57 }
 0x62d   :  { %12073 = vmatprep.subr.bf16.mxu1 %v13741_v14  ;;  %v8966_v34 = vpack.c.bf16 %v8918_v15, %v8918_v15 }
 0x62f   :  { %13129 = vmatpush3.bf16.msra.mxu0 %v13770_v48 }
 0x630   :  { %12074 = vmatpush3.bf16.msra.mxu1 %v13742_v60  ;;  %13130 = vmatprep.subr.bf16.mxu0 %v13781_v57 }
 0x631   :  { %12075 = vmatprep.subr.bf16.mxu1 %v13743_v22 }
 0x633   :  { %13131 = vmatpush3.bf16.msra.mxu0 %v13771_v16 }
 0x634   :  { %12076 = vmatpush3.bf16.msra.mxu1 %v13744_v53  ;;  %13132 = vmatprep.subr.bf16.mxu0 %v13781_v57 }
 0x635   :  { %12077 = vmatprep.subr.bf16.mxu1 %v13745_v27 }
 0x637   :  { %13133 = vmatpush3.bf16.msra.mxu0 %v13772_v49 }
 0x638   :  { %12078 = vmatpush3.bf16.msra.mxu1 %v13746_v50  ;;  %13134 = vmatprep.subr.bf16.mxu0 %v13781_v57 }
 0x639   :  { %12079 = vmatprep.subr.bf16.mxu1 %v13747_v6 }
 0x63b   :  { %13135 = vmatpush3.bf16.msra.mxu0 %v13773_v28 }
 0x63c   :  { %12080 = vmatpush3.bf16.msra.mxu1 %v13748_v25  ;;  %13136 = vmatprep.subr.bf16.mxu0 %v13781_v57 }
 0x63d   :  { %12081 = vmatprep.subr.bf16.mxu1 %v13749_v12 }
 0x63f   :  { %13137 = vmatpush3.bf16.msra.mxu0 %v13774_v45 }
 0x640   :  { %12082 = vmatpush3.bf16.msra.mxu1 %v13750_v55  ;;  %13138 = vmatprep.subr.bf16.mxu0 %v13781_v57 }
 0x641   :  { %12083 = vmatprep.subr.bf16.mxu1 %v13751_v3 }
 0x643   :  { %13139 = vmatpush3.bf16.msra.mxu0 %v13775_v44 }
 0x644   :  { %12084 = vmatpush3.bf16.msra.mxu1 %v13752_v51  ;;  %13140 = vmatprep.subr.bf16.mxu0 %v13781_v57 }
 0x645   :  { %12113 = vmatprep.subr.bf16.mxu1 %v13753_v32 }
 0x647   :  { %10232 = vmatmul.mubr.bf16.vlgmr.msra.gmra.mxu1 %v8962_v9  ;;  %13141 = vmatpush3.bf16.msra.mxu0 %v13776_v56 }
 0x648   :  { %12114 = vmatpush3.bf16.msra.mxu1 %v13754_v5  ;;  %10311 = vmatprep.mubr.bf16.mxu1 %v8967_v0 }
 0x649   :  { %12115 = vmatprep.subr.bf16.mxu1 %v13755_v38 }
 0x64c   :  { %12116 = vmatpush3.bf16.msra.mxu1 %v13756_v36 }
 0x64d   :  { %12117 = vmatprep.subr.bf16.mxu1 %v13757_v2 }
 0x650   :  { %12118 = vmatpush3.bf16.msra.mxu1 %v13758_v41 }
 0x651   :  { %12119 = vmatprep.subr.bf16.mxu1 %v13759_v42 }
 0x654   :  { %12120 = vmatpush3.bf16.msra.mxu1 %v13760_v18 }
 0x655   :  { %12121 = vmatprep.subr.bf16.mxu1 %v13761_v62 }
 0x658   :  { %12122 = vmatpush3.bf16.msra.mxu1 %v13762_v58 }
 0x659   :  { %12123 = vmatprep.subr.bf16.mxu1 %v13763_v31 }
 0x65c   :  { %12124 = vmatpush3.bf16.msra.mxu1 %v13764_v17 }
 0x65d   :  { %12125 = vmatprep.subr.bf16.mxu1 %v13765_v7 }
 0x660   :  { %12126 = vmatpush3.bf16.msra.mxu1 %v13766_v35 }
 0x661   :  { %12127 = vmatprep.subr.bf16.mxu1 %v13767_v23  ;;  %v11315_v23 = vld [vmem:[%s17256_s8] ss:$0 sm:$0xff] }
 0x664   :  { %12128 = vmatpush3.bf16.msra.mxu1 %v13768_v47 }
 0x667   :  { %10312 = vmatmul.mubr.bf16.vlgmr.msra.gmra.mxu1 %v8966_v34 }
 0x687   :  { %v11975_v63 = vpop.f32.mrf.mxu1 }
 0x689   :  { %v11976_v61 = vpop.f32.mrf.mxu1 }
 0x68a   :  { %v11977_v8 = vadd.f32 %v11976_v61, %v11975_v63 }
 0x68b   :  { %v11978_v37 = vpop.f32.mrf.mxu1 }
 0x68c   :  { %v10034_v52 = vadd.f32 %v11977_v8, %v11186_v21 }
 0x68d   :  { %v11979_v24 = vpop.f32.mrf.mxu1 }
 0x6a7   :  { %v11997_v33 = vpop.f32.mrf.mxu1 }
 0x6a9   :  { %v11998_v40 = vpop.f32.mrf.mxu1 }
 0x6aa   :  { %v11999_v46 = vadd.f32 %v11998_v40, %v11997_v33 }
 0x6ab   :  { %v12000_v20 = vpop.f32.mrf.mxu1 }
 0x6ac   :  { %v10074_v30 = vadd.f32 %v11999_v46, %v10034_v52 }
 0x6ad   :  { %v12001_v10 = vpop.f32.mrf.mxu1 }
 0x6c7   :  { %v12019_v29 = vpop.f32.mrf.mxu1  ;;  %v12063_v1 = vpop.f32.mrf.mxu0 }
 0x6c9   :  { %v12020_v11 = vpop.f32.mrf.mxu1  ;;  %v12064_v43 = vpop.f32.mrf.mxu0 }
 0x6ca   :  { %v12021_v14 = vadd.f32 %v12020_v11, %v12019_v29  ;;  %v12065_v60 = vadd.f32 %v12064_v43, %v12063_v1 }
 0x6cb   :  { %v12022_v22 = vpop.f32.mrf.mxu1  ;;  %v12066_v53 = vpop.f32.mrf.mxu0 }
 0x6cc   :  { %v10114_v27 = vadd.f32 %v12021_v14, %v10074_v30 }
 0x6cd   :  { %v12023_v50 = vpop.f32.mrf.mxu1  ;;  %v12067_v6 = vpop.f32.mrf.mxu0 }
 0x6e7   :  { %v12041_v25 = vpop.f32.mrf.mxu1 }
 0x6e9   :  { %v12107_v12 = vpop.f32.mrf.mxu0  ;;  %v12042_v55 = vpop.f32.mrf.mxu1 }
 0x6ea   :  { %v12043_v26 = vadd.f32 %v12042_v55, %v12041_v25 }
 0x6eb   :  { %v12108_v3 = vpop.f32.mrf.mxu0  ;;  %v12044_v39 = vpop.f32.mrf.mxu1 }
 0x6ec   :  { %v10154_v51 = vadd.f32 %v12043_v26, %v10114_v27  ;;  %v12109_v18 = vadd.f32 %v12108_v3, %v12107_v12 }
 0x6ed   :  { %v12110_v19 = vpop.f32.mrf.mxu0  ;;  %v12045_v32 = vpop.f32.mrf.mxu1 }
 0x6ee   :  { %v10194_v54 = vadd.f32 %v12065_v60, %v10154_v51 }
 0x6ef   :  { %v12111_v5 = vpop.f32.mrf.mxu0 }
 0x707   :  { %v12085_v9 = vpop.f32.mrf.mxu1 }
 0x709   :  { %v12086_v38 = vpop.f32.mrf.mxu1 }
 0x70a   :  { %v12087_v2 = vadd.f32 %v12086_v38, %v12085_v9 }
 0x70b   :  { %v12088_v0 = vpop.f32.mrf.mxu1 }
 0x70c   :  { %v10234_v41 = vadd.f32 %v12087_v2, %v10194_v54 }
 0x70d   :  { %v12089_v36 = vpop.f32.mrf.mxu1 }
 0x70e   :  { %v10274_v58 = vadd.f32 %v12109_v18, %v10234_v41 }
 0x727   :  { %v12129_v42 = vpop.f32.mrf.mxu1 }
 0x729   :  { %v12130_v62 = vpop.f32.mrf.mxu1 }
 0x72a   :  { %v12131_v31 = vadd.f32 %v12130_v62, %v12129_v42 }
 0x72b   :  { %v12132_v17 = vpop.f32.mrf.mxu1 }
 0x72c   :  { %v10314_v7 = vadd.f32 %v12131_v31, %v10274_v58 }
 0x72d   :  { %v12133_v35 = vpop.f32.mrf.mxu1 }
 0x72e   :  { %v10319_v59 = vmax.f32 %v10314_v7, 0.0 }
 0x730   :  { %v10320_v13 = vpack.c.bf16 %v10319_v59, %v10319_v59 }
 0x732   :  { %13143 = vmatmul.mubr.bf16.vlgmr.msra.gmra.mxu0 %v10320_v13 }
 0x7f2   :  { %v10426_v47 = vpop.f32.mrf.mxu0 }
 0x7f3   :  { %v10427_v15 = vadd.f32 %v11315_v23, %v10426_v47 }
 0x7f4   :  { %v13144_v34 = vpop.f32.mrf.mxu0 }
 0x7f5   :  { %10432 = vst [vmem:[%s17257_s9] sm:$0xff] %v10427_v15 }
 0x7f6   :  { %v10429_v63 = vpop.f32.mrf.mxu0 }
 0x7f8   :  { %v13145_v61 = vpop.f32.mrf.mxu0 }

</bundles_post_ra>
